<compile_context>
chip_gen: v5e
topology: v5e:2x2
jax: 0.10.0
libtpu: 0.0.40
codegen_flags: <defaults>
</compile_context>

<pallas_src>
import functools

import jax
import jax.numpy as jnp
from jax.experimental import pallas as pl
from jax.experimental.pallas import tpu as pltpu


# ---------------------------------------------------------------------------
# Tiling helpers
# ---------------------------------------------------------------------------

def _vmem_budget_bytes():
    """Per-generation VMEM budget used for tile sizing and vmem_limit_bytes."""
    cap = 128 * 1024 * 1024                                # v5e / v6e physical
    try:
        cap = int(pltpu.get_tpu_info().vmem_capacity_bytes)  # 64 MiB on v7x
    except Exception:
        pass
    return int(min(cap // 2, 64 * 1024 * 1024))


def _largest_divisor_leq(total, target):
    target = max(1, min(total, target))
    for b in range(target, 0, -1):
        if total % b == 0:
            return b
    return 1


def _pick_block_padded(total, target, align=8):
    """Aligned block size <= target; pad `total` if no aligned divisor exists."""
    target = max(align, (min(total, target) // align) * align)
    for b in range(target, 0, -align):
        if total % b == 0:
            return b, total
    padded = ((total + target - 1) // target) * target
    return target, padded


# ---------------------------------------------------------------------------
# Pallas kernels
# ---------------------------------------------------------------------------

def _xconv_kernel(xc_ref, w_ref, o_ref):
    """Gate-fused input-side conv: ONE MXU matmul with K = 9*Cin (all taps fused).

    xc_ref : (Bb, H, W, 9*Cin)  bf16  im2col view of the zero-padded input frames
    w_ref  : (9*Cin, 4*Cout)    bf16  tap-major, gate-fused weight
    o_ref  : (Bb, H, W, 4*Cout) bf16  gate pre-activations (bias added later, in f32)
    """
    Bb, H, W, K = xc_ref.shape
    C4 = w_ref.shape[-1]
    x = xc_ref[...].reshape(Bb * H * W, K)
    y = jnp.dot(x, w_ref[...], preferred_element_type=jnp.float32)
    o_ref[...] = y.reshape(Bb, H, W, C4).astype(o_ref.dtype)


def _lstm_step_kernel(xg_ref, b_ref, wh_ref, wci_ref, wcf_ref, wco_ref,
                      h_ref, stats_ref, him_ref, c_ref, *, H, W):
    """One ConvLSTM timestep for one batch block.

    Grid = (batch_blocks ["parallel"], T ["arbitrary"]).  The recurrent hidden state is
    kept in VMEM scratch already in im2col form (`him_ref`: 9 shifted tap slots of the
    previous H, borders permanently zero), so the hidden-state 3x3 conv is a single MXU
    matmul with K = 9*Cout.  Cell state stays f32.  BatchNorm sum / sum-of-squares are
    accumulated into `stats_ref` (resident output block), removing a later HBM pass.

    xg_ref   : (1, NB, H, W, 4*Cout) bf16  x-side gate pre-activations (no bias)
    b_ref    : (1, 4*Cout)           f32   conv bias
    wh_ref   : (9*Cout, 4*Cout)      bf16  tap-major, gate-fused recurrent weight
    wci/wcf/wco_ref : (H, W, Cout)   f32   peephole weights (broadcast over NB)
    h_ref    : (1, NB, H, W, Cout)   f32   hidden state output for this timestep
    stats_ref: (1, 2, Cout)          f32   running [sum, sum_sq] of H for this batch block
    him_ref  : (NB, H, W, 9*Cout)    f32   scratch: im2col of previous H
    c_ref    : (NB, H, W, Cout)      f32   scratch: cell state
    """
    t = pl.program_id(1)
    NB = c_ref.shape[0]
    Cout = c_ref.shape[-1]
    C4 = 4 * Cout
    M = NB * H * W

    @pl.when(t == 0)
    def _():
        him_ref[...] = jnp.zeros_like(him_ref)
        c_ref[...] = jnp.zeros_like(c_ref)
        stats_ref[...] = jnp.zeros_like(stats_ref)

    # x-part (bf16 -> f32) + bias + recurrent conv as ONE wide-K matmul.
    acc = xg_ref[...].astype(jnp.float32).reshape(M, C4) + b_ref[...]
    hcat = him_ref[...].reshape(M, 9 * Cout).astype(jnp.bfloat16)  # single bulk cast
    acc = acc + jnp.dot(hcat, wh_ref[...], preferred_element_type=jnp.float32)

    def gate(k):
        return acc[:, k * Cout:(k + 1) * Cout].reshape(NB, H, W, Cout)

    gi, gf, gc, go = gate(0), gate(1), gate(2), gate(3)   # torch.chunk order: i, f, C, o

    c_prev = c_ref[...]
    i_g = jax.nn.sigmoid(gi + wci_ref[...] * c_prev)      # (H,W,C) broadcasts over NB
    f_g = jax.nn.sigmoid(gf + wcf_ref[...] * c_prev)
    c_new = f_g * c_prev + i_g * jnp.maximum(gc, 0.0)     # activation = 'relu'
    o_g = jax.nn.sigmoid(go + wco_ref[...] * c_new)
    h_new = o_g * jnp.maximum(c_new, 0.0)

    c_ref[...] = c_new
    h_ref[...] = h_new.reshape(1, NB, H, W, Cout)

    # Scatter h_new into the 9 shifted tap slots used by the NEXT timestep's matmul.
    # Border positions are never written, so they remain zero ('same' padding).
    for ky in range(3):
        for kx in range(3):
            dy, dx = ky - 1, kx - 1
            tap = ky * 3 + kx
            him_ref[:, max(0, -dy):H + min(0, -dy),
                    max(0, -dx):W + min(0, -dx),
                    tap * Cout:(tap + 1) * Cout] = \
                h_new[:, max(0, dy):H + min(0, dy), max(0, dx):W + min(0, dx), :]

    # Fused BatchNorm3d statistics (biased; finalized by tiny plain-JAX glue).
    hs2 = h_new.reshape(M, Cout)
    s = jnp.sum(hs2, axis=0, keepdims=True)
    ss = jnp.sum(hs2 * hs2, axis=0, keepdims=True)
    stats_ref[...] = stats_ref[...] + jnp.concatenate([s, ss], axis=0)[None]


def _bn_norm_kernel(x_ref, mean_ref, rstd_ref, o_ref):
    """Normalize a lane-dense row block. x/o: (Mb, CW); mean/rstd: (1, CW)."""
    o_ref[...] = (x_ref[...] - mean_ref[...]) * rstd_ref[...]


# ---------------------------------------------------------------------------
# Forward wrapper
# ---------------------------------------------------------------------------

def convcell_forward(x, params, eps=1e-5):
    """Convcell forward: x (N, Cin, T, H, W) -> (N, Cout, T, H, W)."""
    N, Cin, T, H, W = x.shape
    Cout = params["wci"].shape[-1]
    C4 = 4 * Cout
    budget = _vmem_budget_bytes()

    # ---- phase 1: hoisted, gate-fused input conv for ALL timesteps (one K=9*Cin matmul)
    # TODO(synk): the NCDHW->TNHWC transpose and the im2col gather are left to XLA; the
    # raw input (Cin channels) is tiny compared to the gate tensor produced here.
    xt = jnp.transpose(x, (2, 0, 3, 4, 1))                        # (T, N, H, W, Cin)
    B = T * N
    xp = jnp.pad(xt.reshape(B, H, W, Cin).astype(jnp.bfloat16),
                 ((0, 0), (1, 1), (1, 1), (0, 0)))
    xcol = jnp.concatenate(
        [xp[:, ky:ky + H, kx:kx + W, :] for ky in range(3) for kx in range(3)],
        axis=-1)                                                  # (B, H, W, 9*Cin) bf16

    per_row = H * W * (9 * Cin * 6 + C4 * 8)                      # rough VMEM bytes / row
    Bb = _largest_divisor_leq(B, max(1, budget // (2 * per_row)))
    xg = pl.pallas_call(
        _xconv_kernel,
        out_shape=jax.ShapeDtypeStruct((B, H, W, C4), jnp.bfloat16),
        grid=(B // Bb,),
        in_specs=[pl.BlockSpec((Bb, H, W, 9 * Cin), lambda b: (b, 0, 0, 0)),
                  pl.BlockSpec((9 * Cin, C4), lambda b: (0, 0))],
        out_specs=pl.BlockSpec((Bb, H, W, C4), lambda b: (b, 0, 0, 0)),
        compiler_params=pltpu.CompilerParams(
            dimension_semantics=("parallel",), vmem_limit_bytes=budget),
    )(xcol, params["wx"])
    xg = xg.reshape(T, N, H, W, C4)

    # ---- phase 2: recurrence over T; state kept in VMEM scratch (im2col of H + cell C);
    #               BN statistics fused in (saves one full HBM read of h_seq).
    n_bb = 2 if (N >= 2 and N % 2 == 0) else 1     # batch-parallel axis (2 TCs on v7x)
    NB = N // n_bb
    h_seq, stats = pl.pallas_call(
        functools.partial(_lstm_step_kernel, H=H, W=W),
        out_shape=(jax.ShapeDtypeStruct((T, N, H, W, Cout), jnp.float32),
                   jax.ShapeDtypeStruct((n_bb, 2, Cout), jnp.float32)),
        grid=(n_bb, T),
        in_specs=[pl.BlockSpec((1, NB, H, W, C4), lambda nb, t: (t, nb, 0, 0, 0)),
                  pl.BlockSpec((1, C4), lambda nb, t: (0, 0)),
                  pl.BlockSpec((9 * Cout, C4), lambda nb, t: (0, 0)),
                  pl.BlockSpec((H, W, Cout), lambda nb, t: (0, 0, 0)),
                  pl.BlockSpec((H, W, Cout), lambda nb, t: (0, 0, 0)),
                  pl.BlockSpec((H, W, Cout), lambda nb, t: (0, 0, 0))],
        out_specs=(pl.BlockSpec((1, NB, H, W, Cout), lambda nb, t: (t, nb, 0, 0, 0)),
                   pl.BlockSpec((1, 2, Cout), lambda nb, t: (nb, 0, 0))),
        scratch_shapes=[pltpu.VMEM((NB, H, W, 9 * Cout), jnp.float32),
                        pltpu.VMEM((NB, H, W, Cout), jnp.float32)],
        compiler_params=pltpu.CompilerParams(
            dimension_semantics=("parallel", "arbitrary"), vmem_limit_bytes=budget),
    )(xg, params["b"].reshape(1, C4), params["wh"],
      params["wci"], params["wcf"], params["wco"])

    # ---- phase 3: BatchNorm3d finalize + normalize (training-mode stats, gamma=1, beta=0)
    count = float(T * N * H * W)
    tot = jnp.sum(stats, axis=0)                           # (2, Cout) tiny finalization
    mean = tot[0] / count
    var = jnp.maximum(tot[1] / count - mean * mean, 0.0)   # guard cancellation
    rstd = jax.lax.rsqrt(var + eps)

    M0 = T * N * H * W
    G = (128 // Cout) if (Cout < 128 and 128 % Cout == 0
                          and M0 % max(1, 128 // Cout) == 0) else 1
    CW = Cout * G
    M2 = M0 // G
    x2 = h_seq.reshape(M2, CW)                             # lane-dense (>=128) row view
    mean_t = jnp.tile(mean.reshape(1, Cout), (1, G))
    rstd_t = jnp.tile(rstd.reshape(1, Cout), (1, G))

    Mb, Mp = _pick_block_padded(M2, max(8, budget // (CW * 32)), align=8)
    if Mp != M2:
        x2 = jnp.pad(x2, ((0, Mp - M2), (0, 0)))
    y2 = pl.pallas_call(
        _bn_norm_kernel,
        out_shape=jax.ShapeDtypeStruct((Mp, CW), jnp.float32),
        grid=(Mp // Mb,),
        in_specs=[pl.BlockSpec((Mb, CW), lambda i: (i, 0)),
                  pl.BlockSpec((1, CW), lambda i: (0, 0)),
                  pl.BlockSpec((1, CW), lambda i: (0, 0))],
        out_specs=pl.BlockSpec((Mb, CW), lambda i: (i, 0)),
        compiler_params=pltpu.CompilerParams(
            dimension_semantics=("parallel",), vmem_limit_bytes=budget),
    )(x2, mean_t, rstd_t)
    if Mp != M2:
        y2 = y2[:M2]

    y = y2.reshape(T, N, H, W, Cout)
    # TODO(synk): the final (T,N,H,W,C)->(N,C,T,H,W) transpose stays in XLA; emitting it
    # from the norm kernel would force a <128-lane output layout at these frame sizes.
    return jnp.transpose(y, (1, 4, 0, 2, 3))


# ---------------------------------------------------------------------------
# Parameter init (mirrors the torch module's initialization scheme)
# ---------------------------------------------------------------------------

def init_convcell_params(key, cin, cout, frame_size):
    H, W = frame_size
    k = jax.random.split(key, 4)

    # nn.Conv2d(cin+cout, 4*cout, 3, padding=1): xavier_uniform weight, zero bias.
    fan_in, fan_out = (cin + cout) * 9, 4 * cout * 9
    a = (6.0 / (fan_in + fan_out)) ** 0.5
    w_full = jax.random.uniform(k[0], (4 * cout, cin + cout, 3, 3), jnp.float32, -a, a)
    # Tap-major, gate-fused matmul layouts: rows = (ky, kx, ci), cols = 4*cout gates.
    wx = jnp.transpose(w_full[:, :cin], (2, 3, 1, 0)).reshape(9 * cin, 4 * cout)
    wh = jnp.transpose(w_full[:, cin:], (2, 3, 1, 0)).reshape(9 * cout, 4 * cout)

    def peephole(kk):
        aa = (6.0 / (H * W + cout * W)) ** 0.5          # xavier_uniform_ on (cout, H, W)
        p = jax.random.uniform(kk, (cout, H, W), jnp.float32, -aa, aa)
        return jnp.transpose(p, (1, 2, 0))              # -> (H, W, Cout) channels-last

    return dict(
        wx=wx.astype(jnp.bfloat16),
        wh=wh.astype(jnp.bfloat16),
        b=jnp.zeros((4 * cout,), jnp.float32),
        wci=peephole(k[1]), wcf=peephole(k[2]), wco=peephole(k[3]))


# ---------------------------------------------------------------------------
# Pure-JAX f32 reference (same module semantics) for correctness checking
# ---------------------------------------------------------------------------

def ref_convcell(x, params, eps=1e-5):
    N, Cin, T, H, W = x.shape
    Cout = params["wci"].shape[-1]
    wx = params["wx"].astype(jnp.float32).reshape(9, Cin, 4 * Cout)
    wh = params["wh"].astype(jnp.float32).reshape(9, Cout, 4 * Cout)
    b = params["b"]
    wci, wcf, wco = params["wci"], params["wcf"], params["wco"]

    def conv3x3(xin, w):                    # xin (B,H,W,Ci), w (9,Ci,Co)
        xpad = jnp.pad(xin, ((0, 0), (1, 1), (1, 1), (0, 0)))
        out = jnp.zeros(xin.shape[:3] + (w.shape[-1],), jnp.float32)
        for ky in range(3):
            for kx in range(3):
                out = out + jnp.einsum('bhwc,cd->bhwd',
                                       xpad[:, ky:ky + H, kx:kx + W, :], w[ky * 3 + kx])
        return out

    xt = jnp.transpose(x, (2, 0, 3, 4, 1)).astype(jnp.float32)   # (T,N,H,W,Cin)
    h = jnp.zeros((N, H, W, Cout), jnp.float32)
    c = jnp.zeros((N, H, W, Cout), jnp.float32)
    hs = []
    for t in range(T):
        g = conv3x3(xt[t], wx) + conv3x3(h, wh) + b
        gi, gf, gc, go = [g[..., k * Cout:(k + 1) * Cout] for k in range(4)]
        i = jax.nn.sigmoid(gi + wci * c)
        f = jax.nn.sigmoid(gf + wcf * c)
        c = f * c + i * jnp.maximum(gc, 0.0)
        o = jax.nn.sigmoid(go + wco * c)
        h = o * jnp.maximum(c, 0.0)
        hs.append(h)
    hseq = jnp.stack(hs, axis=0)                                  # (T,N,H,W,Cout)
    flat = hseq.reshape(-1, Cout)
    mean = jnp.mean(flat, axis=0, keepdims=True)
    var = jnp.mean(flat * flat, axis=0, keepdims=True) - mean ** 2
    y = (hseq - mean) * jax.lax.rsqrt(var + eps)
    return jnp.transpose(y, (1, 4, 0, 2, 3))                      # (N,Cout,T,H,W)


# ---------------------------------------------------------------------------
# Demo
# ---------------------------------------------------------------------------

if __name__ == "__main__":
    # Convcell(in_channels=4, out_channels=32, frame_size=(16,16)), batch=2, seq=8.
    N, Cin, Cout, T, H, W = 2, 4, 32, 8, 16, 16

    root = jax.random.PRNGKey(0)
    key_x, key_p = jax.random.split(root)
    params = init_convcell_params(key_p, Cin, Cout, (H, W))
    x = jax.random.normal(key_x, (N, Cin, T, H, W), jnp.float32)

    fwd = jax.jit(convcell_forward)
    y = jax.block_until_ready(fwd(x, params))

    assert y.shape == (N, Cout, T, H, W), y.shape
    assert bool(jnp.all(jnp.isfinite(y)))

    # BatchNorm(train) output: per-channel mean ~ 0
    ch = jnp.transpose(y, (1, 0, 2, 3, 4)).reshape(Cout, -1)
    assert bool(jnp.all(jnp.abs(jnp.mean(ch, axis=1)) < 5e-3))

    # Compare against the pure-JAX f32 reference (loose tol: bf16 matmul inputs / bf16 xg).
    y_ref = ref_convcell(x, params)
    err = float(jnp.max(jnp.abs(y - y_ref)))
    assert err < 0.2, f"max abs error vs reference: {err}"

    print("KERNEL_OK")
</pallas_src>

<mosaic_0001>
module attributes {stable_mosaic.version = 11 : i64} {
  func.func @_xconv_kernel(%arg0: i32, %arg1: memref<16x16x16x36xbf16, #tpu.memory_space<vmem>>, %arg2: memref<36x128xbf16, #tpu.memory_space<vmem>>, %arg3: memref<16x16x16x128xbf16, #tpu.memory_space<vmem>>) attributes {dimension_semantics = [#tpu.dimension_semantics<parallel>], iteration_bounds = array<i64: 1>, scalar_prefetch = 0 : i64, scratch_operands = 0 : i64, tpu.core_type = #tpu.core_type<tc>, window_params = [{transform_indices = @transform_0, window_bounds = array<i64: 16, 16, 16, 36>}, {pipeline_mode = #tpu.pipeline_mode<synchronous>, transform_indices = @transform_1, window_bounds = array<i64: 36, 128>}, {transform_indices = @transform_2, window_bounds = array<i64: 16, 16, 16, 128>}]} {
    %c0 = arith.constant 0 : index
    %c0_0 = arith.constant 0 : index
    %c0_1 = arith.constant 0 : index
    %c0_2 = arith.constant 0 : index
    %0 = vector.load %arg1[%c0, %c0_0, %c0_1, %c0_2] : memref<16x16x16x36xbf16, #tpu.memory_space<vmem>>, vector<16x16x16x36xbf16>
    %1 = vector.shape_cast %0 : vector<16x16x16x36xbf16> to vector<4096x36xbf16>
    %c0_3 = arith.constant 0 : index
    %c0_4 = arith.constant 0 : index
    %2 = vector.load %arg2[%c0_3, %c0_4] : memref<36x128xbf16, #tpu.memory_space<vmem>>, vector<36x128xbf16>
    %cst = arith.constant dense<0.000000e+00> : vector<4096x128xf32>
    %3 = tpu.matmul %1, %2, %cst {dimension_numbers = #tpu.dot_dimension_numbers<[1], [0], [0], [1], [0, 0, 1, 1], [], []>} : vector<4096x36xbf16>, vector<36x128xbf16>, vector<4096x128xf32> -> vector<4096x128xf32>
    %4 = vector.shape_cast %3 : vector<4096x128xf32> to vector<16x16x16x128xf32>
    %5 = arith.truncf %4 : vector<16x16x16x128xf32> to vector<16x16x16x128xbf16>
    %c0_5 = arith.constant 0 : index
    %c0_6 = arith.constant 0 : index
    %c0_7 = arith.constant 0 : index
    %c0_8 = arith.constant 0 : index
    %6 = vector.load %arg3[%c0_5, %c0_6, %c0_7, %c0_8] : memref<16x16x16x128xbf16, #tpu.memory_space<vmem>>, vector<16x16x16x128xbf16>
    tpu.vector_store %arg3[%c0_5, %c0_6, %c0_7, %c0_8], %5 {strides = array<i32>} : memref<16x16x16x128xbf16, #tpu.memory_space<vmem>>, vector<16x16x16x128xbf16>,
    return
  }
  func.func @transform_0(%arg0: i32) -> (i32, i32, i32, i32) {
    %c0_i32 = arith.constant 0 : i32
    %c0_i32_0 = arith.constant 0 : i32
    %c0_i32_1 = arith.constant 0 : i32
    %c0_i32_2 = arith.constant 0 : i32
    return %arg0, %c0_i32, %c0_i32_0, %c0_i32_1 : i32, i32, i32, i32
  }
  func.func @transform_1(%arg0: i32) -> (i32, i32) {
    %c0_i32 = arith.constant 0 : i32
    %c0_i32_0 = arith.constant 0 : i32
    %c0_i32_1 = arith.constant 0 : i32
    return %c0_i32, %c0_i32_0 : i32, i32
  }
  func.func @transform_2(%arg0: i32) -> (i32, i32, i32, i32) {
    %c0_i32 = arith.constant 0 : i32
    %c0_i32_0 = arith.constant 0 : i32
    %c0_i32_1 = arith.constant 0 : i32
    %c0_i32_2 = arith.constant 0 : i32
    return %arg0, %c0_i32, %c0_i32_0, %c0_i32_1 : i32, i32, i32, i32
  }
}

module attributes {stable_mosaic.version = 11 : i64} {
  func.func @_lstm_step_kernel(%arg0: i32, %arg1: i32, %arg2: memref<1x1x16x16x128xbf16, #tpu.memory_space<vmem>>, %arg3: memref<1x128xf32, #tpu.memory_space<vmem>>, %arg4: memref<288x128xbf16, #tpu.memory_space<vmem>>, %arg5: memref<16x16x32xf32, #tpu.memory_space<vmem>>, %arg6: memref<16x16x32xf32, #tpu.memory_space<vmem>>, %arg7: memref<16x16x32xf32, #tpu.memory_space<vmem>>, %arg8: memref<1x1x16x16x32xf32, #tpu.memory_space<vmem>>, %arg9: memref<1x2x32xf32, #tpu.memory_space<vmem>>, %arg10: memref<1x16x16x288xf32, #tpu.memory_space<vmem>>, %arg11: memref<1x16x16x32xf32, #tpu.memory_space<vmem>>) attributes {dimension_semantics = [#tpu.dimension_semantics<parallel>, #tpu.dimension_semantics<arbitrary>], iteration_bounds = array<i64: 2, 8>, scalar_prefetch = 0 : i64, scratch_operands = 2 : i64, tpu.core_type = #tpu.core_type<tc>, window_params = [{transform_indices = @transform_0, window_bounds = array<i64: 1, 1, 16, 16, 128>}, {pipeline_mode = #tpu.pipeline_mode<synchronous>, transform_indices = @transform_1, window_bounds = array<i64: 1, 128>}, {pipeline_mode = #tpu.pipeline_mode<synchronous>, transform_indices = @transform_2, window_bounds = array<i64: 288, 128>}, {pipeline_mode = #tpu.pipeline_mode<synchronous>, transform_indices = @transform_3, window_bounds = array<i64: 16, 16, 32>}, {pipeline_mode = #tpu.pipeline_mode<synchronous>, transform_indices = @transform_4, window_bounds = array<i64: 16, 16, 32>}, {pipeline_mode = #tpu.pipeline_mode<synchronous>, transform_indices = @transform_5, window_bounds = array<i64: 16, 16, 32>}, {transform_indices = @transform_6, window_bounds = array<i64: 1, 1, 16, 16, 32>}, {transform_indices = @transform_7, window_bounds = array<i64: 1, 2, 32>}]} {
    %c0_i32 = arith.constant 0 : i32
    %0 = arith.cmpi eq, %arg1, %c0_i32 : i32
    %1 = arith.extui %0 : i1 to i32
    %c0_i32_0 = arith.constant 0 : i32
    %2 = arith.cmpi ne, %1, %c0_i32_0 : i32
    scf.if %2 {
      %cst_75 = arith.constant 0.000000e+00 : f32
      %90 = vector.broadcast %cst_75 : f32 to vector<1x16x16x288xf32>
      %c0_76 = arith.constant 0 : index
      %c0_77 = arith.constant 0 : index
      %c0_78 = arith.constant 0 : index
      %c0_79 = arith.constant 0 : index
      %91 = vector.load %arg10[%c0_76, %c0_77, %c0_78, %c0_79] : memref<1x16x16x288xf32, #tpu.memory_space<vmem>>, vector<1x16x16x288xf32>
      tpu.vector_store %arg10[%c0_76, %c0_77, %c0_78, %c0_79], %90 {strides = array<i32>} : memref<1x16x16x288xf32, #tpu.memory_space<vmem>>, vector<1x16x16x288xf32>,
      %cst_80 = arith.constant 0.000000e+00 : f32
      %92 = vector.broadcast %cst_80 : f32 to vector<1x16x16x32xf32>
      %c0_81 = arith.constant 0 : index
      %c0_82 = arith.constant 0 : index
      %c0_83 = arith.constant 0 : index
      %c0_84 = arith.constant 0 : index
      %93 = vector.load %arg11[%c0_81, %c0_82, %c0_83, %c0_84] : memref<1x16x16x32xf32, #tpu.memory_space<vmem>>, vector<1x16x16x32xf32>
      tpu.vector_store %arg11[%c0_81, %c0_82, %c0_83, %c0_84], %92 {strides = array<i32>} : memref<1x16x16x32xf32, #tpu.memory_space<vmem>>, vector<1x16x16x32xf32>,
      %cst_85 = arith.constant 0.000000e+00 : f32
      %94 = vector.broadcast %cst_85 : f32 to vector<1x2x32xf32>
      %c0_86 = arith.constant 0 : index
      %c0_87 = arith.constant 0 : index
      %c0_88 = arith.constant 0 : index
      %95 = vector.load %arg9[%c0_86, %c0_87, %c0_88] : memref<1x2x32xf32, #tpu.memory_space<vmem>>, vector<1x2x32xf32>
      tpu.vector_store %arg9[%c0_86, %c0_87, %c0_88], %94 {strides = array<i32>} : memref<1x2x32xf32, #tpu.memory_space<vmem>>, vector<1x2x32xf32>,
    } else {
    }
    %c0 = arith.constant 0 : index
    %c0_1 = arith.constant 0 : index
    %c0_2 = arith.constant 0 : index
    %c0_3 = arith.constant 0 : index
    %c0_4 = arith.constant 0 : index
    %3 = vector.load %arg2[%c0, %c0_1, %c0_2, %c0_3, %c0_4] : memref<1x1x16x16x128xbf16, #tpu.memory_space<vmem>>, vector<1x1x16x16x128xbf16>
    %4 = arith.extf %3 : vector<1x1x16x16x128xbf16> to vector<1x1x16x16x128xf32>
    %5 = vector.shape_cast %4 : vector<1x1x16x16x128xf32> to vector<256x128xf32>
    %c0_5 = arith.constant 0 : index
    %c0_6 = arith.constant 0 : index
    %6 = vector.load %arg3[%c0_5, %c0_6] : memref<1x128xf32, #tpu.memory_space<vmem>>, vector<1x128xf32>
    %7 = vector.broadcast %6 : vector<1x128xf32> to vector<256x128xf32>
    %8 = arith.addf %5, %7 : vector<256x128xf32>
    %c0_7 = arith.constant 0 : index
    %c0_8 = arith.constant 0 : index
    %c0_9 = arith.constant 0 : index
    %c0_10 = arith.constant 0 : index
    %9 = vector.load %arg10[%c0_7, %c0_8, %c0_9, %c0_10] : memref<1x16x16x288xf32, #tpu.memory_space<vmem>>, vector<1x16x16x288xf32>
    %10 = vector.shape_cast %9 : vector<1x16x16x288xf32> to vector<256x288xf32>
    %11 = arith.truncf %10 : vector<256x288xf32> to vector<256x288xbf16>
    %c0_11 = arith.constant 0 : index
    %c0_12 = arith.constant 0 : index
    %12 = vector.load %arg4[%c0_11, %c0_12] : memref<288x128xbf16, #tpu.memory_space<vmem>>, vector<288x128xbf16>
    %cst = arith.constant dense<0.000000e+00> : vector<256x128xf32>
    %13 = tpu.matmul %11, %12, %cst {dimension_numbers = #tpu.dot_dimension_numbers<[1], [0], [0], [1], [0, 0, 1, 1], [], []>} : vector<256x288xbf16>, vector<288x128xbf16>, vector<256x128xf32> -> vector<256x128xf32>
    %14 = arith.addf %8, %13 : vector<256x128xf32>
    %15 = vector.extract_strided_slice %14 {offsets = [0, 0], sizes = [256, 32], strides = [1, 1]} : vector<256x128xf32> to vector<256x32xf32>
    %16 = vector.shape_cast %15 : vector<256x32xf32> to vector<1x16x16x32xf32>
    %17 = vector.extract_strided_slice %14 {offsets = [0, 32], sizes = [256, 32], strides = [1, 1]} : vector<256x128xf32> to vector<256x32xf32>
    %18 = vector.shape_cast %17 : vector<256x32xf32> to vector<1x16x16x32xf32>
    %19 = vector.extract_strided_slice %14 {offsets = [0, 64], sizes = [256, 32], strides = [1, 1]} : vector<256x128xf32> to vector<256x32xf32>
    %20 = vector.shape_cast %19 : vector<256x32xf32> to vector<1x16x16x32xf32>
    %21 = vector.extract_strided_slice %14 {offsets = [0, 96], sizes = [256, 32], strides = [1, 1]} : vector<256x128xf32> to vector<256x32xf32>
    %22 = vector.shape_cast %21 : vector<256x32xf32> to vector<1x16x16x32xf32>
    %c0_13 = arith.constant 0 : index
    %c0_14 = arith.constant 0 : index
    %c0_15 = arith.constant 0 : index
    %c0_16 = arith.constant 0 : index
    %23 = vector.load %arg11[%c0_13, %c0_14, %c0_15, %c0_16] : memref<1x16x16x32xf32, #tpu.memory_space<vmem>>, vector<1x16x16x32xf32>
    %c0_17 = arith.constant 0 : index
    %c0_18 = arith.constant 0 : index
    %c0_19 = arith.constant 0 : index
    %24 = vector.load %arg5[%c0_17, %c0_18, %c0_19] : memref<16x16x32xf32, #tpu.memory_space<vmem>>, vector<16x16x32xf32>
    %25 = vector.shape_cast %24 : vector<16x16x32xf32> to vector<1x16x16x32xf32>
    %26 = arith.mulf %25, %23 : vector<1x16x16x32xf32>
    %27 = arith.addf %16, %26 : vector<1x16x16x32xf32>
    %28 = arith.negf %27 : vector<1x16x16x32xf32>
    %29 = math.exp %28 : vector<1x16x16x32xf32>
    %cst_20 = arith.constant 1.000000e+00 : f32
    %30 = vector.broadcast %cst_20 : f32 to vector<1x16x16x32xf32>
    %31 = arith.addf %30, %29 : vector<1x16x16x32xf32>
    %32 = arith.divf %30, %31 : vector<1x16x16x32xf32>
    %c0_21 = arith.constant 0 : index
    %c0_22 = arith.constant 0 : index
    %c0_23 = arith.constant 0 : index
    %33 = vector.load %arg6[%c0_21, %c0_22, %c0_23] : memref<16x16x32xf32, #tpu.memory_space<vmem>>, vector<16x16x32xf32>
    %34 = vector.shape_cast %33 : vector<16x16x32xf32> to vector<1x16x16x32xf32>
    %35 = arith.mulf %34, %23 : vector<1x16x16x32xf32>
    %36 = arith.addf %18, %35 : vector<1x16x16x32xf32>
    %37 = arith.negf %36 : vector<1x16x16x32xf32>
    %38 = math.exp %37 : vector<1x16x16x32xf32>
    %cst_24 = arith.constant 1.000000e+00 : f32
    %39 = vector.broadcast %cst_24 : f32 to vector<1x16x16x32xf32>
    %40 = arith.addf %39, %38 : vector<1x16x16x32xf32>
    %41 = arith.divf %39, %40 : vector<1x16x16x32xf32>
    %42 = arith.mulf %41, %23 : vector<1x16x16x32xf32>
    %cst_25 = arith.constant 0.000000e+00 : f32
    %43 = vector.broadcast %cst_25 : f32 to vector<1x16x16x32xf32>
    %44 = arith.maximumf %20, %43 : vector<1x16x16x32xf32>
    %45 = arith.mulf %32, %44 : vector<1x16x16x32xf32>
    %46 = arith.addf %42, %45 : vector<1x16x16x32xf32>
    %c0_26 = arith.constant 0 : index
    %c0_27 = arith.constant 0 : index
    %c0_28 = arith.constant 0 : index
    %47 = vector.load %arg7[%c0_26, %c0_27, %c0_28] : memref<16x16x32xf32, #tpu.memory_space<vmem>>, vector<16x16x32xf32>
    %48 = vector.shape_cast %47 : vector<16x16x32xf32> to vector<1x16x16x32xf32>
    %49 = arith.mulf %48, %46 : vector<1x16x16x32xf32>
    %50 = arith.addf %22, %49 : vector<1x16x16x32xf32>
    %51 = arith.negf %50 : vector<1x16x16x32xf32>
    %52 = math.exp %51 : vector<1x16x16x32xf32>
    %cst_29 = arith.constant 1.000000e+00 : f32
    %53 = vector.broadcast %cst_29 : f32 to vector<1x16x16x32xf32>
    %54 = arith.addf %53, %52 : vector<1x16x16x32xf32>
    %55 = arith.divf %53, %54 : vector<1x16x16x32xf32>
    %cst_30 = arith.constant 0.000000e+00 : f32
    %56 = vector.broadcast %cst_30 : f32 to vector<1x16x16x32xf32>
    %57 = arith.maximumf %46, %56 : vector<1x16x16x32xf32>
    %58 = arith.mulf %55, %57 : vector<1x16x16x32xf32>
    %c0_31 = arith.constant 0 : index
    %c0_32 = arith.constant 0 : index
    %c0_33 = arith.constant 0 : index
    %c0_34 = arith.constant 0 : index
    %59 = vector.load %arg11[%c0_31, %c0_32, %c0_33, %c0_34] : memref<1x16x16x32xf32, #tpu.memory_space<vmem>>, vector<1x16x16x32xf32>
    tpu.vector_store %arg11[%c0_31, %c0_32, %c0_33, %c0_34], %46 {strides = array<i32>} : memref<1x16x16x32xf32, #tpu.memory_space<vmem>>, vector<1x16x16x32xf32>,
    %60 = vector.shape_cast %58 : vector<1x16x16x32xf32> to vector<1x1x16x16x32xf32>
    %c0_35 = arith.constant 0 : index
    %c0_36 = arith.constant 0 : index
    %c0_37 = arith.constant 0 : index
    %c0_38 = arith.constant 0 : index
    %c0_39 = arith.constant 0 : index
    %61 = vector.load %arg8[%c0_35, %c0_36, %c0_37, %c0_38, %c0_39] : memref<1x1x16x16x32xf32, #tpu.memory_space<vmem>>, vector<1x1x16x16x32xf32>
    tpu.vector_store %arg8[%c0_35, %c0_36, %c0_37, %c0_38, %c0_39], %60 {strides = array<i32>} : memref<1x1x16x16x32xf32, #tpu.memory_space<vmem>>, vector<1x1x16x16x32xf32>,
    %62 = vector.extract_strided_slice %58 {offsets = [0, 0, 0, 0], sizes = [1, 15, 15, 32], strides = [1, 1, 1, 1]} : vector<1x16x16x32xf32> to vector<1x15x15x32xf32>
    %c0_40 = arith.constant 0 : index
    %c1 = arith.constant 1 : index
    %c1_41 = arith.constant 1 : index
    %c0_42 = arith.constant 0 : index
    %63 = vector.load %arg10[%c0_40, %c1, %c1_41, %c0_42] : memref<1x16x16x288xf32, #tpu.memory_space<vmem>>, vector<1x15x15x32xf32>
    tpu.vector_store %arg10[%c0_40, %c1, %c1_41, %c0_42], %62 {strides = array<i32>} : memref<1x16x16x288xf32, #tpu.memory_space<vmem>>, vector<1x15x15x32xf32>,
    %64 = vector.extract_strided_slice %58 {offsets = [0, 0, 0, 0], sizes = [1, 15, 16, 32], strides = [1, 1, 1, 1]} : vector<1x16x16x32xf32> to vector<1x15x16x32xf32>
    %c0_43 = arith.constant 0 : index
    %c1_44 = arith.constant 1 : index
    %c0_45 = arith.constant 0 : index
    %c32 = arith.constant 32 : index
    %65 = vector.load %arg10[%c0_43, %c1_44, %c0_45, %c32] : memref<1x16x16x288xf32, #tpu.memory_space<vmem>>, vector<1x15x16x32xf32>
    tpu.vector_store %arg10[%c0_43, %c1_44, %c0_45, %c32], %64 {strides = array<i32>} : memref<1x16x16x288xf32, #tpu.memory_space<vmem>>, vector<1x15x16x32xf32>,
    %66 = vector.extract_strided_slice %58 {offsets = [0, 0, 1, 0], sizes = [1, 15, 15, 32], strides = [1, 1, 1, 1]} : vector<1x16x16x32xf32> to vector<1x15x15x32xf32>
    %c0_46 = arith.constant 0 : index
    %c1_47 = arith.constant 1 : index
    %c0_48 = arith.constant 0 : index
    %c64 = arith.constant 64 : index
    %67 = vector.load %arg10[%c0_46, %c1_47, %c0_48, %c64] : memref<1x16x16x288xf32, #tpu.memory_space<vmem>>, vector<1x15x15x32xf32>
    tpu.vector_store %arg10[%c0_46, %c1_47, %c0_48, %c64], %66 {strides = array<i32>} : memref<1x16x16x288xf32, #tpu.memory_space<vmem>>, vector<1x15x15x32xf32>,
    %68 = vector.extract_strided_slice %58 {offsets = [0, 0, 0, 0], sizes = [1, 16, 15, 32], strides = [1, 1, 1, 1]} : vector<1x16x16x32xf32> to vector<1x16x15x32xf32>
    %c0_49 = arith.constant 0 : index
    %c0_50 = arith.constant 0 : index
    %c1_51 = arith.constant 1 : index
    %c96 = arith.constant 96 : index
    %69 = vector.load %arg10[%c0_49, %c0_50, %c1_51, %c96] : memref<1x16x16x288xf32, #tpu.memory_space<vmem>>, vector<1x16x15x32xf32>
    tpu.vector_store %arg10[%c0_49, %c0_50, %c1_51, %c96], %68 {strides = array<i32>} : memref<1x16x16x288xf32, #tpu.memory_space<vmem>>, vector<1x16x15x32xf32>,
    %c0_52 = arith.constant 0 : index
    %c0_53 = arith.constant 0 : index
    %c0_54 = arith.constant 0 : index
    %c128 = arith.constant 128 : index
    %70 = vector.load %arg10[%c0_52, %c0_53, %c0_54, %c128] : memref<1x16x16x288xf32, #tpu.memory_space<vmem>>, vector<1x16x16x32xf32>
    tpu.vector_store %arg10[%c0_52, %c0_53, %c0_54, %c128], %58 {strides = array<i32>} : memref<1x16x16x288xf32, #tpu.memory_space<vmem>>, vector<1x16x16x32xf32>,
    %71 = vector.extract_strided_slice %58 {offsets = [0, 0, 1, 0], sizes = [1, 16, 15, 32], strides = [1, 1, 1, 1]} : vector<1x16x16x32xf32> to vector<1x16x15x32xf32>
    %c0_55 = arith.constant 0 : index
    %c0_56 = arith.constant 0 : index
    %c0_57 = arith.constant 0 : index
    %c160 = arith.constant 160 : index
    %72 = vector.load %arg10[%c0_55, %c0_56, %c0_57, %c160] : memref<1x16x16x288xf32, #tpu.memory_space<vmem>>, vector<1x16x15x32xf32>
    tpu.vector_store %arg10[%c0_55, %c0_56, %c0_57, %c160], %71 {strides = array<i32>} : memref<1x16x16x288xf32, #tpu.memory_space<vmem>>, vector<1x16x15x32xf32>,
    %73 = vector.extract_strided_slice %58 {offsets = [0, 1, 0, 0], sizes = [1, 15, 15, 32], strides = [1, 1, 1, 1]} : vector<1x16x16x32xf32> to vector<1x15x15x32xf32>
    %c0_58 = arith.constant 0 : index
    %c0_59 = arith.constant 0 : index
    %c1_60 = arith.constant 1 : index
    %c192 = arith.constant 192 : index
    %74 = vector.load %arg10[%c0_58, %c0_59, %c1_60, %c192] : memref<1x16x16x288xf32, #tpu.memory_space<vmem>>, vector<1x15x15x32xf32>
    tpu.vector_store %arg10[%c0_58, %c0_59, %c1_60, %c192], %73 {strides = array<i32>} : memref<1x16x16x288xf32, #tpu.memory_space<vmem>>, vector<1x15x15x32xf32>,
    %75 = vector.extract_strided_slice %58 {offsets = [0, 1, 0, 0], sizes = [1, 15, 16, 32], strides = [1, 1, 1, 1]} : vector<1x16x16x32xf32> to vector<1x15x16x32xf32>
    %c0_61 = arith.constant 0 : index
    %c0_62 = arith.constant 0 : index
    %c0_63 = arith.constant 0 : index
    %c224 = arith.constant 224 : index
    %76 = vector.load %arg10[%c0_61, %c0_62, %c0_63, %c224] : memref<1x16x16x288xf32, #tpu.memory_space<vmem>>, vector<1x15x16x32xf32>
    tpu.vector_store %arg10[%c0_61, %c0_62, %c0_63, %c224], %75 {strides = array<i32>} : memref<1x16x16x288xf32, #tpu.memory_space<vmem>>, vector<1x15x16x32xf32>,
    %77 = vector.extract_strided_slice %58 {offsets = [0, 1, 1, 0], sizes = [1, 15, 15, 32], strides = [1, 1, 1, 1]} : vector<1x16x16x32xf32> to vector<1x15x15x32xf32>
    %c0_64 = arith.constant 0 : index
    %c0_65 = arith.constant 0 : index
    %c0_66 = arith.constant 0 : index
    %c256 = arith.constant 256 : index
    %78 = vector.load %arg10[%c0_64, %c0_65, %c0_66, %c256] : memref<1x16x16x288xf32, #tpu.memory_space<vmem>>, vector<1x15x15x32xf32>
    tpu.vector_store %arg10[%c0_64, %c0_65, %c0_66, %c256], %77 {strides = array<i32>} : memref<1x16x16x288xf32, #tpu.memory_space<vmem>>, vector<1x15x15x32xf32>,
    %79 = vector.shape_cast %58 : vector<1x16x16x32xf32> to vector<256x32xf32>
    %cst_67 = arith.constant dense<0.000000e+00> : vector<32xf32>
    %80 = vector.multi_reduction <add>, %79, %cst_67 [0] : vector<256x32xf32> to vector<32xf32>
    %81 = vector.shape_cast %80 : vector<32xf32> to vector<1x32xf32>
    %82 = arith.mulf %79, %79 : vector<256x32xf32>
    %cst_68 = arith.constant dense<0.000000e+00> : vector<32xf32>
    %83 = vector.multi_reduction <add>, %82, %cst_68 [0] : vector<256x32xf32> to vector<32xf32>
    %84 = vector.shape_cast %83 : vector<32xf32> to vector<1x32xf32>
    %c0_69 = arith.constant 0 : index
    %c0_70 = arith.constant 0 : index
    %c0_71 = arith.constant 0 : index
    %85 = vector.load %arg9[%c0_69, %c0_70, %c0_71] : memref<1x2x32xf32, #tpu.memory_space<vmem>>, vector<1x2x32xf32>
    %86 = tpu.concatenate %81, %84 in 0 : vector<1x32xf32>, vector<1x32xf32> -> vector<2x32xf32>
    %87 = vector.shape_cast %86 : vector<2x32xf32> to vector<1x2x32xf32>
    %88 = arith.addf %85, %87 : vector<1x2x32xf32>
    %c0_72 = arith.constant 0 : index
    %c0_73 = arith.constant 0 : index
    %c0_74 = arith.constant 0 : index
    %89 = vector.load %arg9[%c0_72, %c0_73, %c0_74] : memref<1x2x32xf32, #tpu.memory_space<vmem>>, vector<1x2x32xf32>
    tpu.vector_store %arg9[%c0_72, %c0_73, %c0_74], %88 {strides = array<i32>} : memref<1x2x32xf32, #tpu.memory_space<vmem>>, vector<1x2x32xf32>,
    return
  }
  func.func @transform_0(%arg0: i32, %arg1: i32) -> (i32, i32, i32, i32, i32) {
    %c0_i32 = arith.constant 0 : i32
    %c0_i32_0 = arith.constant 0 : i32
    %c0_i32_1 = arith.constant 0 : i32
    %c0_i32_2 = arith.constant 0 : i32
    return %arg1, %arg0, %c0_i32, %c0_i32_0, %c0_i32_1 : i32, i32, i32, i32, i32
  }
  func.func @transform_1(%arg0: i32, %arg1: i32) -> (i32, i32) {
    %c0_i32 = arith.constant 0 : i32
    %c0_i32_0 = arith.constant 0 : i32
    %c0_i32_1 = arith.constant 0 : i32
    return %c0_i32, %c0_i32_0 : i32, i32
  }
  func.func @transform_2(%arg0: i32, %arg1: i32) -> (i32, i32) {
    %c0_i32 = arith.constant 0 : i32
    %c0_i32_0 = arith.constant 0 : i32
    %c0_i32_1 = arith.constant 0 : i32
    return %c0_i32, %c0_i32_0 : i32, i32
  }
  func.func @transform_3(%arg0: i32, %arg1: i32) -> (i32, i32, i32) {
    %c0_i32 = arith.constant 0 : i32
    %c0_i32_0 = arith.constant 0 : i32
    %c0_i32_1 = arith.constant 0 : i32
    %c0_i32_2 = arith.constant 0 : i32
    return %c0_i32, %c0_i32_0, %c0_i32_1 : i32, i32, i32
  }
  func.func @transform_4(%arg0: i32, %arg1: i32) -> (i32, i32, i32) {
    %c0_i32 = arith.constant 0 : i32
    %c0_i32_0 = arith.constant 0 : i32
    %c0_i32_1 = arith.constant 0 : i32
    %c0_i32_2 = arith.constant 0 : i32
    return %c0_i32, %c0_i32_0, %c0_i32_1 : i32, i32, i32
  }
  func.func @transform_5(%arg0: i32, %arg1: i32) -> (i32, i32, i32) {
    %c0_i32 = arith.constant 0 : i32
    %c0_i32_0 = arith.constant 0 : i32
    %c0_i32_1 = arith.constant 0 : i32
    %c0_i32_2 = arith.constant 0 : i32
    return %c0_i32, %c0_i32_0, %c0_i32_1 : i32, i32, i32
  }
  func.func @transform_6(%arg0: i32, %arg1: i32) -> (i32, i32, i32, i32, i32) {
    %c0_i32 = arith.constant 0 : i32
    %c0_i32_0 = arith.constant 0 : i32
    %c0_i32_1 = arith.constant 0 : i32
    %c0_i32_2 = arith.constant 0 : i32
    return %arg1, %arg0, %c0_i32, %c0_i32_0, %c0_i32_1 : i32, i32, i32, i32, i32
  }
  func.func @transform_7(%arg0: i32, %arg1: i32) -> (i32, i32, i32) {
    %c0_i32 = arith.constant 0 : i32
    %c0_i32_0 = arith.constant 0 : i32
    %c0_i32_1 = arith.constant 0 : i32
    return %arg0, %c0_i32, %c0_i32_0 : i32, i32, i32
  }
}

module attributes {stable_mosaic.version = 11 : i64} {
  func.func @_bn_norm_kernel(%arg0: i32, %arg1: memref<1024x128xf32, #tpu.memory_space<vmem>>, %arg2: memref<1x128xf32, #tpu.memory_space<vmem>>, %arg3: memref<1x128xf32, #tpu.memory_space<vmem>>, %arg4: memref<1024x128xf32, #tpu.memory_space<vmem>>) attributes {dimension_semantics = [#tpu.dimension_semantics<parallel>], iteration_bounds = array<i64: 1>, scalar_prefetch = 0 : i64, scratch_operands = 0 : i64, tpu.core_type = #tpu.core_type<tc>, window_params = [{transform_indices = @transform_0, window_bounds = array<i64: 1024, 128>}, {pipeline_mode = #tpu.pipeline_mode<synchronous>, transform_indices = @transform_1, window_bounds = array<i64: 1, 128>}, {pipeline_mode = #tpu.pipeline_mode<synchronous>, transform_indices = @transform_2, window_bounds = array<i64: 1, 128>}, {transform_indices = @transform_3, window_bounds = array<i64: 1024, 128>}]} {
    %c0 = arith.constant 0 : index
    %c0_0 = arith.constant 0 : index
    %0 = vector.load %arg1[%c0, %c0_0] : memref<1024x128xf32, #tpu.memory_space<vmem>>, vector<1024x128xf32>
    %c0_1 = arith.constant 0 : index
    %c0_2 = arith.constant 0 : index
    %1 = vector.load %arg2[%c0_1, %c0_2] : memref<1x128xf32, #tpu.memory_space<vmem>>, vector<1x128xf32>
    %2 = vector.broadcast %1 : vector<1x128xf32> to vector<1024x128xf32>
    %3 = arith.subf %0, %2 : vector<1024x128xf32>
    %c0_3 = arith.constant 0 : index
    %c0_4 = arith.constant 0 : index
    %4 = vector.load %arg3[%c0_3, %c0_4] : memref<1x128xf32, #tpu.memory_space<vmem>>, vector<1x128xf32>
    %5 = vector.broadcast %4 : vector<1x128xf32> to vector<1024x128xf32>
    %6 = arith.mulf %3, %5 : vector<1024x128xf32>
    %c0_5 = arith.constant 0 : index
    %c0_6 = arith.constant 0 : index
    %7 = vector.load %arg4[%c0_5, %c0_6] : memref<1024x128xf32, #tpu.memory_space<vmem>>, vector<1024x128xf32>
    tpu.vector_store %arg4[%c0_5, %c0_6], %6 {strides = array<i32>} : memref<1024x128xf32, #tpu.memory_space<vmem>>, vector<1024x128xf32>,
    return
  }
  func.func @transform_0(%arg0: i32) -> (i32, i32) {
    %c0_i32 = arith.constant 0 : i32
    %c0_i32_0 = arith.constant 0 : i32
    return %arg0, %c0_i32 : i32, i32
  }
  func.func @transform_1(%arg0: i32) -> (i32, i32) {
    %c0_i32 = arith.constant 0 : i32
    %c0_i32_0 = arith.constant 0 : i32
    %c0_i32_1 = arith.constant 0 : i32
    return %c0_i32, %c0_i32_0 : i32, i32
  }
  func.func @transform_2(%arg0: i32) -> (i32, i32) {
    %c0_i32 = arith.constant 0 : i32
    %c0_i32_0 = arith.constant 0 : i32
    %c0_i32_1 = arith.constant 0 : i32
    return %c0_i32, %c0_i32_0 : i32, i32
  }
  func.func @transform_3(%arg0: i32) -> (i32, i32) {
    %c0_i32 = arith.constant 0 : i32
    %c0_i32_0 = arith.constant 0 : i32
    return %arg0, %c0_i32 : i32, i32
  }
}

</mosaic_0001>

<bundles_post_ra>
// kernel: convcell_forward.3
= control target key start
LH: loop header
LB: loop body
LE: loop exit
PB: predicated region body
PF: predicated region fallthrough
CT: control target
= control target key end

     0   :  { %vm2593_vm0 = vcmask 1041408   ;;  %vm1824_vm1 = vcmask 293888   ;;  %s9820_s1 = inlined_call_operand.vmem [shape: bf16[36,128], index: 1, kind: input, shape index: {}]   ;;  %s9821_s0 = inlined_call_operand.vmem [shape: bf16[16,16,16,36], index: 0, kind: input, shape index: {}]   ;;  %s9822_s2 = inlined_call_operand.vmem [shape: bf16[16,16,16,128], index: 2, kind: output, shape index: {}]  }
   0x1   :  { %v528_v0 = vld [vmem:[%s9820_s1 + $0x10] sm:$0x3]  ;;  %v6459_v4 = vld [vmem:[%s9820_s1 + $0x8] sm:$0xff]  ;;  %v6458_v5 = vld [vmem:[%s9820_s1] sm:$0xff] }
   0x2   :  { %v1818_v1 = vunpack.c.l.b16 %v528_v0  ;;  %v6202_v6 = vld [vmem:[%s9821_s0] sm:$0xff]  ;;  %v6203_v10 = vld [vmem:[%s9821_s0 + $0x8] sm:$0xff]  ;;  %v6204_v14 = vld [vmem:[%s9821_s0 + $0x10] sm:$0xff] }
   0x3   :  { %v6266_v7 = vld [vmem:[%s9821_s0 + $0x200] sm:$0xff]  ;;  %v6267_v11 = vld [vmem:[%s9821_s0 + $0x208] sm:$0xff]  ;;  %v6268_v15 = vld [vmem:[%s9821_s0 + $0x210] sm:$0xff] }
   0x4   :  { %v1821_v2 = vpack.c.b16 %v1818_v1, %v1818_v1  ;;  %v6330_v8 = vld [vmem:[%s9821_s0 + $0x400] sm:$0xff]  ;;  %v6331_v12 = vld [vmem:[%s9821_s0 + $0x408] sm:$0xff]  ;;  %v6332_v16 = vld [vmem:[%s9821_s0 + $0x410] sm:$0xff] }
   0x5   :  { %v6394_v9 = vld [vmem:[%s9821_s0 + $0x600] sm:$0xff]  ;;  %v6395_v13 = vld [vmem:[%s9821_s0 + $0x608] sm:$0xff]  ;;  %v6396_v17 = vld [vmem:[%s9821_s0 + $0x610] sm:$0xff] }
   0x6   :  { %v2595_v3 = vsel %vm2593_vm0, %v1821_v2, 0  ;;  %v6205_v18 = vld [vmem:[%s9821_s0 + $0x18] sm:$0xff]  ;;  %v6206_v22 = vld [vmem:[%s9821_s0 + $0x20] sm:$0xff]  ;;  %v6207_v26 = vld [vmem:[%s9821_s0 + $0x28] sm:$0xff] }
   0x7   :  { %2602 = vmatpush.bf16.msra.mxu0 %v2595_v3  ;;  %7995 = vmatpush.bf16.msra.mxu1 %v2595_v3  ;;  %v6269_v19 = vld [vmem:[%s9821_s0 + $0x218] sm:$0xff]  ;;  %v6270_v23 = vld [vmem:[%s9821_s0 + $0x220] sm:$0xff]  ;;  %v6271_v27 = vld [vmem:[%s9821_s0 + $0x228] sm:$0xff] }
   0x8   :  { %7996 = vmatpush.bf16.msra.mxu2 %v2595_v3  ;;  %7997 = vmatpush.bf16.msra.mxu3 %v2595_v3  ;;  %v6333_v20 = vld [vmem:[%s9821_s0 + $0x418] sm:$0xff]  ;;  %v6334_v24 = vld [vmem:[%s9821_s0 + $0x420] sm:$0xff]  ;;  %v6335_v28 = vld [vmem:[%s9821_s0 + $0x428] sm:$0xff] }
   0x9   :  { %v6397_v21 = vld [vmem:[%s9821_s0 + $0x618] sm:$0xff]  ;;  %v6398_v25 = vld [vmem:[%s9821_s0 + $0x620] sm:$0xff]  ;;  %v6399_v29 = vld [vmem:[%s9821_s0 + $0x628] sm:$0xff] }
   0xa   :  { %v6208_v30 = vld [vmem:[%s9821_s0 + $0x30] sm:$0xff]  ;;  %v6209_v34 = vld [vmem:[%s9821_s0 + $0x38] sm:$0xff]  ;;  %v6210_v38 = vld [vmem:[%s9821_s0 + $0x40] sm:$0xff] }
   0xb   :  { %2603 = vmatpush.bf16.msra.mxu0 %v6459_v4  ;;  %7998 = vmatpush.bf16.msra.mxu1 %v6459_v4  ;;  %v6272_v31 = vld [vmem:[%s9821_s0 + $0x230] sm:$0xff]  ;;  %v6273_v35 = vld [vmem:[%s9821_s0 + $0x238] sm:$0xff]  ;;  %v6274_v39 = vld [vmem:[%s9821_s0 + $0x240] sm:$0xff] }
   0xc   :  { %7999 = vmatpush.bf16.msra.mxu2 %v6459_v4  ;;  %8000 = vmatpush.bf16.msra.mxu3 %v6459_v4  ;;  %v6336_v32 = vld [vmem:[%s9821_s0 + $0x430] sm:$0xff]  ;;  %v6337_v36 = vld [vmem:[%s9821_s0 + $0x438] sm:$0xff]  ;;  %v6338_v42 = vld [vmem:[%s9821_s0 + $0x440] sm:$0xff] }
   0xd   :  { %v6400_v33 = vld [vmem:[%s9821_s0 + $0x630] sm:$0xff]  ;;  %v6401_v37 = vld [vmem:[%s9821_s0 + $0x638] sm:$0xff]  ;;  %v6402_v43 = vld [vmem:[%s9821_s0 + $0x640] sm:$0xff] }
   0xe   :  { %v6211_v52 = vld [vmem:[%s9821_s0 + $0x48] sm:$0xff]  ;;  %v6212_v4 = vld [vmem:[%s9821_s0 + $0x50] sm:$0xff] }
   0xf   :  { %2604 = vmatpush.bf16.msra.mxu0 %v6458_v5  ;;  %8001 = vmatpush.bf16.msra.mxu1 %v6458_v5  ;;  %v6275_v53 = vld [vmem:[%s9821_s0 + $0x248] sm:$0xff] }
  0x10   :  { %8002 = vmatpush.bf16.msra.mxu2 %v6458_v5  ;;  %8003 = vmatpush.bf16.msra.mxu3 %v6458_v5  ;;  %v6339_v58 = vld [vmem:[%s9821_s0 + $0x448] sm:$0xff]  ;;  %v6276_v5 = vld [vmem:[%s9821_s0 + $0x250] sm:$0xff] }
  0x11   :  { %v6403_v59 = vld [vmem:[%s9821_s0 + $0x648] sm:$0xff] }
  0x12   :  { %5946 = vmatmul.msk.bf16.vlgmr.msra.gmra.mxu0 %vm1824_vm1, %v6202_v6  ;;  %6010 = vmatmul.msk.bf16.vlgmr.msra.gmra.mxu1 %vm1824_vm1, %v6266_v7 }
  0x13   :  { %6074 = vmatmul.msk.bf16.vlgmr.msra.gmra.mxu2 %vm1824_vm1, %v6330_v8  ;;  %6138 = vmatmul.msk.bf16.vlgmr.msra.gmra.mxu3 %vm1824_vm1, %v6394_v9 }
  0x22   :  { %5947 = vmatmul.msk.bf16.gmra.mxu0 %vm1824_vm1, %v6203_v10  ;;  %6011 = vmatmul.msk.bf16.gmra.mxu1 %vm1824_vm1, %v6267_v11  ;;  %v6340_v10 = vld [vmem:[%s9821_s0 + $0x450] sm:$0xff] }
  0x23   :  { %6075 = vmatmul.msk.bf16.gmra.mxu2 %vm1824_vm1, %v6331_v12  ;;  %6139 = vmatmul.msk.bf16.gmra.mxu3 %vm1824_vm1, %v6395_v13  ;;  %v6404_v11 = vld [vmem:[%s9821_s0 + $0x650] sm:$0xff] }
  0x32   :  { %5948 = vmatmul.msk.bf16.gmra.mxu0 %vm1824_vm1, %v6204_v14  ;;  %6012 = vmatmul.msk.bf16.gmra.mxu1 %vm1824_vm1, %v6268_v15 }
  0x33   :  { %6076 = vmatmul.msk.bf16.gmra.mxu2 %vm1824_vm1, %v6332_v16  ;;  %6140 = vmatmul.msk.bf16.gmra.mxu3 %vm1824_vm1, %v6396_v17 }
  0x42   :  { %5949 = vmatmul.msk.bf16.gmra.mxu0 %vm1824_vm1, %v6205_v18  ;;  %6013 = vmatmul.msk.bf16.gmra.mxu1 %vm1824_vm1, %v6269_v19 }
  0x43   :  { %6077 = vmatmul.msk.bf16.gmra.mxu2 %vm1824_vm1, %v6333_v20  ;;  %6141 = vmatmul.msk.bf16.gmra.mxu3 %vm1824_vm1, %v6397_v21  ;;  %v6213_v20 = vld [vmem:[%s9821_s0 + $0x58] sm:$0xff] }
  0x44   :  { %v6277_v21 = vld [vmem:[%s9821_s0 + $0x258] sm:$0xff] }
  0x52   :  { %5950 = vmatmul.msk.bf16.gmra.mxu0 %vm1824_vm1, %v6206_v22  ;;  %6014 = vmatmul.msk.bf16.gmra.mxu1 %vm1824_vm1, %v6270_v23 }
  0x53   :  { %6078 = vmatmul.msk.bf16.gmra.mxu2 %vm1824_vm1, %v6334_v24  ;;  %6142 = vmatmul.msk.bf16.gmra.mxu3 %vm1824_vm1, %v6398_v25 }
  0x62   :  { %5951 = vmatmul.msk.bf16.gmra.mxu0 %vm1824_vm1, %v6207_v26  ;;  %6015 = vmatmul.msk.bf16.gmra.mxu1 %vm1824_vm1, %v6271_v27  ;;  %v6341_v26 = vld [vmem:[%s9821_s0 + $0x458] sm:$0xff] }
  0x63   :  { %6079 = vmatmul.msk.bf16.gmra.mxu2 %vm1824_vm1, %v6335_v28  ;;  %6143 = vmatmul.msk.bf16.gmra.mxu3 %vm1824_vm1, %v6399_v29  ;;  %v6405_v27 = vld [vmem:[%s9821_s0 + $0x658] sm:$0xff] }
  0x72   :  { %5952 = vmatmul.msk.bf16.gmra.mxu0 %vm1824_vm1, %v6208_v30  ;;  %6016 = vmatmul.msk.bf16.gmra.mxu1 %vm1824_vm1, %v6272_v31 }
  0x73   :  { %6080 = vmatmul.msk.bf16.gmra.mxu2 %vm1824_vm1, %v6336_v32  ;;  %6144 = vmatmul.msk.bf16.gmra.mxu3 %vm1824_vm1, %v6400_v33 }
  0x82   :  { %5953 = vmatmul.msk.bf16.gmra.mxu0 %vm1824_vm1, %v6209_v34  ;;  %6017 = vmatmul.msk.bf16.gmra.mxu1 %vm1824_vm1, %v6273_v35 }
  0x83   :  { %6081 = vmatmul.msk.bf16.gmra.mxu2 %vm1824_vm1, %v6337_v36  ;;  %6145 = vmatmul.msk.bf16.gmra.mxu3 %vm1824_vm1, %v6401_v37  ;;  %v6214_v36 = vld [vmem:[%s9821_s0 + $0x60] sm:$0xff] }
  0x84   :  { %v6278_v37 = vld [vmem:[%s9821_s0 + $0x260] sm:$0xff] }
  0x8f   :  { %v2606_v40 = vpop.f32.mrf.mxu0  ;;  %v2926_v41 = vpop.f32.mrf.mxu1 }
  0x92   :  { %5954 = vmatmul.msk.bf16.gmra.mxu0 %vm1824_vm1, %v6210_v38  ;;  %6018 = vmatmul.msk.bf16.gmra.mxu1 %vm1824_vm1, %v6274_v39 }
  0x93   :  { %6082 = vmatmul.msk.bf16.gmra.mxu2 %vm1824_vm1, %v6338_v42  ;;  %6146 = vmatmul.msk.bf16.gmra.mxu3 %vm1824_vm1, %v6402_v43  ;;  %v6342_v42 = vld [vmem:[%s9821_s0 + $0x460] sm:$0xff] }
  0x94   :  { %v6406_v43 = vld [vmem:[%s9821_s0 + $0x660] sm:$0xff] }
  0x96   :  { %v3246_v44 = vpop.f32.mrf.mxu2  ;;  %v3566_v45 = vpop.f32.mrf.mxu3 }
  0x97   :  { %v2608_v46 = vpop.f32.mrf.mxu0  ;;  %v2928_v47 = vpop.f32.mrf.mxu1 }
  0x98   :  { %v6463_v48 = vpack.c.bf16 %v2608_v46, %v2606_v40  ;;  %v6783_v49 = vpack.c.bf16 %v2928_v47, %v2926_v41 }
  0x9a   :  { %6464 = vst [vmem:[%s9822_s2] sm:$0xff] %v6463_v48  }
  0x9b   :  { %7803 = vst [vmem:[%s9822_s2 + $0x200] sm:$0xff] %v6783_v49  }
  0x9e   :  { %v3248_v50 = vpop.f32.mrf.mxu2  ;;  %v3568_v51 = vpop.f32.mrf.mxu3 }
  0x9f   :  { %v7103_v54 = vpack.c.bf16 %v3248_v50, %v3246_v44  ;;  %v7423_v55 = vpack.c.bf16 %v3568_v51, %v3566_v45  ;;  %v2611_v56 = vpop.f32.mrf.mxu0  ;;  %v2931_v57 = vpop.f32.mrf.mxu1 }
  0xa1   :  { %7867 = vst [vmem:[%s9822_s2 + $0x400] sm:$0xff] %v7103_v54  }
  0xa2   :  { %7931 = vst [vmem:[%s9822_s2 + $0x600] sm:$0xff] %v7423_v55   ;;  %5955 = vmatmul.msk.bf16.gmra.mxu0 %vm1824_vm1, %v6211_v52  ;;  %6019 = vmatmul.msk.bf16.gmra.mxu1 %vm1824_vm1, %v6275_v53  ;;  %v6215_v52 = vld [vmem:[%s9821_s0 + $0x68] sm:$0xff] }
  0xa3   :  { %6083 = vmatmul.msk.bf16.gmra.mxu2 %vm1824_vm1, %v6339_v58  ;;  %6147 = vmatmul.msk.bf16.gmra.mxu3 %vm1824_vm1, %v6403_v59  ;;  %v6279_v53 = vld [vmem:[%s9821_s0 + $0x268] sm:$0xff] }
  0xa4   :  { %v6343_v58 = vld [vmem:[%s9821_s0 + $0x468] sm:$0xff] }
  0xa5   :  { %v6407_v59 = vld [vmem:[%s9821_s0 + $0x668] sm:$0xff] }
  0xa6   :  { %v3251_v60 = vpop.f32.mrf.mxu2  ;;  %v3571_v61 = vpop.f32.mrf.mxu3 }
  0xa7   :  { %v2613_v62 = vpop.f32.mrf.mxu0  ;;  %v2933_v63 = vpop.f32.mrf.mxu1 }
  0xa8   :  { %v6468_v0 = vpack.c.bf16 %v2613_v62, %v2611_v56  ;;  %v6788_v1 = vpack.c.bf16 %v2933_v63, %v2931_v57 }
  0xaa   :  { %7740 = vst [vmem:[%s9822_s2 + $0x8] sm:$0xff] %v6468_v0  }
  0xab   :  { %7804 = vst [vmem:[%s9822_s2 + $0x208] sm:$0xff] %v6788_v1  }
  0xae   :  { %v3253_v2 = vpop.f32.mrf.mxu2  ;;  %v3573_v3 = vpop.f32.mrf.mxu3 }
  0xaf   :  { %v7108_v6 = vpack.c.bf16 %v3253_v2, %v3251_v60  ;;  %v7428_v7 = vpack.c.bf16 %v3573_v3, %v3571_v61  ;;  %v2616_v8 = vpop.f32.mrf.mxu0  ;;  %v2936_v9 = vpop.f32.mrf.mxu1 }
  0xb1   :  { %7868 = vst [vmem:[%s9822_s2 + $0x408] sm:$0xff] %v7108_v6  }
  0xb2   :  { %7932 = vst [vmem:[%s9822_s2 + $0x608] sm:$0xff] %v7428_v7   ;;  %5956 = vmatmul.msk.bf16.gmra.mxu0 %vm1824_vm1, %v6212_v4  ;;  %6020 = vmatmul.msk.bf16.gmra.mxu1 %vm1824_vm1, %v6276_v5  ;;  %v6216_v4 = vld [vmem:[%s9821_s0 + $0x70] sm:$0xff] }
  0xb3   :  { %6084 = vmatmul.msk.bf16.gmra.mxu2 %vm1824_vm1, %v6340_v10  ;;  %6148 = vmatmul.msk.bf16.gmra.mxu3 %vm1824_vm1, %v6404_v11  ;;  %v6280_v5 = vld [vmem:[%s9821_s0 + $0x270] sm:$0xff] }
  0xb4   :  { %v6344_v10 = vld [vmem:[%s9821_s0 + $0x470] sm:$0xff] }
  0xb5   :  { %v6408_v11 = vld [vmem:[%s9821_s0 + $0x670] sm:$0xff] }
  0xb6   :  { %v3256_v12 = vpop.f32.mrf.mxu2  ;;  %v3576_v13 = vpop.f32.mrf.mxu3 }
  0xb7   :  { %v2618_v14 = vpop.f32.mrf.mxu0  ;;  %v2938_v15 = vpop.f32.mrf.mxu1 }
  0xb8   :  { %v6473_v16 = vpack.c.bf16 %v2618_v14, %v2616_v8  ;;  %v6793_v17 = vpack.c.bf16 %v2938_v15, %v2936_v9 }
  0xba   :  { %7741 = vst [vmem:[%s9822_s2 + $0x10] sm:$0xff] %v6473_v16  }
  0xbb   :  { %7805 = vst [vmem:[%s9822_s2 + $0x210] sm:$0xff] %v6793_v17  }
  0xbe   :  { %v3258_v18 = vpop.f32.mrf.mxu2  ;;  %v3578_v19 = vpop.f32.mrf.mxu3 }
  0xbf   :  { %v7113_v22 = vpack.c.bf16 %v3258_v18, %v3256_v12  ;;  %v7433_v23 = vpack.c.bf16 %v3578_v19, %v3576_v13  ;;  %v2621_v24 = vpop.f32.mrf.mxu0  ;;  %v2941_v25 = vpop.f32.mrf.mxu1 }
  0xc1   :  { %7869 = vst [vmem:[%s9822_s2 + $0x410] sm:$0xff] %v7113_v22  }
  0xc2   :  { %7933 = vst [vmem:[%s9822_s2 + $0x610] sm:$0xff] %v7433_v23   ;;  %5957 = vmatmul.msk.bf16.gmra.mxu0 %vm1824_vm1, %v6213_v20  ;;  %6021 = vmatmul.msk.bf16.gmra.mxu1 %vm1824_vm1, %v6277_v21  ;;  %v6217_v20 = vld [vmem:[%s9821_s0 + $0x78] sm:$0xff] }
  0xc3   :  { %6085 = vmatmul.msk.bf16.gmra.mxu2 %vm1824_vm1, %v6341_v26  ;;  %6149 = vmatmul.msk.bf16.gmra.mxu3 %vm1824_vm1, %v6405_v27  ;;  %v6281_v21 = vld [vmem:[%s9821_s0 + $0x278] sm:$0xff] }
  0xc4   :  { %v6345_v26 = vld [vmem:[%s9821_s0 + $0x478] sm:$0xff] }
  0xc5   :  { %v6409_v27 = vld [vmem:[%s9821_s0 + $0x678] sm:$0xff] }
  0xc6   :  { %v3261_v28 = vpop.f32.mrf.mxu2  ;;  %v3581_v29 = vpop.f32.mrf.mxu3 }
  0xc7   :  { %v2623_v30 = vpop.f32.mrf.mxu0  ;;  %v2943_v31 = vpop.f32.mrf.mxu1 }
  0xc8   :  { %v6478_v32 = vpack.c.bf16 %v2623_v30, %v2621_v24  ;;  %v6798_v33 = vpack.c.bf16 %v2943_v31, %v2941_v25 }
  0xca   :  { %7742 = vst [vmem:[%s9822_s2 + $0x18] sm:$0xff] %v6478_v32  }
  0xcb   :  { %7806 = vst [vmem:[%s9822_s2 + $0x218] sm:$0xff] %v6798_v33  }
  0xce   :  { %v3263_v34 = vpop.f32.mrf.mxu2  ;;  %v3583_v35 = vpop.f32.mrf.mxu3 }
  0xcf   :  { %v7118_v38 = vpack.c.bf16 %v3263_v34, %v3261_v28  ;;  %v7438_v39 = vpack.c.bf16 %v3583_v35, %v3581_v29  ;;  %v2626_v40 = vpop.f32.mrf.mxu0  ;;  %v2946_v41 = vpop.f32.mrf.mxu1 }
  0xd1   :  { %7870 = vst [vmem:[%s9822_s2 + $0x418] sm:$0xff] %v7118_v38  }
  0xd2   :  { %7934 = vst [vmem:[%s9822_s2 + $0x618] sm:$0xff] %v7438_v39   ;;  %5958 = vmatmul.msk.bf16.gmra.mxu0 %vm1824_vm1, %v6214_v36  ;;  %6022 = vmatmul.msk.bf16.gmra.mxu1 %vm1824_vm1, %v6278_v37  ;;  %v6218_v36 = vld [vmem:[%s9821_s0 + $0x80] sm:$0xff] }
  0xd3   :  { %6086 = vmatmul.msk.bf16.gmra.mxu2 %vm1824_vm1, %v6342_v42  ;;  %6150 = vmatmul.msk.bf16.gmra.mxu3 %vm1824_vm1, %v6406_v43  ;;  %v6282_v37 = vld [vmem:[%s9821_s0 + $0x280] sm:$0xff] }
  0xd4   :  { %v6346_v42 = vld [vmem:[%s9821_s0 + $0x480] sm:$0xff] }
  0xd5   :  { %v6410_v43 = vld [vmem:[%s9821_s0 + $0x680] sm:$0xff] }
  0xd6   :  { %v3266_v44 = vpop.f32.mrf.mxu2  ;;  %v3586_v45 = vpop.f32.mrf.mxu3 }
  0xd7   :  { %v2628_v46 = vpop.f32.mrf.mxu0  ;;  %v2948_v47 = vpop.f32.mrf.mxu1 }
  0xd8   :  { %v6483_v48 = vpack.c.bf16 %v2628_v46, %v2626_v40  ;;  %v6803_v49 = vpack.c.bf16 %v2948_v47, %v2946_v41 }
  0xda   :  { %7743 = vst [vmem:[%s9822_s2 + $0x20] sm:$0xff] %v6483_v48  }
  0xdb   :  { %7807 = vst [vmem:[%s9822_s2 + $0x220] sm:$0xff] %v6803_v49  }
  0xde   :  { %v3268_v50 = vpop.f32.mrf.mxu2  ;;  %v3588_v51 = vpop.f32.mrf.mxu3 }
  0xdf   :  { %v7123_v54 = vpack.c.bf16 %v3268_v50, %v3266_v44  ;;  %v7443_v55 = vpack.c.bf16 %v3588_v51, %v3586_v45  ;;  %v2631_v56 = vpop.f32.mrf.mxu0  ;;  %v2951_v57 = vpop.f32.mrf.mxu1 }
  0xe1   :  { %7871 = vst [vmem:[%s9822_s2 + $0x420] sm:$0xff] %v7123_v54  }
  0xe2   :  { %7935 = vst [vmem:[%s9822_s2 + $0x620] sm:$0xff] %v7443_v55   ;;  %5959 = vmatmul.msk.bf16.gmra.mxu0 %vm1824_vm1, %v6215_v52  ;;  %6023 = vmatmul.msk.bf16.gmra.mxu1 %vm1824_vm1, %v6279_v53  ;;  %v6219_v52 = vld [vmem:[%s9821_s0 + $0x88] sm:$0xff] }
  0xe3   :  { %6087 = vmatmul.msk.bf16.gmra.mxu2 %vm1824_vm1, %v6343_v58  ;;  %6151 = vmatmul.msk.bf16.gmra.mxu3 %vm1824_vm1, %v6407_v59  ;;  %v6283_v53 = vld [vmem:[%s9821_s0 + $0x288] sm:$0xff] }
  0xe4   :  { %v6347_v58 = vld [vmem:[%s9821_s0 + $0x488] sm:$0xff] }
  0xe5   :  { %v6411_v59 = vld [vmem:[%s9821_s0 + $0x688] sm:$0xff] }
  0xe6   :  { %v3271_v60 = vpop.f32.mrf.mxu2  ;;  %v3591_v61 = vpop.f32.mrf.mxu3 }
  0xe7   :  { %v2633_v62 = vpop.f32.mrf.mxu0  ;;  %v2953_v63 = vpop.f32.mrf.mxu1 }
  0xe8   :  { %v6488_v0 = vpack.c.bf16 %v2633_v62, %v2631_v56  ;;  %v6808_v1 = vpack.c.bf16 %v2953_v63, %v2951_v57 }
  0xea   :  { %7744 = vst [vmem:[%s9822_s2 + $0x28] sm:$0xff] %v6488_v0  }
  0xeb   :  { %7808 = vst [vmem:[%s9822_s2 + $0x228] sm:$0xff] %v6808_v1  }
  0xee   :  { %v3273_v2 = vpop.f32.mrf.mxu2  ;;  %v3593_v3 = vpop.f32.mrf.mxu3 }
  0xef   :  { %v7128_v6 = vpack.c.bf16 %v3273_v2, %v3271_v60  ;;  %v7448_v7 = vpack.c.bf16 %v3593_v3, %v3591_v61  ;;  %v2636_v8 = vpop.f32.mrf.mxu0  ;;  %v2956_v9 = vpop.f32.mrf.mxu1 }
  0xf1   :  { %7872 = vst [vmem:[%s9822_s2 + $0x428] sm:$0xff] %v7128_v6  }
  0xf2   :  { %7936 = vst [vmem:[%s9822_s2 + $0x628] sm:$0xff] %v7448_v7   ;;  %5960 = vmatmul.msk.bf16.gmra.mxu0 %vm1824_vm1, %v6216_v4  ;;  %6024 = vmatmul.msk.bf16.gmra.mxu1 %vm1824_vm1, %v6280_v5  ;;  %v6220_v4 = vld [vmem:[%s9821_s0 + $0x90] sm:$0xff] }
  0xf3   :  { %6088 = vmatmul.msk.bf16.gmra.mxu2 %vm1824_vm1, %v6344_v10  ;;  %6152 = vmatmul.msk.bf16.gmra.mxu3 %vm1824_vm1, %v6408_v11  ;;  %v6284_v5 = vld [vmem:[%s9821_s0 + $0x290] sm:$0xff] }
  0xf4   :  { %v6348_v10 = vld [vmem:[%s9821_s0 + $0x490] sm:$0xff] }
  0xf5   :  { %v6412_v11 = vld [vmem:[%s9821_s0 + $0x690] sm:$0xff] }
  0xf6   :  { %v3276_v12 = vpop.f32.mrf.mxu2  ;;  %v3596_v13 = vpop.f32.mrf.mxu3 }
  0xf7   :  { %v2638_v14 = vpop.f32.mrf.mxu0  ;;  %v2958_v15 = vpop.f32.mrf.mxu1 }
  0xf8   :  { %v6493_v16 = vpack.c.bf16 %v2638_v14, %v2636_v8  ;;  %v6813_v17 = vpack.c.bf16 %v2958_v15, %v2956_v9 }
  0xfa   :  { %7745 = vst [vmem:[%s9822_s2 + $0x30] sm:$0xff] %v6493_v16  }
  0xfb   :  { %7809 = vst [vmem:[%s9822_s2 + $0x230] sm:$0xff] %v6813_v17  }
  0xfe   :  { %v3278_v18 = vpop.f32.mrf.mxu2  ;;  %v3598_v19 = vpop.f32.mrf.mxu3 }
  0xff   :  { %v7133_v22 = vpack.c.bf16 %v3278_v18, %v3276_v12  ;;  %v7453_v23 = vpack.c.bf16 %v3598_v19, %v3596_v13  ;;  %v2641_v24 = vpop.f32.mrf.mxu0  ;;  %v2961_v25 = vpop.f32.mrf.mxu1 }
 0x101   :  { %7873 = vst [vmem:[%s9822_s2 + $0x430] sm:$0xff] %v7133_v22  }
 0x102   :  { %7937 = vst [vmem:[%s9822_s2 + $0x630] sm:$0xff] %v7453_v23   ;;  %5961 = vmatmul.msk.bf16.gmra.mxu0 %vm1824_vm1, %v6217_v20  ;;  %6025 = vmatmul.msk.bf16.gmra.mxu1 %vm1824_vm1, %v6281_v21  ;;  %v6221_v20 = vld [vmem:[%s9821_s0 + $0x98] sm:$0xff] }
 0x103   :  { %6089 = vmatmul.msk.bf16.gmra.mxu2 %vm1824_vm1, %v6345_v26  ;;  %6153 = vmatmul.msk.bf16.gmra.mxu3 %vm1824_vm1, %v6409_v27  ;;  %v6285_v21 = vld [vmem:[%s9821_s0 + $0x298] sm:$0xff] }
 0x104   :  { %v6349_v26 = vld [vmem:[%s9821_s0 + $0x498] sm:$0xff] }
 0x105   :  { %v6413_v27 = vld [vmem:[%s9821_s0 + $0x698] sm:$0xff] }
 0x106   :  { %v3281_v28 = vpop.f32.mrf.mxu2  ;;  %v3601_v29 = vpop.f32.mrf.mxu3 }
 0x107   :  { %v2643_v30 = vpop.f32.mrf.mxu0  ;;  %v2963_v31 = vpop.f32.mrf.mxu1 }
 0x108   :  { %v6498_v32 = vpack.c.bf16 %v2643_v30, %v2641_v24  ;;  %v6818_v33 = vpack.c.bf16 %v2963_v31, %v2961_v25 }
 0x10a   :  { %7746 = vst [vmem:[%s9822_s2 + $0x38] sm:$0xff] %v6498_v32  }
 0x10b   :  { %7810 = vst [vmem:[%s9822_s2 + $0x238] sm:$0xff] %v6818_v33  }
 0x10e   :  { %v3283_v34 = vpop.f32.mrf.mxu2  ;;  %v3603_v35 = vpop.f32.mrf.mxu3 }
 0x10f   :  { %v7138_v38 = vpack.c.bf16 %v3283_v34, %v3281_v28  ;;  %v7458_v39 = vpack.c.bf16 %v3603_v35, %v3601_v29  ;;  %v2646_v40 = vpop.f32.mrf.mxu0  ;;  %v2966_v41 = vpop.f32.mrf.mxu1 }
 0x111   :  { %7874 = vst [vmem:[%s9822_s2 + $0x438] sm:$0xff] %v7138_v38  }
 0x112   :  { %7938 = vst [vmem:[%s9822_s2 + $0x638] sm:$0xff] %v7458_v39   ;;  %5962 = vmatmul.msk.bf16.gmra.mxu0 %vm1824_vm1, %v6218_v36  ;;  %6026 = vmatmul.msk.bf16.gmra.mxu1 %vm1824_vm1, %v6282_v37  ;;  %v6222_v36 = vld [vmem:[%s9821_s0 + $0xa0] sm:$0xff] }
 0x113   :  { %6090 = vmatmul.msk.bf16.gmra.mxu2 %vm1824_vm1, %v6346_v42  ;;  %6154 = vmatmul.msk.bf16.gmra.mxu3 %vm1824_vm1, %v6410_v43  ;;  %v6286_v37 = vld [vmem:[%s9821_s0 + $0x2a0] sm:$0xff] }
 0x114   :  { %v6350_v42 = vld [vmem:[%s9821_s0 + $0x4a0] sm:$0xff] }
 0x115   :  { %v6414_v43 = vld [vmem:[%s9821_s0 + $0x6a0] sm:$0xff] }
 0x116   :  { %v3286_v44 = vpop.f32.mrf.mxu2  ;;  %v3606_v45 = vpop.f32.mrf.mxu3 }
 0x117   :  { %v2648_v46 = vpop.f32.mrf.mxu0  ;;  %v2968_v47 = vpop.f32.mrf.mxu1 }
 0x118   :  { %v6503_v48 = vpack.c.bf16 %v2648_v46, %v2646_v40  ;;  %v6823_v49 = vpack.c.bf16 %v2968_v47, %v2966_v41 }
 0x11a   :  { %7747 = vst [vmem:[%s9822_s2 + $0x40] sm:$0xff] %v6503_v48  }
 0x11b   :  { %7811 = vst [vmem:[%s9822_s2 + $0x240] sm:$0xff] %v6823_v49  }
 0x11e   :  { %v3288_v50 = vpop.f32.mrf.mxu2  ;;  %v3608_v51 = vpop.f32.mrf.mxu3 }
 0x11f   :  { %v7143_v54 = vpack.c.bf16 %v3288_v50, %v3286_v44  ;;  %v7463_v55 = vpack.c.bf16 %v3608_v51, %v3606_v45  ;;  %v2651_v56 = vpop.f32.mrf.mxu0  ;;  %v2971_v57 = vpop.f32.mrf.mxu1 }
 0x121   :  { %7875 = vst [vmem:[%s9822_s2 + $0x440] sm:$0xff] %v7143_v54  }
 0x122   :  { %7939 = vst [vmem:[%s9822_s2 + $0x640] sm:$0xff] %v7463_v55   ;;  %5963 = vmatmul.msk.bf16.gmra.mxu0 %vm1824_vm1, %v6219_v52  ;;  %6027 = vmatmul.msk.bf16.gmra.mxu1 %vm1824_vm1, %v6283_v53  ;;  %v6223_v52 = vld [vmem:[%s9821_s0 + $0xa8] sm:$0xff] }
 0x123   :  { %6091 = vmatmul.msk.bf16.gmra.mxu2 %vm1824_vm1, %v6347_v58  ;;  %6155 = vmatmul.msk.bf16.gmra.mxu3 %vm1824_vm1, %v6411_v59  ;;  %v6287_v53 = vld [vmem:[%s9821_s0 + $0x2a8] sm:$0xff] }
 0x124   :  { %v6351_v58 = vld [vmem:[%s9821_s0 + $0x4a8] sm:$0xff] }
 0x125   :  { %v6415_v59 = vld [vmem:[%s9821_s0 + $0x6a8] sm:$0xff] }
 0x126   :  { %v3291_v60 = vpop.f32.mrf.mxu2  ;;  %v3611_v61 = vpop.f32.mrf.mxu3 }
 0x127   :  { %v2653_v62 = vpop.f32.mrf.mxu0  ;;  %v2973_v63 = vpop.f32.mrf.mxu1 }
 0x128   :  { %v6508_v0 = vpack.c.bf16 %v2653_v62, %v2651_v56  ;;  %v6828_v1 = vpack.c.bf16 %v2973_v63, %v2971_v57 }
 0x12a   :  { %7748 = vst [vmem:[%s9822_s2 + $0x48] sm:$0xff] %v6508_v0  }
 0x12b   :  { %7812 = vst [vmem:[%s9822_s2 + $0x248] sm:$0xff] %v6828_v1  }
 0x12e   :  { %v3293_v2 = vpop.f32.mrf.mxu2  ;;  %v3613_v3 = vpop.f32.mrf.mxu3 }
 0x12f   :  { %v7148_v6 = vpack.c.bf16 %v3293_v2, %v3291_v60  ;;  %v7468_v7 = vpack.c.bf16 %v3613_v3, %v3611_v61  ;;  %v2656_v8 = vpop.f32.mrf.mxu0  ;;  %v2976_v9 = vpop.f32.mrf.mxu1 }
 0x131   :  { %7876 = vst [vmem:[%s9822_s2 + $0x448] sm:$0xff] %v7148_v6  }
 0x132   :  { %7940 = vst [vmem:[%s9822_s2 + $0x648] sm:$0xff] %v7468_v7   ;;  %5964 = vmatmul.msk.bf16.gmra.mxu0 %vm1824_vm1, %v6220_v4  ;;  %6028 = vmatmul.msk.bf16.gmra.mxu1 %vm1824_vm1, %v6284_v5  ;;  %v6224_v4 = vld [vmem:[%s9821_s0 + $0xb0] sm:$0xff] }
 0x133   :  { %6092 = vmatmul.msk.bf16.gmra.mxu2 %vm1824_vm1, %v6348_v10  ;;  %6156 = vmatmul.msk.bf16.gmra.mxu3 %vm1824_vm1, %v6412_v11  ;;  %v6288_v5 = vld [vmem:[%s9821_s0 + $0x2b0] sm:$0xff] }
 0x134   :  { %v6352_v10 = vld [vmem:[%s9821_s0 + $0x4b0] sm:$0xff] }
 0x135   :  { %v6416_v11 = vld [vmem:[%s9821_s0 + $0x6b0] sm:$0xff] }
 0x136   :  { %v3296_v12 = vpop.f32.mrf.mxu2  ;;  %v3616_v13 = vpop.f32.mrf.mxu3 }
 0x137   :  { %v2658_v14 = vpop.f32.mrf.mxu0  ;;  %v2978_v15 = vpop.f32.mrf.mxu1 }
 0x138   :  { %v6513_v16 = vpack.c.bf16 %v2658_v14, %v2656_v8  ;;  %v6833_v17 = vpack.c.bf16 %v2978_v15, %v2976_v9 }
 0x13a   :  { %7749 = vst [vmem:[%s9822_s2 + $0x50] sm:$0xff] %v6513_v16  }
 0x13b   :  { %7813 = vst [vmem:[%s9822_s2 + $0x250] sm:$0xff] %v6833_v17  }
 0x13e   :  { %v3298_v18 = vpop.f32.mrf.mxu2  ;;  %v3618_v19 = vpop.f32.mrf.mxu3 }
 0x13f   :  { %v7153_v22 = vpack.c.bf16 %v3298_v18, %v3296_v12  ;;  %v7473_v23 = vpack.c.bf16 %v3618_v19, %v3616_v13  ;;  %v2661_v24 = vpop.f32.mrf.mxu0  ;;  %v2981_v25 = vpop.f32.mrf.mxu1 }
 0x141   :  { %7877 = vst [vmem:[%s9822_s2 + $0x450] sm:$0xff] %v7153_v22  }
 0x142   :  { %7941 = vst [vmem:[%s9822_s2 + $0x650] sm:$0xff] %v7473_v23   ;;  %5965 = vmatmul.msk.bf16.gmra.mxu0 %vm1824_vm1, %v6221_v20  ;;  %6029 = vmatmul.msk.bf16.gmra.mxu1 %vm1824_vm1, %v6285_v21  ;;  %v6225_v20 = vld [vmem:[%s9821_s0 + $0xb8] sm:$0xff] }
 0x143   :  { %6093 = vmatmul.msk.bf16.gmra.mxu2 %vm1824_vm1, %v6349_v26  ;;  %6157 = vmatmul.msk.bf16.gmra.mxu3 %vm1824_vm1, %v6413_v27  ;;  %v6289_v21 = vld [vmem:[%s9821_s0 + $0x2b8] sm:$0xff] }
 0x144   :  { %v6353_v26 = vld [vmem:[%s9821_s0 + $0x4b8] sm:$0xff] }
 0x145   :  { %v6417_v27 = vld [vmem:[%s9821_s0 + $0x6b8] sm:$0xff] }
 0x146   :  { %v3301_v28 = vpop.f32.mrf.mxu2  ;;  %v3621_v29 = vpop.f32.mrf.mxu3 }
 0x147   :  { %v2663_v30 = vpop.f32.mrf.mxu0  ;;  %v2983_v31 = vpop.f32.mrf.mxu1 }
 0x148   :  { %v6518_v32 = vpack.c.bf16 %v2663_v30, %v2661_v24  ;;  %v6838_v33 = vpack.c.bf16 %v2983_v31, %v2981_v25 }
 0x14a   :  { %7750 = vst [vmem:[%s9822_s2 + $0x58] sm:$0xff] %v6518_v32  }
 0x14b   :  { %7814 = vst [vmem:[%s9822_s2 + $0x258] sm:$0xff] %v6838_v33  }
 0x14e   :  { %v3303_v34 = vpop.f32.mrf.mxu2  ;;  %v3623_v35 = vpop.f32.mrf.mxu3 }
 0x14f   :  { %v7158_v38 = vpack.c.bf16 %v3303_v34, %v3301_v28  ;;  %v7478_v39 = vpack.c.bf16 %v3623_v35, %v3621_v29  ;;  %v2666_v40 = vpop.f32.mrf.mxu0  ;;  %v2986_v41 = vpop.f32.mrf.mxu1 }
 0x151   :  { %7878 = vst [vmem:[%s9822_s2 + $0x458] sm:$0xff] %v7158_v38  }
 0x152   :  { %7942 = vst [vmem:[%s9822_s2 + $0x658] sm:$0xff] %v7478_v39   ;;  %5966 = vmatmul.msk.bf16.gmra.mxu0 %vm1824_vm1, %v6222_v36  ;;  %6030 = vmatmul.msk.bf16.gmra.mxu1 %vm1824_vm1, %v6286_v37  ;;  %v6226_v36 = vld [vmem:[%s9821_s0 + $0xc0] sm:$0xff] }
 0x153   :  { %6094 = vmatmul.msk.bf16.gmra.mxu2 %vm1824_vm1, %v6350_v42  ;;  %6158 = vmatmul.msk.bf16.gmra.mxu3 %vm1824_vm1, %v6414_v43  ;;  %v6290_v37 = vld [vmem:[%s9821_s0 + $0x2c0] sm:$0xff] }
 0x154   :  { %v6354_v42 = vld [vmem:[%s9821_s0 + $0x4c0] sm:$0xff] }
 0x155   :  { %v6418_v43 = vld [vmem:[%s9821_s0 + $0x6c0] sm:$0xff] }
 0x156   :  { %v3306_v44 = vpop.f32.mrf.mxu2  ;;  %v3626_v45 = vpop.f32.mrf.mxu3 }
 0x157   :  { %v2668_v46 = vpop.f32.mrf.mxu0  ;;  %v2988_v47 = vpop.f32.mrf.mxu1 }
 0x158   :  { %v6523_v48 = vpack.c.bf16 %v2668_v46, %v2666_v40  ;;  %v6843_v49 = vpack.c.bf16 %v2988_v47, %v2986_v41 }
 0x15a   :  { %7751 = vst [vmem:[%s9822_s2 + $0x60] sm:$0xff] %v6523_v48  }
 0x15b   :  { %7815 = vst [vmem:[%s9822_s2 + $0x260] sm:$0xff] %v6843_v49  }
 0x15e   :  { %v3308_v50 = vpop.f32.mrf.mxu2  ;;  %v3628_v51 = vpop.f32.mrf.mxu3 }
 0x15f   :  { %v7163_v54 = vpack.c.bf16 %v3308_v50, %v3306_v44  ;;  %v7483_v55 = vpack.c.bf16 %v3628_v51, %v3626_v45  ;;  %v2671_v56 = vpop.f32.mrf.mxu0  ;;  %v2991_v57 = vpop.f32.mrf.mxu1 }
 0x161   :  { %7879 = vst [vmem:[%s9822_s2 + $0x460] sm:$0xff] %v7163_v54  }
 0x162   :  { %7943 = vst [vmem:[%s9822_s2 + $0x660] sm:$0xff] %v7483_v55   ;;  %5967 = vmatmul.msk.bf16.gmra.mxu0 %vm1824_vm1, %v6223_v52  ;;  %6031 = vmatmul.msk.bf16.gmra.mxu1 %vm1824_vm1, %v6287_v53  ;;  %v6227_v52 = vld [vmem:[%s9821_s0 + $0xc8] sm:$0xff] }
 0x163   :  { %6095 = vmatmul.msk.bf16.gmra.mxu2 %vm1824_vm1, %v6351_v58  ;;  %6159 = vmatmul.msk.bf16.gmra.mxu3 %vm1824_vm1, %v6415_v59  ;;  %v6291_v53 = vld [vmem:[%s9821_s0 + $0x2c8] sm:$0xff] }
 0x164   :  { %v6355_v58 = vld [vmem:[%s9821_s0 + $0x4c8] sm:$0xff] }
 0x165   :  { %v6419_v59 = vld [vmem:[%s9821_s0 + $0x6c8] sm:$0xff] }
 0x166   :  { %v3311_v60 = vpop.f32.mrf.mxu2  ;;  %v3631_v61 = vpop.f32.mrf.mxu3 }
 0x167   :  { %v2673_v62 = vpop.f32.mrf.mxu0  ;;  %v2993_v63 = vpop.f32.mrf.mxu1 }
 0x168   :  { %v6528_v0 = vpack.c.bf16 %v2673_v62, %v2671_v56  ;;  %v6848_v1 = vpack.c.bf16 %v2993_v63, %v2991_v57 }
 0x16a   :  { %7752 = vst [vmem:[%s9822_s2 + $0x68] sm:$0xff] %v6528_v0  }
 0x16b   :  { %7816 = vst [vmem:[%s9822_s2 + $0x268] sm:$0xff] %v6848_v1  }
 0x16e   :  { %v3313_v2 = vpop.f32.mrf.mxu2  ;;  %v3633_v3 = vpop.f32.mrf.mxu3 }
 0x16f   :  { %v7168_v6 = vpack.c.bf16 %v3313_v2, %v3311_v60  ;;  %v7488_v7 = vpack.c.bf16 %v3633_v3, %v3631_v61  ;;  %v2676_v8 = vpop.f32.mrf.mxu0  ;;  %v2996_v9 = vpop.f32.mrf.mxu1 }
 0x171   :  { %7880 = vst [vmem:[%s9822_s2 + $0x468] sm:$0xff] %v7168_v6  }
 0x172   :  { %7944 = vst [vmem:[%s9822_s2 + $0x668] sm:$0xff] %v7488_v7   ;;  %5968 = vmatmul.msk.bf16.gmra.mxu0 %vm1824_vm1, %v6224_v4  ;;  %6032 = vmatmul.msk.bf16.gmra.mxu1 %vm1824_vm1, %v6288_v5  ;;  %v6228_v4 = vld [vmem:[%s9821_s0 + $0xd0] sm:$0xff] }
 0x173   :  { %6096 = vmatmul.msk.bf16.gmra.mxu2 %vm1824_vm1, %v6352_v10  ;;  %6160 = vmatmul.msk.bf16.gmra.mxu3 %vm1824_vm1, %v6416_v11  ;;  %v6292_v5 = vld [vmem:[%s9821_s0 + $0x2d0] sm:$0xff] }
 0x174   :  { %v6356_v10 = vld [vmem:[%s9821_s0 + $0x4d0] sm:$0xff] }
 0x175   :  { %v6420_v11 = vld [vmem:[%s9821_s0 + $0x6d0] sm:$0xff] }
 0x176   :  { %v3316_v12 = vpop.f32.mrf.mxu2  ;;  %v3636_v13 = vpop.f32.mrf.mxu3 }
 0x177   :  { %v2678_v14 = vpop.f32.mrf.mxu0  ;;  %v2998_v15 = vpop.f32.mrf.mxu1 }
 0x178   :  { %v6533_v16 = vpack.c.bf16 %v2678_v14, %v2676_v8  ;;  %v6853_v17 = vpack.c.bf16 %v2998_v15, %v2996_v9 }
 0x17a   :  { %7753 = vst [vmem:[%s9822_s2 + $0x70] sm:$0xff] %v6533_v16  }
 0x17b   :  { %7817 = vst [vmem:[%s9822_s2 + $0x270] sm:$0xff] %v6853_v17  }
 0x17e   :  { %v3318_v18 = vpop.f32.mrf.mxu2  ;;  %v3638_v19 = vpop.f32.mrf.mxu3 }
 0x17f   :  { %v7173_v22 = vpack.c.bf16 %v3318_v18, %v3316_v12  ;;  %v7493_v23 = vpack.c.bf16 %v3638_v19, %v3636_v13  ;;  %v2681_v24 = vpop.f32.mrf.mxu0  ;;  %v3001_v25 = vpop.f32.mrf.mxu1 }
 0x181   :  { %7881 = vst [vmem:[%s9822_s2 + $0x470] sm:$0xff] %v7173_v22  }
 0x182   :  { %7945 = vst [vmem:[%s9822_s2 + $0x670] sm:$0xff] %v7493_v23   ;;  %5969 = vmatmul.msk.bf16.gmra.mxu0 %vm1824_vm1, %v6225_v20  ;;  %6033 = vmatmul.msk.bf16.gmra.mxu1 %vm1824_vm1, %v6289_v21  ;;  %v6229_v20 = vld [vmem:[%s9821_s0 + $0xd8] sm:$0xff] }
 0x183   :  { %6097 = vmatmul.msk.bf16.gmra.mxu2 %vm1824_vm1, %v6353_v26  ;;  %6161 = vmatmul.msk.bf16.gmra.mxu3 %vm1824_vm1, %v6417_v27  ;;  %v6293_v21 = vld [vmem:[%s9821_s0 + $0x2d8] sm:$0xff] }
 0x184   :  { %v6357_v26 = vld [vmem:[%s9821_s0 + $0x4d8] sm:$0xff] }
 0x185   :  { %v6421_v27 = vld [vmem:[%s9821_s0 + $0x6d8] sm:$0xff] }
 0x186   :  { %v3321_v28 = vpop.f32.mrf.mxu2  ;;  %v3641_v29 = vpop.f32.mrf.mxu3 }
 0x187   :  { %v2683_v30 = vpop.f32.mrf.mxu0  ;;  %v3003_v31 = vpop.f32.mrf.mxu1 }
 0x188   :  { %v6538_v32 = vpack.c.bf16 %v2683_v30, %v2681_v24  ;;  %v6858_v33 = vpack.c.bf16 %v3003_v31, %v3001_v25 }
 0x18a   :  { %7754 = vst [vmem:[%s9822_s2 + $0x78] sm:$0xff] %v6538_v32  }
 0x18b   :  { %7818 = vst [vmem:[%s9822_s2 + $0x278] sm:$0xff] %v6858_v33  }
 0x18e   :  { %v3323_v34 = vpop.f32.mrf.mxu2  ;;  %v3643_v35 = vpop.f32.mrf.mxu3 }
 0x18f   :  { %v7178_v38 = vpack.c.bf16 %v3323_v34, %v3321_v28  ;;  %v7498_v39 = vpack.c.bf16 %v3643_v35, %v3641_v29  ;;  %v2686_v40 = vpop.f32.mrf.mxu0  ;;  %v3006_v41 = vpop.f32.mrf.mxu1 }
 0x191   :  { %7882 = vst [vmem:[%s9822_s2 + $0x478] sm:$0xff] %v7178_v38  }
 0x192   :  { %7946 = vst [vmem:[%s9822_s2 + $0x678] sm:$0xff] %v7498_v39   ;;  %5970 = vmatmul.msk.bf16.gmra.mxu0 %vm1824_vm1, %v6226_v36  ;;  %6034 = vmatmul.msk.bf16.gmra.mxu1 %vm1824_vm1, %v6290_v37  ;;  %v6230_v36 = vld [vmem:[%s9821_s0 + $0xe0] sm:$0xff] }
 0x193   :  { %6098 = vmatmul.msk.bf16.gmra.mxu2 %vm1824_vm1, %v6354_v42  ;;  %6162 = vmatmul.msk.bf16.gmra.mxu3 %vm1824_vm1, %v6418_v43  ;;  %v6294_v37 = vld [vmem:[%s9821_s0 + $0x2e0] sm:$0xff] }
 0x194   :  { %v6358_v42 = vld [vmem:[%s9821_s0 + $0x4e0] sm:$0xff] }
 0x195   :  { %v6422_v43 = vld [vmem:[%s9821_s0 + $0x6e0] sm:$0xff] }
 0x196   :  { %v3326_v44 = vpop.f32.mrf.mxu2  ;;  %v3646_v45 = vpop.f32.mrf.mxu3 }
 0x197   :  { %v2688_v46 = vpop.f32.mrf.mxu0  ;;  %v3008_v47 = vpop.f32.mrf.mxu1 }
 0x198   :  { %v6543_v48 = vpack.c.bf16 %v2688_v46, %v2686_v40  ;;  %v6863_v49 = vpack.c.bf16 %v3008_v47, %v3006_v41 }
 0x19a   :  { %7755 = vst [vmem:[%s9822_s2 + $0x80] sm:$0xff] %v6543_v48  }
 0x19b   :  { %7819 = vst [vmem:[%s9822_s2 + $0x280] sm:$0xff] %v6863_v49  }
 0x19e   :  { %v3328_v50 = vpop.f32.mrf.mxu2  ;;  %v3648_v51 = vpop.f32.mrf.mxu3 }
 0x19f   :  { %v7183_v54 = vpack.c.bf16 %v3328_v50, %v3326_v44  ;;  %v7503_v55 = vpack.c.bf16 %v3648_v51, %v3646_v45  ;;  %v2691_v56 = vpop.f32.mrf.mxu0  ;;  %v3011_v57 = vpop.f32.mrf.mxu1 }
 0x1a1   :  { %7883 = vst [vmem:[%s9822_s2 + $0x480] sm:$0xff] %v7183_v54  }
 0x1a2   :  { %7947 = vst [vmem:[%s9822_s2 + $0x680] sm:$0xff] %v7503_v55   ;;  %5971 = vmatmul.msk.bf16.gmra.mxu0 %vm1824_vm1, %v6227_v52  ;;  %6035 = vmatmul.msk.bf16.gmra.mxu1 %vm1824_vm1, %v6291_v53  ;;  %v6231_v52 = vld [vmem:[%s9821_s0 + $0xe8] sm:$0xff] }
 0x1a3   :  { %6099 = vmatmul.msk.bf16.gmra.mxu2 %vm1824_vm1, %v6355_v58  ;;  %6163 = vmatmul.msk.bf16.gmra.mxu3 %vm1824_vm1, %v6419_v59  ;;  %v6295_v53 = vld [vmem:[%s9821_s0 + $0x2e8] sm:$0xff] }
 0x1a4   :  { %v6359_v58 = vld [vmem:[%s9821_s0 + $0x4e8] sm:$0xff] }
 0x1a5   :  { %v6423_v59 = vld [vmem:[%s9821_s0 + $0x6e8] sm:$0xff] }
 0x1a6   :  { %v3331_v60 = vpop.f32.mrf.mxu2  ;;  %v3651_v61 = vpop.f32.mrf.mxu3 }
 0x1a7   :  { %v2693_v62 = vpop.f32.mrf.mxu0  ;;  %v3013_v63 = vpop.f32.mrf.mxu1 }
 0x1a8   :  { %v6548_v0 = vpack.c.bf16 %v2693_v62, %v2691_v56  ;;  %v6868_v1 = vpack.c.bf16 %v3013_v63, %v3011_v57 }
 0x1aa   :  { %7756 = vst [vmem:[%s9822_s2 + $0x88] sm:$0xff] %v6548_v0  }
 0x1ab   :  { %7820 = vst [vmem:[%s9822_s2 + $0x288] sm:$0xff] %v6868_v1  }
 0x1ae   :  { %v3333_v2 = vpop.f32.mrf.mxu2  ;;  %v3653_v3 = vpop.f32.mrf.mxu3 }
 0x1af   :  { %v7188_v6 = vpack.c.bf16 %v3333_v2, %v3331_v60  ;;  %v7508_v7 = vpack.c.bf16 %v3653_v3, %v3651_v61  ;;  %v2696_v8 = vpop.f32.mrf.mxu0  ;;  %v3016_v9 = vpop.f32.mrf.mxu1 }
 0x1b1   :  { %7884 = vst [vmem:[%s9822_s2 + $0x488] sm:$0xff] %v7188_v6  }
 0x1b2   :  { %7948 = vst [vmem:[%s9822_s2 + $0x688] sm:$0xff] %v7508_v7   ;;  %5972 = vmatmul.msk.bf16.gmra.mxu0 %vm1824_vm1, %v6228_v4  ;;  %6036 = vmatmul.msk.bf16.gmra.mxu1 %vm1824_vm1, %v6292_v5  ;;  %v6232_v4 = vld [vmem:[%s9821_s0 + $0xf0] sm:$0xff] }
 0x1b3   :  { %6100 = vmatmul.msk.bf16.gmra.mxu2 %vm1824_vm1, %v6356_v10  ;;  %6164 = vmatmul.msk.bf16.gmra.mxu3 %vm1824_vm1, %v6420_v11  ;;  %v6296_v5 = vld [vmem:[%s9821_s0 + $0x2f0] sm:$0xff] }
 0x1b4   :  { %v6360_v10 = vld [vmem:[%s9821_s0 + $0x4f0] sm:$0xff] }
 0x1b5   :  { %v6424_v11 = vld [vmem:[%s9821_s0 + $0x6f0] sm:$0xff] }
 0x1b6   :  { %v3336_v12 = vpop.f32.mrf.mxu2  ;;  %v3656_v13 = vpop.f32.mrf.mxu3 }
 0x1b7   :  { %v2698_v14 = vpop.f32.mrf.mxu0  ;;  %v3018_v15 = vpop.f32.mrf.mxu1 }
 0x1b8   :  { %v6553_v16 = vpack.c.bf16 %v2698_v14, %v2696_v8  ;;  %v6873_v17 = vpack.c.bf16 %v3018_v15, %v3016_v9 }
 0x1ba   :  { %7757 = vst [vmem:[%s9822_s2 + $0x90] sm:$0xff] %v6553_v16  }
 0x1bb   :  { %7821 = vst [vmem:[%s9822_s2 + $0x290] sm:$0xff] %v6873_v17  }
 0x1be   :  { %v3338_v18 = vpop.f32.mrf.mxu2  ;;  %v3658_v19 = vpop.f32.mrf.mxu3 }
 0x1bf   :  { %v7193_v22 = vpack.c.bf16 %v3338_v18, %v3336_v12  ;;  %v7513_v23 = vpack.c.bf16 %v3658_v19, %v3656_v13  ;;  %v2701_v24 = vpop.f32.mrf.mxu0  ;;  %v3021_v25 = vpop.f32.mrf.mxu1 }
 0x1c1   :  { %7885 = vst [vmem:[%s9822_s2 + $0x490] sm:$0xff] %v7193_v22  }
 0x1c2   :  { %7949 = vst [vmem:[%s9822_s2 + $0x690] sm:$0xff] %v7513_v23   ;;  %5973 = vmatmul.msk.bf16.gmra.mxu0 %vm1824_vm1, %v6229_v20  ;;  %6037 = vmatmul.msk.bf16.gmra.mxu1 %vm1824_vm1, %v6293_v21  ;;  %v6233_v20 = vld [vmem:[%s9821_s0 + $0xf8] sm:$0xff] }
 0x1c3   :  { %6101 = vmatmul.msk.bf16.gmra.mxu2 %vm1824_vm1, %v6357_v26  ;;  %6165 = vmatmul.msk.bf16.gmra.mxu3 %vm1824_vm1, %v6421_v27  ;;  %v6297_v21 = vld [vmem:[%s9821_s0 + $0x2f8] sm:$0xff] }
 0x1c4   :  { %v6361_v26 = vld [vmem:[%s9821_s0 + $0x4f8] sm:$0xff] }
 0x1c5   :  { %v6425_v27 = vld [vmem:[%s9821_s0 + $0x6f8] sm:$0xff] }
 0x1c6   :  { %v3341_v28 = vpop.f32.mrf.mxu2  ;;  %v3661_v29 = vpop.f32.mrf.mxu3 }
 0x1c7   :  { %v2703_v30 = vpop.f32.mrf.mxu0  ;;  %v3023_v31 = vpop.f32.mrf.mxu1 }
 0x1c8   :  { %v6558_v32 = vpack.c.bf16 %v2703_v30, %v2701_v24  ;;  %v6878_v33 = vpack.c.bf16 %v3023_v31, %v3021_v25 }
 0x1ca   :  { %7758 = vst [vmem:[%s9822_s2 + $0x98] sm:$0xff] %v6558_v32  }
 0x1cb   :  { %7822 = vst [vmem:[%s9822_s2 + $0x298] sm:$0xff] %v6878_v33  }
 0x1ce   :  { %v3343_v34 = vpop.f32.mrf.mxu2  ;;  %v3663_v35 = vpop.f32.mrf.mxu3 }
 0x1cf   :  { %v7198_v38 = vpack.c.bf16 %v3343_v34, %v3341_v28  ;;  %v7518_v39 = vpack.c.bf16 %v3663_v35, %v3661_v29  ;;  %v2706_v40 = vpop.f32.mrf.mxu0  ;;  %v3026_v41 = vpop.f32.mrf.mxu1 }
 0x1d1   :  { %7886 = vst [vmem:[%s9822_s2 + $0x498] sm:$0xff] %v7198_v38  }
 0x1d2   :  { %7950 = vst [vmem:[%s9822_s2 + $0x698] sm:$0xff] %v7518_v39   ;;  %5974 = vmatmul.msk.bf16.gmra.mxu0 %vm1824_vm1, %v6230_v36  ;;  %6038 = vmatmul.msk.bf16.gmra.mxu1 %vm1824_vm1, %v6294_v37  ;;  %v6234_v36 = vld [vmem:[%s9821_s0 + $0x100] sm:$0xff] }
 0x1d3   :  { %6102 = vmatmul.msk.bf16.gmra.mxu2 %vm1824_vm1, %v6358_v42  ;;  %6166 = vmatmul.msk.bf16.gmra.mxu3 %vm1824_vm1, %v6422_v43  ;;  %v6298_v37 = vld [vmem:[%s9821_s0 + $0x300] sm:$0xff] }
 0x1d4   :  { %v6362_v42 = vld [vmem:[%s9821_s0 + $0x500] sm:$0xff] }
 0x1d5   :  { %v6426_v43 = vld [vmem:[%s9821_s0 + $0x700] sm:$0xff] }
 0x1d6   :  { %v3346_v44 = vpop.f32.mrf.mxu2  ;;  %v3666_v45 = vpop.f32.mrf.mxu3 }
 0x1d7   :  { %v2708_v46 = vpop.f32.mrf.mxu0  ;;  %v3028_v47 = vpop.f32.mrf.mxu1 }
 0x1d8   :  { %v6563_v48 = vpack.c.bf16 %v2708_v46, %v2706_v40  ;;  %v6883_v49 = vpack.c.bf16 %v3028_v47, %v3026_v41 }
 0x1da   :  { %7759 = vst [vmem:[%s9822_s2 + $0xa0] sm:$0xff] %v6563_v48  }
 0x1db   :  { %7823 = vst [vmem:[%s9822_s2 + $0x2a0] sm:$0xff] %v6883_v49  }
 0x1de   :  { %v3348_v50 = vpop.f32.mrf.mxu2  ;;  %v3668_v51 = vpop.f32.mrf.mxu3 }
 0x1df   :  { %v7203_v54 = vpack.c.bf16 %v3348_v50, %v3346_v44  ;;  %v7523_v55 = vpack.c.bf16 %v3668_v51, %v3666_v45  ;;  %v2711_v56 = vpop.f32.mrf.mxu0  ;;  %v3031_v57 = vpop.f32.mrf.mxu1 }
 0x1e1   :  { %7887 = vst [vmem:[%s9822_s2 + $0x4a0] sm:$0xff] %v7203_v54  }
 0x1e2   :  { %7951 = vst [vmem:[%s9822_s2 + $0x6a0] sm:$0xff] %v7523_v55   ;;  %5975 = vmatmul.msk.bf16.gmra.mxu0 %vm1824_vm1, %v6231_v52  ;;  %6039 = vmatmul.msk.bf16.gmra.mxu1 %vm1824_vm1, %v6295_v53  ;;  %v6235_v52 = vld [vmem:[%s9821_s0 + $0x108] sm:$0xff] }
 0x1e3   :  { %6103 = vmatmul.msk.bf16.gmra.mxu2 %vm1824_vm1, %v6359_v58  ;;  %6167 = vmatmul.msk.bf16.gmra.mxu3 %vm1824_vm1, %v6423_v59  ;;  %v6299_v53 = vld [vmem:[%s9821_s0 + $0x308] sm:$0xff] }
 0x1e4   :  { %v6363_v58 = vld [vmem:[%s9821_s0 + $0x508] sm:$0xff] }
 0x1e5   :  { %v6427_v59 = vld [vmem:[%s9821_s0 + $0x708] sm:$0xff] }
 0x1e6   :  { %v3351_v60 = vpop.f32.mrf.mxu2  ;;  %v3671_v61 = vpop.f32.mrf.mxu3 }
 0x1e7   :  { %v2713_v62 = vpop.f32.mrf.mxu0  ;;  %v3033_v63 = vpop.f32.mrf.mxu1 }
 0x1e8   :  { %v6568_v0 = vpack.c.bf16 %v2713_v62, %v2711_v56  ;;  %v6888_v1 = vpack.c.bf16 %v3033_v63, %v3031_v57 }
 0x1ea   :  { %7760 = vst [vmem:[%s9822_s2 + $0xa8] sm:$0xff] %v6568_v0  }
 0x1eb   :  { %7824 = vst [vmem:[%s9822_s2 + $0x2a8] sm:$0xff] %v6888_v1  }
 0x1ee   :  { %v3353_v2 = vpop.f32.mrf.mxu2  ;;  %v3673_v3 = vpop.f32.mrf.mxu3 }
 0x1ef   :  { %v7208_v6 = vpack.c.bf16 %v3353_v2, %v3351_v60  ;;  %v7528_v7 = vpack.c.bf16 %v3673_v3, %v3671_v61  ;;  %v2716_v8 = vpop.f32.mrf.mxu0  ;;  %v3036_v9 = vpop.f32.mrf.mxu1 }
 0x1f1   :  { %7888 = vst [vmem:[%s9822_s2 + $0x4a8] sm:$0xff] %v7208_v6  }
 0x1f2   :  { %7952 = vst [vmem:[%s9822_s2 + $0x6a8] sm:$0xff] %v7528_v7   ;;  %5976 = vmatmul.msk.bf16.gmra.mxu0 %vm1824_vm1, %v6232_v4  ;;  %6040 = vmatmul.msk.bf16.gmra.mxu1 %vm1824_vm1, %v6296_v5  ;;  %v6236_v4 = vld [vmem:[%s9821_s0 + $0x110] sm:$0xff] }
 0x1f3   :  { %6104 = vmatmul.msk.bf16.gmra.mxu2 %vm1824_vm1, %v6360_v10  ;;  %6168 = vmatmul.msk.bf16.gmra.mxu3 %vm1824_vm1, %v6424_v11  ;;  %v6300_v5 = vld [vmem:[%s9821_s0 + $0x310] sm:$0xff] }
 0x1f4   :  { %v6364_v10 = vld [vmem:[%s9821_s0 + $0x510] sm:$0xff] }
 0x1f5   :  { %v6428_v11 = vld [vmem:[%s9821_s0 + $0x710] sm:$0xff] }
 0x1f6   :  { %v3356_v12 = vpop.f32.mrf.mxu2  ;;  %v3676_v13 = vpop.f32.mrf.mxu3 }
 0x1f7   :  { %v2718_v14 = vpop.f32.mrf.mxu0  ;;  %v3038_v15 = vpop.f32.mrf.mxu1 }
 0x1f8   :  { %v6573_v16 = vpack.c.bf16 %v2718_v14, %v2716_v8  ;;  %v6893_v17 = vpack.c.bf16 %v3038_v15, %v3036_v9 }
 0x1fa   :  { %7761 = vst [vmem:[%s9822_s2 + $0xb0] sm:$0xff] %v6573_v16  }
 0x1fb   :  { %7825 = vst [vmem:[%s9822_s2 + $0x2b0] sm:$0xff] %v6893_v17  }
 0x1fe   :  { %v3358_v18 = vpop.f32.mrf.mxu2  ;;  %v3678_v19 = vpop.f32.mrf.mxu3 }
 0x1ff   :  { %v7213_v22 = vpack.c.bf16 %v3358_v18, %v3356_v12  ;;  %v7533_v23 = vpack.c.bf16 %v3678_v19, %v3676_v13  ;;  %v2721_v24 = vpop.f32.mrf.mxu0  ;;  %v3041_v25 = vpop.f32.mrf.mxu1 }
 0x201   :  { %7889 = vst [vmem:[%s9822_s2 + $0x4b0] sm:$0xff] %v7213_v22  }
 0x202   :  { %7953 = vst [vmem:[%s9822_s2 + $0x6b0] sm:$0xff] %v7533_v23   ;;  %5977 = vmatmul.msk.bf16.gmra.mxu0 %vm1824_vm1, %v6233_v20  ;;  %6041 = vmatmul.msk.bf16.gmra.mxu1 %vm1824_vm1, %v6297_v21  ;;  %v6237_v20 = vld [vmem:[%s9821_s0 + $0x118] sm:$0xff] }
 0x203   :  { %6105 = vmatmul.msk.bf16.gmra.mxu2 %vm1824_vm1, %v6361_v26  ;;  %6169 = vmatmul.msk.bf16.gmra.mxu3 %vm1824_vm1, %v6425_v27  ;;  %v6301_v21 = vld [vmem:[%s9821_s0 + $0x318] sm:$0xff] }
 0x204   :  { %v6365_v26 = vld [vmem:[%s9821_s0 + $0x518] sm:$0xff] }
 0x205   :  { %v6429_v27 = vld [vmem:[%s9821_s0 + $0x718] sm:$0xff] }
 0x206   :  { %v3361_v28 = vpop.f32.mrf.mxu2  ;;  %v3681_v29 = vpop.f32.mrf.mxu3 }
 0x207   :  { %v2723_v30 = vpop.f32.mrf.mxu0  ;;  %v3043_v31 = vpop.f32.mrf.mxu1 }
 0x208   :  { %v6578_v32 = vpack.c.bf16 %v2723_v30, %v2721_v24  ;;  %v6898_v33 = vpack.c.bf16 %v3043_v31, %v3041_v25 }
 0x20a   :  { %7762 = vst [vmem:[%s9822_s2 + $0xb8] sm:$0xff] %v6578_v32  }
 0x20b   :  { %7826 = vst [vmem:[%s9822_s2 + $0x2b8] sm:$0xff] %v6898_v33  }
 0x20e   :  { %v3363_v34 = vpop.f32.mrf.mxu2  ;;  %v3683_v35 = vpop.f32.mrf.mxu3 }
 0x20f   :  { %v7218_v38 = vpack.c.bf16 %v3363_v34, %v3361_v28  ;;  %v7538_v39 = vpack.c.bf16 %v3683_v35, %v3681_v29  ;;  %v2726_v40 = vpop.f32.mrf.mxu0  ;;  %v3046_v41 = vpop.f32.mrf.mxu1 }
 0x211   :  { %7890 = vst [vmem:[%s9822_s2 + $0x4b8] sm:$0xff] %v7218_v38  }
 0x212   :  { %7954 = vst [vmem:[%s9822_s2 + $0x6b8] sm:$0xff] %v7538_v39   ;;  %5978 = vmatmul.msk.bf16.gmra.mxu0 %vm1824_vm1, %v6234_v36  ;;  %6042 = vmatmul.msk.bf16.gmra.mxu1 %vm1824_vm1, %v6298_v37  ;;  %v6238_v36 = vld [vmem:[%s9821_s0 + $0x120] sm:$0xff] }
 0x213   :  { %6106 = vmatmul.msk.bf16.gmra.mxu2 %vm1824_vm1, %v6362_v42  ;;  %6170 = vmatmul.msk.bf16.gmra.mxu3 %vm1824_vm1, %v6426_v43  ;;  %v6302_v37 = vld [vmem:[%s9821_s0 + $0x320] sm:$0xff] }
 0x214   :  { %v6366_v42 = vld [vmem:[%s9821_s0 + $0x520] sm:$0xff] }
 0x215   :  { %v6430_v43 = vld [vmem:[%s9821_s0 + $0x720] sm:$0xff] }
 0x216   :  { %v3366_v44 = vpop.f32.mrf.mxu2  ;;  %v3686_v45 = vpop.f32.mrf.mxu3 }
 0x217   :  { %v2728_v46 = vpop.f32.mrf.mxu0  ;;  %v3048_v47 = vpop.f32.mrf.mxu1 }
 0x218   :  { %v6583_v48 = vpack.c.bf16 %v2728_v46, %v2726_v40  ;;  %v6903_v49 = vpack.c.bf16 %v3048_v47, %v3046_v41 }
 0x21a   :  { %7763 = vst [vmem:[%s9822_s2 + $0xc0] sm:$0xff] %v6583_v48  }
 0x21b   :  { %7827 = vst [vmem:[%s9822_s2 + $0x2c0] sm:$0xff] %v6903_v49  }
 0x21e   :  { %v3368_v50 = vpop.f32.mrf.mxu2  ;;  %v3688_v51 = vpop.f32.mrf.mxu3 }
 0x21f   :  { %v7223_v54 = vpack.c.bf16 %v3368_v50, %v3366_v44  ;;  %v7543_v55 = vpack.c.bf16 %v3688_v51, %v3686_v45  ;;  %v2731_v56 = vpop.f32.mrf.mxu0  ;;  %v3051_v57 = vpop.f32.mrf.mxu1 }
 0x221   :  { %7891 = vst [vmem:[%s9822_s2 + $0x4c0] sm:$0xff] %v7223_v54  }
 0x222   :  { %7955 = vst [vmem:[%s9822_s2 + $0x6c0] sm:$0xff] %v7543_v55   ;;  %5979 = vmatmul.msk.bf16.gmra.mxu0 %vm1824_vm1, %v6235_v52  ;;  %6043 = vmatmul.msk.bf16.gmra.mxu1 %vm1824_vm1, %v6299_v53  ;;  %v6239_v52 = vld [vmem:[%s9821_s0 + $0x128] sm:$0xff] }
 0x223   :  { %6107 = vmatmul.msk.bf16.gmra.mxu2 %vm1824_vm1, %v6363_v58  ;;  %6171 = vmatmul.msk.bf16.gmra.mxu3 %vm1824_vm1, %v6427_v59  ;;  %v6303_v53 = vld [vmem:[%s9821_s0 + $0x328] sm:$0xff] }
 0x224   :  { %v6367_v58 = vld [vmem:[%s9821_s0 + $0x528] sm:$0xff] }
 0x225   :  { %v6431_v59 = vld [vmem:[%s9821_s0 + $0x728] sm:$0xff] }
 0x226   :  { %v3371_v60 = vpop.f32.mrf.mxu2  ;;  %v3691_v61 = vpop.f32.mrf.mxu3 }
 0x227   :  { %v2733_v62 = vpop.f32.mrf.mxu0  ;;  %v3053_v63 = vpop.f32.mrf.mxu1 }
 0x228   :  { %v6588_v0 = vpack.c.bf16 %v2733_v62, %v2731_v56  ;;  %v6908_v1 = vpack.c.bf16 %v3053_v63, %v3051_v57 }
 0x22a   :  { %7764 = vst [vmem:[%s9822_s2 + $0xc8] sm:$0xff] %v6588_v0  }
 0x22b   :  { %7828 = vst [vmem:[%s9822_s2 + $0x2c8] sm:$0xff] %v6908_v1  }
 0x22e   :  { %v3373_v2 = vpop.f32.mrf.mxu2  ;;  %v3693_v3 = vpop.f32.mrf.mxu3 }
 0x22f   :  { %v7228_v6 = vpack.c.bf16 %v3373_v2, %v3371_v60  ;;  %v7548_v7 = vpack.c.bf16 %v3693_v3, %v3691_v61  ;;  %v2736_v8 = vpop.f32.mrf.mxu0  ;;  %v3056_v9 = vpop.f32.mrf.mxu1 }
 0x231   :  { %7892 = vst [vmem:[%s9822_s2 + $0x4c8] sm:$0xff] %v7228_v6  }
 0x232   :  { %7956 = vst [vmem:[%s9822_s2 + $0x6c8] sm:$0xff] %v7548_v7   ;;  %5980 = vmatmul.msk.bf16.gmra.mxu0 %vm1824_vm1, %v6236_v4  ;;  %6044 = vmatmul.msk.bf16.gmra.mxu1 %vm1824_vm1, %v6300_v5  ;;  %v6240_v4 = vld [vmem:[%s9821_s0 + $0x130] sm:$0xff] }
 0x233   :  { %6108 = vmatmul.msk.bf16.gmra.mxu2 %vm1824_vm1, %v6364_v10  ;;  %6172 = vmatmul.msk.bf16.gmra.mxu3 %vm1824_vm1, %v6428_v11  ;;  %v6304_v5 = vld [vmem:[%s9821_s0 + $0x330] sm:$0xff] }
 0x234   :  { %v6368_v10 = vld [vmem:[%s9821_s0 + $0x530] sm:$0xff] }
 0x235   :  { %v6432_v11 = vld [vmem:[%s9821_s0 + $0x730] sm:$0xff] }
 0x236   :  { %v3376_v12 = vpop.f32.mrf.mxu2  ;;  %v3696_v13 = vpop.f32.mrf.mxu3 }
 0x237   :  { %v2738_v14 = vpop.f32.mrf.mxu0  ;;  %v3058_v15 = vpop.f32.mrf.mxu1 }
 0x238   :  { %v6593_v16 = vpack.c.bf16 %v2738_v14, %v2736_v8  ;;  %v6913_v17 = vpack.c.bf16 %v3058_v15, %v3056_v9 }
 0x23a   :  { %7765 = vst [vmem:[%s9822_s2 + $0xd0] sm:$0xff] %v6593_v16  }
 0x23b   :  { %7829 = vst [vmem:[%s9822_s2 + $0x2d0] sm:$0xff] %v6913_v17  }
 0x23e   :  { %v3378_v18 = vpop.f32.mrf.mxu2  ;;  %v3698_v19 = vpop.f32.mrf.mxu3 }
 0x23f   :  { %v7233_v22 = vpack.c.bf16 %v3378_v18, %v3376_v12  ;;  %v7553_v23 = vpack.c.bf16 %v3698_v19, %v3696_v13  ;;  %v2741_v24 = vpop.f32.mrf.mxu0  ;;  %v3061_v25 = vpop.f32.mrf.mxu1 }
 0x241   :  { %7893 = vst [vmem:[%s9822_s2 + $0x4d0] sm:$0xff] %v7233_v22  }
 0x242   :  { %7957 = vst [vmem:[%s9822_s2 + $0x6d0] sm:$0xff] %v7553_v23   ;;  %5981 = vmatmul.msk.bf16.gmra.mxu0 %vm1824_vm1, %v6237_v20  ;;  %6045 = vmatmul.msk.bf16.gmra.mxu1 %vm1824_vm1, %v6301_v21  ;;  %v6241_v20 = vld [vmem:[%s9821_s0 + $0x138] sm:$0xff] }
 0x243   :  { %6109 = vmatmul.msk.bf16.gmra.mxu2 %vm1824_vm1, %v6365_v26  ;;  %6173 = vmatmul.msk.bf16.gmra.mxu3 %vm1824_vm1, %v6429_v27  ;;  %v6305_v21 = vld [vmem:[%s9821_s0 + $0x338] sm:$0xff] }
 0x244   :  { %v6369_v26 = vld [vmem:[%s9821_s0 + $0x538] sm:$0xff] }
 0x245   :  { %v6433_v27 = vld [vmem:[%s9821_s0 + $0x738] sm:$0xff] }
 0x246   :  { %v3381_v28 = vpop.f32.mrf.mxu2  ;;  %v3701_v29 = vpop.f32.mrf.mxu3 }
 0x247   :  { %v2743_v30 = vpop.f32.mrf.mxu0  ;;  %v3063_v31 = vpop.f32.mrf.mxu1 }
 0x248   :  { %v6598_v32 = vpack.c.bf16 %v2743_v30, %v2741_v24  ;;  %v6918_v33 = vpack.c.bf16 %v3063_v31, %v3061_v25 }
 0x24a   :  { %7766 = vst [vmem:[%s9822_s2 + $0xd8] sm:$0xff] %v6598_v32  }
 0x24b   :  { %7830 = vst [vmem:[%s9822_s2 + $0x2d8] sm:$0xff] %v6918_v33  }
 0x24e   :  { %v3383_v34 = vpop.f32.mrf.mxu2  ;;  %v3703_v35 = vpop.f32.mrf.mxu3 }
 0x24f   :  { %v7238_v38 = vpack.c.bf16 %v3383_v34, %v3381_v28  ;;  %v7558_v39 = vpack.c.bf16 %v3703_v35, %v3701_v29  ;;  %v2746_v40 = vpop.f32.mrf.mxu0  ;;  %v3066_v41 = vpop.f32.mrf.mxu1 }
 0x251   :  { %7894 = vst [vmem:[%s9822_s2 + $0x4d8] sm:$0xff] %v7238_v38  }
 0x252   :  { %7958 = vst [vmem:[%s9822_s2 + $0x6d8] sm:$0xff] %v7558_v39   ;;  %5982 = vmatmul.msk.bf16.gmra.mxu0 %vm1824_vm1, %v6238_v36  ;;  %6046 = vmatmul.msk.bf16.gmra.mxu1 %vm1824_vm1, %v6302_v37  ;;  %v6242_v36 = vld [vmem:[%s9821_s0 + $0x140] sm:$0xff] }
 0x253   :  { %6110 = vmatmul.msk.bf16.gmra.mxu2 %vm1824_vm1, %v6366_v42  ;;  %6174 = vmatmul.msk.bf16.gmra.mxu3 %vm1824_vm1, %v6430_v43  ;;  %v6306_v37 = vld [vmem:[%s9821_s0 + $0x340] sm:$0xff] }
 0x254   :  { %v6370_v42 = vld [vmem:[%s9821_s0 + $0x540] sm:$0xff] }
 0x255   :  { %v6434_v43 = vld [vmem:[%s9821_s0 + $0x740] sm:$0xff] }
 0x256   :  { %v3386_v44 = vpop.f32.mrf.mxu2  ;;  %v3706_v45 = vpop.f32.mrf.mxu3 }
 0x257   :  { %v2748_v46 = vpop.f32.mrf.mxu0  ;;  %v3068_v47 = vpop.f32.mrf.mxu1 }
 0x258   :  { %v6603_v48 = vpack.c.bf16 %v2748_v46, %v2746_v40  ;;  %v6923_v49 = vpack.c.bf16 %v3068_v47, %v3066_v41 }
 0x25a   :  { %7767 = vst [vmem:[%s9822_s2 + $0xe0] sm:$0xff] %v6603_v48  }
 0x25b   :  { %7831 = vst [vmem:[%s9822_s2 + $0x2e0] sm:$0xff] %v6923_v49  }
 0x25e   :  { %v3388_v50 = vpop.f32.mrf.mxu2  ;;  %v3708_v51 = vpop.f32.mrf.mxu3 }
 0x25f   :  { %v7243_v54 = vpack.c.bf16 %v3388_v50, %v3386_v44  ;;  %v7563_v55 = vpack.c.bf16 %v3708_v51, %v3706_v45  ;;  %v2751_v56 = vpop.f32.mrf.mxu0  ;;  %v3071_v57 = vpop.f32.mrf.mxu1 }
 0x261   :  { %7895 = vst [vmem:[%s9822_s2 + $0x4e0] sm:$0xff] %v7243_v54  }
 0x262   :  { %7959 = vst [vmem:[%s9822_s2 + $0x6e0] sm:$0xff] %v7563_v55   ;;  %5983 = vmatmul.msk.bf16.gmra.mxu0 %vm1824_vm1, %v6239_v52  ;;  %6047 = vmatmul.msk.bf16.gmra.mxu1 %vm1824_vm1, %v6303_v53  ;;  %v6243_v52 = vld [vmem:[%s9821_s0 + $0x148] sm:$0xff] }
 0x263   :  { %6111 = vmatmul.msk.bf16.gmra.mxu2 %vm1824_vm1, %v6367_v58  ;;  %6175 = vmatmul.msk.bf16.gmra.mxu3 %vm1824_vm1, %v6431_v59  ;;  %v6307_v53 = vld [vmem:[%s9821_s0 + $0x348] sm:$0xff] }
 0x264   :  { %v6371_v58 = vld [vmem:[%s9821_s0 + $0x548] sm:$0xff] }
 0x265   :  { %v6435_v59 = vld [vmem:[%s9821_s0 + $0x748] sm:$0xff] }
 0x266   :  { %v3391_v60 = vpop.f32.mrf.mxu2  ;;  %v3711_v61 = vpop.f32.mrf.mxu3 }
 0x267   :  { %v2753_v62 = vpop.f32.mrf.mxu0  ;;  %v3073_v63 = vpop.f32.mrf.mxu1 }
 0x268   :  { %v6608_v0 = vpack.c.bf16 %v2753_v62, %v2751_v56  ;;  %v6928_v1 = vpack.c.bf16 %v3073_v63, %v3071_v57 }
 0x26a   :  { %7768 = vst [vmem:[%s9822_s2 + $0xe8] sm:$0xff] %v6608_v0  }
 0x26b   :  { %7832 = vst [vmem:[%s9822_s2 + $0x2e8] sm:$0xff] %v6928_v1  }
 0x26e   :  { %v3393_v2 = vpop.f32.mrf.mxu2  ;;  %v3713_v3 = vpop.f32.mrf.mxu3 }
 0x26f   :  { %v7248_v6 = vpack.c.bf16 %v3393_v2, %v3391_v60  ;;  %v7568_v7 = vpack.c.bf16 %v3713_v3, %v3711_v61  ;;  %v2756_v8 = vpop.f32.mrf.mxu0  ;;  %v3076_v9 = vpop.f32.mrf.mxu1 }
 0x271   :  { %7896 = vst [vmem:[%s9822_s2 + $0x4e8] sm:$0xff] %v7248_v6  }
 0x272   :  { %7960 = vst [vmem:[%s9822_s2 + $0x6e8] sm:$0xff] %v7568_v7   ;;  %5984 = vmatmul.msk.bf16.gmra.mxu0 %vm1824_vm1, %v6240_v4  ;;  %6048 = vmatmul.msk.bf16.gmra.mxu1 %vm1824_vm1, %v6304_v5  ;;  %v6244_v4 = vld [vmem:[%s9821_s0 + $0x150] sm:$0xff] }
 0x273   :  { %6112 = vmatmul.msk.bf16.gmra.mxu2 %vm1824_vm1, %v6368_v10  ;;  %6176 = vmatmul.msk.bf16.gmra.mxu3 %vm1824_vm1, %v6432_v11  ;;  %v6308_v5 = vld [vmem:[%s9821_s0 + $0x350] sm:$0xff] }
 0x274   :  { %v6372_v10 = vld [vmem:[%s9821_s0 + $0x550] sm:$0xff] }
 0x275   :  { %v6436_v11 = vld [vmem:[%s9821_s0 + $0x750] sm:$0xff] }
 0x276   :  { %v3396_v12 = vpop.f32.mrf.mxu2  ;;  %v3716_v13 = vpop.f32.mrf.mxu3 }
 0x277   :  { %v2758_v14 = vpop.f32.mrf.mxu0  ;;  %v3078_v15 = vpop.f32.mrf.mxu1 }
 0x278   :  { %v6613_v16 = vpack.c.bf16 %v2758_v14, %v2756_v8  ;;  %v6933_v17 = vpack.c.bf16 %v3078_v15, %v3076_v9 }
 0x27a   :  { %7769 = vst [vmem:[%s9822_s2 + $0xf0] sm:$0xff] %v6613_v16  }
 0x27b   :  { %7833 = vst [vmem:[%s9822_s2 + $0x2f0] sm:$0xff] %v6933_v17  }
 0x27e   :  { %v3398_v18 = vpop.f32.mrf.mxu2  ;;  %v3718_v19 = vpop.f32.mrf.mxu3 }
 0x27f   :  { %v7253_v22 = vpack.c.bf16 %v3398_v18, %v3396_v12  ;;  %v7573_v23 = vpack.c.bf16 %v3718_v19, %v3716_v13  ;;  %v2761_v24 = vpop.f32.mrf.mxu0  ;;  %v3081_v25 = vpop.f32.mrf.mxu1 }
 0x281   :  { %7897 = vst [vmem:[%s9822_s2 + $0x4f0] sm:$0xff] %v7253_v22  }
 0x282   :  { %7961 = vst [vmem:[%s9822_s2 + $0x6f0] sm:$0xff] %v7573_v23   ;;  %5985 = vmatmul.msk.bf16.gmra.mxu0 %vm1824_vm1, %v6241_v20  ;;  %6049 = vmatmul.msk.bf16.gmra.mxu1 %vm1824_vm1, %v6305_v21  ;;  %v6245_v20 = vld [vmem:[%s9821_s0 + $0x158] sm:$0xff] }
 0x283   :  { %6113 = vmatmul.msk.bf16.gmra.mxu2 %vm1824_vm1, %v6369_v26  ;;  %6177 = vmatmul.msk.bf16.gmra.mxu3 %vm1824_vm1, %v6433_v27  ;;  %v6309_v21 = vld [vmem:[%s9821_s0 + $0x358] sm:$0xff] }
 0x284   :  { %v6373_v26 = vld [vmem:[%s9821_s0 + $0x558] sm:$0xff] }
 0x285   :  { %v6437_v27 = vld [vmem:[%s9821_s0 + $0x758] sm:$0xff] }
 0x286   :  { %v3401_v28 = vpop.f32.mrf.mxu2  ;;  %v3721_v29 = vpop.f32.mrf.mxu3 }
 0x287   :  { %v2763_v30 = vpop.f32.mrf.mxu0  ;;  %v3083_v31 = vpop.f32.mrf.mxu1 }
 0x288   :  { %v6618_v32 = vpack.c.bf16 %v2763_v30, %v2761_v24  ;;  %v6938_v33 = vpack.c.bf16 %v3083_v31, %v3081_v25 }
 0x28a   :  { %7770 = vst [vmem:[%s9822_s2 + $0xf8] sm:$0xff] %v6618_v32  }
 0x28b   :  { %7834 = vst [vmem:[%s9822_s2 + $0x2f8] sm:$0xff] %v6938_v33  }
 0x28e   :  { %v3403_v34 = vpop.f32.mrf.mxu2  ;;  %v3723_v35 = vpop.f32.mrf.mxu3 }
 0x28f   :  { %v7258_v38 = vpack.c.bf16 %v3403_v34, %v3401_v28  ;;  %v7578_v39 = vpack.c.bf16 %v3723_v35, %v3721_v29  ;;  %v2766_v40 = vpop.f32.mrf.mxu0  ;;  %v3086_v41 = vpop.f32.mrf.mxu1 }
 0x291   :  { %7898 = vst [vmem:[%s9822_s2 + $0x4f8] sm:$0xff] %v7258_v38  }
 0x292   :  { %7962 = vst [vmem:[%s9822_s2 + $0x6f8] sm:$0xff] %v7578_v39   ;;  %5986 = vmatmul.msk.bf16.gmra.mxu0 %vm1824_vm1, %v6242_v36  ;;  %6050 = vmatmul.msk.bf16.gmra.mxu1 %vm1824_vm1, %v6306_v37  ;;  %v6246_v36 = vld [vmem:[%s9821_s0 + $0x160] sm:$0xff] }
 0x293   :  { %6114 = vmatmul.msk.bf16.gmra.mxu2 %vm1824_vm1, %v6370_v42  ;;  %6178 = vmatmul.msk.bf16.gmra.mxu3 %vm1824_vm1, %v6434_v43  ;;  %v6310_v37 = vld [vmem:[%s9821_s0 + $0x360] sm:$0xff] }
 0x294   :  { %v6374_v42 = vld [vmem:[%s9821_s0 + $0x560] sm:$0xff] }
 0x295   :  { %v6438_v43 = vld [vmem:[%s9821_s0 + $0x760] sm:$0xff] }
 0x296   :  { %v3406_v44 = vpop.f32.mrf.mxu2  ;;  %v3726_v45 = vpop.f32.mrf.mxu3 }
 0x297   :  { %v2768_v46 = vpop.f32.mrf.mxu0  ;;  %v3088_v47 = vpop.f32.mrf.mxu1 }
 0x298   :  { %v6623_v48 = vpack.c.bf16 %v2768_v46, %v2766_v40  ;;  %v6943_v49 = vpack.c.bf16 %v3088_v47, %v3086_v41 }
 0x29a   :  { %7771 = vst [vmem:[%s9822_s2 + $0x100] sm:$0xff] %v6623_v48  }
 0x29b   :  { %7835 = vst [vmem:[%s9822_s2 + $0x300] sm:$0xff] %v6943_v49  }
 0x29e   :  { %v3408_v50 = vpop.f32.mrf.mxu2  ;;  %v3728_v51 = vpop.f32.mrf.mxu3 }
 0x29f   :  { %v7263_v54 = vpack.c.bf16 %v3408_v50, %v3406_v44  ;;  %v7583_v55 = vpack.c.bf16 %v3728_v51, %v3726_v45  ;;  %v2771_v56 = vpop.f32.mrf.mxu0  ;;  %v3091_v57 = vpop.f32.mrf.mxu1 }
 0x2a1   :  { %7899 = vst [vmem:[%s9822_s2 + $0x500] sm:$0xff] %v7263_v54  }
 0x2a2   :  { %7963 = vst [vmem:[%s9822_s2 + $0x700] sm:$0xff] %v7583_v55   ;;  %5987 = vmatmul.msk.bf16.gmra.mxu0 %vm1824_vm1, %v6243_v52  ;;  %6051 = vmatmul.msk.bf16.gmra.mxu1 %vm1824_vm1, %v6307_v53  ;;  %v6247_v52 = vld [vmem:[%s9821_s0 + $0x168] sm:$0xff] }
 0x2a3   :  { %6115 = vmatmul.msk.bf16.gmra.mxu2 %vm1824_vm1, %v6371_v58  ;;  %6179 = vmatmul.msk.bf16.gmra.mxu3 %vm1824_vm1, %v6435_v59  ;;  %v6311_v53 = vld [vmem:[%s9821_s0 + $0x368] sm:$0xff] }
 0x2a4   :  { %v6375_v58 = vld [vmem:[%s9821_s0 + $0x568] sm:$0xff] }
 0x2a5   :  { %v6439_v59 = vld [vmem:[%s9821_s0 + $0x768] sm:$0xff] }
 0x2a6   :  { %v3411_v60 = vpop.f32.mrf.mxu2  ;;  %v3731_v61 = vpop.f32.mrf.mxu3 }
 0x2a7   :  { %v2773_v62 = vpop.f32.mrf.mxu0  ;;  %v3093_v63 = vpop.f32.mrf.mxu1 }
 0x2a8   :  { %v6628_v0 = vpack.c.bf16 %v2773_v62, %v2771_v56  ;;  %v6948_v1 = vpack.c.bf16 %v3093_v63, %v3091_v57 }
 0x2aa   :  { %7772 = vst [vmem:[%s9822_s2 + $0x108] sm:$0xff] %v6628_v0  }
 0x2ab   :  { %7836 = vst [vmem:[%s9822_s2 + $0x308] sm:$0xff] %v6948_v1  }
 0x2ae   :  { %v3413_v2 = vpop.f32.mrf.mxu2  ;;  %v3733_v3 = vpop.f32.mrf.mxu3 }
 0x2af   :  { %v7268_v6 = vpack.c.bf16 %v3413_v2, %v3411_v60  ;;  %v7588_v7 = vpack.c.bf16 %v3733_v3, %v3731_v61  ;;  %v2776_v8 = vpop.f32.mrf.mxu0  ;;  %v3096_v9 = vpop.f32.mrf.mxu1 }
 0x2b1   :  { %7900 = vst [vmem:[%s9822_s2 + $0x508] sm:$0xff] %v7268_v6  }
 0x2b2   :  { %7964 = vst [vmem:[%s9822_s2 + $0x708] sm:$0xff] %v7588_v7   ;;  %5988 = vmatmul.msk.bf16.gmra.mxu0 %vm1824_vm1, %v6244_v4  ;;  %6052 = vmatmul.msk.bf16.gmra.mxu1 %vm1824_vm1, %v6308_v5  ;;  %v6248_v4 = vld [vmem:[%s9821_s0 + $0x170] sm:$0xff] }
 0x2b3   :  { %6116 = vmatmul.msk.bf16.gmra.mxu2 %vm1824_vm1, %v6372_v10  ;;  %6180 = vmatmul.msk.bf16.gmra.mxu3 %vm1824_vm1, %v6436_v11  ;;  %v6312_v5 = vld [vmem:[%s9821_s0 + $0x370] sm:$0xff] }
 0x2b4   :  { %v6376_v10 = vld [vmem:[%s9821_s0 + $0x570] sm:$0xff] }
 0x2b5   :  { %v6440_v11 = vld [vmem:[%s9821_s0 + $0x770] sm:$0xff] }
 0x2b6   :  { %v3416_v12 = vpop.f32.mrf.mxu2  ;;  %v3736_v13 = vpop.f32.mrf.mxu3 }
 0x2b7   :  { %v2778_v14 = vpop.f32.mrf.mxu0  ;;  %v3098_v15 = vpop.f32.mrf.mxu1 }
 0x2b8   :  { %v6633_v16 = vpack.c.bf16 %v2778_v14, %v2776_v8  ;;  %v6953_v17 = vpack.c.bf16 %v3098_v15, %v3096_v9 }
 0x2ba   :  { %7773 = vst [vmem:[%s9822_s2 + $0x110] sm:$0xff] %v6633_v16  }
 0x2bb   :  { %7837 = vst [vmem:[%s9822_s2 + $0x310] sm:$0xff] %v6953_v17  }
 0x2be   :  { %v3418_v18 = vpop.f32.mrf.mxu2  ;;  %v3738_v19 = vpop.f32.mrf.mxu3 }
 0x2bf   :  { %v7273_v22 = vpack.c.bf16 %v3418_v18, %v3416_v12  ;;  %v7593_v23 = vpack.c.bf16 %v3738_v19, %v3736_v13  ;;  %v2781_v24 = vpop.f32.mrf.mxu0  ;;  %v3101_v25 = vpop.f32.mrf.mxu1 }
 0x2c1   :  { %7901 = vst [vmem:[%s9822_s2 + $0x510] sm:$0xff] %v7273_v22  }
 0x2c2   :  { %7965 = vst [vmem:[%s9822_s2 + $0x710] sm:$0xff] %v7593_v23   ;;  %5989 = vmatmul.msk.bf16.gmra.mxu0 %vm1824_vm1, %v6245_v20  ;;  %6053 = vmatmul.msk.bf16.gmra.mxu1 %vm1824_vm1, %v6309_v21  ;;  %v6249_v20 = vld [vmem:[%s9821_s0 + $0x178] sm:$0xff] }
 0x2c3   :  { %6117 = vmatmul.msk.bf16.gmra.mxu2 %vm1824_vm1, %v6373_v26  ;;  %6181 = vmatmul.msk.bf16.gmra.mxu3 %vm1824_vm1, %v6437_v27  ;;  %v6313_v21 = vld [vmem:[%s9821_s0 + $0x378] sm:$0xff] }
 0x2c4   :  { %v6377_v26 = vld [vmem:[%s9821_s0 + $0x578] sm:$0xff] }
 0x2c5   :  { %v6441_v27 = vld [vmem:[%s9821_s0 + $0x778] sm:$0xff] }
 0x2c6   :  { %v3421_v28 = vpop.f32.mrf.mxu2  ;;  %v3741_v29 = vpop.f32.mrf.mxu3 }
 0x2c7   :  { %v2783_v30 = vpop.f32.mrf.mxu0  ;;  %v3103_v31 = vpop.f32.mrf.mxu1 }
 0x2c8   :  { %v6638_v32 = vpack.c.bf16 %v2783_v30, %v2781_v24  ;;  %v6958_v33 = vpack.c.bf16 %v3103_v31, %v3101_v25 }
 0x2ca   :  { %7774 = vst [vmem:[%s9822_s2 + $0x118] sm:$0xff] %v6638_v32  }
 0x2cb   :  { %7838 = vst [vmem:[%s9822_s2 + $0x318] sm:$0xff] %v6958_v33  }
 0x2ce   :  { %v3423_v34 = vpop.f32.mrf.mxu2  ;;  %v3743_v35 = vpop.f32.mrf.mxu3 }
 0x2cf   :  { %v7278_v38 = vpack.c.bf16 %v3423_v34, %v3421_v28  ;;  %v7598_v39 = vpack.c.bf16 %v3743_v35, %v3741_v29  ;;  %v2786_v40 = vpop.f32.mrf.mxu0  ;;  %v3106_v41 = vpop.f32.mrf.mxu1 }
 0x2d1   :  { %7902 = vst [vmem:[%s9822_s2 + $0x518] sm:$0xff] %v7278_v38  }
 0x2d2   :  { %7966 = vst [vmem:[%s9822_s2 + $0x718] sm:$0xff] %v7598_v39   ;;  %5990 = vmatmul.msk.bf16.gmra.mxu0 %vm1824_vm1, %v6246_v36  ;;  %6054 = vmatmul.msk.bf16.gmra.mxu1 %vm1824_vm1, %v6310_v37  ;;  %v6250_v36 = vld [vmem:[%s9821_s0 + $0x180] sm:$0xff] }
 0x2d3   :  { %6118 = vmatmul.msk.bf16.gmra.mxu2 %vm1824_vm1, %v6374_v42  ;;  %6182 = vmatmul.msk.bf16.gmra.mxu3 %vm1824_vm1, %v6438_v43  ;;  %v6314_v37 = vld [vmem:[%s9821_s0 + $0x380] sm:$0xff] }
 0x2d4   :  { %v6378_v42 = vld [vmem:[%s9821_s0 + $0x580] sm:$0xff] }
 0x2d5   :  { %v6442_v43 = vld [vmem:[%s9821_s0 + $0x780] sm:$0xff] }
 0x2d6   :  { %v3426_v44 = vpop.f32.mrf.mxu2  ;;  %v3746_v45 = vpop.f32.mrf.mxu3 }
 0x2d7   :  { %v2788_v46 = vpop.f32.mrf.mxu0  ;;  %v3108_v47 = vpop.f32.mrf.mxu1 }
 0x2d8   :  { %v6643_v48 = vpack.c.bf16 %v2788_v46, %v2786_v40  ;;  %v6963_v49 = vpack.c.bf16 %v3108_v47, %v3106_v41 }
 0x2da   :  { %7775 = vst [vmem:[%s9822_s2 + $0x120] sm:$0xff] %v6643_v48  }
 0x2db   :  { %7839 = vst [vmem:[%s9822_s2 + $0x320] sm:$0xff] %v6963_v49  }
 0x2de   :  { %v3428_v50 = vpop.f32.mrf.mxu2  ;;  %v3748_v51 = vpop.f32.mrf.mxu3 }
 0x2df   :  { %v7283_v54 = vpack.c.bf16 %v3428_v50, %v3426_v44  ;;  %v7603_v55 = vpack.c.bf16 %v3748_v51, %v3746_v45  ;;  %v2791_v56 = vpop.f32.mrf.mxu0  ;;  %v3111_v57 = vpop.f32.mrf.mxu1 }
 0x2e1   :  { %7903 = vst [vmem:[%s9822_s2 + $0x520] sm:$0xff] %v7283_v54  }
 0x2e2   :  { %7967 = vst [vmem:[%s9822_s2 + $0x720] sm:$0xff] %v7603_v55   ;;  %5991 = vmatmul.msk.bf16.gmra.mxu0 %vm1824_vm1, %v6247_v52  ;;  %6055 = vmatmul.msk.bf16.gmra.mxu1 %vm1824_vm1, %v6311_v53  ;;  %v6251_v52 = vld [vmem:[%s9821_s0 + $0x188] sm:$0xff] }
 0x2e3   :  { %6119 = vmatmul.msk.bf16.gmra.mxu2 %vm1824_vm1, %v6375_v58  ;;  %6183 = vmatmul.msk.bf16.gmra.mxu3 %vm1824_vm1, %v6439_v59  ;;  %v6315_v53 = vld [vmem:[%s9821_s0 + $0x388] sm:$0xff] }
 0x2e4   :  { %v6379_v58 = vld [vmem:[%s9821_s0 + $0x588] sm:$0xff] }
 0x2e5   :  { %v6443_v59 = vld [vmem:[%s9821_s0 + $0x788] sm:$0xff] }
 0x2e6   :  { %v3431_v60 = vpop.f32.mrf.mxu2  ;;  %v3751_v61 = vpop.f32.mrf.mxu3 }
 0x2e7   :  { %v2793_v62 = vpop.f32.mrf.mxu0  ;;  %v3113_v63 = vpop.f32.mrf.mxu1 }
 0x2e8   :  { %v6648_v0 = vpack.c.bf16 %v2793_v62, %v2791_v56  ;;  %v6968_v1 = vpack.c.bf16 %v3113_v63, %v3111_v57 }
 0x2ea   :  { %7776 = vst [vmem:[%s9822_s2 + $0x128] sm:$0xff] %v6648_v0  }
 0x2eb   :  { %7840 = vst [vmem:[%s9822_s2 + $0x328] sm:$0xff] %v6968_v1  }
 0x2ee   :  { %v3433_v2 = vpop.f32.mrf.mxu2  ;;  %v3753_v3 = vpop.f32.mrf.mxu3 }
 0x2ef   :  { %v7288_v6 = vpack.c.bf16 %v3433_v2, %v3431_v60  ;;  %v7608_v7 = vpack.c.bf16 %v3753_v3, %v3751_v61  ;;  %v2796_v8 = vpop.f32.mrf.mxu0  ;;  %v3116_v9 = vpop.f32.mrf.mxu1 }
 0x2f1   :  { %7904 = vst [vmem:[%s9822_s2 + $0x528] sm:$0xff] %v7288_v6  }
 0x2f2   :  { %7968 = vst [vmem:[%s9822_s2 + $0x728] sm:$0xff] %v7608_v7   ;;  %5992 = vmatmul.msk.bf16.gmra.mxu0 %vm1824_vm1, %v6248_v4  ;;  %6056 = vmatmul.msk.bf16.gmra.mxu1 %vm1824_vm1, %v6312_v5  ;;  %v6252_v4 = vld [vmem:[%s9821_s0 + $0x190] sm:$0xff] }
 0x2f3   :  { %6120 = vmatmul.msk.bf16.gmra.mxu2 %vm1824_vm1, %v6376_v10  ;;  %6184 = vmatmul.msk.bf16.gmra.mxu3 %vm1824_vm1, %v6440_v11  ;;  %v6316_v5 = vld [vmem:[%s9821_s0 + $0x390] sm:$0xff] }
 0x2f4   :  { %v6380_v10 = vld [vmem:[%s9821_s0 + $0x590] sm:$0xff] }
 0x2f5   :  { %v6444_v11 = vld [vmem:[%s9821_s0 + $0x790] sm:$0xff] }
 0x2f6   :  { %v3436_v12 = vpop.f32.mrf.mxu2  ;;  %v3756_v13 = vpop.f32.mrf.mxu3 }
 0x2f7   :  { %v2798_v14 = vpop.f32.mrf.mxu0  ;;  %v3118_v15 = vpop.f32.mrf.mxu1 }
 0x2f8   :  { %v6653_v16 = vpack.c.bf16 %v2798_v14, %v2796_v8  ;;  %v6973_v17 = vpack.c.bf16 %v3118_v15, %v3116_v9 }
 0x2fa   :  { %7777 = vst [vmem:[%s9822_s2 + $0x130] sm:$0xff] %v6653_v16  }
 0x2fb   :  { %7841 = vst [vmem:[%s9822_s2 + $0x330] sm:$0xff] %v6973_v17  }
 0x2fe   :  { %v3438_v18 = vpop.f32.mrf.mxu2  ;;  %v3758_v19 = vpop.f32.mrf.mxu3 }
 0x2ff   :  { %v7293_v22 = vpack.c.bf16 %v3438_v18, %v3436_v12  ;;  %v7613_v23 = vpack.c.bf16 %v3758_v19, %v3756_v13  ;;  %v2801_v24 = vpop.f32.mrf.mxu0  ;;  %v3121_v25 = vpop.f32.mrf.mxu1 }
 0x301   :  { %7905 = vst [vmem:[%s9822_s2 + $0x530] sm:$0xff] %v7293_v22  }
 0x302   :  { %7969 = vst [vmem:[%s9822_s2 + $0x730] sm:$0xff] %v7613_v23   ;;  %5993 = vmatmul.msk.bf16.gmra.mxu0 %vm1824_vm1, %v6249_v20  ;;  %6057 = vmatmul.msk.bf16.gmra.mxu1 %vm1824_vm1, %v6313_v21  ;;  %v6253_v20 = vld [vmem:[%s9821_s0 + $0x198] sm:$0xff] }
 0x303   :  { %6121 = vmatmul.msk.bf16.gmra.mxu2 %vm1824_vm1, %v6377_v26  ;;  %6185 = vmatmul.msk.bf16.gmra.mxu3 %vm1824_vm1, %v6441_v27  ;;  %v6317_v21 = vld [vmem:[%s9821_s0 + $0x398] sm:$0xff] }
 0x304   :  { %v6381_v26 = vld [vmem:[%s9821_s0 + $0x598] sm:$0xff] }
 0x305   :  { %v6445_v27 = vld [vmem:[%s9821_s0 + $0x798] sm:$0xff] }
 0x306   :  { %v3441_v28 = vpop.f32.mrf.mxu2  ;;  %v3761_v29 = vpop.f32.mrf.mxu3 }
 0x307   :  { %v2803_v30 = vpop.f32.mrf.mxu0  ;;  %v3123_v31 = vpop.f32.mrf.mxu1 }
 0x308   :  { %v6658_v32 = vpack.c.bf16 %v2803_v30, %v2801_v24  ;;  %v6978_v33 = vpack.c.bf16 %v3123_v31, %v3121_v25 }
 0x30a   :  { %7778 = vst [vmem:[%s9822_s2 + $0x138] sm:$0xff] %v6658_v32  }
 0x30b   :  { %7842 = vst [vmem:[%s9822_s2 + $0x338] sm:$0xff] %v6978_v33  }
 0x30e   :  { %v3443_v34 = vpop.f32.mrf.mxu2  ;;  %v3763_v35 = vpop.f32.mrf.mxu3 }
 0x30f   :  { %v7298_v38 = vpack.c.bf16 %v3443_v34, %v3441_v28  ;;  %v7618_v39 = vpack.c.bf16 %v3763_v35, %v3761_v29  ;;  %v2806_v40 = vpop.f32.mrf.mxu0  ;;  %v3126_v41 = vpop.f32.mrf.mxu1 }
 0x311   :  { %7906 = vst [vmem:[%s9822_s2 + $0x538] sm:$0xff] %v7298_v38  }
 0x312   :  { %7970 = vst [vmem:[%s9822_s2 + $0x738] sm:$0xff] %v7618_v39   ;;  %5994 = vmatmul.msk.bf16.gmra.mxu0 %vm1824_vm1, %v6250_v36  ;;  %6058 = vmatmul.msk.bf16.gmra.mxu1 %vm1824_vm1, %v6314_v37  ;;  %v6254_v36 = vld [vmem:[%s9821_s0 + $0x1a0] sm:$0xff] }
 0x313   :  { %6122 = vmatmul.msk.bf16.gmra.mxu2 %vm1824_vm1, %v6378_v42  ;;  %6186 = vmatmul.msk.bf16.gmra.mxu3 %vm1824_vm1, %v6442_v43  ;;  %v6318_v37 = vld [vmem:[%s9821_s0 + $0x3a0] sm:$0xff] }
 0x314   :  { %v6382_v42 = vld [vmem:[%s9821_s0 + $0x5a0] sm:$0xff] }
 0x315   :  { %v6446_v43 = vld [vmem:[%s9821_s0 + $0x7a0] sm:$0xff] }
 0x316   :  { %v3446_v44 = vpop.f32.mrf.mxu2  ;;  %v3766_v45 = vpop.f32.mrf.mxu3 }
 0x317   :  { %v2808_v46 = vpop.f32.mrf.mxu0  ;;  %v3128_v47 = vpop.f32.mrf.mxu1 }
 0x318   :  { %v6663_v48 = vpack.c.bf16 %v2808_v46, %v2806_v40  ;;  %v6983_v49 = vpack.c.bf16 %v3128_v47, %v3126_v41 }
 0x31a   :  { %7779 = vst [vmem:[%s9822_s2 + $0x140] sm:$0xff] %v6663_v48  }
 0x31b   :  { %7843 = vst [vmem:[%s9822_s2 + $0x340] sm:$0xff] %v6983_v49  }
 0x31e   :  { %v3448_v50 = vpop.f32.mrf.mxu2  ;;  %v3768_v51 = vpop.f32.mrf.mxu3 }
 0x31f   :  { %v7303_v54 = vpack.c.bf16 %v3448_v50, %v3446_v44  ;;  %v7623_v55 = vpack.c.bf16 %v3768_v51, %v3766_v45  ;;  %v2811_v56 = vpop.f32.mrf.mxu0  ;;  %v3131_v57 = vpop.f32.mrf.mxu1 }
 0x321   :  { %7907 = vst [vmem:[%s9822_s2 + $0x540] sm:$0xff] %v7303_v54  }
 0x322   :  { %7971 = vst [vmem:[%s9822_s2 + $0x740] sm:$0xff] %v7623_v55   ;;  %5995 = vmatmul.msk.bf16.gmra.mxu0 %vm1824_vm1, %v6251_v52  ;;  %6059 = vmatmul.msk.bf16.gmra.mxu1 %vm1824_vm1, %v6315_v53  ;;  %v6255_v52 = vld [vmem:[%s9821_s0 + $0x1a8] sm:$0xff] }
 0x323   :  { %6123 = vmatmul.msk.bf16.gmra.mxu2 %vm1824_vm1, %v6379_v58  ;;  %6187 = vmatmul.msk.bf16.gmra.mxu3 %vm1824_vm1, %v6443_v59  ;;  %v6319_v53 = vld [vmem:[%s9821_s0 + $0x3a8] sm:$0xff] }
 0x324   :  { %v6383_v58 = vld [vmem:[%s9821_s0 + $0x5a8] sm:$0xff] }
 0x325   :  { %v6447_v59 = vld [vmem:[%s9821_s0 + $0x7a8] sm:$0xff] }
 0x326   :  { %v3451_v60 = vpop.f32.mrf.mxu2  ;;  %v3771_v61 = vpop.f32.mrf.mxu3 }
 0x327   :  { %v2813_v62 = vpop.f32.mrf.mxu0  ;;  %v3133_v63 = vpop.f32.mrf.mxu1 }
 0x328   :  { %v6668_v0 = vpack.c.bf16 %v2813_v62, %v2811_v56  ;;  %v6988_v1 = vpack.c.bf16 %v3133_v63, %v3131_v57 }
 0x32a   :  { %7780 = vst [vmem:[%s9822_s2 + $0x148] sm:$0xff] %v6668_v0  }
 0x32b   :  { %7844 = vst [vmem:[%s9822_s2 + $0x348] sm:$0xff] %v6988_v1  }
 0x32e   :  { %v3453_v2 = vpop.f32.mrf.mxu2  ;;  %v3773_v3 = vpop.f32.mrf.mxu3 }
 0x32f   :  { %v7308_v6 = vpack.c.bf16 %v3453_v2, %v3451_v60  ;;  %v7628_v7 = vpack.c.bf16 %v3773_v3, %v3771_v61  ;;  %v2816_v8 = vpop.f32.mrf.mxu0  ;;  %v3136_v9 = vpop.f32.mrf.mxu1 }
 0x331   :  { %7908 = vst [vmem:[%s9822_s2 + $0x548] sm:$0xff] %v7308_v6  }
 0x332   :  { %7972 = vst [vmem:[%s9822_s2 + $0x748] sm:$0xff] %v7628_v7   ;;  %5996 = vmatmul.msk.bf16.gmra.mxu0 %vm1824_vm1, %v6252_v4  ;;  %6060 = vmatmul.msk.bf16.gmra.mxu1 %vm1824_vm1, %v6316_v5  ;;  %v6256_v4 = vld [vmem:[%s9821_s0 + $0x1b0] sm:$0xff] }
 0x333   :  { %6124 = vmatmul.msk.bf16.gmra.mxu2 %vm1824_vm1, %v6380_v10  ;;  %6188 = vmatmul.msk.bf16.gmra.mxu3 %vm1824_vm1, %v6444_v11  ;;  %v6320_v5 = vld [vmem:[%s9821_s0 + $0x3b0] sm:$0xff] }
 0x334   :  { %v6384_v10 = vld [vmem:[%s9821_s0 + $0x5b0] sm:$0xff] }
 0x335   :  { %v6448_v11 = vld [vmem:[%s9821_s0 + $0x7b0] sm:$0xff] }
 0x336   :  { %v3456_v12 = vpop.f32.mrf.mxu2  ;;  %v3776_v13 = vpop.f32.mrf.mxu3 }
 0x337   :  { %v2818_v14 = vpop.f32.mrf.mxu0  ;;  %v3138_v15 = vpop.f32.mrf.mxu1 }
 0x338   :  { %v6673_v16 = vpack.c.bf16 %v2818_v14, %v2816_v8  ;;  %v6993_v17 = vpack.c.bf16 %v3138_v15, %v3136_v9 }
 0x33a   :  { %7781 = vst [vmem:[%s9822_s2 + $0x150] sm:$0xff] %v6673_v16  }
 0x33b   :  { %7845 = vst [vmem:[%s9822_s2 + $0x350] sm:$0xff] %v6993_v17  }
 0x33e   :  { %v3458_v18 = vpop.f32.mrf.mxu2  ;;  %v3778_v19 = vpop.f32.mrf.mxu3 }
 0x33f   :  { %v7313_v22 = vpack.c.bf16 %v3458_v18, %v3456_v12  ;;  %v7633_v23 = vpack.c.bf16 %v3778_v19, %v3776_v13  ;;  %v2821_v24 = vpop.f32.mrf.mxu0  ;;  %v3141_v25 = vpop.f32.mrf.mxu1 }
 0x341   :  { %7909 = vst [vmem:[%s9822_s2 + $0x550] sm:$0xff] %v7313_v22  }
 0x342   :  { %7973 = vst [vmem:[%s9822_s2 + $0x750] sm:$0xff] %v7633_v23   ;;  %5997 = vmatmul.msk.bf16.gmra.mxu0 %vm1824_vm1, %v6253_v20  ;;  %6061 = vmatmul.msk.bf16.gmra.mxu1 %vm1824_vm1, %v6317_v21  ;;  %v6257_v20 = vld [vmem:[%s9821_s0 + $0x1b8] sm:$0xff] }
 0x343   :  { %6125 = vmatmul.msk.bf16.gmra.mxu2 %vm1824_vm1, %v6381_v26  ;;  %6189 = vmatmul.msk.bf16.gmra.mxu3 %vm1824_vm1, %v6445_v27  ;;  %v6321_v21 = vld [vmem:[%s9821_s0 + $0x3b8] sm:$0xff] }
 0x344   :  { %v6385_v26 = vld [vmem:[%s9821_s0 + $0x5b8] sm:$0xff] }
 0x345   :  { %v6449_v27 = vld [vmem:[%s9821_s0 + $0x7b8] sm:$0xff] }
 0x346   :  { %v3461_v28 = vpop.f32.mrf.mxu2  ;;  %v3781_v29 = vpop.f32.mrf.mxu3 }
 0x347   :  { %v2823_v30 = vpop.f32.mrf.mxu0  ;;  %v3143_v31 = vpop.f32.mrf.mxu1 }
 0x348   :  { %v6678_v32 = vpack.c.bf16 %v2823_v30, %v2821_v24  ;;  %v6998_v33 = vpack.c.bf16 %v3143_v31, %v3141_v25 }
 0x34a   :  { %7782 = vst [vmem:[%s9822_s2 + $0x158] sm:$0xff] %v6678_v32  }
 0x34b   :  { %7846 = vst [vmem:[%s9822_s2 + $0x358] sm:$0xff] %v6998_v33  }
 0x34e   :  { %v3463_v34 = vpop.f32.mrf.mxu2  ;;  %v3783_v35 = vpop.f32.mrf.mxu3 }
 0x34f   :  { %v7318_v38 = vpack.c.bf16 %v3463_v34, %v3461_v28  ;;  %v7638_v39 = vpack.c.bf16 %v3783_v35, %v3781_v29  ;;  %v2826_v40 = vpop.f32.mrf.mxu0  ;;  %v3146_v41 = vpop.f32.mrf.mxu1 }
 0x351   :  { %7910 = vst [vmem:[%s9822_s2 + $0x558] sm:$0xff] %v7318_v38  }
 0x352   :  { %7974 = vst [vmem:[%s9822_s2 + $0x758] sm:$0xff] %v7638_v39   ;;  %5998 = vmatmul.msk.bf16.gmra.mxu0 %vm1824_vm1, %v6254_v36  ;;  %6062 = vmatmul.msk.bf16.gmra.mxu1 %vm1824_vm1, %v6318_v37  ;;  %v6258_v36 = vld [vmem:[%s9821_s0 + $0x1c0] sm:$0xff] }
 0x353   :  { %6126 = vmatmul.msk.bf16.gmra.mxu2 %vm1824_vm1, %v6382_v42  ;;  %6190 = vmatmul.msk.bf16.gmra.mxu3 %vm1824_vm1, %v6446_v43  ;;  %v6322_v37 = vld [vmem:[%s9821_s0 + $0x3c0] sm:$0xff] }
 0x354   :  { %v6386_v42 = vld [vmem:[%s9821_s0 + $0x5c0] sm:$0xff] }
 0x355   :  { %v6450_v43 = vld [vmem:[%s9821_s0 + $0x7c0] sm:$0xff] }
 0x356   :  { %v3466_v44 = vpop.f32.mrf.mxu2  ;;  %v3786_v45 = vpop.f32.mrf.mxu3 }
 0x357   :  { %v2828_v46 = vpop.f32.mrf.mxu0  ;;  %v3148_v47 = vpop.f32.mrf.mxu1 }
 0x358   :  { %v6683_v48 = vpack.c.bf16 %v2828_v46, %v2826_v40  ;;  %v7003_v49 = vpack.c.bf16 %v3148_v47, %v3146_v41 }
 0x35a   :  { %7783 = vst [vmem:[%s9822_s2 + $0x160] sm:$0xff] %v6683_v48  }
 0x35b   :  { %7847 = vst [vmem:[%s9822_s2 + $0x360] sm:$0xff] %v7003_v49  }
 0x35e   :  { %v3468_v50 = vpop.f32.mrf.mxu2  ;;  %v3788_v51 = vpop.f32.mrf.mxu3 }
 0x35f   :  { %v7323_v54 = vpack.c.bf16 %v3468_v50, %v3466_v44  ;;  %v7643_v55 = vpack.c.bf16 %v3788_v51, %v3786_v45  ;;  %v2831_v56 = vpop.f32.mrf.mxu0  ;;  %v3151_v57 = vpop.f32.mrf.mxu1 }
 0x361   :  { %7911 = vst [vmem:[%s9822_s2 + $0x560] sm:$0xff] %v7323_v54  }
 0x362   :  { %7975 = vst [vmem:[%s9822_s2 + $0x760] sm:$0xff] %v7643_v55   ;;  %5999 = vmatmul.msk.bf16.gmra.mxu0 %vm1824_vm1, %v6255_v52  ;;  %6063 = vmatmul.msk.bf16.gmra.mxu1 %vm1824_vm1, %v6319_v53  ;;  %v6259_v52 = vld [vmem:[%s9821_s0 + $0x1c8] sm:$0xff] }
 0x363   :  { %6127 = vmatmul.msk.bf16.gmra.mxu2 %vm1824_vm1, %v6383_v58  ;;  %6191 = vmatmul.msk.bf16.gmra.mxu3 %vm1824_vm1, %v6447_v59  ;;  %v6323_v53 = vld [vmem:[%s9821_s0 + $0x3c8] sm:$0xff] }
 0x364   :  { %v6387_v58 = vld [vmem:[%s9821_s0 + $0x5c8] sm:$0xff] }
 0x365   :  { %v6451_v59 = vld [vmem:[%s9821_s0 + $0x7c8] sm:$0xff] }
 0x366   :  { %v3471_v60 = vpop.f32.mrf.mxu2  ;;  %v3791_v61 = vpop.f32.mrf.mxu3 }
 0x367   :  { %v2833_v62 = vpop.f32.mrf.mxu0  ;;  %v3153_v63 = vpop.f32.mrf.mxu1 }
 0x368   :  { %v6688_v0 = vpack.c.bf16 %v2833_v62, %v2831_v56  ;;  %v7008_v1 = vpack.c.bf16 %v3153_v63, %v3151_v57 }
 0x36a   :  { %7784 = vst [vmem:[%s9822_s2 + $0x168] sm:$0xff] %v6688_v0  }
 0x36b   :  { %7848 = vst [vmem:[%s9822_s2 + $0x368] sm:$0xff] %v7008_v1  }
 0x36e   :  { %v3473_v2 = vpop.f32.mrf.mxu2  ;;  %v3793_v3 = vpop.f32.mrf.mxu3 }
 0x36f   :  { %v7328_v6 = vpack.c.bf16 %v3473_v2, %v3471_v60  ;;  %v7648_v7 = vpack.c.bf16 %v3793_v3, %v3791_v61  ;;  %v2836_v8 = vpop.f32.mrf.mxu0  ;;  %v3156_v9 = vpop.f32.mrf.mxu1 }
 0x371   :  { %7912 = vst [vmem:[%s9822_s2 + $0x568] sm:$0xff] %v7328_v6  }
 0x372   :  { %7976 = vst [vmem:[%s9822_s2 + $0x768] sm:$0xff] %v7648_v7   ;;  %6000 = vmatmul.msk.bf16.gmra.mxu0 %vm1824_vm1, %v6256_v4  ;;  %6064 = vmatmul.msk.bf16.gmra.mxu1 %vm1824_vm1, %v6320_v5  ;;  %v6260_v4 = vld [vmem:[%s9821_s0 + $0x1d0] sm:$0xff] }
 0x373   :  { %6128 = vmatmul.msk.bf16.gmra.mxu2 %vm1824_vm1, %v6384_v10  ;;  %6192 = vmatmul.msk.bf16.gmra.mxu3 %vm1824_vm1, %v6448_v11  ;;  %v6324_v5 = vld [vmem:[%s9821_s0 + $0x3d0] sm:$0xff] }
 0x374   :  { %v6388_v10 = vld [vmem:[%s9821_s0 + $0x5d0] sm:$0xff] }
 0x375   :  { %v6452_v11 = vld [vmem:[%s9821_s0 + $0x7d0] sm:$0xff] }
 0x376   :  { %v3476_v12 = vpop.f32.mrf.mxu2  ;;  %v3796_v13 = vpop.f32.mrf.mxu3 }
 0x377   :  { %v2838_v14 = vpop.f32.mrf.mxu0  ;;  %v3158_v15 = vpop.f32.mrf.mxu1 }
 0x378   :  { %v6693_v16 = vpack.c.bf16 %v2838_v14, %v2836_v8  ;;  %v7013_v17 = vpack.c.bf16 %v3158_v15, %v3156_v9 }
 0x37a   :  { %7785 = vst [vmem:[%s9822_s2 + $0x170] sm:$0xff] %v6693_v16  }
 0x37b   :  { %7849 = vst [vmem:[%s9822_s2 + $0x370] sm:$0xff] %v7013_v17  }
 0x37e   :  { %v3478_v18 = vpop.f32.mrf.mxu2  ;;  %v3798_v19 = vpop.f32.mrf.mxu3 }
 0x37f   :  { %v7333_v22 = vpack.c.bf16 %v3478_v18, %v3476_v12  ;;  %v7653_v23 = vpack.c.bf16 %v3798_v19, %v3796_v13  ;;  %v2841_v24 = vpop.f32.mrf.mxu0  ;;  %v3161_v25 = vpop.f32.mrf.mxu1 }
 0x381   :  { %7913 = vst [vmem:[%s9822_s2 + $0x570] sm:$0xff] %v7333_v22  }
 0x382   :  { %7977 = vst [vmem:[%s9822_s2 + $0x770] sm:$0xff] %v7653_v23   ;;  %6001 = vmatmul.msk.bf16.gmra.mxu0 %vm1824_vm1, %v6257_v20  ;;  %6065 = vmatmul.msk.bf16.gmra.mxu1 %vm1824_vm1, %v6321_v21  ;;  %v6261_v20 = vld [vmem:[%s9821_s0 + $0x1d8] sm:$0xff] }
 0x383   :  { %6129 = vmatmul.msk.bf16.gmra.mxu2 %vm1824_vm1, %v6385_v26  ;;  %6193 = vmatmul.msk.bf16.gmra.mxu3 %vm1824_vm1, %v6449_v27  ;;  %v6325_v21 = vld [vmem:[%s9821_s0 + $0x3d8] sm:$0xff] }
 0x384   :  { %v6389_v26 = vld [vmem:[%s9821_s0 + $0x5d8] sm:$0xff] }
 0x385   :  { %v6453_v27 = vld [vmem:[%s9821_s0 + $0x7d8] sm:$0xff] }
 0x386   :  { %v3481_v28 = vpop.f32.mrf.mxu2  ;;  %v3801_v29 = vpop.f32.mrf.mxu3 }
 0x387   :  { %v2843_v30 = vpop.f32.mrf.mxu0  ;;  %v3163_v31 = vpop.f32.mrf.mxu1 }
 0x388   :  { %v6698_v32 = vpack.c.bf16 %v2843_v30, %v2841_v24  ;;  %v7018_v33 = vpack.c.bf16 %v3163_v31, %v3161_v25 }
 0x38a   :  { %7786 = vst [vmem:[%s9822_s2 + $0x178] sm:$0xff] %v6698_v32  }
 0x38b   :  { %7850 = vst [vmem:[%s9822_s2 + $0x378] sm:$0xff] %v7018_v33  }
 0x38e   :  { %v3483_v34 = vpop.f32.mrf.mxu2  ;;  %v3803_v35 = vpop.f32.mrf.mxu3 }
 0x38f   :  { %v7338_v38 = vpack.c.bf16 %v3483_v34, %v3481_v28  ;;  %v7658_v39 = vpack.c.bf16 %v3803_v35, %v3801_v29  ;;  %v2846_v40 = vpop.f32.mrf.mxu0  ;;  %v3166_v41 = vpop.f32.mrf.mxu1 }
 0x391   :  { %7914 = vst [vmem:[%s9822_s2 + $0x578] sm:$0xff] %v7338_v38  }
 0x392   :  { %7978 = vst [vmem:[%s9822_s2 + $0x778] sm:$0xff] %v7658_v39   ;;  %6002 = vmatmul.msk.bf16.gmra.mxu0 %vm1824_vm1, %v6258_v36  ;;  %6066 = vmatmul.msk.bf16.gmra.mxu1 %vm1824_vm1, %v6322_v37  ;;  %v6262_v36 = vld [vmem:[%s9821_s0 + $0x1e0] sm:$0xff] }
 0x393   :  { %6130 = vmatmul.msk.bf16.gmra.mxu2 %vm1824_vm1, %v6386_v42  ;;  %6194 = vmatmul.msk.bf16.gmra.mxu3 %vm1824_vm1, %v6450_v43  ;;  %v6326_v37 = vld [vmem:[%s9821_s0 + $0x3e0] sm:$0xff] }
 0x394   :  { %v6390_v42 = vld [vmem:[%s9821_s0 + $0x5e0] sm:$0xff] }
 0x395   :  { %v6454_v43 = vld [vmem:[%s9821_s0 + $0x7e0] sm:$0xff] }
 0x396   :  { %v3486_v44 = vpop.f32.mrf.mxu2  ;;  %v3806_v45 = vpop.f32.mrf.mxu3 }
 0x397   :  { %v2848_v46 = vpop.f32.mrf.mxu0  ;;  %v3168_v47 = vpop.f32.mrf.mxu1 }
 0x398   :  { %v6703_v48 = vpack.c.bf16 %v2848_v46, %v2846_v40  ;;  %v7023_v49 = vpack.c.bf16 %v3168_v47, %v3166_v41 }
 0x39a   :  { %7787 = vst [vmem:[%s9822_s2 + $0x180] sm:$0xff] %v6703_v48  }
 0x39b   :  { %7851 = vst [vmem:[%s9822_s2 + $0x380] sm:$0xff] %v7023_v49  }
 0x39e   :  { %v3488_v50 = vpop.f32.mrf.mxu2  ;;  %v3808_v51 = vpop.f32.mrf.mxu3 }
 0x39f   :  { %v7343_v54 = vpack.c.bf16 %v3488_v50, %v3486_v44  ;;  %v7663_v55 = vpack.c.bf16 %v3808_v51, %v3806_v45  ;;  %v2851_v56 = vpop.f32.mrf.mxu0  ;;  %v3171_v57 = vpop.f32.mrf.mxu1 }
 0x3a1   :  { %7915 = vst [vmem:[%s9822_s2 + $0x580] sm:$0xff] %v7343_v54  }
 0x3a2   :  { %7979 = vst [vmem:[%s9822_s2 + $0x780] sm:$0xff] %v7663_v55   ;;  %6003 = vmatmul.msk.bf16.gmra.mxu0 %vm1824_vm1, %v6259_v52  ;;  %6067 = vmatmul.msk.bf16.gmra.mxu1 %vm1824_vm1, %v6323_v53  ;;  %v6263_v52 = vld [vmem:[%s9821_s0 + $0x1e8] sm:$0xff] }
 0x3a3   :  { %6131 = vmatmul.msk.bf16.gmra.mxu2 %vm1824_vm1, %v6387_v58  ;;  %6195 = vmatmul.msk.bf16.gmra.mxu3 %vm1824_vm1, %v6451_v59  ;;  %v6327_v53 = vld [vmem:[%s9821_s0 + $0x3e8] sm:$0xff] }
 0x3a4   :  { %v6391_v58 = vld [vmem:[%s9821_s0 + $0x5e8] sm:$0xff] }
 0x3a5   :  { %v6455_v59 = vld [vmem:[%s9821_s0 + $0x7e8] sm:$0xff] }
 0x3a6   :  { %v3491_v60 = vpop.f32.mrf.mxu2  ;;  %v3811_v61 = vpop.f32.mrf.mxu3 }
 0x3a7   :  { %v2853_v62 = vpop.f32.mrf.mxu0  ;;  %v3173_v63 = vpop.f32.mrf.mxu1 }
 0x3a8   :  { %v6708_v0 = vpack.c.bf16 %v2853_v62, %v2851_v56  ;;  %v7028_v1 = vpack.c.bf16 %v3173_v63, %v3171_v57 }
 0x3aa   :  { %7788 = vst [vmem:[%s9822_s2 + $0x188] sm:$0xff] %v6708_v0  }
 0x3ab   :  { %7852 = vst [vmem:[%s9822_s2 + $0x388] sm:$0xff] %v7028_v1  }
 0x3ae   :  { %v3493_v2 = vpop.f32.mrf.mxu2  ;;  %v3813_v3 = vpop.f32.mrf.mxu3 }
 0x3af   :  { %v7348_v6 = vpack.c.bf16 %v3493_v2, %v3491_v60  ;;  %v7668_v7 = vpack.c.bf16 %v3813_v3, %v3811_v61  ;;  %v2856_v8 = vpop.f32.mrf.mxu0  ;;  %v3176_v9 = vpop.f32.mrf.mxu1 }
 0x3b1   :  { %7916 = vst [vmem:[%s9822_s2 + $0x588] sm:$0xff] %v7348_v6  }
 0x3b2   :  { %7980 = vst [vmem:[%s9822_s2 + $0x788] sm:$0xff] %v7668_v7   ;;  %6004 = vmatmul.msk.bf16.gmra.mxu0 %vm1824_vm1, %v6260_v4  ;;  %6068 = vmatmul.msk.bf16.gmra.mxu1 %vm1824_vm1, %v6324_v5  ;;  %v6264_v4 = vld [vmem:[%s9821_s0 + $0x1f0] sm:$0xff] }
 0x3b3   :  { %6132 = vmatmul.msk.bf16.gmra.mxu2 %vm1824_vm1, %v6388_v10  ;;  %6196 = vmatmul.msk.bf16.gmra.mxu3 %vm1824_vm1, %v6452_v11  ;;  %v6328_v5 = vld [vmem:[%s9821_s0 + $0x3f0] sm:$0xff] }
 0x3b4   :  { %v6392_v10 = vld [vmem:[%s9821_s0 + $0x5f0] sm:$0xff] }
 0x3b5   :  { %v6456_v11 = vld [vmem:[%s9821_s0 + $0x7f0] sm:$0xff] }
 0x3b6   :  { %v3496_v12 = vpop.f32.mrf.mxu2  ;;  %v3816_v13 = vpop.f32.mrf.mxu3 }
 0x3b7   :  { %v2858_v14 = vpop.f32.mrf.mxu0  ;;  %v3178_v15 = vpop.f32.mrf.mxu1 }
 0x3b8   :  { %v6713_v16 = vpack.c.bf16 %v2858_v14, %v2856_v8  ;;  %v7033_v17 = vpack.c.bf16 %v3178_v15, %v3176_v9 }
 0x3ba   :  { %7789 = vst [vmem:[%s9822_s2 + $0x190] sm:$0xff] %v6713_v16  }
 0x3bb   :  { %7853 = vst [vmem:[%s9822_s2 + $0x390] sm:$0xff] %v7033_v17  }
 0x3be   :  { %v3498_v18 = vpop.f32.mrf.mxu2  ;;  %v3818_v19 = vpop.f32.mrf.mxu3 }
 0x3bf   :  { %v7353_v22 = vpack.c.bf16 %v3498_v18, %v3496_v12  ;;  %v7673_v23 = vpack.c.bf16 %v3818_v19, %v3816_v13  ;;  %v2861_v24 = vpop.f32.mrf.mxu0  ;;  %v3181_v25 = vpop.f32.mrf.mxu1 }
 0x3c1   :  { %7917 = vst [vmem:[%s9822_s2 + $0x590] sm:$0xff] %v7353_v22  }
 0x3c2   :  { %7981 = vst [vmem:[%s9822_s2 + $0x790] sm:$0xff] %v7673_v23   ;;  %6005 = vmatmul.msk.bf16.gmra.mxu0 %vm1824_vm1, %v6261_v20  ;;  %6069 = vmatmul.msk.bf16.gmra.mxu1 %vm1824_vm1, %v6325_v21  ;;  %v6265_v20 = vld [vmem:[%s9821_s0 + $0x1f8] sm:$0xff] }
 0x3c3   :  { %6133 = vmatmul.msk.bf16.gmra.mxu2 %vm1824_vm1, %v6389_v26  ;;  %6197 = vmatmul.msk.bf16.gmra.mxu3 %vm1824_vm1, %v6453_v27  ;;  %v6329_v21 = vld [vmem:[%s9821_s0 + $0x3f8] sm:$0xff] }
 0x3c4   :  { %v6393_v26 = vld [vmem:[%s9821_s0 + $0x5f8] sm:$0xff] }
 0x3c5   :  { %v6457_v27 = vld [vmem:[%s9821_s0 + $0x7f8] sm:$0xff] }
 0x3c6   :  { %v3501_v28 = vpop.f32.mrf.mxu2  ;;  %v3821_v29 = vpop.f32.mrf.mxu3 }
 0x3c7   :  { %v2863_v30 = vpop.f32.mrf.mxu0  ;;  %v3183_v31 = vpop.f32.mrf.mxu1 }
 0x3c8   :  { %v6718_v32 = vpack.c.bf16 %v2863_v30, %v2861_v24  ;;  %v7038_v33 = vpack.c.bf16 %v3183_v31, %v3181_v25 }
 0x3ca   :  { %7790 = vst [vmem:[%s9822_s2 + $0x198] sm:$0xff] %v6718_v32  }
 0x3cb   :  { %7854 = vst [vmem:[%s9822_s2 + $0x398] sm:$0xff] %v7038_v33  }
 0x3ce   :  { %v3503_v34 = vpop.f32.mrf.mxu2  ;;  %v3823_v35 = vpop.f32.mrf.mxu3 }
 0x3cf   :  { %v7358_v38 = vpack.c.bf16 %v3503_v34, %v3501_v28  ;;  %v7678_v39 = vpack.c.bf16 %v3823_v35, %v3821_v29  ;;  %v2866_v40 = vpop.f32.mrf.mxu0  ;;  %v3186_v41 = vpop.f32.mrf.mxu1 }
 0x3d1   :  { %7918 = vst [vmem:[%s9822_s2 + $0x598] sm:$0xff] %v7358_v38  }
 0x3d2   :  { %7982 = vst [vmem:[%s9822_s2 + $0x798] sm:$0xff] %v7678_v39   ;;  %6006 = vmatmul.msk.bf16.gmra.mxu0 %vm1824_vm1, %v6262_v36  ;;  %6070 = vmatmul.msk.bf16.gmra.mxu1 %vm1824_vm1, %v6326_v37 }
 0x3d3   :  { %6134 = vmatmul.msk.bf16.gmra.mxu2 %vm1824_vm1, %v6390_v42  ;;  %6198 = vmatmul.msk.bf16.gmra.mxu3 %vm1824_vm1, %v6454_v43 }
 0x3d6   :  { %v3506_v44 = vpop.f32.mrf.mxu2  ;;  %v3826_v45 = vpop.f32.mrf.mxu3 }
 0x3d7   :  { %v2868_v46 = vpop.f32.mrf.mxu0  ;;  %v3188_v47 = vpop.f32.mrf.mxu1 }
 0x3d8   :  { %v6723_v48 = vpack.c.bf16 %v2868_v46, %v2866_v40  ;;  %v7043_v49 = vpack.c.bf16 %v3188_v47, %v3186_v41 }
 0x3da   :  { %7791 = vst [vmem:[%s9822_s2 + $0x1a0] sm:$0xff] %v6723_v48  }
 0x3db   :  { %7855 = vst [vmem:[%s9822_s2 + $0x3a0] sm:$0xff] %v7043_v49  }
 0x3de   :  { %v3508_v50 = vpop.f32.mrf.mxu2  ;;  %v3828_v51 = vpop.f32.mrf.mxu3 }
 0x3df   :  { %v7363_v54 = vpack.c.bf16 %v3508_v50, %v3506_v44  ;;  %v7683_v55 = vpack.c.bf16 %v3828_v51, %v3826_v45  ;;  %v2871_v56 = vpop.f32.mrf.mxu0  ;;  %v3191_v57 = vpop.f32.mrf.mxu1 }
 0x3e1   :  { %7919 = vst [vmem:[%s9822_s2 + $0x5a0] sm:$0xff] %v7363_v54  }
 0x3e2   :  { %7983 = vst [vmem:[%s9822_s2 + $0x7a0] sm:$0xff] %v7683_v55   ;;  %6007 = vmatmul.msk.bf16.gmra.mxu0 %vm1824_vm1, %v6263_v52  ;;  %6071 = vmatmul.msk.bf16.gmra.mxu1 %vm1824_vm1, %v6327_v53 }
 0x3e3   :  { %6135 = vmatmul.msk.bf16.gmra.mxu2 %vm1824_vm1, %v6391_v58  ;;  %6199 = vmatmul.msk.bf16.gmra.mxu3 %vm1824_vm1, %v6455_v59 }
 0x3e6   :  { %v3511_v60 = vpop.f32.mrf.mxu2  ;;  %v3831_v61 = vpop.f32.mrf.mxu3 }
 0x3e7   :  { %v2873_v62 = vpop.f32.mrf.mxu0  ;;  %v3193_v63 = vpop.f32.mrf.mxu1 }
 0x3e8   :  { %v6728_v0 = vpack.c.bf16 %v2873_v62, %v2871_v56  ;;  %v7048_v1 = vpack.c.bf16 %v3193_v63, %v3191_v57 }
 0x3ea   :  { %7792 = vst [vmem:[%s9822_s2 + $0x1a8] sm:$0xff] %v6728_v0  }
 0x3eb   :  { %7856 = vst [vmem:[%s9822_s2 + $0x3a8] sm:$0xff] %v7048_v1  }
 0x3ee   :  { %v3513_v2 = vpop.f32.mrf.mxu2  ;;  %v3833_v3 = vpop.f32.mrf.mxu3 }
 0x3ef   :  { %v7368_v6 = vpack.c.bf16 %v3513_v2, %v3511_v60  ;;  %v7688_v7 = vpack.c.bf16 %v3833_v3, %v3831_v61  ;;  %v2876_v8 = vpop.f32.mrf.mxu0  ;;  %v3196_v9 = vpop.f32.mrf.mxu1 }
 0x3f1   :  { %7920 = vst [vmem:[%s9822_s2 + $0x5a8] sm:$0xff] %v7368_v6  }
 0x3f2   :  { %7984 = vst [vmem:[%s9822_s2 + $0x7a8] sm:$0xff] %v7688_v7   ;;  %6008 = vmatmul.msk.bf16.gmra.mxu0 %vm1824_vm1, %v6264_v4  ;;  %6072 = vmatmul.msk.bf16.gmra.mxu1 %vm1824_vm1, %v6328_v5 }
 0x3f3   :  { %6136 = vmatmul.msk.bf16.gmra.mxu2 %vm1824_vm1, %v6392_v10  ;;  %6200 = vmatmul.msk.bf16.gmra.mxu3 %vm1824_vm1, %v6456_v11 }
 0x3f6   :  { %v3516_v12 = vpop.f32.mrf.mxu2  ;;  %v3836_v13 = vpop.f32.mrf.mxu3 }
 0x3f7   :  { %v2878_v14 = vpop.f32.mrf.mxu0  ;;  %v3198_v15 = vpop.f32.mrf.mxu1 }
 0x3f8   :  { %v6733_v16 = vpack.c.bf16 %v2878_v14, %v2876_v8  ;;  %v7053_v17 = vpack.c.bf16 %v3198_v15, %v3196_v9 }
 0x3fa   :  { %7793 = vst [vmem:[%s9822_s2 + $0x1b0] sm:$0xff] %v6733_v16  }
 0x3fb   :  { %7857 = vst [vmem:[%s9822_s2 + $0x3b0] sm:$0xff] %v7053_v17  }
 0x3fe   :  { %v3518_v18 = vpop.f32.mrf.mxu2  ;;  %v3838_v19 = vpop.f32.mrf.mxu3 }
 0x3ff   :  { %v7373_v22 = vpack.c.bf16 %v3518_v18, %v3516_v12  ;;  %v7693_v23 = vpack.c.bf16 %v3838_v19, %v3836_v13  ;;  %v2881_v24 = vpop.f32.mrf.mxu0  ;;  %v3201_v25 = vpop.f32.mrf.mxu1 }
 0x401   :  { %7921 = vst [vmem:[%s9822_s2 + $0x5b0] sm:$0xff] %v7373_v22  }
 0x402   :  { %7985 = vst [vmem:[%s9822_s2 + $0x7b0] sm:$0xff] %v7693_v23   ;;  %6009 = vmatmul.msk.bf16.gmra.mxu0 %vm1824_vm1, %v6265_v20  ;;  %6073 = vmatmul.msk.bf16.gmra.mxu1 %vm1824_vm1, %v6329_v21 }
 0x403   :  { %6137 = vmatmul.msk.bf16.gmra.mxu2 %vm1824_vm1, %v6393_v26  ;;  %6201 = vmatmul.msk.bf16.gmra.mxu3 %vm1824_vm1, %v6457_v27 }
 0x406   :  { %v3521_v28 = vpop.f32.mrf.mxu2  ;;  %v3841_v29 = vpop.f32.mrf.mxu3 }
 0x407   :  { %v2883_v30 = vpop.f32.mrf.mxu0  ;;  %v3203_v31 = vpop.f32.mrf.mxu1 }
 0x408   :  { %v6738_v32 = vpack.c.bf16 %v2883_v30, %v2881_v24  ;;  %v7058_v33 = vpack.c.bf16 %v3203_v31, %v3201_v25 }
 0x40a   :  { %7794 = vst [vmem:[%s9822_s2 + $0x1b8] sm:$0xff] %v6738_v32  }
 0x40b   :  { %7858 = vst [vmem:[%s9822_s2 + $0x3b8] sm:$0xff] %v7058_v33  }
 0x40e   :  { %v3523_v34 = vpop.f32.mrf.mxu2  ;;  %v3843_v35 = vpop.f32.mrf.mxu3 }
 0x40f   :  { %v7378_v36 = vpack.c.bf16 %v3523_v34, %v3521_v28  ;;  %v7698_v37 = vpack.c.bf16 %v3843_v35, %v3841_v29  ;;  %v2886_v38 = vpop.f32.mrf.mxu0  ;;  %v3206_v39 = vpop.f32.mrf.mxu1 }
 0x411   :  { %7922 = vst [vmem:[%s9822_s2 + $0x5b8] sm:$0xff] %v7378_v36  }
 0x412   :  { %7986 = vst [vmem:[%s9822_s2 + $0x7b8] sm:$0xff] %v7698_v37  }
 0x416   :  { %v3526_v40 = vpop.f32.mrf.mxu2  ;;  %v3846_v41 = vpop.f32.mrf.mxu3 }
 0x417   :  { %v2888_v42 = vpop.f32.mrf.mxu0  ;;  %v3208_v43 = vpop.f32.mrf.mxu1 }
 0x418   :  { %v6743_v44 = vpack.c.bf16 %v2888_v42, %v2886_v38  ;;  %v7063_v45 = vpack.c.bf16 %v3208_v43, %v3206_v39 }
 0x41a   :  { %7795 = vst [vmem:[%s9822_s2 + $0x1c0] sm:$0xff] %v6743_v44  }
 0x41b   :  { %7859 = vst [vmem:[%s9822_s2 + $0x3c0] sm:$0xff] %v7063_v45  }
 0x41e   :  { %v3528_v46 = vpop.f32.mrf.mxu2  ;;  %v3848_v47 = vpop.f32.mrf.mxu3 }
 0x41f   :  { %v7383_v48 = vpack.c.bf16 %v3528_v46, %v3526_v40  ;;  %v7703_v49 = vpack.c.bf16 %v3848_v47, %v3846_v41  ;;  %v2891_v50 = vpop.f32.mrf.mxu0  ;;  %v3211_v51 = vpop.f32.mrf.mxu1 }
 0x421   :  { %7923 = vst [vmem:[%s9822_s2 + $0x5c0] sm:$0xff] %v7383_v48  }
 0x422   :  { %7987 = vst [vmem:[%s9822_s2 + $0x7c0] sm:$0xff] %v7703_v49  }
 0x426   :  { %v3531_v52 = vpop.f32.mrf.mxu2  ;;  %v3851_v53 = vpop.f32.mrf.mxu3 }
 0x427   :  { %v2893_v54 = vpop.f32.mrf.mxu0  ;;  %v3213_v55 = vpop.f32.mrf.mxu1 }
 0x428   :  { %v6748_v56 = vpack.c.bf16 %v2893_v54, %v2891_v50  ;;  %v7068_v57 = vpack.c.bf16 %v3213_v55, %v3211_v51 }
 0x42a   :  { %7796 = vst [vmem:[%s9822_s2 + $0x1c8] sm:$0xff] %v6748_v56  }
 0x42b   :  { %7860 = vst [vmem:[%s9822_s2 + $0x3c8] sm:$0xff] %v7068_v57  }
 0x42e   :  { %v3533_v58 = vpop.f32.mrf.mxu2  ;;  %v3853_v59 = vpop.f32.mrf.mxu3 }
 0x42f   :  { %v7388_v60 = vpack.c.bf16 %v3533_v58, %v3531_v52  ;;  %v7708_v61 = vpack.c.bf16 %v3853_v59, %v3851_v53  ;;  %v2896_v62 = vpop.f32.mrf.mxu0  ;;  %v3216_v63 = vpop.f32.mrf.mxu1 }
 0x431   :  { %7924 = vst [vmem:[%s9822_s2 + $0x5c8] sm:$0xff] %v7388_v60  }
 0x432   :  { %7988 = vst [vmem:[%s9822_s2 + $0x7c8] sm:$0xff] %v7708_v61  }
 0x436   :  { %v3536_v0 = vpop.f32.mrf.mxu2  ;;  %v3856_v1 = vpop.f32.mrf.mxu3 }
 0x437   :  { %v2898_v2 = vpop.f32.mrf.mxu0  ;;  %v3218_v3 = vpop.f32.mrf.mxu1 }
 0x438   :  { %v6753_v4 = vpack.c.bf16 %v2898_v2, %v2896_v62  ;;  %v7073_v5 = vpack.c.bf16 %v3218_v3, %v3216_v63 }
 0x43a   :  { %7797 = vst [vmem:[%s9822_s2 + $0x1d0] sm:$0xff] %v6753_v4  }
 0x43b   :  { %7861 = vst [vmem:[%s9822_s2 + $0x3d0] sm:$0xff] %v7073_v5  }
 0x43e   :  { %v3538_v6 = vpop.f32.mrf.mxu2  ;;  %v3858_v7 = vpop.f32.mrf.mxu3 }
 0x43f   :  { %v7393_v8 = vpack.c.bf16 %v3538_v6, %v3536_v0  ;;  %v7713_v9 = vpack.c.bf16 %v3858_v7, %v3856_v1  ;;  %v2901_v10 = vpop.f32.mrf.mxu0  ;;  %v3221_v11 = vpop.f32.mrf.mxu1 }
 0x441   :  { %7925 = vst [vmem:[%s9822_s2 + $0x5d0] sm:$0xff] %v7393_v8  }
 0x442   :  { %7989 = vst [vmem:[%s9822_s2 + $0x7d0] sm:$0xff] %v7713_v9  }
 0x446   :  { %v3541_v12 = vpop.f32.mrf.mxu2  ;;  %v3861_v13 = vpop.f32.mrf.mxu3 }
 0x447   :  { %v2903_v14 = vpop.f32.mrf.mxu0  ;;  %v3223_v15 = vpop.f32.mrf.mxu1 }
 0x448   :  { %v6758_v16 = vpack.c.bf16 %v2903_v14, %v2901_v10  ;;  %v7078_v17 = vpack.c.bf16 %v3223_v15, %v3221_v11 }
 0x44a   :  { %7798 = vst [vmem:[%s9822_s2 + $0x1d8] sm:$0xff] %v6758_v16  }
 0x44b   :  { %7862 = vst [vmem:[%s9822_s2 + $0x3d8] sm:$0xff] %v7078_v17  }
 0x44e   :  { %v3543_v18 = vpop.f32.mrf.mxu2  ;;  %v3863_v19 = vpop.f32.mrf.mxu3 }
 0x44f   :  { %v7398_v20 = vpack.c.bf16 %v3543_v18, %v3541_v12  ;;  %v7718_v21 = vpack.c.bf16 %v3863_v19, %v3861_v13  ;;  %v2906_v22 = vpop.f32.mrf.mxu0  ;;  %v3226_v23 = vpop.f32.mrf.mxu1 }
 0x451   :  { %7926 = vst [vmem:[%s9822_s2 + $0x5d8] sm:$0xff] %v7398_v20  }
 0x452   :  { %7990 = vst [vmem:[%s9822_s2 + $0x7d8] sm:$0xff] %v7718_v21  }
 0x456   :  { %v3546_v24 = vpop.f32.mrf.mxu2  ;;  %v3866_v25 = vpop.f32.mrf.mxu3 }
 0x457   :  { %v2908_v26 = vpop.f32.mrf.mxu0  ;;  %v3228_v27 = vpop.f32.mrf.mxu1 }
 0x458   :  { %v6763_v28 = vpack.c.bf16 %v2908_v26, %v2906_v22  ;;  %v7083_v29 = vpack.c.bf16 %v3228_v27, %v3226_v23 }
 0x45a   :  { %7799 = vst [vmem:[%s9822_s2 + $0x1e0] sm:$0xff] %v6763_v28  }
 0x45b   :  { %7863 = vst [vmem:[%s9822_s2 + $0x3e0] sm:$0xff] %v7083_v29  }
 0x45e   :  { %v3548_v30 = vpop.f32.mrf.mxu2  ;;  %v3868_v31 = vpop.f32.mrf.mxu3 }
 0x45f   :  { %v7403_v32 = vpack.c.bf16 %v3548_v30, %v3546_v24  ;;  %v7723_v33 = vpack.c.bf16 %v3868_v31, %v3866_v25  ;;  %v2911_v34 = vpop.f32.mrf.mxu0  ;;  %v3231_v35 = vpop.f32.mrf.mxu1 }
 0x461   :  { %7927 = vst [vmem:[%s9822_s2 + $0x5e0] sm:$0xff] %v7403_v32  }
 0x462   :  { %7991 = vst [vmem:[%s9822_s2 + $0x7e0] sm:$0xff] %v7723_v33  }
 0x466   :  { %v3551_v36 = vpop.f32.mrf.mxu2  ;;  %v3871_v37 = vpop.f32.mrf.mxu3 }
 0x467   :  { %v2913_v38 = vpop.f32.mrf.mxu0  ;;  %v3233_v39 = vpop.f32.mrf.mxu1 }
 0x468   :  { %v6768_v40 = vpack.c.bf16 %v2913_v38, %v2911_v34  ;;  %v7088_v41 = vpack.c.bf16 %v3233_v39, %v3231_v35 }
 0x46a   :  { %7800 = vst [vmem:[%s9822_s2 + $0x1e8] sm:$0xff] %v6768_v40  }
 0x46b   :  { %7864 = vst [vmem:[%s9822_s2 + $0x3e8] sm:$0xff] %v7088_v41  }
 0x46e   :  { %v3553_v42 = vpop.f32.mrf.mxu2  ;;  %v3873_v43 = vpop.f32.mrf.mxu3 }
 0x46f   :  { %v7408_v44 = vpack.c.bf16 %v3553_v42, %v3551_v36  ;;  %v7728_v45 = vpack.c.bf16 %v3873_v43, %v3871_v37  ;;  %v2916_v46 = vpop.f32.mrf.mxu0  ;;  %v3236_v47 = vpop.f32.mrf.mxu1 }
 0x471   :  { %7928 = vst [vmem:[%s9822_s2 + $0x5e8] sm:$0xff] %v7408_v44  }
 0x472   :  { %7992 = vst [vmem:[%s9822_s2 + $0x7e8] sm:$0xff] %v7728_v45  }
 0x476   :  { %v3556_v48 = vpop.f32.mrf.mxu2  ;;  %v3876_v49 = vpop.f32.mrf.mxu3 }
 0x477   :  { %v2918_v50 = vpop.f32.mrf.mxu0  ;;  %v3238_v51 = vpop.f32.mrf.mxu1 }
 0x478   :  { %v6773_v52 = vpack.c.bf16 %v2918_v50, %v2916_v46  ;;  %v7093_v53 = vpack.c.bf16 %v3238_v51, %v3236_v47 }
 0x47a   :  { %7801 = vst [vmem:[%s9822_s2 + $0x1f0] sm:$0xff] %v6773_v52  }
 0x47b   :  { %7865 = vst [vmem:[%s9822_s2 + $0x3f0] sm:$0xff] %v7093_v53  }
 0x47e   :  { %v3558_v54 = vpop.f32.mrf.mxu2  ;;  %v3878_v55 = vpop.f32.mrf.mxu3 }
 0x47f   :  { %v7413_v56 = vpack.c.bf16 %v3558_v54, %v3556_v48  ;;  %v7733_v57 = vpack.c.bf16 %v3878_v55, %v3876_v49  ;;  %v2921_v58 = vpop.f32.mrf.mxu0  ;;  %v3241_v59 = vpop.f32.mrf.mxu1 }
 0x481   :  { %7929 = vst [vmem:[%s9822_s2 + $0x5f0] sm:$0xff] %v7413_v56  }
 0x482   :  { %7993 = vst [vmem:[%s9822_s2 + $0x7f0] sm:$0xff] %v7733_v57  }
 0x486   :  { %v3561_v60 = vpop.f32.mrf.mxu2  ;;  %v3881_v61 = vpop.f32.mrf.mxu3 }
 0x487   :  { %v2923_v62 = vpop.f32.mrf.mxu0  ;;  %v3243_v63 = vpop.f32.mrf.mxu1 }
 0x488   :  { %v6778_v0 = vpack.c.bf16 %v2923_v62, %v2921_v58  ;;  %v7098_v1 = vpack.c.bf16 %v3243_v63, %v3241_v59 }
 0x48a   :  { %7802 = vst [vmem:[%s9822_s2 + $0x1f8] sm:$0xff] %v6778_v0  }
 0x48b   :  { %7866 = vst [vmem:[%s9822_s2 + $0x3f8] sm:$0xff] %v7098_v1  }
 0x48e   :  { %v3563_v2 = vpop.f32.mrf.mxu2  ;;  %v3883_v3 = vpop.f32.mrf.mxu3 }
 0x48f   :  { %v7418_v4 = vpack.c.bf16 %v3563_v2, %v3561_v60  ;;  %v7738_v5 = vpack.c.bf16 %v3883_v3, %v3881_v61 }
 0x491   :  { %7930 = vst [vmem:[%s9822_s2 + $0x5f8] sm:$0xff] %v7418_v4  }
 0x492   :  { %7994 = vst [vmem:[%s9822_s2 + $0x7f8] sm:$0xff] %v7738_v5  }

// kernel: convcell_forward.4
= control target key start
LH: loop header
LB: loop body
LE: loop exit
PB: predicated region body
PF: predicated region fallthrough
CT: control target
= control target key end

     0   :  { %s6748_s24 = smov 0   ;;  %s6750_s25 = smov 0   ;;  %s12158_s0 = inlined_call_operand.vmem [shape: bf16[8,2,16,16,128], index: 0, kind: input, shape index: {}]   ;;  %s12159_s1 = inlined_call_operand.vmem [shape: f32[1,128], index: 1, kind: input, shape index: {}]   ;;  %s12160_s2 = inlined_call_operand.vmem [shape: bf16[288,128], index: 2, kind: input, shape index: {}]   ;;  %s12161_s3 = inlined_call_operand.vmem [shape: f32[16,16,32], index: 3, kind: input, shape index: {}]   ;;  %s12162_s4 = inlined_call_operand.vmem [shape: f32[16,16,32], index: 4, kind: input, shape index: {}]   ;;  %s12163_s5 = inlined_call_operand.vmem [shape: f32[16,16,32], index: 5, kind: input, shape index: {}]   ;;  %s12164_s6 = inlined_call_operand.vmem [shape: f32[8,2,16,16,32], index: 6, kind: output, shape index: {0}]   ;;  %s12165_s7 = inlined_call_operand.vmem [shape: f32[2,2,32], index: 7, kind: output, shape index: {1}]  }
   0x1   :  { %s6752_s26 = smov 0   ;;  %s6754_s27 = smov 0  }
   0x2   :  { %s6756_s28 = smov 0  }
   0x3 LB: > { %s27_s29 = sadd.s32 1, %s6694_s26  ;;  %s30_s30 = sadd.s32 1, %s6698_s27  ;;  %s6702_s28 = sphi %s6756_s28, %s18_s28   ;;  %s6698_s27 = sphi %s6754_s27, %s12816_s27   ;;  %s6694_s26 = sphi %s6752_s26, %s12815_s26   ;;  %s6690_s25 = sphi %s6750_s25, %s12814_s25   ;;  %s6686_s24 = sphi %s6748_s24, %s12813_s24  }
   0x4   : > { %p28_p0 = scmp.ge.s32.totalorder %s27_s29, 8  ;;  %p5893_p1 = scmp.ge.s32.totalorder %s6702_s28, 1 }
   0x5   : > { %p260_p2 = scmp.lt.s32.totalorder %s6702_s28, 17 }
   0x6   : > { %s12818_s29 = smov (%p28_p0, %s27_s29), 0  ;;  %s12820_s30 = smov (!%p28_p0, %s30_s30), %s6698_s27 }
   0x7   : > { %p261_p3 = pnand %p5893_p1, %p260_p2  ;;  %p32_p4 = scmp.ge.s32.totalorder %s12820_s30, 2 }
   0x9   : > { %s12822_s30 = smov (%p32_p4, %s12820_s30), 0  ;;  %264 = sbr.rel (%p261_p3) target bundleno = 1589 (0x635), region = 44 }
   0xe   : > { %p304_p5 = scmp.lt.s32.totalorder %s6686_s24, 7  ;;  %p306_p6 = scmp.lt.s32.totalorder %s6690_s25, 1 }
   0xf   : > { %p5901_p7 = scmp.ne.s32.totalorder %s6686_s24, 0 }
  0x10   : > { %s305_s8 = scalar_select %p304_p5, %s6686_s24, 7 }
  0x11   : > { %s12824_s25 = smov (!%p306_p6, %s6690_s25), 1 }
  0x12   : > { %s5895_s9 = sshll.u32 %s305_s8, 6  ;;  %s5894_s10 = sshll.u32 %s12824_s25, 5 }
  0x13   : > { %s5900_s11 = sshll.u32 %s12824_s25, 1  ;;  %s310_s12 = sadd.s32 %s5895_s9, %s5894_s10 }
  0x14   : > { %s6785_s15 = scalar_lea.vmem %s12165_s7, %s5900_s11  ;;  %s5896_s16 = sshll.u32 %s310_s12, 2 }
  0x15   : > { %s5899_s17 = sshll.u32 %s310_s12, 3  ;;  %s6790_s20 = scalar_lea.vmem %s12158_s0, %s5896_s16 }
  0x16   : > { %s6795_s23 = scalar_lea.vmem %s12164_s6, %s5899_s17  ;;  %330 = sbr.rel (%p5901_p7) target bundleno = 157 (0x9d), region = 48 }
  0x1b   : > { %v6704_v0 = vmov 0.0   ;;  %vm333_vm0 = vcmask 261120   ;;  %vm460_vm1 = vcmask 254976  }
  0x1c   : > { %331 = vst [vmem:[#allocation2] sm:$0xff] %v6704_v0 }
  0x1d   : > { %332 = vst [vmem:[#allocation2 + $0x8] sm:$0xff] %v6704_v0 }
  0x1e   : > { %335 = vst [vmem:[#allocation2 + $0x18] sm:$0xff] %v6704_v0 }
  0x1f   : > { %336 = vst [vmem:[#allocation2 + $0x20] sm:$0xff] %v6704_v0 }
  0x20   : > { %338 = vst [vmem:[#allocation2 + $0x30] sm:$0xff] %v6704_v0 }
  0x21   : > { %339 = vst [vmem:[#allocation2 + $0x38] sm:$0xff] %v6704_v0 }
  0x22   : > { %341 = vst [vmem:[#allocation2 + $0x48] sm:$0xff] %v6704_v0 }
  0x23   : > { %342 = vst [vmem:[#allocation2 + $0x50] sm:$0xff] %v6704_v0 }
  0x24   : > { %344 = vst [vmem:[#allocation2 + $0x60] sm:$0xff] %v6704_v0 }
  0x25   : > { %345 = vst [vmem:[#allocation2 + $0x68] sm:$0xff] %v6704_v0 }
  0x26   : > { %347 = vst [vmem:[#allocation2 + $0x78] sm:$0xff] %v6704_v0 }
  0x27   : > { %348 = vst [vmem:[#allocation2 + $0x80] sm:$0xff] %v6704_v0 }
  0x28   : > { %350 = vst [vmem:[#allocation2 + $0x90] sm:$0xff] %v6704_v0 }
  0x29   : > { %351 = vst [vmem:[#allocation2 + $0x98] sm:$0xff] %v6704_v0 }
  0x2a   : > { %353 = vst [vmem:[#allocation2 + $0xa8] sm:$0xff] %v6704_v0 }
  0x2b   : > { %354 = vst [vmem:[#allocation2 + $0xb0] sm:$0xff] %v6704_v0 }
  0x2c   : > { %356 = vst [vmem:[#allocation2 + $0xc0] sm:$0xff] %v6704_v0 }
  0x2d   : > { %357 = vst [vmem:[#allocation2 + $0xc8] sm:$0xff] %v6704_v0 }
  0x2e   : > { %359 = vst [vmem:[#allocation2 + $0xd8] sm:$0xff] %v6704_v0 }
  0x2f   : > { %360 = vst [vmem:[#allocation2 + $0xe0] sm:$0xff] %v6704_v0 }
  0x30   : > { %362 = vst [vmem:[#allocation2 + $0xf0] sm:$0xff] %v6704_v0 }
  0x31   : > { %363 = vst [vmem:[#allocation2 + $0xf8] sm:$0xff] %v6704_v0 }
  0x32   : > { %365 = vst [vmem:[#allocation2 + $0x108] sm:$0xff] %v6704_v0 }
  0x33   : > { %366 = vst [vmem:[#allocation2 + $0x110] sm:$0xff] %v6704_v0 }
  0x34   : > { %368 = vst [vmem:[#allocation2 + $0x120] sm:$0xff] %v6704_v0 }
  0x35   : > { %369 = vst [vmem:[#allocation2 + $0x128] sm:$0xff] %v6704_v0 }
  0x36   : > { %371 = vst [vmem:[#allocation2 + $0x138] sm:$0xff] %v6704_v0 }
  0x37   : > { %372 = vst [vmem:[#allocation2 + $0x140] sm:$0xff] %v6704_v0 }
  0x38   : > { %374 = vst [vmem:[#allocation2 + $0x150] sm:$0xff] %v6704_v0 }
  0x39   : > { %375 = vst [vmem:[#allocation2 + $0x158] sm:$0xff] %v6704_v0 }
  0x3a   : > { %377 = vst [vmem:[#allocation2 + $0x168] sm:$0xff] %v6704_v0 }
  0x3b   : > { %378 = vst [vmem:[#allocation2 + $0x170] sm:$0xff] %v6704_v0 }
  0x3c   : > { %380 = vst [vmem:[#allocation2 + $0x180] sm:$0xff] %v6704_v0 }
  0x3d   : > { %381 = vst [vmem:[#allocation2 + $0x188] sm:$0xff] %v6704_v0 }
  0x3e   : > { %383 = vst [vmem:[#allocation2 + $0x198] sm:$0xff] %v6704_v0 }
  0x3f   : > { %384 = vst [vmem:[#allocation2 + $0x1a0] sm:$0xff] %v6704_v0 }
  0x40   : > { %386 = vst [vmem:[#allocation2 + $0x1b0] sm:$0xff] %v6704_v0 }
  0x41   : > { %387 = vst [vmem:[#allocation2 + $0x1b8] sm:$0xff] %v6704_v0 }
  0x42   : > { %389 = vst [vmem:[#allocation2 + $0x1c8] sm:$0xff] %v6704_v0 }
  0x43   : > { %390 = vst [vmem:[#allocation2 + $0x1d0] sm:$0xff] %v6704_v0 }
  0x44   : > { %392 = vst [vmem:[#allocation2 + $0x1e0] sm:$0xff] %v6704_v0 }
  0x45   : > { %393 = vst [vmem:[#allocation2 + $0x1e8] sm:$0xff] %v6704_v0 }
  0x46   : > { %395 = vst [vmem:[#allocation2 + $0x1f8] sm:$0xff] %v6704_v0 }
  0x47   : > { %396 = vst [vmem:[#allocation2 + $0x200] sm:$0xff] %v6704_v0 }
  0x48   : > { %398 = vst [vmem:[#allocation2 + $0x210] sm:$0xff] %v6704_v0 }
  0x49   : > { %399 = vst [vmem:[#allocation2 + $0x218] sm:$0xff] %v6704_v0 }
  0x4a   : > { %401 = vst [vmem:[#allocation2 + $0x228] sm:$0xff] %v6704_v0 }
  0x4b   : > { %402 = vst [vmem:[#allocation2 + $0x230] sm:$0xff] %v6704_v0 }
  0x4c   : > { %404 = vst [vmem:[#allocation2 + $0x240] sm:$0xff] %v6704_v0 }
  0x4d   : > { %405 = vst [vmem:[#allocation2 + $0x248] sm:$0xff] %v6704_v0 }
  0x4e   : > { %407 = vst [vmem:[#allocation2 + $0x258] sm:$0xff] %v6704_v0 }
  0x4f   : > { %408 = vst [vmem:[#allocation2 + $0x260] sm:$0xff] %v6704_v0 }
  0x50   : > { %410 = vst [vmem:[#allocation2 + $0x270] sm:$0xff] %v6704_v0 }
  0x51   : > { %411 = vst [vmem:[#allocation2 + $0x278] sm:$0xff] %v6704_v0 }
  0x52   : > { %413 = vst [vmem:[#allocation2 + $0x288] sm:$0xff] %v6704_v0 }
  0x53   : > { %414 = vst [vmem:[#allocation2 + $0x290] sm:$0xff] %v6704_v0 }
  0x54   : > { %416 = vst [vmem:[#allocation2 + $0x2a0] sm:$0xff] %v6704_v0 }
  0x55   : > { %417 = vst [vmem:[#allocation2 + $0x2a8] sm:$0xff] %v6704_v0 }
  0x56   : > { %419 = vst [vmem:[#allocation2 + $0x2b8] sm:$0xff] %v6704_v0 }
  0x57   : > { %420 = vst [vmem:[#allocation2 + $0x2c0] sm:$0xff] %v6704_v0 }
  0x58   : > { %422 = vst [vmem:[#allocation2 + $0x2d0] sm:$0xff] %v6704_v0 }
  0x59   : > { %423 = vst [vmem:[#allocation2 + $0x2d8] sm:$0xff] %v6704_v0 }
  0x5a   : > { %425 = vst [vmem:[#allocation2 + $0x2e8] sm:$0xff] %v6704_v0 }
  0x5b   : > { %426 = vst [vmem:[#allocation2 + $0x2f0] sm:$0xff] %v6704_v0 }
  0x5c   : > { %334 = vst.msk [vmem:[#allocation2 + $0x10] sm:$0xff] %vm333_vm0, %v6704_v0 }
  0x5d   : > { %337 = vst.msk [vmem:[#allocation2 + $0x28] sm:$0xff] %vm333_vm0, %v6704_v0 }
  0x5e   : > { %340 = vst.msk [vmem:[#allocation2 + $0x40] sm:$0xff] %vm333_vm0, %v6704_v0 }
  0x5f   : > { %343 = vst.msk [vmem:[#allocation2 + $0x58] sm:$0xff] %vm333_vm0, %v6704_v0 }
  0x60   : > { %346 = vst.msk [vmem:[#allocation2 + $0x70] sm:$0xff] %vm333_vm0, %v6704_v0 }
  0x61   : > { %349 = vst.msk [vmem:[#allocation2 + $0x88] sm:$0xff] %vm333_vm0, %v6704_v0 }
  0x62   : > { %352 = vst.msk [vmem:[#allocation2 + $0xa0] sm:$0xff] %vm333_vm0, %v6704_v0 }
  0x63   : > { %355 = vst.msk [vmem:[#allocation2 + $0xb8] sm:$0xff] %vm333_vm0, %v6704_v0 }
  0x64   : > { %358 = vst.msk [vmem:[#allocation2 + $0xd0] sm:$0xff] %vm333_vm0, %v6704_v0 }
  0x65   : > { %361 = vst.msk [vmem:[#allocation2 + $0xe8] sm:$0xff] %vm333_vm0, %v6704_v0 }
  0x66   : > { %364 = vst.msk [vmem:[#allocation2 + $0x100] sm:$0xff] %vm333_vm0, %v6704_v0 }
  0x67   : > { %367 = vst.msk [vmem:[#allocation2 + $0x118] sm:$0xff] %vm333_vm0, %v6704_v0 }
  0x68   : > { %370 = vst.msk [vmem:[#allocation2 + $0x130] sm:$0xff] %vm333_vm0, %v6704_v0 }
  0x69   : > { %373 = vst.msk [vmem:[#allocation2 + $0x148] sm:$0xff] %vm333_vm0, %v6704_v0 }
  0x6a   : > { %376 = vst.msk [vmem:[#allocation2 + $0x160] sm:$0xff] %vm333_vm0, %v6704_v0 }
  0x6b   : > { %379 = vst.msk [vmem:[#allocation2 + $0x178] sm:$0xff] %vm333_vm0, %v6704_v0 }
  0x6c   : > { %382 = vst.msk [vmem:[#allocation2 + $0x190] sm:$0xff] %vm333_vm0, %v6704_v0 }
  0x6d   : > { %385 = vst.msk [vmem:[#allocation2 + $0x1a8] sm:$0xff] %vm333_vm0, %v6704_v0 }
  0x6e   : > { %388 = vst.msk [vmem:[#allocation2 + $0x1c0] sm:$0xff] %vm333_vm0, %v6704_v0 }
  0x6f   : > { %391 = vst.msk [vmem:[#allocation2 + $0x1d8] sm:$0xff] %vm333_vm0, %v6704_v0 }
  0x70   : > { %394 = vst.msk [vmem:[#allocation2 + $0x1f0] sm:$0xff] %vm333_vm0, %v6704_v0 }
  0x71   : > { %397 = vst.msk [vmem:[#allocation2 + $0x208] sm:$0xff] %vm333_vm0, %v6704_v0 }
  0x72   : > { %400 = vst.msk [vmem:[#allocation2 + $0x220] sm:$0xff] %vm333_vm0, %v6704_v0 }
  0x73   : > { %403 = vst.msk [vmem:[#allocation2 + $0x238] sm:$0xff] %vm333_vm0, %v6704_v0 }
  0x74   : > { %406 = vst.msk [vmem:[#allocation2 + $0x250] sm:$0xff] %vm333_vm0, %v6704_v0 }
  0x75   : > { %409 = vst.msk [vmem:[#allocation2 + $0x268] sm:$0xff] %vm333_vm0, %v6704_v0 }
  0x76   : > { %412 = vst.msk [vmem:[#allocation2 + $0x280] sm:$0xff] %vm333_vm0, %v6704_v0 }
  0x77   : > { %415 = vst.msk [vmem:[#allocation2 + $0x298] sm:$0xff] %vm333_vm0, %v6704_v0 }
  0x78   : > { %418 = vst.msk [vmem:[#allocation2 + $0x2b0] sm:$0xff] %vm333_vm0, %v6704_v0 }
  0x79   : > { %421 = vst.msk [vmem:[#allocation2 + $0x2c8] sm:$0xff] %vm333_vm0, %v6704_v0 }
  0x7a   : > { %424 = vst.msk [vmem:[#allocation2 + $0x2e0] sm:$0xff] %vm333_vm0, %v6704_v0 }
  0x7b   : > { %427 = vst.msk [vmem:[#allocation2 + $0x2f8] sm:$0xff] %vm333_vm0, %v6704_v0 }
  0x7c   : > { %428 = vst.msk [vmem:[#allocation3] sm:$0xff] %vm333_vm0, %v6704_v0 }
  0x7d   : > { %429 = vst.msk [vmem:[#allocation3 + $0x8] sm:$0xff] %vm333_vm0, %v6704_v0 }
  0x7e   : > { %430 = vst.msk [vmem:[#allocation3 + $0x10] sm:$0xff] %vm333_vm0, %v6704_v0 }
  0x7f   : > { %431 = vst.msk [vmem:[#allocation3 + $0x18] sm:$0xff] %vm333_vm0, %v6704_v0 }
  0x80   : > { %432 = vst.msk [vmem:[#allocation3 + $0x20] sm:$0xff] %vm333_vm0, %v6704_v0 }
  0x81   : > { %433 = vst.msk [vmem:[#allocation3 + $0x28] sm:$0xff] %vm333_vm0, %v6704_v0 }
  0x82   : > { %434 = vst.msk [vmem:[#allocation3 + $0x30] sm:$0xff] %vm333_vm0, %v6704_v0 }
  0x83   : > { %435 = vst.msk [vmem:[#allocation3 + $0x38] sm:$0xff] %vm333_vm0, %v6704_v0 }
  0x84   : > { %436 = vst.msk [vmem:[#allocation3 + $0x40] sm:$0xff] %vm333_vm0, %v6704_v0 }
  0x85   : > { %437 = vst.msk [vmem:[#allocation3 + $0x48] sm:$0xff] %vm333_vm0, %v6704_v0 }
  0x86   : > { %438 = vst.msk [vmem:[#allocation3 + $0x50] sm:$0xff] %vm333_vm0, %v6704_v0 }
  0x87   : > { %439 = vst.msk [vmem:[#allocation3 + $0x58] sm:$0xff] %vm333_vm0, %v6704_v0 }
  0x88   : > { %440 = vst.msk [vmem:[#allocation3 + $0x60] sm:$0xff] %vm333_vm0, %v6704_v0 }
  0x89   : > { %441 = vst.msk [vmem:[#allocation3 + $0x68] sm:$0xff] %vm333_vm0, %v6704_v0 }
  0x8a   : > { %442 = vst.msk [vmem:[#allocation3 + $0x70] sm:$0xff] %vm333_vm0, %v6704_v0 }
  0x8b   : > { %443 = vst.msk [vmem:[#allocation3 + $0x78] sm:$0xff] %vm333_vm0, %v6704_v0 }
  0x8c   : > { %444 = vst.msk [vmem:[#allocation3 + $0x80] sm:$0xff] %vm333_vm0, %v6704_v0 }
  0x8d   : > { %445 = vst.msk [vmem:[#allocation3 + $0x88] sm:$0xff] %vm333_vm0, %v6704_v0 }
  0x8e   : > { %446 = vst.msk [vmem:[#allocation3 + $0x90] sm:$0xff] %vm333_vm0, %v6704_v0 }
  0x8f   : > { %447 = vst.msk [vmem:[#allocation3 + $0x98] sm:$0xff] %vm333_vm0, %v6704_v0 }
  0x90   : > { %448 = vst.msk [vmem:[#allocation3 + $0xa0] sm:$0xff] %vm333_vm0, %v6704_v0 }
  0x91   : > { %449 = vst.msk [vmem:[#allocation3 + $0xa8] sm:$0xff] %vm333_vm0, %v6704_v0 }
  0x92   : > { %450 = vst.msk [vmem:[#allocation3 + $0xb0] sm:$0xff] %vm333_vm0, %v6704_v0 }
  0x93   : > { %451 = vst.msk [vmem:[#allocation3 + $0xb8] sm:$0xff] %vm333_vm0, %v6704_v0 }
  0x94   : > { %452 = vst.msk [vmem:[#allocation3 + $0xc0] sm:$0xff] %vm333_vm0, %v6704_v0 }
  0x95   : > { %453 = vst.msk [vmem:[#allocation3 + $0xc8] sm:$0xff] %vm333_vm0, %v6704_v0 }
  0x96   : > { %454 = vst.msk [vmem:[#allocation3 + $0xd0] sm:$0xff] %vm333_vm0, %v6704_v0 }
  0x97   : > { %455 = vst.msk [vmem:[#allocation3 + $0xd8] sm:$0xff] %vm333_vm0, %v6704_v0 }
  0x98   : > { %456 = vst.msk [vmem:[#allocation3 + $0xe0] sm:$0xff] %vm333_vm0, %v6704_v0 }
  0x99   : > { %457 = vst.msk [vmem:[#allocation3 + $0xe8] sm:$0xff] %vm333_vm0, %v6704_v0 }
  0x9a   : > { %458 = vst.msk [vmem:[#allocation3 + $0xf0] sm:$0xff] %vm333_vm0, %v6704_v0 }
  0x9b   : > { %459 = vst.msk [vmem:[#allocation3 + $0xf8] sm:$0xff] %vm333_vm0, %v6704_v0 }
  0x9c   : > { %461 = vst.msk [vmem:[%s6785_s15] sm:$0x3] %vm460_vm1, %v6704_v0 }
  0x9d PF: > { %v6992_v1 = vld [vmem:[#allocation3 + $0x10] sm:$0xff]  ;;  %v6998_v4 = vld [vmem:[#allocation3] sm:$0xff]  ;;  %v6095_v7 = vld [vmem:[%s12160_s2 + $0x38] sm:$0xff]  ;;  %s6705_s17 = smov 32   ;;  %vm850_vm2 = vcmask 261120   ;;  %s6706_s10 = smov 64  }
  0x9e   : > { %v1936_v2 = vld [vmem:[%s12162_s4 + $0x10] sm:$0xff]  ;;  %v1934_v5 = vld [vmem:[%s12162_s4] sm:$0xff]  ;;  %v7010_v8 = vld [vmem:[%s12160_s2 + $0x78] sm:$0xff]  ;;  %899 = vmatpush.bf16.msra.mxu0 %v6095_v7  ;;  %6185 = vmatpush.bf16.msra.mxu3 %v6095_v7 }
  0x9f   : > { %v1968_v3 = vmul.f32 %v1936_v2, %v6992_v1  ;;  %v1966_v6 = vmul.f32 %v1934_v5, %v6998_v4  ;;  %v7015_v9 = vld [vmem:[%s12160_s2 + $0x88] sm:$0xff]  ;;  %v6094_v10 = vld [vmem:[%s12160_s2 + $0x30] sm:$0xff]  ;;  %v7027_v12 = vld [vmem:[#allocation3 + $0x20] sm:$0xff]  ;;  %988 = vmatpush.bf16.msra.mxu1 %v7010_v8 }
  0xa0   : > { %v7025_v11 = vld [vmem:[%s12160_s2 + $0x70] sm:$0xff]  ;;  %v1938_v13 = vld [vmem:[%s12162_s4 + $0x20] sm:$0xff]  ;;  %v7039_v17 = vld [vmem:[#allocation3 + $0x18] sm:$0xff]  ;;  %1083 = vmatpush.bf16.msra.mxu2 %v7015_v9 }
  0xa1   : > { %2034 = vrot.lane.b32.xlu1 %v1968_v3, %s6705_s17  ;;  %2030 = vrot.lane.b32.xlu0 %v1966_v6, %s6705_s17  ;;  %v7036_v14 = vld [vmem:[%s12160_s2 + $0x80] sm:$0xff]  ;;  %v1970_v15 = vmul.f32 %v1938_v13, %v7027_v12  ;;  %v564_v16 = vld [vmem:[#allocation2 + $0x10] sm:$0xff]  ;;  %v567_v18 = vld [vmem:[#allocation2 + $0x28] sm:$0xff] }
  0xa2   : > { %v1937_v19 = vld [vmem:[%s12162_s4 + $0x18] sm:$0xff]  ;;  %v7045_v20 = vld [vmem:[#allocation3 + $0x8] sm:$0xff]  ;;  %900 = vmatpush.bf16.msra.mxu0 %v6094_v10  ;;  %6186 = vmatpush.bf16.msra.mxu3 %v6094_v10  ;;  %v660_v25 = vpack.c.bf16 %v567_v18, %v564_v16  ;;  %v6092_v30 = vld [vmem:[%s12160_s2 + $0x20] sm:$0xff] }
  0xa3   : > { %2038 = vrot.lane.b32.xlu2 %v1970_v15, %s6705_s17  ;;  %v1969_v21 = vmul.f32 %v1937_v19, %v7039_v17  ;;  %v1935_v22 = vld [vmem:[%s12162_s4 + $0x8] sm:$0xff]  ;;  %989 = vmatpush.bf16.msra.mxu1 %v7025_v11  ;;  %v7074_v31 = vld [vmem:[#allocation3 + $0x38] sm:$0xff]  ;;  %v7080_v33 = vld [vmem:[#allocation3 + $0x30] sm:$0xff] }
  0xa4   : > { %v1967_v23 = vmul.f32 %v1935_v22, %v7045_v20  ;;  %v6093_v24 = vld [vmem:[%s12160_s2 + $0x28] sm:$0xff]  ;;  %1084 = vmatpush.bf16.msra.mxu2 %v7036_v14  ;;  %v1941_v32 = vld [vmem:[%s12162_s4 + $0x38] sm:$0xff]  ;;  %v1940_v34 = vld [vmem:[%s12162_s4 + $0x30] sm:$0xff] }
  0xa5   : > { %v7057_v26 = vld [vmem:[#allocation3 + $0x28] sm:$0xff]  ;;  %v7089_v35 = vld [vmem:[%s12160_s2 + $0x60] sm:$0xff]  ;;  %v1973_v36 = vmul.f32 %v1941_v32, %v7074_v31  ;;  %v1972_v37 = vmul.f32 %v1940_v34, %v7080_v33  ;;  %v6091_v38 = vld [vmem:[%s12160_s2 + $0x18] sm:$0xff] }
  0xa6   : > { %v1939_v27 = vld [vmem:[%s12162_s4 + $0x28] sm:$0xff]  ;;  %901 = vmatpush.bf16.msra.mxu0 %v6093_v24  ;;  %6187 = vmatpush.bf16.msra.mxu3 %v6093_v24  ;;  %v7097_v39 = vld [vmem:[#allocation3 + $0x40] sm:$0xff]  ;;  %v7106_v41 = vld [vmem:[%s12160_s2 + $0x58] sm:$0xff] }
  0xa7   : > { %v7066_v28 = vld [vmem:[%s12160_s2 + $0x68] sm:$0xff]  ;;  %v1971_v29 = vmul.f32 %v1939_v27, %v7057_v26  ;;  %5974 = vmatmul.msk.bf16.vlgmr.msra.gmra.mxu2 %vm850_vm2, %v660_v25  ;;  %v1942_v40 = vld [vmem:[%s12162_s4 + $0x40] sm:$0xff]  ;;  %v6090_v43 = vld [vmem:[%s12160_s2 + $0x10] sm:$0xff] }
  0xa8   : > { %990 = vmatpush.bf16.msra.mxu1 %v7066_v28  ;;  %v1974_v42 = vmul.f32 %v1942_v40, %v7097_v39  ;;  %v7114_v44 = vld [vmem:[#allocation3 + $0x50] sm:$0xff]  ;;  %v7119_v46 = vld [vmem:[#allocation3 + $0x48] sm:$0xff]  ;;  %v570_v49 = vld [vmem:[#allocation2 + $0x40] sm:$0xff] }
  0xa9   : > { %2036 = vrot.lane.b32.xlu1 %v1969_v21, %s6705_s17  ;;  %2032 = vrot.lane.b32.xlu0 %v1967_v23, %s6705_s17  ;;  %v1944_v45 = vld [vmem:[%s12162_s4 + $0x50] sm:$0xff]  ;;  %v1943_v47 = vld [vmem:[%s12162_s4 + $0x48] sm:$0xff]  ;;  %v573_v50 = vld [vmem:[#allocation2 + $0x58] sm:$0xff] }
  0xaa   : > { %902 = vmatpush.bf16.msra.mxu0 %v6092_v30  ;;  %6188 = vmatpush.bf16.msra.mxu3 %v6092_v30  ;;  %v7128_v48 = vld [vmem:[%s12160_s2 + $0x50] sm:$0xff]  ;;  %v1976_v51 = vmul.f32 %v1944_v45, %v7114_v44  ;;  %v1975_v52 = vmul.f32 %v1943_v47, %v7119_v46  ;;  %v6089_v53 = vld [vmem:[%s12160_s2 + $0x8] sm:$0xff]  ;;  %v7136_v54 = vld [vmem:[#allocation3 + $0x58] sm:$0xff]  ;;  %v663_v56 = vpack.c.bf16 %v573_v50, %v570_v49 }
  0xab   : > { %2040 = vrot.lane.b32.xlu2 %v1971_v29, %s6705_s17  ;;  %v1945_v55 = vld [vmem:[%s12162_s4 + $0x58] sm:$0xff]  ;;  %v7145_v57 = vld [vmem:[%s12160_s2 + $0x48] sm:$0xff]  ;;  %v6088_v58 = vld [vmem:[%s12160_s2] sm:$0xff] }
  0xac   : > { %991 = vmatpush.bf16.msra.mxu1 %v7089_v35  ;;  %v1977_v59 = vmul.f32 %v1945_v55, %v7136_v54  ;;  %v562_v60 = vld [vmem:[#allocation2] sm:$0xff]  ;;  %v565_v61 = vld [vmem:[#allocation2 + $0x18] sm:$0xff]  ;;  %v7153_v63 = vld [vmem:[#allocation3 + $0x68] sm:$0xff] }
  0xad   : > { %v634_v62 = vld [vmem:[#allocation2 + $0x240] sm:$0xff]  ;;  %v1947_v0 = vld [vmem:[%s12162_s4 + $0x68] sm:$0xff]  ;;  %v637_v2 = vld [vmem:[#allocation2 + $0x258] sm:$0xff]  ;;  %v658_v13 = vpack.c.bf16 %v565_v61, %v562_v60 }
  0xae   : > { %903 = vmatpush.bf16.msra.mxu0 %v6091_v38  ;;  %6189 = vmatpush.bf16.msra.mxu3 %v6091_v38  ;;  %v7159_v3 = vld [vmem:[#allocation3 + $0x60] sm:$0xff]  ;;  %v563_v7 = vld [vmem:[#allocation2 + $0x8] sm:$0xff]  ;;  %v1979_v15 = vmul.f32 %v1947_v0, %v7153_v63  ;;  %v694_v16 = vpack.c.bf16 %v637_v2, %v634_v62  ;;  %v7173_v19 = vld [vmem:[#allocation3 + $0x70] sm:$0xff] }
  0xaf   : > { %v1946_v5 = vld [vmem:[%s12162_s4 + $0x60] sm:$0xff]  ;;  %v1948_v21 = vld [vmem:[%s12162_s4 + $0x70] sm:$0xff]  ;;  %v7188_v27 = vld [vmem:[#allocation3 + $0x78] sm:$0xff] }
  0xb0   : > { %992 = vmatpush.bf16.msra.mxu1 %v7106_v41  ;;  %v7168_v6 = vld [vmem:[%s12160_s2 + $0x40] sm:$0xff]  ;;  %v1978_v18 = vmul.f32 %v1946_v5, %v7159_v3  ;;  %v1980_v23 = vmul.f32 %v1948_v21, %v7173_v19  ;;  %v576_v29 = vld [vmem:[#allocation2 + $0x70] sm:$0xff]  ;;  %v579_v30 = vld [vmem:[#allocation2 + $0x88] sm:$0xff] }
  0xb1   : > { %2044 = vrot.lane.b32.xlu1 %v1973_v36, %s6705_s17  ;;  %2042 = vrot.lane.b32.xlu0 %v1972_v37, %s6705_s17  ;;  %v566_v10 = vld [vmem:[#allocation2 + $0x20] sm:$0xff]  ;;  %v7197_v36 = vld [vmem:[#allocation3 + $0x88] sm:$0xff]  ;;  %v666_v38 = vpack.c.bf16 %v579_v30, %v576_v29  ;;  %v7206_v45 = vld [vmem:[#allocation3 + $0x98] sm:$0xff] }
  0xb2   : > { %904 = vmatpush.bf16.msra.mxu0 %v6090_v43  ;;  %6190 = vmatpush.bf16.msra.mxu3 %v6090_v43  ;;  %v659_v22 = vpack.c.bf16 %v566_v10, %v563_v7  ;;  %v7183_v24 = vld [vmem:[#allocation3 + $0x80] sm:$0xff]  ;;  %v1951_v37 = vld [vmem:[%s12162_s4 + $0x88] sm:$0xff]  ;;  %v640_v43 = vld [vmem:[#allocation2 + $0x270] sm:$0xff] }
  0xb3   : > { %2046 = vrot.lane.b32.xlu2 %v1974_v42, %s6705_s17  ;;  %v1950_v25 = vld [vmem:[%s12162_s4 + $0x80] sm:$0xff]  ;;  %v1983_v40 = vmul.f32 %v1951_v37, %v7197_v36  ;;  %v571_v42 = vld [vmem:[#allocation2 + $0x48] sm:$0xff]  ;;  %v1953_v47 = vld [vmem:[%s12162_s4 + $0x98] sm:$0xff] }
  0xb4   : > { %993 = vmatpush.bf16.msra.mxu1 %v7128_v48  ;;  %v1982_v32 = vmul.f32 %v1950_v25, %v7183_v24  ;;  %v643_v49 = vld [vmem:[#allocation2 + $0x288] sm:$0xff]  ;;  %v7212_v50 = vld [vmem:[#allocation3 + $0x90] sm:$0xff]  ;;  %v1985_v55 = vmul.f32 %v1953_v47, %v7206_v45  ;;  %v1954_v60 = vld [vmem:[%s12162_s4 + $0xa0] sm:$0xff] }
  0xb5   : > { %v7230_v62 = vld [vmem:[#allocation3 + $0xb0] sm:$0xff]  ;;  %v7235_v2 = vld [vmem:[#allocation3 + $0xa8] sm:$0xff]  ;;  %v582_v5 = vld [vmem:[#allocation2 + $0xa0] sm:$0xff] }
  0xb6   : > { %905 = vmatpush.bf16.msra.mxu0 %v6089_v53  ;;  %6191 = vmatpush.bf16.msra.mxu3 %v6089_v53  ;;  %v1956_v0 = vld [vmem:[%s12162_s4 + $0xb0] sm:$0xff]  ;;  %v585_v7 = vld [vmem:[#allocation2 + $0xb8] sm:$0xff]  ;;  %v7253_v25 = vld [vmem:[#allocation3 + $0xc8] sm:$0xff] }
  0xb7   : > { %5975 = vmatmul.msk.bf16.gmra.mxu2 %vm850_vm2, %v663_v56  ;;  %v697_v56 = vpack.c.bf16 %v643_v49, %v640_v43  ;;  %v1988_v10 = vmul.f32 %v1956_v0, %v7230_v62  ;;  %v649_v29 = vld [vmem:[#allocation2 + $0x2b8] sm:$0xff]  ;;  %v7259_v30 = vld [vmem:[#allocation3 + $0xc0] sm:$0xff]  ;;  %v1960_v43 = vld [vmem:[%s12162_s4 + $0xd0] sm:$0xff] }
  0xb8   : > { %994 = vmatpush.bf16.msra.mxu1 %v7145_v57  ;;  %v7277_v49 = vld [vmem:[#allocation3 + $0xe0] sm:$0xff]  ;;  %v583_v0 = vld [vmem:[#allocation2 + $0xa8] sm:$0xff] }
  0xb9   : > { %2050 = vrot.lane.b32.xlu1 %v1976_v51, %s6705_s17  ;;  %2048 = vrot.lane.b32.xlu0 %v1975_v52, %s6705_s17  ;;  %v569_v51 = vld [vmem:[#allocation2 + $0x38] sm:$0xff]  ;;  %v572_v52 = vld [vmem:[#allocation2 + $0x50] sm:$0xff] }
  0xba   : > { %906 = vmatpush.bf16.msra.mxu0 %v6088_v58  ;;  %6192 = vmatpush.bf16.msra.mxu3 %v6088_v58  ;;  %v662_v61 = vpack.c.bf16 %v572_v52, %v569_v51  ;;  %v1961_v51 = vld [vmem:[%s12162_s4 + $0xd8] sm:$0xff]  ;;  %v588_v52 = vld [vmem:[#allocation2 + $0xd0] sm:$0xff] }
  0xbb   : > { %2052 = vrot.lane.b32.xlu2 %v1977_v59, %s6705_s17  ;;  %v7221_v59 = vld [vmem:[#allocation3 + $0xa0] sm:$0xff] }
  0xbc   : > { %995 = vmatpush.bf16.msra.mxu1 %v7168_v6 }
  0xbd   : > { %907 = vmatmul.bf16.vlgmr.msra.gmra.mxu0 %v658_v13  ;;  %967 = vmatmul.bf16.vlgmr.msra.gmra.mxu3 %v694_v16  ;;  %v1957_v16 = vld [vmem:[%s12162_s4 + $0xb8] sm:$0xff] }
  0xbe   : > { %6193 = vmatpush.bf16.msrb.mxu3 %v7010_v8  ;;  %v1949_v8 = vld [vmem:[%s12162_s4 + $0x78] sm:$0xff] }
  0xbf   : > { %996 = vmatmul.bf16.vlgmr.msra.gmra.mxu1 %v659_v22  ;;  %v1981_v34 = vmul.f32 %v1949_v8, %v7188_v27  ;;  %v577_v22 = vld [vmem:[#allocation2 + $0x78] sm:$0xff]  ;;  %v1959_v8 = vld [vmem:[%s12162_s4 + $0xc8] sm:$0xff] }
  0xc1   : > { %2056 = vrot.lane.b32.xlu1 %v1979_v15, %s6705_s17  ;;  %2054 = vrot.lane.b32.xlu0 %v1978_v18, %s6705_s17  ;;  %v7244_v15 = vld [vmem:[#allocation3 + $0xb8] sm:$0xff]  ;;  %v669_v18 = vpack.c.bf16 %v585_v7, %v582_v5 }
  0xc2   : > { %6194 = vmatpush.bf16.msrb.mxu3 %v7025_v11  ;;  %v568_v11 = vld [vmem:[#allocation2 + $0x30] sm:$0xff]  ;;  %v1989_v21 = vmul.f32 %v1957_v16, %v7244_v15  ;;  %v7299_v5 = vld [vmem:[#allocation3 + $0xf8] sm:$0xff] }
  0xc3   : > { %2058 = vrot.lane.b32.xlu2 %v1980_v23, %s6705_s17  ;;  %v661_v53 = vpack.c.bf16 %v571_v42, %v568_v11  ;;  %v646_v23 = vld [vmem:[#allocation2 + $0x2a0] sm:$0xff]  ;;  %v7269_v42 = vld [vmem:[#allocation3 + $0xd0] sm:$0xff]  ;;  %v1965_v7 = vld [vmem:[%s12162_s4 + $0xf8] sm:$0xff] }
  0xc4   : > { %v1964_v16 = vld [vmem:[%s12162_s4 + $0xf0] sm:$0xff] }
  0xc6   : > { %6195 = vmatpush.bf16.msrb.mxu3 %v7066_v28  ;;  %v1952_v28 = vld [vmem:[%s12162_s4 + $0x90] sm:$0xff] }
  0xc7   : > { %5976 = vmatmul.msk.bf16.gmra.mxu2 %vm850_vm2, %v666_v38  ;;  %v1984_v58 = vmul.f32 %v1952_v28, %v7212_v50  ;;  %v1991_v38 = vmul.f32 %v1959_v8, %v7253_v25  ;;  %v7282_v28 = vld [vmem:[#allocation3 + $0xd8] sm:$0xff] }
  0xc9   : > { %2062 = vrot.lane.b32.xlu1 %v1982_v32, %s6705_s17  ;;  %2060 = vrot.lane.b32.xlu0 %v1981_v34, %s6705_s17  ;;  %v575_v32 = vld [vmem:[#allocation2 + $0x68] sm:$0xff]  ;;  %v578_v34 = vld [vmem:[#allocation2 + $0x80] sm:$0xff] }
  0xca   : > { %6196 = vmatpush.bf16.msrb.mxu3 %v7089_v35  ;;  %v1986_v35 = vmul.f32 %v1954_v60, %v7221_v59  ;;  %v665_v47 = vpack.c.bf16 %v578_v34, %v575_v32  ;;  %v1963_v60 = vld [vmem:[%s12162_s4 + $0xe8] sm:$0xff]  ;;  %v597_v32 = vld [vmem:[#allocation2 + $0x118] sm:$0xff] }
  0xcb   : > { %2064 = vrot.lane.b32.xlu2 %v1983_v40, %s6705_s17  ;;  %v700_v40 = vpack.c.bf16 %v649_v29, %v646_v23 }
  0xcd   : > { %912 = vmatmul.bf16.gmra.mxu0 %v661_v53  ;;  %972 = vmatmul.bf16.gmra.mxu3 %v697_v56  ;;  %v591_v53 = vld [vmem:[#allocation2 + $0xe8] sm:$0xff]  ;;  %v1993_v56 = vmul.f32 %v1961_v51, %v7282_v28 }
  0xce   : > { %6197 = vmatpush.bf16.msrb.mxu3 %v7106_v41  ;;  %v1955_v41 = vld [vmem:[%s12162_s4 + $0xa8] sm:$0xff] }
  0xcf   : > { %1001 = vmatmul.bf16.gmra.mxu1 %v662_v61  ;;  %v1987_v13 = vmul.f32 %v1955_v41, %v7235_v2  ;;  %v672_v61 = vpack.c.bf16 %v591_v53, %v588_v52  ;;  %v652_v41 = vld [vmem:[#allocation2 + $0x2d0] sm:$0xff]  ;;  %v595_v53 = vld [vmem:[#allocation2 + $0x108] sm:$0xff] }
  0xd1   : > { %2068 = vrot.lane.b32.xlu1 %v1985_v55, %s6705_s17  ;;  %2066 = vrot.lane.b32.xlu0 %v1984_v58, %s6705_s17  ;;  %v7291_v58 = vld [vmem:[#allocation3 + $0xe8] sm:$0xff] }
  0xd2   : > { %6198 = vmatpush.bf16.msrb.mxu3 %v7128_v48  ;;  %v574_v48 = vld [vmem:[#allocation2 + $0x60] sm:$0xff] }
  0xd3   : > { %2070 = vrot.lane.b32.xlu2 %v1986_v35, %s6705_s17  ;;  %v664_v37 = vpack.c.bf16 %v577_v22, %v574_v48  ;;  %v1995_v35 = vmul.f32 %v1963_v60, %v7291_v58  ;;  %v1997_v22 = vmul.f32 %v1965_v7, %v7299_v5  ;;  %v596_v60 = vld [vmem:[#allocation2 + $0x110] sm:$0xff] }
  0xd6   : > { %6199 = vmatpush.bf16.msrb.mxu3 %v7145_v57  ;;  %v1958_v57 = vld [vmem:[%s12162_s4 + $0xc0] sm:$0xff] }
  0xd7   : > { %5977 = vmatmul.msk.bf16.gmra.mxu2 %vm850_vm2, %v669_v18  ;;  %v1990_v11 = vmul.f32 %v1958_v57, %v7259_v30  ;;  %v581_v18 = vld [vmem:[#allocation2 + $0x98] sm:$0xff]  ;;  %v594_v57 = vld [vmem:[#allocation2 + $0x100] sm:$0xff] }
  0xd8   : > { %v675_v34 = vpack.c.bf16 %v597_v32, %v594_v57  ;;  %v612_v57 = vld [vmem:[#allocation2 + $0x190] sm:$0xff] }
  0xd9   : > { %2074 = vrot.lane.b32.xlu1 %v1988_v10, %s6705_s17  ;;  %2072 = vrot.lane.b32.xlu0 %v1987_v13, %s6705_s17  ;;  %v655_v10 = vld [vmem:[#allocation2 + $0x2e8] sm:$0xff]  ;;  %v7305_v13 = vld [vmem:[#allocation3 + $0xf0] sm:$0xff] }
  0xda   : > { %6200 = vmatpush.bf16.msrb.mxu3 %v7168_v6  ;;  %v1992_v6 = vmul.f32 %v1960_v43, %v7269_v42  ;;  %v703_v23 = vpack.c.bf16 %v655_v10, %v652_v41  ;;  %v1996_v8 = vmul.f32 %v1964_v16, %v7305_v13  ;;  %v587_v43 = vld [vmem:[#allocation2 + $0xc8] sm:$0xff] }
  0xdb   : > { %2076 = vrot.lane.b32.xlu2 %v1989_v21, %s6705_s17  ;;  %v584_v21 = vld [vmem:[#allocation2 + $0xb0] sm:$0xff]  ;;  %v647_v16 = vld [vmem:[#allocation2 + $0x2a8] sm:$0xff] }
  0xdc   : > { %v668_v29 = vpack.c.bf16 %v584_v21, %v581_v18  ;;  %v650_v18 = vld [vmem:[#allocation2 + $0x2c0] sm:$0xff] }
  0xdd   : > { %917 = vmatmul.bf16.gmra.mxu0 %v664_v37  ;;  %977 = vmatmul.bf16.gmra.mxu3 %v700_v40  ;;  %v586_v37 = vld [vmem:[#allocation2 + $0xc0] sm:$0xff]  ;;  %v635_v40 = vld [vmem:[#allocation2 + $0x248] sm:$0xff] }
  0xde   : > { %6201 = vmatpush.bf16.msra.mxu3 %v7015_v9  ;;  %v1962_v9 = vld [vmem:[%s12162_s4 + $0xe0] sm:$0xff] }
  0xdf   : > { %1006 = vmatmul.bf16.gmra.mxu1 %v665_v47  ;;  %v1994_v55 = vmul.f32 %v1962_v9, %v7277_v49  ;;  %v590_v47 = vld [vmem:[#allocation2 + $0xe0] sm:$0xff] }
  0xe0   : > { %v671_v51 = vpack.c.bf16 %v590_v47, %v587_v43  ;;  %v608_v43 = vld [vmem:[#allocation2 + $0x170] sm:$0xff] }
  0xe1   : > { %2080 = vrot.lane.b32.xlu1 %v1991_v38, %s6705_s17  ;;  %2078 = vrot.lane.b32.xlu0 %v1990_v11, %s6705_s17  ;;  %v589_v38 = vld [vmem:[#allocation2 + $0xd8] sm:$0xff]  ;;  %v638_v11 = vld [vmem:[#allocation2 + $0x260] sm:$0xff] }
  0xe2   : > { %6202 = vmatpush.bf16.msra.mxu3 %v7036_v14  ;;  %v580_v14 = vld [vmem:[#allocation2 + $0x90] sm:$0xff] }
  0xe3   : > { %2082 = vrot.lane.b32.xlu2 %v1992_v6, %s6705_s17  ;;  %v667_v48 = vpack.c.bf16 %v583_v0, %v580_v14  ;;  %v670_v6 = vpack.c.bf16 %v589_v38, %v586_v37  ;;  %v606_v0 = vld [vmem:[#allocation2 + $0x160] sm:$0xff]  ;;  %v653_v38 = vld [vmem:[#allocation2 + $0x2d8] sm:$0xff] }
  0xe7   : > { %5978 = vmatmul.msk.bf16.gmra.mxu2 %vm850_vm2, %v672_v61 }
  0xe9   : > { %2086 = vrot.lane.b32.xlu1 %v1994_v55, %s6705_s17  ;;  %2084 = vrot.lane.b32.xlu0 %v1993_v56, %s6705_s17  ;;  %v644_v55 = vld [vmem:[#allocation2 + $0x290] sm:$0xff]  ;;  %v593_v56 = vld [vmem:[#allocation2 + $0xf8] sm:$0xff] }
  0xea   : > { %v674_v14 = vpack.c.bf16 %v596_v60, %v593_v56  ;;  %v648_v56 = vld [vmem:[#allocation2 + $0x2b0] sm:$0xff]  ;;  %v651_v60 = vld [vmem:[#allocation2 + $0x2c8] sm:$0xff] }
  0xeb   : > { %2088 = vrot.lane.b32.xlu2 %v1995_v35, %s6705_s17 }
  0xed   : > { %922 = vmatmul.bf16.gmra.mxu0 %v667_v48  ;;  %982 = vmatmul.bf16.gmra.mxu3 %v703_v23  ;;  %v602_v48 = vld [vmem:[#allocation2 + $0x140] sm:$0xff] }
  0xef   : > { %1011 = vmatmul.bf16.gmra.mxu1 %v668_v29 }
  0xf1   : > { %2092 = vrot.lane.b32.xlu1 %v1997_v22, %s6705_s17  ;;  %2090 = vrot.lane.b32.xlu0 %v1996_v8, %s6705_s17 }
  0xf3   : > { %2798 = vrot.lane.b32.xlu2 %v6998_v4, %s6705_s17  ;;  %v695_v4 = vpack.c.bf16 %v638_v11, %v635_v40  ;;  %v656_v40 = vld [vmem:[#allocation2 + $0x2f0] sm:$0xff] }
  0xf7   : > { %5979 = vmatmul.msk.bf16.gmra.mxu2 %vm850_vm2, %v675_v34 }
  0xf9   : > { %2802 = vrot.lane.b32.xlu1 %v6992_v1, %s6705_s17  ;;  %2800 = vrot.lane.b32.xlu0 %v7045_v20, %s6705_s17  ;;  %v600_v1 = vld [vmem:[#allocation2 + $0x130] sm:$0xff]  ;;  %v603_v20 = vld [vmem:[#allocation2 + $0x148] sm:$0xff] }
  0xfa   : > { %v678_v52 = vpack.c.bf16 %v603_v20, %v600_v1  ;;  %v621_v20 = vld [vmem:[#allocation2 + $0x1d8] sm:$0xff] }
  0xfb   : > { %2804 = vrot.lane.b32.xlu2 %v7039_v17, %s6705_s17 }
  0xfd   : > { %v7324_v9 = vpop.permute.xlu2 %2038  ;;  %927 = vmatmul.bf16.gmra.mxu0 %v670_v6  ;;  %1056 = vmatmul.bf16.vlgmr.msrb.gmra.mxu3 %v695_v4  ;;  %v704_v6 = vpack.c.bf16 %v656_v40, %v653_v38 }
  0xff   : > { %1016 = vmatmul.bf16.gmra.mxu1 %v671_v51 }
 0x101   : > { %2808 = vrot.lane.b32.xlu1 %v7057_v26, %s6705_s17  ;;  %2806 = vrot.lane.b32.xlu0 %v7027_v12, %s6705_s17  ;;  %v592_v26 = vld [vmem:[#allocation2 + $0xf0] sm:$0xff]  ;;  %v641_v12 = vld [vmem:[#allocation2 + $0x278] sm:$0xff] }
 0x102   : > { %v698_v61 = vpack.c.bf16 %v644_v55, %v641_v12  ;;  %v613_v12 = vld [vmem:[#allocation2 + $0x198] sm:$0xff] }
 0x103   : > { %2810 = vrot.lane.b32.xlu2 %v7080_v33, %s6705_s17  ;;  %v673_v33 = vpack.c.bf16 %v595_v53, %v592_v26 }
 0x105   : > { %v7332_v17 = vpop.permute.xlu2 %2040 }
 0x107   : > { %5980 = vmatmul.msk.bf16.gmra.mxu2 %vm850_vm2, %v678_v52 }
 0x109   : > { %2814 = vrot.lane.b32.xlu1 %v7097_v39, %s6705_s17  ;;  %2812 = vrot.lane.b32.xlu0 %v7074_v31, %s6705_s17 }
 0x10b   : > { %2816 = vrot.lane.b32.xlu2 %v7119_v46, %s6705_s17  ;;  %v609_v46 = vld [vmem:[#allocation2 + $0x178] sm:$0xff] }
 0x10c   : > { %v681_v7 = vpack.c.bf16 %v609_v46, %v606_v0 }
 0x10d   : > { %v7341_v35 = vpop.permute.xlu2 %2046  ;;  %932 = vmatmul.bf16.gmra.mxu0 %v673_v33  ;;  %1061 = vmatmul.bf16.gmra.mxu3 %v698_v61  ;;  %v611_v33 = vld [vmem:[#allocation2 + $0x188] sm:$0xff]  ;;  %v614_v61 = vld [vmem:[#allocation2 + $0x1a0] sm:$0xff] }
 0x10e   : > { %12279 = vst [vmem:[#allocation4_spill] sm:$0xff] %v7341_v35  ;;  %v6643_v35 = vld [vmem:[#allocation3 + $0x58] sm:$0xff] }
 0x10f   : > { %1021 = vmatmul.bf16.gmra.mxu1 %v674_v14 }
 0x111   : > { %2820 = vrot.lane.b32.xlu1 %v7136_v54, %s6705_s17  ;;  %2818 = vrot.lane.b32.xlu0 %v7114_v44, %s6705_s17  ;;  %v598_v44 = vld [vmem:[#allocation2 + $0x120] sm:$0xff]  ;;  %v601_v54 = vld [vmem:[#allocation2 + $0x138] sm:$0xff] }
 0x112   : > { %v676_v22 = vpack.c.bf16 %v601_v54, %v598_v44  ;;  %v683_v44 = vpack.c.bf16 %v614_v61, %v611_v33 }
 0x113   : > { %v7347_v31 = vpop.permute.xlu1 %2034  ;;  %v7349_v39 = vpop.permute.xlu0 %2030  ;;  %2822 = vrot.lane.b32.xlu2 %v7159_v3, %s6705_s17  ;;  %v599_v3 = vld [vmem:[#allocation2 + $0x128] sm:$0xff] }
 0x115   : > { %v7353_v41 = vpop.permute.xlu2 %2052 }
 0x116   : > { %12280 = vst [vmem:[#allocation5_spill] sm:$0xff] %v7353_v41 }
 0x117   : > { %5981 = vmatmul.msk.bf16.gmra.mxu2 %vm850_vm2, %v681_v7  ;;  %v702_v7 = vpack.c.bf16 %v651_v60, %v648_v56 }
 0x119   : > { %2826 = vrot.lane.b32.xlu1 %v7173_v19, %s6705_s17  ;;  %2824 = vrot.lane.b32.xlu0 %v7153_v63, %s6705_s17  ;;  %v701_v19 = vpack.c.bf16 %v650_v18, %v647_v16  ;;  %v677_v63 = vpack.c.bf16 %v602_v48, %v599_v3 }
 0x11b   : > { %v7360_v10 = vpop.permute.xlu1 %2036  ;;  %v7362_v21 = vpop.permute.xlu0 %2032  ;;  %2828 = vrot.lane.b32.xlu2 %v7188_v27, %s6705_s17  ;;  %v615_v27 = vld [vmem:[#allocation2 + $0x1a8] sm:$0xff] }
 0x11c   : > { %v684_v34 = vpack.c.bf16 %v615_v27, %v612_v57 }
 0x11d   : > { %v7366_v23 = vpop.permute.xlu2 %2058  ;;  %937 = vmatmul.bf16.gmra.mxu0 %v676_v22  ;;  %1066 = vmatmul.bf16.gmra.mxu3 %v701_v19  ;;  %v624_v19 = vld [vmem:[#allocation2 + $0x1f0] sm:$0xff] }
 0x11e   : > { %12281 = vst [vmem:[#allocation6_spill] sm:$0xff] %v7366_v23  ;;  %v6636_v23 = vld [vmem:[#allocation3 + $0x18] sm:$0xff] }
 0x11f   : > { %1026 = vmatmul.bf16.gmra.mxu1 %v677_v63  ;;  %v627_v63 = vld [vmem:[#allocation2 + $0x208] sm:$0xff] }
 0x121   : > { %2832 = vrot.lane.b32.xlu1 %v7197_v36, %s6705_s17  ;;  %2830 = vrot.lane.b32.xlu0 %v7183_v24, %s6705_s17  ;;  %v604_v24 = vld [vmem:[#allocation2 + $0x150] sm:$0xff]  ;;  %v607_v36 = vld [vmem:[#allocation2 + $0x168] sm:$0xff] }
 0x122   : > { %v679_v47 = vpack.c.bf16 %v607_v36, %v604_v24 }
 0x123   : > { %v7372_v8 = vpop.permute.xlu1 %2044  ;;  %v7374_v29 = vpop.permute.xlu0 %2042  ;;  %2834 = vrot.lane.b32.xlu2 %v7212_v50, %s6705_s17  ;;  %v605_v50 = vld [vmem:[#allocation2 + $0x158] sm:$0xff] }
 0x124   : > { %12282 = vst [vmem:[#allocation7_spill] sm:$0xff] %v7372_v8  ;;  %v6645_v8 = vld [vmem:[#allocation3 + $0x60] sm:$0xff] }
 0x125   : > { %12283 = vst [vmem:[#allocation8_spill] sm:$0xff] %v7374_v29  ;;  %v7378_v32 = vpop.permute.xlu2 %2064  ;;  %v6644_v29 = vld [vmem:[#allocation3 + $0x68] sm:$0xff] }
 0x126   : > { %12284 = vst [vmem:[#allocation9_spill] sm:$0xff] %v7378_v32 }
 0x127   : > { %5982 = vmatmul.msk.bf16.gmra.mxu2 %vm850_vm2, %v684_v34 }
 0x129   : > { %2838 = vrot.lane.b32.xlu1 %v7221_v59, %s6705_s17  ;;  %2836 = vrot.lane.b32.xlu0 %v7206_v45, %s6705_s17  ;;  %v680_v45 = vpack.c.bf16 %v608_v43, %v605_v50  ;;  %v6170_v43 = vld [vmem:[%s6790_s20 + $0x8] sm:$0xff]  }
 0x12a   : > { %v1086_v59 = vpop.f32.mrf.mxu2  ;;  %v6112_v60 = vunpack.c.l.bf16 %v6170_v43 }
 0x12b   : > { %v7385_v37 = vpop.permute.xlu1 %2050  ;;  %v7387_v11 = vpop.permute.xlu0 %2048  ;;  %2840 = vrot.lane.b32.xlu2 %v7235_v2, %s6705_s17  ;;  %v618_v2 = vld [vmem:[#allocation2 + $0x1c0] sm:$0xff] }
 0x12c   : > { %12285 = vst [vmem:[#allocation10_spill] sm:$0xff] %v7385_v37  ;;  %v687_v53 = vpack.c.bf16 %v621_v20, %v618_v2  ;;  %v654_v2 = vld [vmem:[#allocation2 + $0x2e0] sm:$0xff]  ;;  %v657_v20 = vld [vmem:[#allocation2 + $0x2f8] sm:$0xff] }
 0x12d   : > { %12286 = vst [vmem:[#allocation11_spill] sm:$0xff] %v7387_v11  ;;  %v7391_v4 = vpop.permute.xlu2 %2070  ;;  %942 = vmatmul.bf16.gmra.mxu0 %v679_v47  ;;  %1071 = vmatmul.bf16.gmra.mxu3 %v704_v6  ;;  %v616_v47 = vld [vmem:[#allocation2 + $0x1b0] sm:$0xff] }
 0x12e   : > { %12287 = vst [vmem:[#allocation12_spill] sm:$0xff] %v7391_v4 }
 0x12f   : > { %1031 = vmatmul.bf16.gmra.mxu1 %v680_v45 }
 0x131   : > { %2844 = vrot.lane.b32.xlu1 %v7244_v15, %s6705_s17  ;;  %2842 = vrot.lane.b32.xlu0 %v7230_v62, %s6705_s17  ;;  %v6107_v15 = vld [vmem:[%s6790_s20] sm:$0xff]  }
 0x132   : > { %v1088_v52 = vpop.f32.mrf.mxu2  ;;  %v610_v62 = vld [vmem:[#allocation2 + $0x180] sm:$0xff]  ;;  %v6108_v14 = vunpack.c.l.bf16 %v6107_v15  ;;  %v6109_v34 = vunpack.c.h.bf16 %v6107_v15  ;;  %v617_v15 = vld [vmem:[#allocation2 + $0x1b8] sm:$0xff] }
 0x133   : > { %v7397_v51 = vpop.permute.xlu1 %2056  ;;  %v7399_v1 = vpop.permute.xlu0 %2054  ;;  %2846 = vrot.lane.b32.xlu2 %v7259_v30, %s6705_s17 }
 0x134   : > { %12288 = vst [vmem:[#allocation13_spill] sm:$0xff] %v7397_v51 }
 0x135   : > { %12289 = vst [vmem:[#allocation14_spill] sm:$0xff] %v7399_v1  ;;  %v7403_v26 = vpop.permute.xlu2 %2076 }
 0x136   : > { %12290 = vst [vmem:[#allocation15_spill] sm:$0xff] %v7403_v26 }
 0x137   : > { %5983 = vmatmul.msk.bf16.gmra.mxu2 %vm850_vm2, %v687_v53 }
 0x139   : > { %2850 = vrot.lane.b32.xlu1 %v7269_v42, %s6705_s17  ;;  %2848 = vrot.lane.b32.xlu0 %v7253_v25, %s6705_s17  ;;  %v7418_v42 = vld [vmem:[%s12159_s1] ss:$0 sm:$0xff]  ;;  %v682_v25 = vpack.c.bf16 %v613_v12, %v610_v62  ;;  %v620_v62 = vld [vmem:[#allocation2 + $0x1d0] sm:$0xff] }
 0x13a   : > { %v1091_v0 = vpop.f32.mrf.mxu2  ;;  %v908_v46 = vpop.f32.mrf.mxu0  ;;  %v530_v16 = vadd.f32 %v7418_v42, %v6108_v14  ;;  %v531_v40 = vadd.f32 %v7418_v42, %v6109_v34  ;;  %v705_v14 = vpack.c.bf16 %v657_v20, %v654_v2  ;;  %v6171_v2 = vld [vmem:[%s6790_s20 + $0x10] sm:$0xff]   ;;  %v622_v20 = vld [vmem:[#allocation2 + $0x1e0] sm:$0xff] }
 0x13b   : > { %v7411_v55 = vpop.permute.xlu1 %2062  ;;  %v7413_v30 = vpop.permute.xlu0 %2060  ;;  %2852 = vrot.lane.b32.xlu2 %v7282_v28, %s6705_s17 }
 0x13c   : > { %12291 = vst [vmem:[#allocation16_spill] sm:$0xff] %v7411_v55  ;;  %v997_v54 = vpop.f32.mrf.mxu1 }
 0x13d   : > { %12292 = vst [vmem:[#allocation17_spill] sm:$0xff] %v7413_v30  ;;  %v998_v18 = vadd.f32 %v997_v54, %v908_v46  ;;  %v7423_v3 = vpop.permute.xlu2 %2082  ;;  %947 = vmatmul.bf16.gmra.mxu0 %v682_v25  ;;  %5988 = vmatmul.msk.bf16.vlgmr.msra.gmra.mxu3 %vm850_vm2, %v702_v7  ;;  %v686_v46 = vpack.c.bf16 %v620_v62, %v617_v15  ;;  %v625_v15 = vld [vmem:[#allocation2 + $0x1f8] sm:$0xff]  ;;  %v6635_v30 = vld [vmem:[#allocation3 + $0x20] sm:$0xff] }
 0x13e   : > { %12293 = vst [vmem:[#allocation18_spill] sm:$0xff] %v7423_v3 }
 0x13f   : > { %v1087_v28 = vadd.f32 %v1086_v59, %v998_v18  ;;  %1036 = vmatmul.bf16.gmra.mxu1 %v683_v44  ;;  %v619_v59 = vld [vmem:[#allocation2 + $0x1c8] sm:$0xff]  ;;  %v532_v44 = vadd.f32 %v7418_v42, %v6112_v60 }
 0x140   : > { %v7436_v27 = vpop.f32.mrf.mxu3  ;;  %v685_v33 = vpack.c.bf16 %v619_v59, %v616_v47 }
 0x141   : > { %2856 = vrot.lane.b32.xlu1 %v7291_v58, %s6705_s17  ;;  %2854 = vrot.lane.b32.xlu0 %v7277_v49, %s6705_s17  ;;  %v7434_v57 = vadd.f32 %v1087_v28, %v530_v16  ;;  %v690_v49 = vpack.c.bf16 %v627_v63, %v624_v19  ;;  %v630_v19 = vld [vmem:[#allocation2 + $0x220] sm:$0xff]  ;;  %v633_v63 = vld [vmem:[#allocation2 + $0x238] sm:$0xff] }
 0x142   : > { %v1093_v58 = vpop.f32.mrf.mxu2  ;;  %v910_v24 = vpop.f32.mrf.mxu0 }
 0x143   : > { %v7430_v48 = vpop.permute.xlu1 %2068  ;;  %v7432_v22 = vpop.permute.xlu0 %2066  ;;  %12296 = vst [vmem:[#allocation21_spill] sm:$0xff] %v7434_v57  ;;  %2858 = vrot.lane.b32.xlu2 %v7305_v13, %s6705_s17  ;;  %v2926_v36 = vmax.f32 %v7434_v57, 0.0 }
 0x144   : > { %12294 = vst [vmem:[#allocation19_spill] sm:$0xff] %v7430_v48  ;;  %v999_v38 = vpop.f32.mrf.mxu1 }
 0x145   : > { %12295 = vst [vmem:[#allocation20_spill] sm:$0xff] %v7432_v22  ;;  %v1000_v50 = vadd.f32 %v999_v38, %v910_v24  ;;  %v7446_v13 = vpop.permute.xlu2 %2088 }
 0x146   : > { %12297 = vst [vmem:[#allocation22_spill] sm:$0xff] %v7446_v13 }
 0x147   : > { %v1089_v6 = vadd.f32 %v1088_v52, %v1000_v50  ;;  %5984 = vmatmul.msk.bf16.gmra.mxu2 %vm850_vm2, %v690_v49 }
 0x148   : > { %v7455_v56 = vpop.f32.mrf.mxu3 }
 0x149   : > { %2990 = vrot.lane.b32.xlu1 %v2926_v36, %s6706_s10  ;;  %2860 = vrot.lane.b32.xlu0 %v7299_v5, %s6705_s17  ;;  %v7453_v12 = vadd.f32 %v1089_v6, %v531_v40  ;;  %v6113_v36 = vunpack.c.h.bf16 %v6170_v43 }
 0x14a   : > { %v1096_v61 = vpop.f32.mrf.mxu2  ;;  %v913_v52 = vpop.f32.mrf.mxu0 }
 0x14b   : > { %v7449_v45 = vpop.permute.xlu1 %2074  ;;  %v7451_v53 = vpop.permute.xlu0 %2072  ;;  %12300 = vst [vmem:[#allocation25_spill] sm:$0xff] %v7453_v12  ;;  %v2927_v25 = vmax.f32 %v7453_v12, 0.0  ;;  %v533_v59 = vadd.f32 %v7418_v42, %v6113_v36 }
 0x14c   : > { %12298 = vst [vmem:[#allocation23_spill] sm:$0xff] %v7449_v45  ;;  %v1002_v7 = vpop.f32.mrf.mxu1 }
 0x14d   : > { %12299 = vst [vmem:[#allocation24_spill] sm:$0xff] %v7451_v53  ;;  %v1003_v54 = vadd.f32 %v1002_v7, %v913_v52  ;;  %2992 = vrot.lane.b32.xlu2 %v2927_v25, %s6706_s10  ;;  %952 = vmatmul.bf16.gmra.mxu0 %v685_v33  ;;  %v7467_v24 = vpop.permute.xlu2 %2798  ;;  %v623_v33 = vld [vmem:[#allocation2 + $0x1e8] sm:$0xff]  ;;  %v626_v52 = vld [vmem:[#allocation2 + $0x200] sm:$0xff]  ;;  %v688_v7 = vpack.c.bf16 %v625_v15, %v622_v20 }
 0x14e   : > { %5989 = vmatmul.msk.bf16.gmra.mxu3 %vm850_vm2, %v705_v14 }
 0x14f   : > { %v1092_v16 = vadd.f32 %v1091_v0, %v1003_v54  ;;  %1041 = vmatmul.bf16.gmra.mxu1 %v686_v46  ;;  %v693_v0 = vpack.c.bf16 %v633_v63, %v630_v19  ;;  %v6116_v46 = vunpack.c.l.bf16 %v6171_v2  ;;  %v689_v19 = vpack.c.bf16 %v626_v52, %v623_v33 }
 0x150   : > { %v7469_v49 = vpop.f32.mrf.mxu3 }
 0x151   : > { %v7465_v34 = vadd.f32 %v1092_v16, %v532_v44  ;;  %v534_v36 = vadd.f32 %v7418_v42, %v6116_v46 }
 0x152   : > { %v1098_v38 = vpop.f32.mrf.mxu2  ;;  %v915_v40 = vpop.f32.mrf.mxu0 }
 0x153   : > { %v7461_v18 = vpop.permute.xlu1 %2080  ;;  %v7463_v28 = vpop.permute.xlu0 %2078  ;;  %12303 = vst [vmem:[#allocation28_spill] sm:$0xff] %v7465_v34  ;;  %v2928_v50 = vmax.f32 %v7465_v34, 0.0 }
 0x154   : > { %12301 = vst [vmem:[#allocation26_spill] sm:$0xff] %v7461_v18  ;;  %v1004_v47 = vpop.f32.mrf.mxu1  ;;  %v629_v18 = vld [vmem:[#allocation2 + $0x218] sm:$0xff] }
 0x155   : > { %12302 = vst [vmem:[#allocation27_spill] sm:$0xff] %v7463_v28  ;;  %v1005_v6 = vadd.f32 %v1004_v47, %v915_v40  ;;  %2994 = vrot.lane.b32.xlu0 %v2928_v50, %s6706_s10  ;;  %v7484_v16 = vpop.permute.xlu2 %2804 }
 0x156   : > { %12307 = vst [vmem:[#allocation32_spill] sm:$0xff] %v7484_v16  ;;  %v6639_v16 = vld [vmem:[#allocation3 + $0x30] sm:$0xff] }
 0x157   : > { %v1094_v62 = vadd.f32 %v1093_v58, %v1005_v6  ;;  %5985 = vmatmul.msk.bf16.gmra.mxu2 %vm850_vm2, %v693_v0  ;;  %v639_v6 = vld [vmem:[#allocation2 + $0x268] sm:$0xff] }
 0x158   : > { %v7482_v25 = vpop.f32.mrf.mxu3 }
 0x159   : > { %v7480_v14 = vadd.f32 %v1094_v62, %v533_v59  ;;  %v636_v59 = vld [vmem:[#allocation2 + $0x250] sm:$0xff]  ;;  %v6117_v62 = vunpack.c.h.bf16 %v6171_v2  ;;  %v6172_v2 = vld [vmem:[%s6790_s20 + $0x18] sm:$0xff]  }
 0x15a   : > { %v1101_v44 = vpop.f32.mrf.mxu2  ;;  %v918_v54 = vpop.f32.mrf.mxu0  ;;  %v6121_v53 = vunpack.c.h.bf16 %v6172_v2 }
 0x15b   : > { %v7476_v60 = vpop.permute.xlu1 %2086  ;;  %v7478_v43 = vpop.permute.xlu0 %2084  ;;  %12306 = vst [vmem:[#allocation31_spill] sm:$0xff] %v7480_v14  ;;  %v2929_v58 = vmax.f32 %v7480_v14, 0.0 }
 0x15c   : > { %12304 = vst [vmem:[#allocation29_spill] sm:$0xff] %v7476_v60  ;;  %v1007_v63 = vpop.f32.mrf.mxu1 }
 0x15d   : > { %12305 = vst [vmem:[#allocation30_spill] sm:$0xff] %v7478_v43  ;;  %v1008_v40 = vadd.f32 %v1007_v63, %v918_v54  ;;  %2996 = vrot.lane.b32.xlu1 %v2929_v58, %s6706_s10  ;;  %957 = vmatmul.bf16.gmra.mxu0 %v688_v7  ;;  %v696_v54 = vpack.c.bf16 %v639_v6, %v636_v59  ;;  %v628_v63 = vld [vmem:[#allocation2 + $0x210] sm:$0xff] }
 0x15e   : > { %v535_v58 = vadd.f32 %v7418_v42, %v6117_v62  ;;  %v632_v59 = vld [vmem:[#allocation2 + $0x230] sm:$0xff] }
 0x15f   : > { %v1097_v50 = vadd.f32 %v1096_v61, %v1008_v40  ;;  %1046 = vmatmul.bf16.gmra.mxu1 %v689_v19  ;;  %v7498_v61 = vpop.permute.xlu2 %2810  ;;  %v692_v45 = vpack.c.bf16 %v632_v59, %v629_v18  ;;  %v645_v18 = vld [vmem:[#allocation2 + $0x298] sm:$0xff] }
 0x160   : > { %v7495_v15 = vpop.f32.mrf.mxu3  ;;  %12311 = vst [vmem:[#allocation36_spill] sm:$0xff] %v7498_v61 }
 0x161   : > { %v7493_v20 = vadd.f32 %v1097_v50, %v534_v36  ;;  %v631_v36 = vld [vmem:[#allocation2 + $0x228] sm:$0xff] }
 0x162   : > { %v1103_v33 = vpop.f32.mrf.mxu2  ;;  %v920_v52 = vpop.f32.mrf.mxu0  ;;  %v691_v62 = vpack.c.bf16 %v631_v36, %v628_v63 }
 0x163   : > { %v7489_v0 = vpop.permute.xlu1 %2092  ;;  %v7491_v47 = vpop.permute.xlu0 %2090  ;;  %12310 = vst [vmem:[#allocation35_spill] sm:$0xff] %v7493_v20  ;;  %v2930_v46 = vmax.f32 %v7493_v20, 0.0 }
 0x164   : > { %12308 = vst [vmem:[#allocation33_spill] sm:$0xff] %v7489_v0  ;;  %v1009_v7 = vpop.f32.mrf.mxu1 }
 0x165   : > { %12309 = vst [vmem:[#allocation34_spill] sm:$0xff] %v7491_v47  ;;  %v1010_v19 = vadd.f32 %v1009_v7, %v920_v52  ;;  %2998 = vrot.lane.b32.xlu2 %v2930_v46, %s6706_s10  ;;  %v6120_v46 = vunpack.c.l.bf16 %v6172_v2 }
 0x167   : > { %v1099_v40 = vadd.f32 %v1098_v38, %v1010_v19  ;;  %5986 = vmatmul.msk.bf16.gmra.mxu2 %vm850_vm2, %v696_v54  ;;  %v536_v54 = vadd.f32 %v7418_v42, %v6120_v46  ;;  %v7515_v28 = vpop.permute.xlu2 %2816 }
 0x168   : > { %v7510_v3 = vpop.f32.mrf.mxu3  ;;  %12315 = vst [vmem:[#allocation40_spill] sm:$0xff] %v7515_v28 }
 0x169   : > { %v7508_v6 = vadd.f32 %v1099_v40, %v535_v58  ;;  %v642_v40 = vld [vmem:[#allocation2 + $0x280] sm:$0xff] }
 0x16a   : > { %v1106_v52 = vpop.f32.mrf.mxu2  ;;  %v923_v7 = vpop.f32.mrf.mxu0 }
 0x16b   : > { %v7503_v50 = vpop.permute.xlu1 %2802  ;;  %v7506_v43 = vpop.permute.xlu0 %2800  ;;  %12314 = vst [vmem:[#allocation39_spill] sm:$0xff] %v7508_v6  ;;  %v2931_v38 = vmax.f32 %v7508_v6, 0.0 }
 0x16c   : > { %12312 = vst [vmem:[#allocation37_spill] sm:$0xff] %v7503_v50  ;;  %v1012_v26 = vpop.f32.mrf.mxu1  ;;  %v1246_v50 = vld [vmem:[%s12161_s3 + $0x80] sm:$0xff] }
 0x16d   : > { %12313 = vst [vmem:[#allocation38_spill] sm:$0xff] %v7506_v43  ;;  %962 = vmatmul.bf16.gmra.mxu0 %v691_v62  ;;  %v1013_v19 = vadd.f32 %v1012_v26, %v923_v7  ;;  %3000 = vrot.lane.b32.xlu0 %v2931_v38, %s6706_s10  ;;  %v699_v7 = vpack.c.bf16 %v645_v18, %v642_v40  ;;  %v1245_v43 = vld [vmem:[%s12161_s3 + $0x78] sm:$0xff] }
 0x16f   : > { %1051 = vmatmul.bf16.gmra.mxu1 %v692_v45  ;;  %v1102_v63 = vadd.f32 %v1101_v44, %v1013_v19  ;;  %v537_v45 = vadd.f32 %v7418_v42, %v6121_v53  ;;  %v6173_v44 = vld [vmem:[%s6790_s20 + $0x20] sm:$0xff]  }
 0x170   : > { %v7521_v59 = vpop.f32.mrf.mxu3  ;;  %v6124_v18 = vunpack.c.l.bf16 %v6173_v44 }
 0x171   : > { %v7523_v62 = vadd.f32 %v1102_v63, %v536_v54  ;;  %v7534_v54 = vpop.permute.xlu2 %2822 }
 0x172   : > { %v1108_v46 = vpop.f32.mrf.mxu2  ;;  %v925_v26 = vpop.f32.mrf.mxu0  ;;  %12321 = vst [vmem:[#allocation46_spill] sm:$0xff] %v7534_v54 }
 0x173   : > { %v7517_v58 = vpop.permute.xlu1 %2808  ;;  %v7519_v36 = vpop.permute.xlu0 %2806  ;;  %12318 = vst [vmem:[#allocation43_spill] sm:$0xff] %v7523_v62  ;;  %v2932_v0 = vmax.f32 %v7523_v62, 0.0 }
 0x174   : > { %12316 = vst [vmem:[#allocation41_spill] sm:$0xff] %v7517_v58  ;;  %v1014_v38 = vpop.f32.mrf.mxu1 }
 0x175   : > { %12317 = vst [vmem:[#allocation42_spill] sm:$0xff] %v7519_v36  ;;  %v1015_v4 = vadd.f32 %v1014_v38, %v925_v26  ;;  %3002 = vrot.lane.b32.xlu1 %v2932_v0, %s6706_s10  ;;  %v538_v0 = vadd.f32 %v7418_v42, %v6124_v18  ;;  %v6637_v36 = vld [vmem:[#allocation3 + $0x28] sm:$0xff] }
 0x177   : > { %v1104_v19 = vadd.f32 %v1103_v33, %v1015_v4  ;;  %5987 = vmatmul.msk.bf16.gmra.mxu2 %vm850_vm2, %v699_v7 }
 0x178   : > { %v7538_v40 = vpop.f32.mrf.mxu3 }
 0x179   : > { %v7536_v63 = vadd.f32 %v1104_v19, %v537_v45  ;;  %v1230_v45 = vld [vmem:[%s12161_s3] sm:$0xff]  ;;  %v7555_v13 = vpop.permute.xlu2 %2828 }
 0x17a   : > { %v1111_v47 = vpop.f32.mrf.mxu2  ;;  %v928_v53 = vpop.f32.mrf.mxu0  ;;  %12327 = vst [vmem:[#allocation52_spill] sm:$0xff] %v7555_v13 }
 0x17b   : > { %v7530_v48 = vpop.permute.xlu1 %2814  ;;  %v7532_v2 = vpop.permute.xlu0 %2812  ;;  %12322 = vst [vmem:[#allocation47_spill] sm:$0xff] %v7536_v63  ;;  %v2933_v4 = vmax.f32 %v7536_v63, 0.0 }
 0x17c   : > { %12319 = vst [vmem:[#allocation44_spill] sm:$0xff] %v7530_v48  ;;  %v1017_v26 = vpop.f32.mrf.mxu1 }
 0x17d   : > { %12320 = vst [vmem:[#allocation45_spill] sm:$0xff] %v7532_v2  ;;  %v1018_v38 = vadd.f32 %v1017_v26, %v928_v53  ;;  %3004 = vrot.lane.b32.xlu2 %v2933_v4, %s6706_s10 }
 0x17f   : > { %v1107_v33 = vadd.f32 %v1106_v52, %v1018_v38  ;;  %v6125_v52 = vunpack.c.h.bf16 %v6173_v44  ;;  %v6632_v38 = vld [vmem:[#allocation3] sm:$0xff] }
 0x180   : > { %v1057_v54 = vpop.f32.mrf.mxu3  ;;  %v1262_v4 = vmul.f32 %v6632_v38, %v1230_v45  ;;  %v1231_v45 = vld [vmem:[%s12161_s3 + $0x8] sm:$0xff] }
 0x181   : > { %v7550_v22 = vadd.f32 %v1107_v33, %v538_v0  ;;  %v7553_v18 = vadd.f32 %v1057_v54, %v7436_v27  ;;  %v539_v32 = vadd.f32 %v7418_v42, %v6125_v52  ;;  %v6174_v0 = vld [vmem:[%s6790_s20 + $0x28] sm:$0xff]  }
 0x182   : > { %v1113_v53 = vpop.f32.mrf.mxu2  ;;  %v930_v26 = vpop.f32.mrf.mxu0  ;;  %v1294_v33 = vadd.f32 %v1262_v4, %v7434_v57  ;;  %v6128_v44 = vunpack.c.l.bf16 %v6174_v0 }
 0x183   : > { %v7543_v7 = vpop.permute.xlu1 %2820  ;;  %v7548_v19 = vpop.permute.xlu0 %2818  ;;  %12325 = vst [vmem:[#allocation50_spill] sm:$0xff] %v7550_v22  ;;  %v2934_v28 = vmax.f32 %v7550_v22, 0.0 }
 0x184   : > { %12323 = vst [vmem:[#allocation48_spill] sm:$0xff] %v7543_v7  ;;  %v1019_v7 = vpop.f32.mrf.mxu1  ;;  %v5990_v52 = vmul.f32 -1.442695, %v1294_v33 }
 0x185   : > { %12324 = vst [vmem:[#allocation49_spill] sm:$0xff] %v7548_v19  ;;  %v1020_v60 = vadd.f32 %v1019_v7, %v930_v26  ;;  %3006 = vrot.lane.b32.xlu0 %v2934_v28, %s6706_s10 }
 0x186   : > { %12326 = vst [vmem:[#allocation51_spill] sm:$0xff] %v7553_v18  ;;  %6248 = vpow2.f32 %v5990_v52 }
 0x187   : > { %v1109_v27 = vadd.f32 %v1108_v46, %v1020_v60  ;;  %v6633_v46 = vld [vmem:[#allocation3 + $0x8] sm:$0xff] }
 0x188   : > { %v1059_v19 = vpop.f32.mrf.mxu3  ;;  %v1263_v13 = vmul.f32 %v6633_v46, %v1231_v45  ;;  %v6129_v46 = vunpack.c.h.bf16 %v6174_v0  ;;  %v7597_v0 = vld [vmem:[%s6790_s20 + $0x30] sm:$0xff]  }
 0x189   : > { %v7569_v38 = vadd.f32 %v1109_v27, %v539_v32  ;;  %v7572_v28 = vadd.f32 %v1059_v19, %v7455_v56  ;;  %v2126_v32 = vadd.f32 %v7349_v39, %v7434_v57  ;;  %v1232_v57 = vld [vmem:[%s12161_s3 + $0x10] sm:$0xff] }
 0x18a   : > { %v1116_v7 = vpop.f32.mrf.mxu2  ;;  %v933_v26 = vpop.f32.mrf.mxu0  ;;  %v1295_v56 = vadd.f32 %v1263_v13, %v7453_v12  ;;  %v541_v13 = vadd.f32 %v7418_v42, %v6129_v46 }
 0x18b   : > { %v7562_v54 = vpop.permute.xlu1 %2826  ;;  %v7564_v2 = vpop.permute.xlu0 %2824  ;;  %12330 = vst [vmem:[#allocation55_spill] sm:$0xff] %v7569_v38  ;;  %v2935_v60 = vmax.f32 %v7569_v38, 0.0 }
 0x18c   : > { %12328 = vst [vmem:[#allocation53_spill] sm:$0xff] %v7562_v54  ;;  %v1022_v4 = vpop.f32.mrf.mxu1  ;;  %v7575_v54 = vpop.permute.xlu2 %2834 }
 0x18d   : > { %12329 = vst [vmem:[#allocation54_spill] sm:$0xff] %v7564_v2  ;;  %v540_v2 = vadd.f32 %v7418_v42, %v6128_v44  ;;  %v1023_v48 = vadd.f32 %v1022_v4, %v933_v26  ;;  %3008 = vrot.lane.b32.xlu1 %v2935_v60, %s6706_s10  ;;  %v5991_v60 = vmul.f32 -1.442695, %v1295_v56 }
 0x18e   : > { %12331 = vst [vmem:[#allocation56_spill] sm:$0xff] %v7572_v28 }
 0x18f   : > { %12332 = vst [vmem:[#allocation57_spill] sm:$0xff] %v7575_v54  ;;  %v1112_v33 = vadd.f32 %v1111_v47, %v1023_v48  ;;  %v6022_v54 = vmul.f32 -1.442695, %v2126_v32  ;;  %v6249_v47 = vpop.eup %6248 }
 0x190   : > { %v1062_v45 = vpop.f32.mrf.mxu3 }
 0x191   : > { %v7584_v19 = vadd.f32 %v1112_v33, %v540_v2  ;;  %v7587_v44 = vadd.f32 %v1062_v45, %v7469_v49  ;;  %6250 = vpow2.f32 %v6022_v54  ;;  %v7603_v45 = vadd.f32 1.0, %v6249_v47 }
 0x192   : > { %v7589_v26 = vpop.f32.mrf.mxu2  ;;  %v935_v39 = vpop.f32.mrf.mxu0  ;;  %6252 = vpow2.f32 %v5991_v60 }
 0x193   : > { %v7581_v27 = vpop.permute.xlu1 %2832  ;;  %12334 = vst [vmem:[#allocation59_spill] sm:$0xff] %v7584_v19  ;;  %v2936_v4 = vmax.f32 %v7584_v19, 0.0  ;;  %v7592_v52 = vpop.permute.xlu0 %2830  ;;  %6254 = vrcp.f32 %v7603_v45  ;;  %vm1459_vm4 = vweird.f32 %v7603_v45 }
 0x194   : > { %12333 = vst [vmem:[#allocation58_spill] sm:$0xff] %v7581_v27  ;;  %v1024_v48 = vpop.f32.mrf.mxu1  ;;  %v7599_v49 = vpop.permute.xlu2 %2840  ;;  %v1238_v27 = vld [vmem:[%s12161_s3 + $0x40] sm:$0xff] }
 0x195   : > { %12335 = vst [vmem:[#allocation60_spill] sm:$0xff] %v7587_v44  ;;  %v1025_v2 = vadd.f32 %v1024_v48, %v935_v39  ;;  %3010 = vrot.lane.b32.xlu2 %v2936_v4, %s6706_s10  ;;  %v6132_v39 = vunpack.c.l.bf16 %v7597_v0 }
 0x196   : > { %12336 = vst [vmem:[#allocation61_spill] sm:$0xff] %v7592_v52  ;;  %v1233_v52 = vld [vmem:[%s12161_s3 + $0x18] sm:$0xff] }
 0x197   : > { %12337 = vst [vmem:[#allocation62_spill] sm:$0xff] %v7599_v49  ;;  %v1114_v32 = vadd.f32 %v1113_v53, %v1025_v2  ;;  %v6251_v47 = vpop.eup %6250  ;;  %v6634_v2 = vld [vmem:[#allocation3 + $0x10] sm:$0xff]  ;;  %v542_v60 = vadd.f32 %v7418_v42, %v6132_v39  ;;  %v1265_v51 = vmul.f32 %v6636_v23, %v1233_v52  ;;  %v1243_v23 = vld [vmem:[%s12161_s3 + $0x68] sm:$0xff] }
 0x198   : > { %v1064_v46 = vpop.f32.mrf.mxu3  ;;  %v1264_v49 = vmul.f32 %v6634_v2, %v1232_v57  ;;  %v1235_v57 = vld [vmem:[%s12161_s3 + $0x28] sm:$0xff]  ;;  %v7631_v2 = vadd.f32 1.0, %v6251_v47  ;;  %v7714_v44 = vmul.f32 %v6644_v29, %v1243_v23  ;;  %v1252_v29 = vld [vmem:[%s12161_s3 + $0xb0] sm:$0xff] }
 0x199   : > { %v7608_v56 = vadd.f32 %v1114_v32, %v541_v13  ;;  %v7612_v54 = vadd.f32 %v1064_v46, %v7482_v25  ;;  %v6253_v25 = vpop.eup %6252  ;;  %v1234_v46 = vld [vmem:[%s12161_s3 + $0x20] sm:$0xff]  ;;  %v1239_v47 = vld [vmem:[%s12161_s3 + $0x48] sm:$0xff]  ;;  %v7662_v1 = vmul.f32 %v6637_v36, %v1235_v57 }
 0x19a   : > { %v7614_v4 = vpop.f32.mrf.mxu2  ;;  %v938_v53 = vpop.f32.mrf.mxu0  ;;  %v7660_v58 = vmul.f32 %v6635_v30, %v1234_v46  ;;  %v7664_v41 = vadd.f32 1.0, %v6253_v25  ;;  %v1241_v30 = vld [vmem:[%s12161_s3 + $0x58] sm:$0xff]  ;;  %v1242_v36 = vld [vmem:[%s12161_s3 + $0x60] sm:$0xff]  ;;  %6256 = vrcp.f32 %v7631_v2  ;;  %12346 = vst [vmem:[#allocation71_spill] sm:$0xff] %v7714_v44  ;;  %v6654_v44 = vld [vmem:[#allocation3 + $0xa8] sm:$0xff]  ;;  %vm2291_vm5 = vweird.f32 %v7631_v2 }
 0x19b   : > { %v7601_v33 = vpop.permute.xlu1 %2838  ;;  %12339 = vst [vmem:[#allocation64_spill] sm:$0xff] %v7608_v56  ;;  %v2937_v48 = vmax.f32 %v7608_v56, 0.0  ;;  %v7620_v32 = vpop.permute.xlu0 %2836  ;;  %v6640_v25 = vld [vmem:[#allocation3 + $0x40] sm:$0xff]  ;;  %v7716_v28 = vmul.f32 %v6645_v8, %v1242_v36  ;;  %v6650_v36 = vld [vmem:[#allocation3 + $0x98] sm:$0xff] }
 0x19c   : > { %12338 = vst [vmem:[#allocation63_spill] sm:$0xff] %v7601_v33  ;;  %v1027_v33 = vpop.f32.mrf.mxu1  ;;  %v7658_v61 = vpop.eup %6254  ;;  %v7683_v46 = vmul.f32 %v6640_v25, %v1238_v27  ;;  %6258 = vrcp.f32 %v7664_v41  ;;  %v1250_v8 = vld [vmem:[%s12161_s3 + $0xa0] sm:$0xff]  ;;  %vm1474_vm12 = vweird.f32 %v7664_v41 }
 0x19d   : > { %12340 = vst [vmem:[#allocation65_spill] sm:$0xff] %v7612_v54  ;;  %v1028_v13 = vadd.f32 %v1027_v33, %v938_v53  ;;  %3012 = vrot.lane.b32.xlu0 %v2937_v48, %s6706_s10  ;;  %v1237_v53 = vld [vmem:[%s12161_s3 + $0x38] sm:$0xff]  ;;  %v1236_v48 = vld [vmem:[%s12161_s3 + $0x30] sm:$0xff]  ;;  %v7712_v54 = vmul.f32 %v6643_v35, %v1241_v30  ;;  %vm1460_vm3 = vweird.f32 %v7658_v61 }
 0x19e   : > { %12341 = vst [vmem:[#allocation66_spill] sm:$0xff] %v7620_v32  ;;  %v1296_v32 = vadd.f32 %v1264_v49, %v7465_v34  ;;  %v6133_v49 = vunpack.c.h.bf16 %v7597_v0  ;;  %v7670_v0 = vmul.f32 %v6639_v16, %v1236_v48  ;;  %v6641_v16 = vld [vmem:[#allocation3 + $0x50] sm:$0xff]  ;;  %vm7856_vm6 = vmor %vm1459_vm4, %vm1460_vm3 }
 0x19f   : > { %v1117_v33 = vadd.f32 %v1116_v7, %v1028_v13  ;;  %v1240_v7 = vld [vmem:[%s12161_s3 + $0x50] sm:$0xff]  ;;  %v7651_v13 = vpop.permute.xlu2 %2846  ;;  %12345 = vst [vmem:[#allocation70_spill] sm:$0xff] %v7712_v54  ;;  %v6661_v54 = vld [vmem:[#allocation3 + $0xe8] sm:$0xff] }
 0x1a0   : > { %12343 = vst [vmem:[#allocation68_spill] sm:$0xff] %v7651_v13  ;;  %v7655_v55 = vpop.f32.mrf.mxu3  ;;  %v7685_v57 = vmul.f32 %v6641_v16, %v1240_v7  ;;  %v5992_v27 = vmul.f32 -1.442695, %v1296_v32  ;;  %v1247_v7 = vld [vmem:[%s12161_s3 + $0x88] sm:$0xff]  ;;  %v2127_v16 = vadd.f32 %v7362_v21, %v7453_v12  ;;  %v7710_v32 = vmul.f32 %v7658_v61, %v7603_v45  ;;  %v7720_v21 = vld [vmem:[%s6790_s20 + $0x38] sm:$0xff]   ;;  %v1248_v35 = vld [vmem:[%s12161_s3 + $0x90] sm:$0xff] }
 0x1a1   : > { %12347 = vst [vmem:[#allocation72_spill] sm:$0xff] %v7716_v28  ;;  %v6648_v12 = vld [vmem:[#allocation3 + $0x78] sm:$0xff] }
 0x1a2   : > { %v7666_v37 = vpop.f32.mrf.mxu2  ;;  %v7726_v18 = vmul.f32 %v6648_v12, %v1245_v43  ;;  %v6649_v12 = vld [vmem:[#allocation3 + $0x88] sm:$0xff]  ;;  %6260 = vpow2.f32 %v5992_v27  ;;  %v6652_v27 = vld [vmem:[#allocation3 + $0xa0] sm:$0xff] }
 0x1a3   : > { %v7633_v39 = vpop.permute.xlu1 %2844  ;;  %v7738_v23 = vpop.permute.xlu0 %2842  ;;  %v7742_v43 = vmul.f32 %v6649_v12, %v1247_v7  ;;  %v6023_v12 = vmul.f32 -1.442695, %v2127_v16  ;;  %v1298_v16 = vadd.f32 %v7660_v58, %v7493_v20  ;;  %v1258_v58 = vld [vmem:[%s12161_s3 + $0xe0] sm:$0xff] }
 0x1a4   : > { %12342 = vst [vmem:[#allocation67_spill] sm:$0xff] %v7633_v39  ;;  %v7653_v39 = vadd.f32 %v1117_v33, %v542_v60  ;;  %v940_v60 = vpop.f32.mrf.mxu0  ;;  %v6638_v33 = vld [vmem:[#allocation3 + $0x38] sm:$0xff]  ;;  %v1029_v25 = vpop.f32.mrf.mxu1 }
 0x1a5   : > { %v7668_v13 = vmul.f32 %v6638_v33, %v1237_v53  ;;  %v6642_v53 = vld [vmem:[#allocation3 + $0x48] sm:$0xff]  ;;  %v1244_v33 = vld [vmem:[%s12161_s3 + $0x70] sm:$0xff]  ;;  %v1030_v11 = vadd.f32 %v1029_v25, %v940_v60  ;;  %12350 = vst [vmem:[#allocation75_spill] sm:$0xff] %v7726_v18  ;;  %v7756_v7 = vpop.eup %6256  ;;  %6262 = vpow2.f32 %v6023_v12 }
 0x1a6   : > { %12344 = vst [vmem:[#allocation69_spill] sm:$0xff] %v7653_v39  ;;  %v2938_v52 = vmax.f32 %v7653_v39, 0.0  ;;  %v7687_v48 = vmul.f32 %v6642_v53, %v1239_v47  ;;  %v1249_v47 = vld [vmem:[%s12161_s3 + $0x98] sm:$0xff]  ;;  %v543_v53 = vadd.f32 %v7418_v42, %v6133_v49  ;;  %v6646_v49 = vld [vmem:[#allocation3 + $0x70] sm:$0xff]  ;;  %vm2292_vm9 = vweird.f32 %v7756_v7 }
 0x1a7   : > { %v7722_v60 = vmul.f32 %v6646_v49, %v1244_v33  ;;  %v1119_v30 = vadd.f32 %v7589_v26, %v1030_v11  ;;  %12351 = vst [vmem:[#allocation76_spill] sm:$0xff] %v7738_v23  ;;  %v7744_v33 = vmul.f32 %v6650_v36, %v1249_v47  ;;  %v1251_v49 = vld [vmem:[%s12161_s3 + $0xa8] sm:$0xff]  ;;  %v1297_v26 = vadd.f32 %v1265_v51, %v7480_v14  ;;  %v1254_v47 = vld [vmem:[%s12161_s3 + $0xc0] sm:$0xff]  ;;  %v6653_v18 = vld [vmem:[#allocation3 + $0xb0] sm:$0xff] }
 0x1a8   : > { %3014 = vrot.lane.b32.xlu1 %v2938_v52, %s6706_s10  ;;  %v6647_v52 = vld [vmem:[#allocation3 + $0x80] sm:$0xff]  ;;  %12353 = vst [vmem:[#allocation78_spill] sm:$0xff] %v7742_v43  ;;  %v1255_v11 = vld [vmem:[%s12161_s3 + $0xc8] sm:$0xff]  ;;  %v6136_v23 = vunpack.c.l.bf16 %v7720_v21  ;;  %v6651_v43 = vld [vmem:[#allocation3 + $0x90] sm:$0xff]  ;;  %v7769_v51 = vmul.f32 %v6652_v27, %v1250_v8  ;;  %v7777_v28 = vmul.f32 %v6654_v44, %v1251_v49  ;;  %v2128_v27 = vadd.f32 %v7347_v31, %v7465_v34 }
 0x1a9   : > { %12348 = vst [vmem:[#allocation73_spill] sm:$0xff] %v7722_v60  ;;  %v7724_v25 = vmul.f32 %v6647_v52, %v1246_v50  ;;  %v1253_v52 = vld [vmem:[%s12161_s3 + $0xb8] sm:$0xff]  ;;  %v7761_v36 = vadd.f32 %v1119_v30, %v543_v53  ;;  %v7771_v60 = vmul.f32 %v6653_v18, %v1252_v29  ;;  %v1256_v18 = vld [vmem:[%s12161_s3 + $0xd0] sm:$0xff]  ;;  %v7793_v29 = vpop.eup %6258  ;;  %v6659_v31 = vld [vmem:[#allocation3 + $0xe0] sm:$0xff] }
 0x1aa   : > { %12354 = vst [vmem:[#allocation79_spill] sm:$0xff] %v7744_v33  ;;  %v1456_v33 = vsub.f32 1.0, %v7710_v32  ;;  %v7775_v53 = vpop.f32.mrf.mxu2  ;;  %v6655_v39 = vld [vmem:[#allocation3 + $0xb8] sm:$0xff]  ;;  %v7814_v34 = vmul.f32 %v6659_v31, %v1258_v58  ;;  %vm1475_vm10 = vweird.f32 %v7793_v29  ;;  %vm7909_vm11 = vmor %vm2291_vm5, %vm2292_vm9 }
 0x1ab   : > { %12349 = vst [vmem:[#allocation74_spill] sm:$0xff] %v7724_v25  ;;  %v7740_v50 = vpop.permute.xlu1 %2850  ;;  %v7767_v25 = vmul.f32 %v6651_v43, %v1248_v35  ;;  %v7779_v32 = vmul.f32 %v6655_v39, %v1253_v52  ;;  %v6656_v35 = vld [vmem:[#allocation3 + $0xc8] sm:$0xff]  ;;  %v1257_v8 = vld [vmem:[%s12161_s3 + $0xd8] sm:$0xff]  ;;  %v2939_v44 = vmax.f32 %v7761_v36, 0.0  ;;  %v6657_v39 = vld [vmem:[#allocation3 + $0xc0] sm:$0xff] }
 0x1ac   : > { %12352 = vst [vmem:[#allocation77_spill] sm:$0xff] %v7740_v50  ;;  %v7763_v50 = vpop.f32.mrf.mxu3  ;;  %v943_v30 = vpop.f32.mrf.mxu0  ;;  %v7781_v43 = vmul.f32 %v6656_v35, %v1255_v11  ;;  %v7795_v49 = vmul.f32 %v6657_v39, %v1254_v47  ;;  %v1259_v52 = vld [vmem:[%s12161_s3 + $0xe8] sm:$0xff]  ;;  %v1261_v11 = vld [vmem:[%s12161_s3 + $0xf8] sm:$0xff]  ;;  %v2287_v35 = vmul.f32 %v7756_v7, %v7631_v2  ;;  %v544_v47 = vadd.f32 %v7418_v42, %v6136_v23  ;;  %vm7932_vm13 = vmor %vm1474_vm12, %vm1475_vm10 }
 0x1ad   : > { %12355 = vst [vmem:[#allocation80_spill] sm:$0xff] %v7761_v36  ;;  %3016 = vrot.lane.b32.xlu2 %v2939_v44, %s6706_s10  ;;  %v6660_v36 = vld [vmem:[#allocation3 + $0xd8] sm:$0xff]  ;;  %v7818_v12 = vmul.f32 %v6661_v54, %v1259_v52  ;;  %v1470_v23 = vmul.f32 %v7793_v29, %v7664_v41  ;;  %v1260_v54 = vld [vmem:[%s12161_s3 + $0xf0] sm:$0xff]  ;;  %v1463_v52 = vand.u32 2147483647, %v7603_v45 }
 0x1ae   : > { %12356 = vst [vmem:[#allocation81_spill] sm:$0xff] %v7767_v25 }
 0x1af   : > { %12357 = vst [vmem:[#allocation82_spill] sm:$0xff] %v7769_v51  ;;  %v6658_v51 = vld [vmem:[#allocation3 + $0xd0] sm:$0xff]  ;;  %vm1464_vm7 = vcmp.eq.f32.partialorder %v1463_v52, 8.507059e+37 }
 0x1b0   : > { %12358 = vst [vmem:[#allocation83_spill] sm:$0xff] %v7771_v60  ;;  %v1032_v60 = vpop.f32.mrf.mxu1  ;;  %v7812_v25 = vmul.f32 %v6658_v51, %v1256_v18  ;;  %v2288_v18 = vsub.f32 1.0, %v2287_v35  ;;  %v2297_v35 = vand.u32 2147483648, %v7631_v2 }
 0x1b1   : > { %12359 = vst [vmem:[#allocation84_spill] sm:$0xff] %v7777_v28  ;;  %v1033_v39 = vadd.f32 %v1032_v60, %v943_v30  ;;  %v6261_v28 = vpop.eup %6260  ;;  %v7821_v60 = vmul.f32 %v1261_v11, %v7299_v5  ;;  %v6024_v30 = vmul.f32 -1.442695, %v2128_v27  ;;  %v2295_v27 = vand.u32 2147483647, %v7631_v2 }
 0x1b2   : > { %12360 = vst [vmem:[#allocation85_spill] sm:$0xff] %v7779_v32  ;;  %v7807_v32 = vpop.permute.xlu2 %2852  ;;  %v6263_v11 = vpop.eup %6262 }
 0x1b3   : > { %12361 = vst [vmem:[#allocation86_spill] sm:$0xff] %v7781_v43  ;;  %v5993_v43 = vmul.f32 -1.442695, %v1297_v26  ;;  %v7816_v26 = vmul.f32 %v6660_v36, %v1257_v8  ;;  %v7826_v51 = vpop.permute.xlu1 %2856  ;;  %v7832_v36 = vadd.f32 1.0, %v6261_v28  ;;  %v1465_v28 = vand.u32 2147483648, %v7603_v45 }
 0x1b4   : > { %12362 = vst [vmem:[#allocation87_spill] sm:$0xff] %v7795_v49  ;;  %v1457_v49 = vmul.f32 %v7658_v61, %v1456_v33  ;;  %v1122_v33 = vadd.f32 %v7614_v4, %v1033_v39  ;;  %v7838_v58 = vpop.f32.mrf.mxu3  ;;  %v6137_v4 = vunpack.c.h.bf16 %v7720_v21  ;;  %v945_v44 = vpop.f32.mrf.mxu0  ;;  %v6662_v39 = vld [vmem:[#allocation3 + $0xf0] sm:$0xff]  ;;  %vm7875_vm8 = vcmp.eq.f32.partialorder %v2295_v27, 8.507059e+37 }
 0x1b5   : > { %12363 = vst [vmem:[#allocation88_spill] sm:$0xff] %v7807_v32  ;;  %v5994_v32 = vmul.f32 -1.442695, %v1298_v16  ;;  %6264 = vpow2.f32 %v5993_v43  ;;  %v7836_v16 = vpop.permute.xlu0 %2848  ;;  %v7842_v43 = vpop.f32.mrf.mxu2  ;;  %vm1489_vm0 = vweird.f32 %v7832_v36 }
 0x1b6   : > { %12364 = vst [vmem:[#allocation89_spill] sm:$0xff] %v7812_v25  ;;  %v7834_v5 = vadd.f32 %v1122_v33, %v544_v47  ;;  %v1458_v8 = vadd.f32 %v7658_v61, %v1457_v49  ;;  %v1471_v47 = vsub.f32 1.0, %v1470_v23  ;;  %v7850_v49 = vmul.f32 %v6662_v39, %v1260_v54 }
 0x1b7   : > { %12365 = vst [vmem:[#allocation90_spill] sm:$0xff] %v7816_v26  ;;  %6266 = vpow2.f32 %v5994_v32  ;;  %v2289_v32 = vmul.f32 %v7756_v7, %v2288_v18  ;;  %v545_v23 = vadd.f32 %v7418_v42, %v6137_v4  ;;  %v7866_v54 = vadd.f32 1.0, %v6263_v11  ;;  %v7873_v26 = vld [vmem:[%s6790_s20 + $0x40] sm:$0xff]  }
 0x1b8   : > { %12366 = vst [vmem:[#allocation91_spill] sm:$0xff] %v7821_v60  ;;  %v2940_v21 = vmax.f32 %v7834_v5, 0.0  ;;  %6268 = vpow2.f32 %v6024_v30  ;;  %v1034_v31 = vpop.f32.mrf.mxu1  ;;  %v1462_v30 = vsel %vm7856_vm6, %v7658_v61, %v1458_v8  ;;  %v1299_v39 = vadd.f32 %v7662_v1, %v7508_v6 }
 0x1b9   : > { %12367 = vst [vmem:[#allocation92_spill] sm:$0xff] %v7826_v51  ;;  %6270 = vrcp.f32 %v7832_v36  ;;  %v1035_v33 = vadd.f32 %v1034_v31, %v945_v44  ;;  %v1466_v51 = vor.u32 1.1754944e-38, %v1465_v28  ;;  %v2298_v44 = vor.u32 1.1754944e-38, %v2297_v35 }
 0x1ba   : > { %12368 = vst [vmem:[#allocation93_spill] sm:$0xff] %v7834_v5  ;;  %3018 = vrot.lane.b32.xlu0 %v2940_v21, %s6706_s10  ;;  %v1472_v21 = vmul.f32 %v7793_v29, %v1471_v47  ;;  %v2290_v31 = vadd.f32 %v7756_v7, %v2289_v32  ;;  %v2129_v1 = vadd.f32 %v7360_v10, %v7480_v14  ;;  %v6140_v47 = vunpack.c.l.bf16 %v7873_v26 }
 0x1bb   : > { %12369 = vst [vmem:[#allocation94_spill] sm:$0xff] %v7836_v16  ;;  %v6265_v18 = vpop.eup %6264  ;;  %v7870_v16 = vpop.permute.xlu2 %2858  ;;  %v1124_v61 = vadd.f32 %v7666_v37, %v1035_v33  ;;  %v1467_v52 = vsel %vm1464_vm7, %v1466_v51, %v1462_v30  ;;  %6272 = vrcp.f32 %v7866_v54  ;;  %v5995_v33 = vmul.f32 -1.442695, %v1299_v39 }
 0x1bc   : > { %12370 = vst [vmem:[#allocation95_spill] sm:$0xff] %v7850_v49  ;;  %v2991_v8 = vpop.permute.xlu1 %2990  ;;  %v7885_v28 = vadd.f32 1.0, %v6265_v18  ;;  %v7889_v45 = vpop.f32.mrf.mxu3  ;;  %v1300_v32 = vadd.f32 %v7670_v0, %v7523_v62  ;;  %v1478_v10 = vand.u32 2147483647, %v7664_v41  ;;  %v6025_v39 = vmul.f32 -1.442695, %v2129_v1 }
 0x1bd   : > { %12373 = vst [vmem:[#allocation96_spill] sm:$0xff] %v7870_v16  ;;  %v6267_v11 = vpop.eup %6266  ;;  %v7887_v27 = vadd.f32 %v1124_v61, %v545_v23  ;;  %v3086_v35 = vmul.f32 %v2991_v8, %v1467_v52  ;;  %v7896_v51 = vpop.f32.mrf.mxu2  ;;  %v1473_v61 = vadd.f32 %v7793_v29, %v1472_v21  ;;  %v2312_v52 = vand.u32 2147483648, %v7866_v54  ;;  %v7919_v16 = vld [vmem:[%s6790_s20 + $0x70] sm:$0xff]  }
 0x1be   : > { %v6269_v37 = vpop.eup %6268  ;;  %v948_v30 = vpop.f32.mrf.mxu0  ;;  %v7900_v18 = vadd.f32 1.0, %v6267_v11  ;;  %v1480_v11 = vand.u32 2147483648, %v7664_v41  ;;  %v2294_v2 = vsel %vm7909_vm11, %v7756_v7, %v2290_v31  ;;  %6274 = vrcp.f32 %v7885_v28 }
 0x1bf   : > { %12376 = vst [vmem:[#allocation97_spill] sm:$0xff] %v7887_v27  ;;  %v7898_v23 = vpop.eup %6270  ;;  %v2941_v8 = vmax.f32 %v7887_v27, 0.0  ;;  %v7916_v21 = vpop.permute.xlu0 %2854  ;;  %v546_v25 = vadd.f32 %v7418_v42, %v6140_v47  ;;  %v7928_v60 = vadd.f32 1.0, %v6269_v37  ;;  %6276 = vpow2.f32 %v5995_v33 }
 0x1c0   : > { %12379 = vst [vmem:[#allocation98_spill] sm:$0xff] %v7916_v21  ;;  %v1037_v14 = vpop.f32.mrf.mxu1  ;;  %v5996_v41 = vmul.f32 -1.442695, %v1300_v32  ;;  %v1485_v7 = vmul.f32 %v7898_v23, %v7832_v36  ;;  %6278 = vrcp.f32 %v7900_v18  ;;  %v2299_v37 = vsel %vm7875_vm8, %v2298_v44, %v2294_v2 }
 0x1c1   : > { %v1038_v1 = vadd.f32 %v1037_v14, %v948_v30  ;;  %3020 = vrot.lane.b32.xlu1 %v2941_v8, %s6706_s10  ;;  %v1477_v14 = vsel %vm7932_vm13, %v7793_v29, %v1473_v61  ;;  %v7944_v47 = vpop.eup %6272  ;;  %6280 = vpow2.f32 %v6025_v39  ;;  %v2130_v33 = vadd.f32 %v7324_v9, %v7493_v20 }
 0x1c2   : > { %3150 = vrot.lane.b32.xlu0 %v3086_v35, %s6705_s17  ;;  %v6164_v35 = vunpack.c.l.bf16 %v7919_v16  ;;  %v1481_v30 = vor.u32 1.1754944e-38, %v1480_v11  ;;  %v1068_v8 = vadd.f32 %v7655_v55, %v7495_v15  ;;  %vm1479_vm14 = vcmp.eq.f32.partialorder %v1478_v10, 8.507059e+37 }
 0x1c3   : > { %v1127_v31 = vadd.f32 %v7775_v53, %v1038_v1  ;;  %v2993_v32 = vpop.permute.xlu2 %2992  ;;  %v6141_v61 = vunpack.c.h.bf16 %v7873_v26  ;;  %v2327_v0 = vand.u32 2147483648, %v7928_v60  ;;  %6282 = vpow2.f32 %v5996_v41 }
 0x1c4   : > { %v1156_v53 = vpop.f32.mrf.mxu3  ;;  %v1482_v4 = vsel %vm1479_vm14, %v1481_v30, %v1477_v14  ;;  %v1486_v21 = vsub.f32 1.0, %v1485_v7  ;;  %v7958_v9 = vpop.eup %6274  ;;  %v558_v2 = vadd.f32 %v7418_v42, %v6164_v35  ;;  %v6026_v10 = vmul.f32 -1.442695, %v2130_v33 }
 0x1c5   : > { %v7952_v29 = vadd.f32 %v1127_v31, %v546_v25  ;;  %v7956_v44 = vpop.f32.mrf.mxu2  ;;  %v3087_v11 = vmul.f32 %v2993_v32, %v1482_v4  ;;  %v1157_v55 = vadd.f32 %v1156_v53, %v1068_v8  ;;  %v6277_v25 = vpop.eup %6276  ;;  %v2302_v26 = vmul.f32 %v7944_v47, %v7866_v54  ;;  %v7983_v4 = vld [vmem:[%s6790_s20 + $0x48] sm:$0xff]  }
 0x1c6   : > { %v950_v39 = vpop.f32.mrf.mxu0  ;;  %v7965_v41 = vor.u32 1.1754944e-38, %v2312_v52  ;;  %v7967_v7 = vpop.eup %6278  ;;  %6284 = vrcp.f32 %v7928_v60  ;;  %v1301_v31 = vadd.f32 %v7668_v13, %v7536_v63  ;;  %v547_v35 = vadd.f32 %v7418_v42, %v6141_v61 }
 0x1c7   : > { %v2942_v15 = vmax.f32 %v7952_v29, 0.0  ;;  %v6281_v33 = vpop.eup %6280  ;;  %v7976_v30 = vmul.f32 %v7467_v24, %v2299_v37  ;;  %v7979_v8 = vpop.permute.xlu0 %2860  ;;  %v1487_v53 = vmul.f32 %v7898_v23, %v1486_v21  ;;  %v1500_v42 = vmul.f32 %v7958_v9, %v7885_v28 }
 0x1c8   : > { %v1039_v14 = vpop.f32.mrf.mxu1  ;;  %12383 = vst [vmem:[#allocation100_spill] sm:$0xff] %v7979_v8  ;;  %v7987_v13 = vor.u32 1.1754944e-38, %v2327_v0  ;;  %v7989_v61 = vadd.f32 %v1157_v55, %v558_v2  ;;  %v6165_v24 = vunpack.c.h.bf16 %v7919_v16  ;;  %6286 = vpow2.f32 %v6026_v10 }
 0x1c9   : > { %v1040_v32 = vadd.f32 %v1039_v14, %v950_v39  ;;  %3022 = vrot.lane.b32.xlu2 %v2942_v15, %s6706_s10  ;;  %3152 = vrot.lane.b32.xlu1 %v3087_v11, %s6705_s17  ;;  %12382 = vst [vmem:[#allocation99_spill] sm:$0xff] %v7976_v30  ;;  %v6283_v37 = vpop.eup %6282  ;;  %v7993_v11 = vadd.f32 1.0, %v6277_v25  ;;  %v2303_v15 = vsub.f32 1.0, %v2302_v26  ;;  %v1515_v21 = vmul.f32 %v7967_v7, %v7900_v18 }
 0x1ca   : > { %12384 = vst [vmem:[#allocation101_spill] sm:$0xff] %v7989_v61  ;;  %v5997_v14 = vmul.f32 -1.442695, %v1301_v31  ;;  %v1070_v52 = vadd.f32 %v7763_v50, %v7510_v3  ;;  %v6144_v55 = vunpack.c.l.bf16 %v7983_v4  ;;  %v1302_v16 = vadd.f32 %v7683_v46, %v7550_v22  ;;  %v8013_v3 = vld [vmem:[%s12159_s1] ss:$0 sm:$0xff] }
 0x1cb   : > { %v1129_v39 = vadd.f32 %v7842_v43, %v1040_v32  ;;  %v1488_v43 = vadd.f32 %v7898_v23, %v1487_v53  ;;  %vm1490_vm15 = vweird.f32 %v7898_v23  ;;  %v1501_v26 = vsub.f32 1.0, %v1500_v42 }
 0x1cc   : > { %v1158_v2 = vpop.f32.mrf.mxu3  ;;  %v8008_v31 = vpop.eup %6284  ;;  %v559_v50 = vadd.f32 %v8013_v3, %v6165_v24  ;;  %v2954_v46 = vmax.f32 %v7989_v61, 0.0  ;;  %v8018_v53 = vadd.f32 1.0, %v6281_v33  ;;  %6288 = vrcp.f32 %v7993_v11  ;;  %v8030_v33 = vld [vmem:[%s6790_s20 + $0x78] sm:$0xff]   ;;  %vm8039_vm1 = vmor %vm1489_vm0, %vm1490_vm15 }
 0x1cd   : > { %v7999_v0 = vadd.f32 %v1129_v39, %v547_v35  ;;  %v8006_v25 = vpop.f32.mrf.mxu2  ;;  %v1159_v35 = vadd.f32 %v1158_v2, %v1070_v52  ;;  %v8021_v42 = vadd.f32 1.0, %v6283_v37  ;;  %v1495_v39 = vand.u32 2147483648, %v7832_v36 }
 0x1ce   : > { %v953_v10 = vpop.f32.mrf.mxu0  ;;  %v1493_v20 = vand.u32 2147483647, %v7832_v36  ;;  %v548_v24 = vadd.f32 %v8013_v3, %v6144_v55  ;;  %v8032_v2 = vpop.eup %6286  ;;  %v8035_v37 = vmul.f32 %v7944_v47, %v2303_v15  ;;  %6290 = vpow2.f32 %v5997_v14 }
 0x1cf   : > { %v2943_v32 = vmax.f32 %v7999_v0, 0.0  ;;  %v5998_v8 = vmul.f32 -1.442695, %v1302_v16  ;;  %v1516_v30 = vsub.f32 1.0, %v1515_v21  ;;  %v8046_v55 = vadd.f32 %v1159_v35, %v559_v50  ;;  %v2995_v14 = vpop.permute.xlu0 %2994 }
 0x1d0   : > { %v1042_v1 = vpop.f32.mrf.mxu1  ;;  %v1502_v15 = vmul.f32 %v7958_v9, %v1501_v26  ;;  %6292 = vrcp.f32 %v8018_v53  ;;  %v8053_v21 = vmul.f32 %v8008_v31, %v7928_v60  ;;  %v1496_v16 = vor.u32 1.1754944e-38, %v1495_v39 }
 0x1d1   : > { %v1043_v52 = vadd.f32 %v1042_v1, %v953_v10  ;;  %3046 = vrot.lane.b32.xlu2 %v2954_v46, %s6706_s10  ;;  %3024 = vrot.lane.b32.xlu0 %v2943_v32, %s6706_s10  ;;  %v1492_v1 = vsel %vm8039_vm1, %v7898_v23, %v1488_v43  ;;  %12387 = vst [vmem:[#allocation102_spill] sm:$0xff] %v8046_v55  ;;  %v6168_v46 = vunpack.c.l.bf16 %v8030_v33  ;;  %6294 = vrcp.f32 %v8021_v42 }
 0x1d2   : > { %vm1494_vm3 = vcmp.eq.f32.partialorder %v1493_v20, 8.507059e+37  ;;  %v8060_v50 = vpop.eup %6288  ;;  %6296 = vpow2.f32 %v5998_v8  ;;  %v1073_v26 = vadd.f32 %v7838_v58, %v7521_v59  ;;  %v1517_v35 = vmul.f32 %v7967_v7, %v1516_v30 }
 0x1d3   : > { %v1132_v10 = vadd.f32 %v7896_v51, %v1043_v52  ;;  %v6145_v51 = vunpack.c.h.bf16 %v7983_v4  ;;  %v1497_v32 = vsel %vm1494_vm3, %v1496_v16, %v1492_v1  ;;  %v1503_v20 = vadd.f32 %v7958_v9, %v1502_v15 }
 0x1d4   : > { %v1161_v43 = vpop.f32.mrf.mxu3  ;;  %v3088_v36 = vmul.f32 %v2995_v14, %v1497_v32  ;;  %vm1505_vm4 = vweird.f32 %v7958_v9  ;;  %v6291_v4 = vpop.eup %6290  ;;  %v560_v8 = vadd.f32 %v8013_v3, %v6168_v46  ;;  %vm1504_vm5 = vweird.f32 %v7885_v28 }
 0x1d5   : > { %v8057_v23 = vadd.f32 %v1132_v10, %v548_v24  ;;  %v8065_v39 = vpop.f32.mrf.mxu2  ;;  %v2955_v24 = vmax.f32 %v8046_v55, 0.0  ;;  %v1510_v10 = vand.u32 2147483648, %v7885_v28  ;;  %v1162_v49 = vadd.f32 %v1161_v43, %v1073_v26  ;;  %vm8087_vm6 = vmor %vm1504_vm5, %vm1505_vm4 }
 0x1d6   : > { %v955_v52 = vpop.f32.mrf.mxu0  ;;  %v1508_v30 = vand.u32 2147483647, %v7885_v28  ;;  %v549_v1 = vadd.f32 %v8013_v3, %v6145_v51  ;;  %v8078_v14 = vpop.eup %6292  ;;  %v8082_v16 = vadd.f32 %v7332_v17, %v7508_v6  ;;  %v2318_v46 = vsub.f32 1.0, %v8053_v21 }
 0x1d7   : > { %12388 = vst [vmem:[#allocation103_spill] sm:$0xff] %v8057_v23  ;;  %v2944_v58 = vmax.f32 %v8057_v23, 0.0  ;;  %v6169_v43 = vunpack.c.h.bf16 %v8030_v33  ;;  %v1530_v51 = vmul.f32 %v8060_v50, %v7993_v11  ;;  %v8095_v26 = vpop.eup %6294  ;;  %v8097_v17 = vadd.f32 1.0, %v6291_v4  ;;  %v8110_v4 = vld [vmem:[%s6790_s20 + $0x50] sm:$0xff]  }
 0x1d8   : > { %v1044_v59 = vpop.f32.mrf.mxu1  ;;  %v1518_v21 = vadd.f32 %v7967_v7, %v1517_v35  ;;  %v1507_v32 = vsel %vm8087_vm6, %v7958_v9, %v1503_v20  ;;  %vm1520_vm7 = vweird.f32 %v7967_v7  ;;  %v1511_v33 = vor.u32 1.1754944e-38, %v1510_v10 }
 0x1d9   : > { %v1045_v15 = vadd.f32 %v1044_v59, %v955_v52  ;;  %3154 = vrot.lane.b32.xlu2 %v3088_v36, %s6705_s17  ;;  %3048 = vrot.lane.b32.xlu0 %v2955_v24, %s6706_s10  ;;  %v6297_v36 = vpop.eup %6296  ;;  %v1303_v24 = vadd.f32 %v7687_v48, %v7569_v38  ;;  %v2997_v59 = vpop.permute.xlu1 %2996  ;;  %v1304_v35 = vadd.f32 %v7685_v57, %v7584_v19  ;;  %vm1509_vm8 = vcmp.eq.f32.partialorder %v1508_v30, 8.507059e+37  ;;  %v12393_v30 = vld [vmem:[#allocation70_spill] sm:$0xff]  ;;  %v12407_v19 = vld [vmem:[#allocation51_spill] sm:$0xff] }
 0x1da   : > { %3026 = vrot.lane.b32.xlu1 %v2944_v58, %s6706_s10  ;;  %v8107_v58 = vadd.f32 %v1162_v49, %v560_v8  ;;  %v1075_v9 = vadd.f32 %v7889_v45, %v7538_v40  ;;  %v561_v10 = vadd.f32 %v8013_v3, %v6169_v43  ;;  %v1531_v49 = vsub.f32 1.0, %v1530_v51 }
 0x1db   : > { %v1134_v52 = vadd.f32 %v7956_v44, %v1045_v15  ;;  %v1512_v15 = vsel %vm1509_vm8, %v1511_v33, %v1507_v32  ;;  %v1545_v8 = vmul.f32 %v8095_v26, %v8021_v42  ;;  %v6148_v57 = vunpack.c.l.bf16 %v8110_v4 }
 0x1dc   : > { %12391 = vst [vmem:[#allocation104_spill] sm:$0xff] %v8107_v58  ;;  %v1163_v20 = vpop.f32.mrf.mxu3  ;;  %v3089_v6 = vmul.f32 %v2997_v59, %v1512_v15  ;;  %v8125_v45 = vadd.f32 1.0, %v6297_v36  ;;  %v1525_v32 = vand.u32 2147483648, %v7900_v18  ;;  %v2956_v43 = vmax.f32 %v8107_v58, 0.0 }
 0x1dd   : > { %v8116_v44 = vadd.f32 %v1134_v52, %v549_v1  ;;  %v8118_v48 = vpop.f32.mrf.mxu2  ;;  %v1164_v23 = vadd.f32 %v1163_v20, %v1075_v9  ;;  %v1305_v1 = vadd.f32 %v12393_v30, %v7608_v56  ;;  %6298 = vrcp.f32 %v8097_v17  ;;  %v12401_v9 = vld [vmem:[#allocation71_spill] sm:$0xff] }
 0x1de   : > { %v958_v28 = vpop.f32.mrf.mxu0  ;;  %v5999_v51 = vmul.f32 -1.442695, %v1303_v24  ;;  %vm1519_vm9 = vweird.f32 %v7900_v18  ;;  %v1523_v33 = vand.u32 2147483647, %v7900_v18  ;;  %v8138_v36 = vadd.f32 %v7944_v47, %v8035_v37 }
 0x1df   : > { %12392 = vst [vmem:[#allocation105_spill] sm:$0xff] %v8116_v44  ;;  %v2945_v40 = vmax.f32 %v8116_v44, 0.0  ;;  %v6000_v59 = vmul.f32 -1.442695, %v1304_v35  ;;  %vm8142_vm10 = vmor %vm1519_vm9, %vm1520_vm7  ;;  %v1546_v20 = vsub.f32 1.0, %v1545_v8  ;;  %v550_v37 = vadd.f32 %v8013_v3, %v6148_v57  ;;  %v2999_v8 = vpop.permute.xlu2 %2998 }
 0x1e0   : > { %v1047_v52 = vpop.f32.mrf.mxu1  ;;  %v1522_v18 = vsel %vm8142_vm10, %v7967_v7, %v1518_v21  ;;  %v1532_v35 = vmul.f32 %v8060_v50, %v1531_v49  ;;  %v8155_v15 = vmul.f32 %v8008_v31, %v2318_v46  ;;  %6300 = vrcp.f32 %v8125_v45  ;;  %v12398_v21 = vld [vmem:[#allocation72_spill] sm:$0xff] }
 0x1e1   : > { %3028 = vrot.lane.b32.xlu2 %v2945_v40, %s6706_s10  ;;  %3156 = vrot.lane.b32.xlu0 %v3089_v6, %s6705_s17  ;;  %v1048_v24 = vadd.f32 %v1047_v52, %v958_v28  ;;  %v8150_v6 = vadd.f32 %v1164_v23, %v561_v10  ;;  %v6001_v40 = vmul.f32 -1.442695, %v1305_v1  ;;  %v1526_v28 = vor.u32 1.1754944e-38, %v1525_v32  ;;  %v12397_v23 = vld [vmem:[#allocation69_spill] sm:$0xff] }
 0x1e2   : > { %3050 = vrot.lane.b32.xlu1 %v2956_v43, %s6706_s10  ;;  %6302 = vpow2.f32 %v5999_v51  ;;  %vm1524_vm11 = vcmp.eq.f32.partialorder %v1523_v33, 8.507059e+37  ;;  %v6149_v7 = vunpack.c.h.bf16 %v8110_v4  ;;  %v1306_v10 = vadd.f32 %v12398_v21, %v12397_v23 }
 0x1e3   : > { %12396 = vst [vmem:[#allocation70_spill] sm:$0xff] %v8150_v6  ;;  %v1137_v30 = vadd.f32 %v8006_v25, %v1048_v24  ;;  %6304 = vpow2.f32 %v6000_v59  ;;  %v1527_v57 = vsel %vm1524_vm11, %v1526_v28, %v1522_v18  ;;  %v1547_v52 = vmul.f32 %v8095_v26, %v1546_v20  ;;  %v8165_v43 = vpop.eup %6298  ;;  %v12400_v59 = vld [vmem:[#allocation80_spill] sm:$0xff] }
 0x1e4   : > { %v1533_v32 = vadd.f32 %v8060_v50, %v1532_v35  ;;  %vm1535_vm12 = vweird.f32 %v8060_v50  ;;  %v2957_v25 = vmax.f32 %v8150_v6, 0.0  ;;  %6306 = vpow2.f32 %v6001_v40  ;;  %v8181_v35 = vld [vmem:[%s6790_s20 + $0x60] sm:$0xff]  }
 0x1e5   : > { %v8162_v49 = vpop.f32.mrf.mxu2  ;;  %v8167_v1 = vadd.f32 %v1137_v30, %v550_v37  ;;  %v3090_v4 = vmul.f32 %v2999_v8, %v1527_v57  ;;  %vm1534_vm13 = vweird.f32 %v7993_v11  ;;  %v1540_v51 = vand.u32 2147483648, %v7993_v11 }
 0x1e6   : > { %v960_v46 = vpop.f32.mrf.mxu0  ;;  %vm2307_vm14 = vweird.f32 %v7944_v47  ;;  %v1307_v24 = vadd.f32 %v12401_v9, %v12400_v59  ;;  %v1538_v20 = vand.u32 2147483647, %v7993_v11  ;;  %v551_v18 = vadd.f32 %v8013_v3, %v6149_v7  ;;  %v8183_v40 = vpop.eup %6300  ;;  %vm8189_vm15 = vmor %vm1534_vm13, %vm1535_vm12  ;;  %v8198_v7 = vld [vmem:[%s6790_s20 + $0x58] sm:$0xff]  }
 0x1e7   : > { %12399 = vst [vmem:[#allocation72_spill] sm:$0xff] %v8167_v1  ;;  %v1560_v28 = vmul.f32 %v8165_v43, %v8097_v17  ;;  %v2946_v11 = vmax.f32 %v8167_v1, 0.0  ;;  %v1548_v30 = vadd.f32 %v8095_v26, %v1547_v52  ;;  %vm1550_vm0 = vweird.f32 %v8095_v26  ;;  %v3001_v59 = vpop.permute.xlu0 %3000  ;;  %v3003_v23 = vpop.permute.xlu1 %3002 }
 0x1e8   : > { %v1049_v33 = vpop.f32.mrf.mxu1  ;;  %v6303_v21 = vpop.eup %6302  ;;  %vm2306_vm1 = vweird.f32 %v7866_v54  ;;  %v6002_v57 = vmul.f32 -1.442695, %v1306_v10  ;;  %v1541_v9 = vor.u32 1.1754944e-38, %v1540_v51  ;;  %vm1549_vm3 = vweird.f32 %v8021_v42 }
 0x1e9   : > { %v1050_v37 = vadd.f32 %v1049_v33, %v960_v46  ;;  %3052 = vrot.lane.b32.xlu2 %v2957_v25, %s6706_s10  ;;  %v1537_v46 = vsel %vm8189_vm15, %v8060_v50, %v1533_v32  ;;  %v6305_v33 = vpop.eup %6304  ;;  %3030 = vrot.lane.b32.xlu0 %v2946_v11, %s6706_s10  ;;  %v1553_v52 = vand.u32 2147483647, %v8021_v42  ;;  %v6156_v1 = vunpack.c.l.bf16 %v8181_v35  ;;  %vm8214_vm5 = vmor %vm1549_vm3, %vm1550_vm0 }
 0x1ea   : > { %3158 = vrot.lane.b32.xlu1 %v3090_v4, %s6705_s17  ;;  %v1555_v4 = vand.u32 2147483648, %v8021_v42  ;;  %v6003_v10 = vmul.f32 -1.442695, %v1307_v24  ;;  %vm1539_vm4 = vcmp.eq.f32.partialorder %v1538_v20, 8.507059e+37  ;;  %v6307_v32 = vpop.eup %6306  ;;  %v8221_v51 = vmul.f32 %v8078_v14, %v8018_v53  ;;  %vm8250_vm7 = vmor %vm2306_vm1, %vm2307_vm14 }
 0x1eb   : > { %v1139_v25 = vadd.f32 %v8065_v39, %v1050_v37  ;;  %v6152_v39 = vunpack.c.l.bf16 %v8198_v7  ;;  %v8223_v42 = vadd.f32 1.0, %v6303_v21  ;;  %v1542_v37 = vsel %vm1539_vm4, %v1541_v9, %v1537_v46 }
 0x1ec   : > { %v1552_v24 = vsel %vm8214_vm5, %v8095_v26, %v1548_v30  ;;  %6308 = vpow2.f32 %v6002_v57  ;;  %v1561_v8 = vsub.f32 1.0, %v1560_v28  ;;  %v3091_v11 = vmul.f32 %v3001_v59, %v1542_v37 }
 0x1ed   : > { %v8210_v6 = vadd.f32 %v1139_v25, %v551_v18  ;;  %v1146_v20 = vpop.f32.mrf.mxu2  ;;  %v1556_v25 = vor.u32 1.1754944e-38, %v1555_v4  ;;  %vm1554_vm6 = vcmp.eq.f32.partialorder %v1553_v52, 8.507059e+37  ;;  %v554_v56 = vadd.f32 %v8013_v3, %v6156_v1 }
 0x1ee   : > { %v963_v18 = vpop.f32.mrf.mxu0  ;;  %v1147_v44 = vadd.f32 %v1146_v20, %v12407_v19  ;;  %6310 = vpow2.f32 %v6003_v10  ;;  %v552_v9 = vadd.f32 %v8013_v3, %v6152_v39  ;;  %v8235_v59 = vadd.f32 1.0, %v6305_v33 }
 0x1ef   : > { %12404 = vst [vmem:[#allocation71_spill] sm:$0xff] %v8210_v6  ;;  %v2947_v21 = vmax.f32 %v8210_v6, 0.0  ;;  %v1557_v46 = vsel %vm1554_vm6, %v1556_v25, %v1552_v24  ;;  %6312 = vrcp.f32 %v8223_v42  ;;  %v8238_v19 = vadd.f32 1.0, %v6307_v32  ;;  %v12413_v25 = vld [vmem:[#allocation56_spill] sm:$0xff] }
 0x1f0   : > { %v1052_v58 = vpop.f32.mrf.mxu1  ;;  %v3092_v30 = vmul.f32 %v3003_v23, %v1557_v46  ;;  %v1562_v1 = vmul.f32 %v8165_v43, %v1561_v8  ;;  %v2342_v4 = vand.u32 2147483648, %v8018_v53  ;;  %v6027_v52 = vmul.f32 -1.442695, %v8082_v16 }
 0x1f1   : > { %v1053_v26 = vadd.f32 %v1052_v58, %v963_v18  ;;  %3160 = vrot.lane.b32.xlu2 %v3091_v11, %s6705_s17  ;;  %v1575_v58 = vmul.f32 %v8183_v40, %v8125_v45  ;;  %v8254_v33 = vadd.f32 %v1147_v44, %v554_v56  ;;  %v2333_v50 = vsub.f32 1.0, %v8221_v51 }
 0x1f2   : > { %3032 = vrot.lane.b32.xlu1 %v2947_v21, %s6706_s10  ;;  %3162 = vrot.lane.b32.xlu0 %v3092_v30, %s6705_s17  ;;  %v6309_v10 = vpop.eup %6308  ;;  %v8261_v16 = vadd.f32 %v8008_v31, %v8155_v15  ;;  %v2309_v39 = vsel %vm8250_vm7, %v7944_v47, %v8138_v36  ;;  %6314 = vrcp.f32 %v8235_v59  ;;  %vm1565_vm8 = vweird.f32 %v8165_v43  ;;  %v12412_v15 = vld [vmem:[#allocation73_spill] sm:$0xff]  ;;  %v12426_v47 = vld [vmem:[#allocation8_spill] sm:$0xff] }
 0x1f3   : > { %v1142_v57 = vadd.f32 %v8118_v48, %v1053_v26  ;;  %12410 = vst [vmem:[#allocation51_spill] sm:$0xff] %v8254_v33  ;;  %v6157_v48 = vunpack.c.h.bf16 %v8181_v35  ;;  %v1570_v56 = vand.u32 2147483648, %v8097_v17  ;;  %v6153_v35 = vunpack.c.h.bf16 %v8198_v7 }
 0x1f4   : > { %v6311_v51 = vpop.eup %6310  ;;  %vm2322_vm9 = vweird.f32 %v8008_v31  ;;  %6316 = vrcp.f32 %v8238_v19  ;;  %v1308_v37 = vadd.f32 %v12412_v15, %v7834_v5  ;;  %v1563_v24 = vadd.f32 %v8165_v43, %v1562_v1 }
 0x1f5   : > { %v8267_v32 = vadd.f32 %v1142_v57, %v552_v9  ;;  %v1148_v44 = vpop.f32.mrf.mxu2  ;;  %v1576_v18 = vsub.f32 1.0, %v1575_v58  ;;  %v8278_v8 = vpop.eup %6312  ;;  %v555_v11 = vadd.f32 %v8013_v3, %v6157_v48  ;;  %v2950_v9 = vmax.f32 %v8254_v33, 0.0 }
 0x1f6   : > { %v965_v20 = vpop.f32.mrf.mxu0  ;;  %v1149_v21 = vadd.f32 %v1148_v44, %v12413_v25  ;;  %v8285_v26 = vadd.f32 1.0, %v8032_v2  ;;  %vm2321_vm10 = vweird.f32 %v7928_v60  ;;  %v8288_v30 = vadd.f32 1.0, %v6309_v10 }
 0x1f7   : > { %12411 = vst [vmem:[#allocation106_spill] sm:$0xff] %v8267_v32  ;;  %v2948_v7 = vmax.f32 %v8267_v32, 0.0  ;;  %vm1564_vm11 = vweird.f32 %v8097_v17  ;;  %v1568_v1 = vand.u32 2147483647, %v8097_v17  ;;  %6318 = vpow2.f32 %v6027_v52  ;;  %vm8349_vm0 = vmor %vm2321_vm10, %vm2322_vm9 }
 0x1f8   : > { %v1054_v46 = vpop.f32.mrf.mxu1  ;;  %v12414_v57 = vand.u32 2147483647, %v7866_v54  ;;  %v8298_v48 = vadd.f32 1.0, %v6311_v51  ;;  %vm8302_vm13 = vmor %vm1564_vm11, %vm1565_vm8  ;;  %v553_v10 = vadd.f32 %v8013_v3, %v6153_v35  ;;  %v6182_v54 = vld [vmem:[%s6790_s20 + $0x68] sm:$0xff]   ;;  %v2334_v17 = vmul.f32 %v8078_v14, %v2333_v50  ;;  %v8315_v25 = vpop.eup %6314  ;;  %v12420_v50 = vld [vmem:[#allocation7_spill] sm:$0xff]  ;;  %s6707_s20 = smov 96  }
 0x1f9   : > { %v1055_v44 = vadd.f32 %v1054_v46, %v965_v20  ;;  %3034 = vrot.lane.b32.xlu2 %v2948_v7, %s6706_s10  ;;  %v6004_v52 = vmul.f32 -1.442695, %v1308_v37  ;;  %v1567_v51 = vsel %vm8302_vm13, %v8165_v43, %v1563_v24  ;;  %v1577_v15 = vmul.f32 %v8183_v40, %v1576_v18  ;;  %v3005_v43 = vpop.permute.xlu2 %3004 }
 0x1fa   : > { %vm8294_vm12 = vcmp.eq.f32.partialorder %v12414_v57, 8.507059e+37  ;;  %3038 = vrot.lane.b32.xlu1 %v2950_v9, %s6706_s10  ;;  %v1571_v57 = vor.u32 1.1754944e-38, %v1570_v56  ;;  %v8317_v28 = vadd.f32 %v1149_v21, %v555_v11  ;;  %v1590_v20 = vmul.f32 %v8278_v8, %v8223_v42  ;;  %v8322_v46 = vpop.eup %6316 }
 0x1fb   : > { %v1144_v35 = vadd.f32 %v8162_v49, %v1055_v44  ;;  %v2133_v37 = vadd.f32 %v12420_v50, %v7536_v63  ;;  %6320 = vrcp.f32 %v8288_v30  ;;  %vm1569_vm14 = vcmp.eq.f32.partialorder %v1568_v1, 8.507059e+37 }
 0x1fc   : > { %12419 = vst [vmem:[#allocation73_spill] sm:$0xff] %v8317_v28  ;;  %v6160_v24 = vunpack.c.l.bf16 %v6182_v54  ;;  %6322 = vrcp.f32 %v8298_v48  ;;  %v1572_v56 = vsel %vm1569_vm14, %v1571_v57, %v1567_v51  ;;  %vm1580_vm15 = vweird.f32 %v8183_v40  ;;  %v12421_v57 = vld [vmem:[#allocation60_spill] sm:$0xff] }
 0x1fd   : > { %v8328_v18 = vadd.f32 %v1144_v35, %v553_v10  ;;  %v1151_v49 = vpop.f32.mrf.mxu2  ;;  %6324 = vpow2.f32 %v6004_v52  ;;  %v1605_v11 = vmul.f32 %v8315_v25, %v8235_v59  ;;  %v1578_v21 = vadd.f32 %v8183_v40, %v1577_v15  ;;  %v6319_v9 = vpop.eup %6318 }
 0x1fe   : > { %v1585_v7 = vand.u32 2147483648, %v8125_v45  ;;  %v3093_v1 = vmul.f32 %v3005_v43, %v1572_v56  ;;  %v2951_v2 = vmax.f32 %v8317_v28, 0.0  ;;  %v1591_v44 = vsub.f32 1.0, %v1590_v20 }
 0x1ff   : > { %v1620_v10 = vmul.f32 %v8322_v46, %v8238_v19  ;;  %v556_v51 = vadd.f32 %v8013_v3, %v6160_v24  ;;  %v1152_v35 = vadd.f32 %v1151_v49, %v12421_v57  ;;  %v2949_v52 = vmax.f32 %v8328_v18, 0.0 }
 0x200   : > { %v6161_v50 = vunpack.c.h.bf16 %v6182_v54  ;;  %v8343_v15 = vor.u32 1.1754944e-38, %v2342_v4  ;;  %v6029_v43 = vmul.f32 -1.442695, %v2133_v37  ;;  %vm1579_vm1 = vweird.f32 %v8125_v45 }
 0x201   : > { %v1583_v24 = vand.u32 2147483647, %v8125_v45  ;;  %3040 = vrot.lane.b32.xlu2 %v2951_v2, %s6706_s10  ;;  %v8357_v54 = vpop.eup %6320  ;;  %6326 = vrcp.f32 %v8285_v26  ;;  %v8372_v45 = vsel %vm8294_vm12, %v7965_v41, %v2309_v39  ;;  %v1606_v37 = vsub.f32 1.0, %v1605_v11  ;;  %vm8376_vm3 = vmor %vm1579_vm1, %vm1580_vm15  ;;  %3036 = vrot.lane.b32.xlu0 %v2949_v52, %s6706_s10 }
 0x202   : > { %3164 = vrot.lane.b32.xlu1 %v3093_v1, %s6705_s17  ;;  %v8381_v49 = vpop.eup %6322  ;;  %v8384_v23 = vadd.f32 %v8078_v14, %v2334_v17  ;;  %v8388_v36 = vadd.f32 %v12426_v47, %v7523_v62  ;;  %v1582_v41 = vsel %vm8376_vm3, %v8183_v40, %v1578_v21  ;;  %v1621_v39 = vsub.f32 1.0, %v1620_v10  ;;  %v3007_v1 = vpop.permute.xlu0 %3006  ;;  %v12428_v21 = vld [vmem:[#allocation65_spill] sm:$0xff] }
 0x203   : > { %v6325_v58 = vpop.eup %6324  ;;  %v1586_v11 = vor.u32 1.1754944e-38, %v1585_v7  ;;  %v8393_v2 = vadd.f32 %v1152_v35, %v556_v51  ;;  %v1592_v57 = vmul.f32 %v8278_v8, %v1591_v44  ;;  %v557_v52 = vadd.f32 %v8013_v3, %v6161_v50  ;;  %v12429_v51 = vld [vmem:[#allocation75_spill] sm:$0xff] }
 0x204   : > { %v8397_v17 = vadd.f32 1.0, %v6319_v9  ;;  %6328 = vpow2.f32 %v6029_v43  ;;  %vm1609_vm4 = vweird.f32 %v8235_v59  ;;  %vm1584_vm5 = vcmp.eq.f32.partialorder %v1583_v24, 8.507059e+37 }
 0x205   : > { %12427 = vst [vmem:[#allocation56_spill] sm:$0xff] %v8393_v2  ;;  %v1153_v47 = vpop.f32.mrf.mxu2  ;;  %v1607_v56 = vmul.f32 %v8315_v25, %v1606_v37  ;;  %v1587_v40 = vsel %vm1584_vm5, %v1586_v11, %v1582_v41  ;;  %v1650_v7 = vmul.f32 %v8381_v49, %v8298_v48  ;;  %v1309_v44 = vadd.f32 %v12429_v51, %v7887_v27 }
 0x206   : > { %v1154_v10 = vadd.f32 %v1153_v47, %v12428_v21  ;;  %v3094_v35 = vmul.f32 %v3007_v1, %v1587_v40  ;;  %v1622_v3 = vmul.f32 %v8322_v46, %v1621_v39  ;;  %v1635_v9 = vmul.f32 %v8357_v54, %v8288_v30 }
 0x207   : > { %v8409_v50 = vpop.eup %6326  ;;  %v1593_v43 = vadd.f32 %v8278_v8, %v1592_v57  ;;  %vm1595_vm6 = vweird.f32 %v8278_v8  ;;  %v2952_v37 = vmax.f32 %v8393_v2, 0.0  ;;  %vm2337_vm7 = vweird.f32 %v8078_v14 }
 0x208   : > { %v8413_v24 = vadd.f32 %v1154_v10, %v557_v52  ;;  %v8417_v41 = vadd.f32 1.0, %v6325_v58  ;;  %vm1610_vm8 = vweird.f32 %v8315_v25  ;;  %vm1594_vm9 = vweird.f32 %v8223_v42 }
 0x209   : > { %v1600_v39 = vand.u32 2147483648, %v8223_v42  ;;  %3166 = vrot.lane.b32.xlu2 %v3094_v35, %s6705_s17  ;;  %v1608_v11 = vadd.f32 %v8315_v25, %v1607_v56  ;;  %v1598_v1 = vand.u32 2147483647, %v8223_v42  ;;  %3042 = vrot.lane.b32.xlu0 %v2952_v37, %s6706_s10  ;;  %v1651_v57 = vsub.f32 1.0, %v1650_v7  ;;  %vm8433_vm11 = vmor %vm1594_vm9, %vm1595_vm6 }
 0x20a   : > { %12430 = vst [vmem:[#allocation7_spill] sm:$0xff] %v8413_v24  ;;  %v2953_v52 = vmax.f32 %v8413_v24, 0.0  ;;  %v8427_v47 = vpop.eup %6328  ;;  %vm2336_vm10 = vweird.f32 %v8018_v53  ;;  %v1615_v58 = vand.u32 2147483648, %v8235_v59  ;;  %v1623_v56 = vadd.f32 %v8322_v46, %v1622_v3  ;;  %v12436_v3 = vld [vmem:[#allocation74_spill] sm:$0xff]  ;;  %vm8457_vm14 = vmor %vm1609_vm4, %vm1610_vm8 }
 0x20b   : > { %vm1625_vm12 = vweird.f32 %v8322_v46  ;;  %v1636_v42 = vsub.f32 1.0, %v1635_v9  ;;  %v6005_v21 = vmul.f32 -1.442695, %v1309_v44  ;;  %v1613_v10 = vand.u32 2147483647, %v8235_v59  ;;  %vm8492_vm9 = vmor %vm2336_vm10, %vm2337_vm7 }
 0x20c   : > { %v1597_v7 = vsel %vm8433_vm11, %v8278_v8, %v1593_v43  ;;  %3044 = vrot.lane.b32.xlu1 %v2953_v52, %s6706_s10  ;;  %v1630_v51 = vand.u32 2147483648, %v8238_v19  ;;  %v12433_v35 = vand.u32 2147483647, %v7928_v60  ;;  %v1310_v9 = vadd.f32 %v12436_v3, %v7952_v29  ;;  %v3009_v43 = vpop.permute.xlu1 %3008 }
 0x20d   : > { %v1601_v8 = vor.u32 1.1754944e-38, %v1600_v39  ;;  %vm1624_vm15 = vweird.f32 %v8238_v19  ;;  %v1628_v60 = vand.u32 2147483647, %v8238_v19  ;;  %6330 = vrcp.f32 %v8417_v41 }
 0x20e   : > { %vm8447_vm13 = vcmp.eq.f32.partialorder %v12433_v35, 8.507059e+37  ;;  %v1612_v52 = vsel %vm8457_vm14, %v8315_v25, %v1608_v11  ;;  %vm1599_vm1 = vcmp.eq.f32.partialorder %v1598_v1, 8.507059e+37  ;;  %v1652_v40 = vmul.f32 %v8381_v49, %v1651_v57  ;;  %vm8470_vm3 = vmor %vm1624_vm15, %vm1625_vm12  ;;  %v3011_v35 = vpop.permute.xlu2 %3010  ;;  %v12441_v57 = vld [vmem:[#allocation78_spill] sm:$0xff] }
 0x20f   : > { %v1616_v39 = vor.u32 1.1754944e-38, %v1615_v58  ;;  %v1602_v3 = vsel %vm1599_vm1, %v1601_v8, %v1597_v7  ;;  %v1627_v19 = vsel %vm8470_vm3, %v8322_v46, %v1623_v56  ;;  %v1637_v4 = vmul.f32 %v8357_v54, %v1636_v42  ;;  %v3013_v56 = vpop.permute.xlu0 %3012 }
 0x210   : > { %6332 = vpow2.f32 %v6005_v21  ;;  %vm1614_vm4 = vcmp.eq.f32.partialorder %v1613_v10, 8.507059e+37  ;;  %v3095_v25 = vmul.f32 %v3009_v43, %v1602_v3  ;;  %v1631_v11 = vor.u32 1.1754944e-38, %v1630_v51 }
 0x211   : > { %v6006_v1 = vmul.f32 -1.442695, %v1310_v9  ;;  %v1311_v44 = vadd.f32 %v12441_v57, %v7999_v0  ;;  %v1617_v63 = vsel %vm1614_vm4, %v1616_v39, %v1612_v52  ;;  %vm1629_vm5 = vcmp.eq.f32.partialorder %v1628_v60, 8.507059e+37  ;;  %v12450_v57 = vld [vmem:[#allocation11_spill] sm:$0xff] }
 0x212   : > { %v3096_v62 = vmul.f32 %v3011_v35, %v1617_v63  ;;  %v1653_v58 = vadd.f32 %v8381_v49, %v1652_v40  ;;  %vm1655_vm6 = vweird.f32 %v8381_v49  ;;  %3168 = vrot.lane.b32.xlu0 %v3095_v25, %s6705_s17  ;;  %v1632_v46 = vsel %vm1629_vm5, %v1631_v11, %v1627_v19  ;;  %v12447_v40 = vld [vmem:[#allocation4_spill] sm:$0xff]  ;;  %v12453_v63 = vld [vmem:[#allocation37_spill] sm:$0xff] }
 0x213   : > { %v1660_v42 = vand.u32 2147483648, %v8298_v48  ;;  %v3097_v21 = vmul.f32 %v3013_v56, %v1632_v46  ;;  %v1638_v10 = vadd.f32 %v8357_v54, %v1637_v4  ;;  %vm1640_vm8 = vweird.f32 %v8357_v54  ;;  %v8486_v7 = vpop.eup %6330  ;;  %v12452_v56 = vld [vmem:[#allocation38_spill] sm:$0xff] }
 0x214   : > { %v6028_v51 = vmul.f32 -1.442695, %v8388_v36  ;;  %vm1654_vm11 = vweird.f32 %v8298_v48  ;;  %v1658_v9 = vand.u32 2147483647, %v8298_v48  ;;  %3170 = vrot.lane.b32.xlu1 %v3096_v62, %s6705_s17  ;;  %v1645_v4 = vand.u32 2147483648, %v8288_v30 }
 0x215   : > { %6334 = vrcp.f32 %v8397_v17  ;;  %v6007_v8 = vmul.f32 -1.442695, %v1311_v44  ;;  %vm8504_vm12 = vmor %vm1654_vm11, %vm1655_vm6  ;;  %3172 = vrot.lane.b32.xlu2 %v3097_v21, %s6705_s17  ;;  %vm1639_vm7 = vweird.f32 %v8288_v30  ;;  %v1643_v36 = vand.u32 2147483647, %v8288_v30 }
 0x216   : > { %v6333_v48 = vpop.eup %6332  ;;  %v2339_v62 = vsel %vm8492_vm9, %v8078_v14, %v8384_v23  ;;  %v12446_v60 = vsel %vm8349_vm0, %v8008_v31, %v8261_v16  ;;  %v2134_v59 = vadd.f32 %v12447_v40, %v7550_v22  ;;  %v1657_v30 = vsel %vm8504_vm12, %v8381_v49, %v1653_v58  ;;  %vm8530_vm10 = vmor %vm1639_vm7, %vm1640_vm8  ;;  %v3017_v31 = vpop.permute.xlu2 %3016 }
 0x217   : > { %v2329_v52 = vsel %vm8447_vm13, %v7987_v13, %v12446_v60  ;;  %6336 = vpow2.f32 %v6006_v1  ;;  %v1661_v20 = vor.u32 1.1754944e-38, %v1660_v42  ;;  %v1642_v13 = vsel %vm8530_vm10, %v8357_v54, %v1638_v10 }
 0x218   : > { %v1665_v16 = vmul.f32 %v8486_v7, %v8417_v41  ;;  %6338 = vpow2.f32 %v6028_v51  ;;  %v2347_v49 = vmul.f32 %v8409_v50, %v8285_v26  ;;  %vm1659_vm0 = vcmp.eq.f32.partialorder %v1658_v9, 8.507059e+37 }
 0x219   : > { %v1646_v23 = vor.u32 1.1754944e-38, %v1645_v4  ;;  %6340 = vpow2.f32 %v6007_v8  ;;  %v1323_v37 = vadd.f32 %v7818_v12, %v8046_v55  ;;  %v1662_v39 = vsel %vm1659_vm0, %v1661_v20, %v1657_v30  ;;  %v12454_v4 = vld [vmem:[#allocation103_spill] sm:$0xff] }
 0x21a   : > { %vm1644_vm13 = vcmp.eq.f32.partialorder %v1643_v36, 8.507059e+37  ;;  %v6030_v35 = vmul.f32 -1.442695, %v2134_v59  ;;  %v1322_v3 = vadd.f32 %v7814_v34, %v7989_v61  ;;  %v3099_v54 = vmul.f32 %v3017_v31, %v1662_v39  ;;  %v3015_v25 = vpop.permute.xlu1 %3014  ;;  %v12458_v31 = vld [vmem:[#allocation32_spill] sm:$0xff] }
 0x21b   : > { %v1647_v19 = vsel %vm1644_vm13, %v1646_v23, %v1642_v13  ;;  %v8545_v11 = vpop.eup %6334  ;;  %v8548_v1 = vadd.f32 1.0, %v8427_v47  ;;  %v2135_v44 = vadd.f32 %v12450_v57, %v7569_v38  ;;  %v1666_v46 = vsub.f32 1.0, %v1665_v16  ;;  %v12459_v57 = vld [vmem:[#allocation105_spill] sm:$0xff]  ;;  %v12476_v38 = vld [vmem:[#allocation91_spill] sm:$0xff] }
 0x21c   : > { %v3098_v58 = vmul.f32 %v3015_v25, %v1647_v19  ;;  %v12451_v12 = vand.u32 2147483647, %v8018_v53  ;;  %v8556_v42 = vmul.f32 %v12452_v56, %v8372_v45  ;;  %v2357_v34 = vand.u32 2147483648, %v8285_v26  ;;  %3176 = vrot.lane.b32.xlu1 %v3099_v54, %s6705_s17  ;;  %v12455_v53 = vld [vmem:[#allocation81_spill] sm:$0xff]  ;;  %v12479_v56 = vld [vmem:[#allocation72_spill] sm:$0xff] }
 0x21d   : > { %v8559_v21 = vadd.f32 1.0, %v6333_v48  ;;  %v6337_v47 = vpop.eup %6336  ;;  %v8564_v51 = vmul.f32 %v12453_v63, %v2329_v52  ;;  %v6019_v9 = vmul.f32 -1.442695, %v1323_v37  ;;  %v1312_v8 = vadd.f32 %v12455_v53, %v12454_v4  ;;  %v12457_v52 = vld [vmem:[#allocation95_spill] sm:$0xff] }
 0x21e   : > { %vm2341_vm14 = vcmp.eq.f32.partialorder %v12451_v12, 8.507059e+37  ;;  %3174 = vrot.lane.b32.xlu0 %v3098_v58, %s6705_s17  ;;  %v6339_v45 = vpop.eup %6338  ;;  %v2362_v43 = vmul.f32 %v8545_v11, %v8397_v17  ;;  %v2348_v36 = vsub.f32 1.0, %v2347_v49  ;;  %6342 = vpow2.f32 %v6030_v35 }
 0x21f   : > { %v2344_v10 = vsel %vm2341_vm14, %v8343_v15, %v2339_v62  ;;  %v6018_v48 = vmul.f32 -1.442695, %v1322_v3  ;;  %v6341_v60 = vpop.eup %6340  ;;  %6344 = vrcp.f32 %v8548_v1  ;;  %v6031_v15 = vmul.f32 -1.442695, %v2135_v44  ;;  %v12456_v62 = vld [vmem:[#allocation104_spill] sm:$0xff]  ;;  %v12460_v44 = vld [vmem:[#allocation79_spill] sm:$0xff] }
 0x220   : > { %v1324_v40 = vadd.f32 %v12457_v52, %v12456_v62  ;;  %v1667_v59 = vmul.f32 %v8486_v7, %v1666_v46  ;;  %v2355_v30 = vand.u32 2147483647, %v8285_v26  ;;  %v8576_v14 = vor.u32 1.1754944e-38, %v2357_v34  ;;  %v12463_v34 = vld [vmem:[#allocation59_spill] sm:$0xff]  ;;  %v12467_v52 = vld [vmem:[#allocation64_spill] sm:$0xff] }
 0x221   : > { %6346 = vrcp.f32 %v8559_v21  ;;  %v8579_v20 = vadd.f32 1.0, %v6337_v47  ;;  %v8582_v13 = vmul.f32 %v12458_v31, %v2344_v10  ;;  %v2370_v16 = vand.u32 2147483647, %v8397_v17  ;;  %v12464_v47 = vld [vmem:[#allocation10_spill] sm:$0xff] }
 0x222   : > { %vm2351_vm15 = vweird.f32 %v8285_v26  ;;  %6348 = vpow2.f32 %v6019_v9  ;;  %v6008_v49 = vmul.f32 -1.442695, %v1312_v8  ;;  %v2363_v23 = vsub.f32 1.0, %v2362_v43 }
 0x223   : > { %v2349_v37 = vmul.f32 %v8409_v50, %v2348_v36  ;;  %6350 = vpow2.f32 %v6018_v48  ;;  %v8587_v39 = vadd.f32 1.0, %v6341_v60  ;;  %v8589_v35 = vpop.permute.xlu2 %3022  ;;  %v6020_v3 = vmul.f32 -1.442695, %v1324_v40  ;;  %v12468_v40 = vld [vmem:[#allocation5_spill] sm:$0xff] }
 0x224   : > { %6352 = vpow2.f32 %v6031_v15  ;;  %v1668_v54 = vadd.f32 %v8486_v7, %v1667_v59  ;;  %vm1670_vm1 = vweird.f32 %v8486_v7  ;;  %v6343_v19 = vpop.eup %6342  ;;  %v8593_v25 = vadd.f32 1.0, %v6339_v45 }
 0x225   : > { %6354 = vrcp.f32 %v8579_v20  ;;  %v1313_v58 = vadd.f32 %v12460_v44, %v12459_v57  ;;  %v1675_v46 = vand.u32 2147483648, %v8417_v41  ;;  %v8599_v12 = vpop.eup %6344  ;;  %vm8601_vm3 = vcmp.eq.f32.partialorder %v2355_v30, 8.507059e+37 }
 0x226   : > { %v2136_v10 = vadd.f32 %v12464_v47, %v12463_v34  ;;  %6356 = vpow2.f32 %v6008_v49  ;;  %vm1669_vm4 = vweird.f32 %v8417_v41  ;;  %v1673_v63 = vand.u32 2147483647, %v8417_v41  ;;  %v12475_v34 = vld [vmem:[#allocation70_spill] sm:$0xff] }
 0x227   : > { %v8609_v9 = vpop.eup %6346  ;;  %vm2366_vm5 = vweird.f32 %v8397_v17  ;;  %v2372_v53 = vand.u32 2147483648, %v8397_v17  ;;  %v2350_v8 = vadd.f32 %v8409_v50, %v2349_v37  ;;  %vm2352_vm6 = vweird.f32 %v8409_v50  ;;  %vm8618_vm8 = vmor %vm1669_vm4, %vm1670_vm1 }
 0x228   : > { %6358 = vrcp.f32 %v8587_v39  ;;  %v6349_v43 = vpop.eup %6348  ;;  %v2364_v41 = vmul.f32 %v8545_v11, %v2363_v23  ;;  %v8623_v36 = vadd.f32 1.0, %v6343_v19  ;;  %v1672_v48 = vsel %vm8618_vm8, %v8486_v7, %v1668_v54  ;;  %vm8644_vm7 = vmor %vm2351_vm15, %vm2352_vm6  ;;  %v12473_v54 = vld [vmem:[#allocation69_spill] sm:$0xff]  ;;  %v12474_v19 = vld [vmem:[#allocation14_spill] sm:$0xff] }
 0x229   : > { %6360 = vpow2.f32 %v6020_v3  ;;  %v6351_v60 = vpop.eup %6350  ;;  %v2392_v15 = vmul.f32 %v8599_v12, %v8548_v1  ;;  %v2137_v59 = vadd.f32 %v12468_v40, %v12467_v52  ;;  %v6009_v30 = vmul.f32 -1.442695, %v1313_v58 }
 0x22a   : > { %v1676_v31 = vor.u32 1.1754944e-38, %v1675_v46  ;;  %v6353_v49 = vpop.eup %6352  ;;  %6362 = vrcp.f32 %v8593_v25  ;;  %vm2367_vm9 = vweird.f32 %v8545_v11  ;;  %v6032_v23 = vmul.f32 -1.442695, %v2136_v10 }
 0x22b   : > { %vm1674_vm11 = vcmp.eq.f32.partialorder %v1673_v63, 8.507059e+37  ;;  %v8634_v37 = vpop.eup %6354  ;;  %vm8636_vm12 = vcmp.eq.f32.partialorder %v2370_v16, 8.507059e+37  ;;  %v2138_v44 = vadd.f32 %v12474_v19, %v12473_v54  ;;  %v8650_v58 = vadd.f32 1.0, %v6349_v43  ;;  %v8652_v10 = vpop.permute.xlu2 %3046  ;;  %vm8682_vm10 = vmor %vm2366_vm5, %vm2367_vm9 }
 0x22c   : > { %v1677_v46 = vsel %vm1674_vm11, %v1676_v31, %v1672_v48  ;;  %v3019_v47 = vpop.permute.xlu0 %3018  ;;  %v1680_v16 = vmul.f32 %v8609_v9, %v8559_v21  ;;  %v6357_v63 = vpop.eup %6356  ;;  %v2354_v26 = vsel %vm8644_vm7, %v8409_v50, %v2350_v8  ;;  %6364 = vrcp.f32 %v8623_v36 }
 0x22d   : > { %v8660_v45 = vadd.f32 1.0, %v6351_v60  ;;  %v3100_v40 = vmul.f32 %v3019_v47, %v1677_v46  ;;  %v2365_v43 = vadd.f32 %v8545_v11, %v2364_v41  ;;  %v2393_v48 = vsub.f32 1.0, %v2392_v15 }
 0x22e   : > { %v8662_v19 = vpop.eup %6358  ;;  %v6033_v31 = vmul.f32 -1.442695, %v2137_v59  ;;  %6366 = vpow2.f32 %v6009_v30  ;;  %v8665_v52 = vadd.f32 1.0, %v6353_v49  ;;  %v1325_v3 = vadd.f32 %v12476_v38, %v12475_v34 }
 0x22f   : > { %v6361_v54 = vpop.eup %6360  ;;  %6368 = vpow2.f32 %v6032_v23  ;;  %v1695_v50 = vmul.f32 %v8634_v37, %v8579_v20  ;;  %3178 = vrot.lane.b32.xlu2 %v3100_v40, %s6705_s17  ;;  %v2359_v8 = vsel %vm8601_vm3, %v8576_v14, %v2354_v26  ;;  %v6034_v41 = vmul.f32 -1.442695, %v2138_v44  ;;  %v12480_v14 = vld [vmem:[#allocation82_spill] sm:$0xff] }
 0x230   : > { %6370 = vrcp.f32 %v8650_v58  ;;  %v1681_v60 = vsub.f32 1.0, %v1680_v16  ;;  %v8676_v15 = vpop.eup %6362  ;;  %v8687_v59 = vadd.f32 1.0, %v6357_v63  ;;  %v1314_v30 = vadd.f32 %v12480_v14, %v12479_v56  ;;  %v12481_v40 = vld [vmem:[#allocation42_spill] sm:$0xff] }
 0x231   : > { %6372 = vrcp.f32 %v8660_v45  ;;  %v1710_v49 = vmul.f32 %v8662_v19, %v8587_v39  ;;  %v2369_v23 = vsel %vm8682_vm10, %v8545_v11, %v2365_v43  ;;  %v2394_v17 = vmul.f32 %v8599_v12, %v2393_v48 }
 0x232   : > { %6374 = vpow2.f32 %v6033_v31  ;;  %v8697_v44 = vadd.f32 1.0, %v6361_v54  ;;  %v8699_v46 = vpop.eup %6364  ;;  %v2373_v47 = vor.u32 1.1754944e-38, %v2372_v53  ;;  %v6021_v16 = vmul.f32 -1.442695, %v1325_v3 }
 0x233   : > { %6376 = vrcp.f32 %v8665_v52  ;;  %v1696_v63 = vsub.f32 1.0, %v1695_v50  ;;  %v8703_v14 = vmul.f32 %v12481_v40, %v2359_v8  ;;  %v3155_v11 = vpop.permute.xlu2 %3154  ;;  %v1682_v43 = vmul.f32 %v8609_v9, %v1681_v60  ;;  %v8707_v48 = vpop.permute.xlu1 %3020  ;;  %v12482_v60 = vld [vmem:[#allocation99_spill] sm:$0xff] }
 0x234   : > { %v6367_v26 = vpop.eup %6366  ;;  %6378 = vpow2.f32 %v6034_v41  ;;  %v8711_v53 = vsel %vm8636_vm12, %v2373_v47, %v2369_v23  ;;  %v6010_v31 = vmul.f32 -1.442695, %v1314_v30  ;;  %v3151_v3 = vpop.permute.xlu0 %3150  ;;  %v1711_v50 = vsub.f32 1.0, %v1710_v49  ;;  %v12483_v30 = vld [vmem:[#allocation84_spill] sm:$0xff] }
 0x235   : > { %v6369_v54 = vpop.eup %6368  ;;  %6380 = vrcp.f32 %v8687_v59  ;;  %v8717_v38 = vadd.f32 %v8599_v12, %v2394_v17  ;;  %v3246_v40 = vadd.f32 %v3151_v3, %v12482_v60  ;;  %v8724_v7 = vadd.f32 1.0, %v6367_v26 }
 0x236   : > { %v8714_v8 = vpop.eup %6370  ;;  %6382 = vrcp.f32 %v8697_v44  ;;  %v1315_v23 = vadd.f32 %v12483_v30, %v8210_v6  ;;  %v1697_v49 = vmul.f32 %v8634_v37, %v1696_v63  ;;  %v1683_v17 = vadd.f32 %v8609_v9, %v1682_v43  ;;  %v12485_v6 = vld [vmem:[#allocation87_spill] sm:$0xff] }
 0x237   : > { %v8722_v22 = vpop.eup %6372  ;;  %6384 = vpow2.f32 %v6021_v16  ;;  %vm1685_vm0 = vweird.f32 %v8609_v9  ;;  %v1690_v41 = vand.u32 2147483648, %v8559_v21  ;;  %v4238_v34 = vmax.f32 %v3246_v40, 0.0  ;;  %3342 = vrot.lane.b32.xlu2 %v3246_v40, %s6707_s20 }
 0x238   : > { %v6375_v47 = vpop.eup %6374  ;;  %v8735_v26 = vadd.f32 1.0, %v6369_v54  ;;  %6386 = vpow2.f32 %v6010_v31  ;;  %v1712_v16 = vmul.f32 %v8662_v19, %v1711_v50  ;;  %v1890_v63 = vmul.f32 %v8714_v8, %v8650_v58 }
 0x239   : > { %v8733_v3 = vpop.eup %6376  ;;  %v1875_v43 = vmul.f32 %v8722_v22, %v8660_v45  ;;  %v8745_v30 = vadd.f32 %v3155_v11, %v8564_v51  ;;  %vm1684_vm13 = vweird.f32 %v8559_v21  ;;  %v1688_v40 = vand.u32 2147483647, %v8559_v21  ;;  %4302 = vrot.lane.b32.xlu0 %v4238_v34, %s6706_s10 }
 0x23a   : > { %12484 = vst [vmem:[#allocation60_spill] sm:$0xff] %v8733_v3  ;;  %v8740_v60 = vpop.eup %6378  ;;  %v8752_v31 = vadd.f32 1.0, %v6375_v47  ;;  %6388 = vrcp.f32 %v8724_v7  ;;  %v6011_v50 = vmul.f32 -1.442695, %v1315_v23  ;;  %v1318_v56 = vadd.f32 %v12485_v6, %v8254_v33  ;;  %vm8759_vm14 = vmor %vm1684_vm13, %vm1685_vm0 }
 0x23b   : > { %v8750_v54 = vpop.eup %6380  ;;  %v1698_v21 = vadd.f32 %v8634_v37, %v1697_v49  ;;  %vm1700_vm15 = vweird.f32 %v8634_v37  ;;  %v1687_v34 = vsel %vm8759_vm14, %v8609_v9, %v1683_v17  ;;  %v1691_v23 = vor.u32 1.1754944e-38, %v1690_v41  ;;  %v3153_v47 = vpop.permute.xlu1 %3152 }
 0x23c   : > { %v8763_v11 = vpop.eup %6382  ;;  %v8772_v6 = vpop.permute.xlu2 %3028  ;;  %v8775_v33 = vadd.f32 %v3153_v47, %v8556_v42  ;;  %v1713_v62 = vadd.f32 %v8662_v19, %v1712_v16  ;;  %vm1715_vm1 = vweird.f32 %v8662_v19  ;;  %v1891_v49 = vsub.f32 1.0, %v1890_v63  ;;  %v12488_v16 = vld [vmem:[#allocation83_spill] sm:$0xff] }
 0x23d   : > { %v8770_v57 = vpop.eup %6384  ;;  %v1876_v4 = vsub.f32 1.0, %v1875_v43  ;;  %v4240_v55 = vmax.f32 %v8745_v30, 0.0  ;;  %vm1689_vm3 = vcmp.eq.f32.partialorder %v1688_v40, 8.507059e+37  ;;  %v1720_v9 = vand.u32 2147483648, %v8587_v39 }
 0x23e   : > { %v6387_v41 = vpop.eup %6386  ;;  %v1692_v17 = vsel %vm1689_vm3, %v1691_v23, %v1687_v34  ;;  %v4239_v51 = vmax.f32 %v8775_v33, 0.0  ;;  %vm1714_vm4 = vweird.f32 %v8587_v39  ;;  %v1718_v42 = vand.u32 2147483647, %v8587_v39  ;;  %v12492_v23 = vld [vmem:[#allocation13_spill] sm:$0xff] }
 0x23f   : > { %v6014_v47 = vmul.f32 -1.442695, %v1318_v56  ;;  %v1316_v61 = vadd.f32 %v12488_v16, %v8267_v32  ;;  %v1705_v63 = vand.u32 2147483648, %v8579_v20  ;;  %v3101_v43 = vmul.f32 %v8707_v48, %v1692_v17  ;;  %4306 = vrot.lane.b32.xlu2 %v4240_v55, %s6706_s10  ;;  %vm8791_vm5 = vmor %vm1714_vm4, %vm1715_vm1  ;;  %v12491_v48 = vld [vmem:[#allocation80_spill] sm:$0xff]  ;;  %v12493_v16 = vld [vmem:[#allocation85_spill] sm:$0xff] }
 0x240   : > { %v8795_v34 = vpop.eup %6388  ;;  %vm1699_vm6 = vweird.f32 %v8579_v20  ;;  %v1703_v39 = vand.u32 2147483647, %v8579_v20  ;;  %4304 = vrot.lane.b32.xlu1 %v4239_v51, %s6706_s10  ;;  %v1717_v56 = vsel %vm8791_vm5, %v8662_v19, %v1713_v62  ;;  %v1892_v55 = vmul.f32 %v8714_v8, %v1891_v49 }
 0x241   : > { %v2139_v17 = vadd.f32 %v12492_v23, %v12491_v48  ;;  %6390 = vpow2.f32 %v6011_v50  ;;  %v1317_v32 = vadd.f32 %v12493_v16, %v8328_v18  ;;  %vm8810_vm8 = vmor %vm1699_vm6, %vm1700_vm15  ;;  %3180 = vrot.lane.b32.xlu0 %v3101_v43, %s6705_s17  ;;  %v1721_v20 = vor.u32 1.1754944e-38, %v1720_v9 }
 0x242   : > { %v8815_v51 = vadd.f32 1.0, %v6387_v41  ;;  %v1702_v62 = vsel %vm8810_vm8, %v8634_v37, %v1698_v21  ;;  %v1877_v19 = vmul.f32 %v8722_v22, %v1876_v4  ;;  %vm1719_vm9 = vcmp.eq.f32.partialorder %v1718_v42, 8.507059e+37 }
 0x243   : > { %vm2397_vm11 = vweird.f32 %v8599_v12  ;;  %6392 = vpow2.f32 %v6014_v47  ;;  %v6012_v50 = vmul.f32 -1.442695, %v1316_v61  ;;  %v1706_v49 = vor.u32 1.1754944e-38, %v1705_v63  ;;  %v3025_v23 = vpop.permute.xlu0 %3024  ;;  %v12496_v63 = vld [vmem:[#allocation6_spill] sm:$0xff] }
 0x244   : > { %v1722_v40 = vsel %vm1719_vm9, %v1721_v20, %v1717_v56  ;;  %vm1704_vm12 = vcmp.eq.f32.partialorder %v1703_v39, 8.507059e+37  ;;  %v1893_v9 = vadd.f32 %v8714_v8, %v1892_v55  ;;  %vm1895_vm7 = vweird.f32 %v8714_v8  ;;  %v8829_v41 = vpop.permute.xlu2 %3052 }
 0x245   : > { %v3103_v16 = vmul.f32 %v3025_v23, %v1722_v40  ;;  %vm2396_vm10 = vweird.f32 %v8548_v1  ;;  %v6013_v3 = vmul.f32 -1.442695, %v1317_v32  ;;  %v1707_v37 = vsel %vm1704_vm12, %v1706_v49, %v1702_v62  ;;  %v12497_v32 = vld [vmem:[#allocation89_spill] sm:$0xff] }
 0x246   : > { %vm1880_vm0 = vweird.f32 %v8722_v22  ;;  %v1900_v4 = vand.u32 2147483648, %v8650_v58  ;;  %v3102_v21 = vmul.f32 %v8589_v35, %v1707_v37  ;;  %v1878_v61 = vadd.f32 %v8722_v22, %v1877_v19  ;;  %vm8882_vm5 = vmor %vm2396_vm10, %vm2397_vm11  ;;  %v12506_v19 = vld [vmem:[#allocation90_spill] sm:$0xff] }
 0x247   : > { %vm1894_vm13 = vweird.f32 %v8650_v58  ;;  %v1898_v42 = vand.u32 2147483647, %v8650_v58  ;;  %v6391_v47 = vpop.eup %6390  ;;  %v2140_v43 = vadd.f32 %v12496_v63, %v7834_v5  ;;  %6394 = vpow2.f32 %v6012_v50  ;;  %3184 = vrot.lane.b32.xlu2 %v3103_v16, %s6705_s17 }
 0x248   : > { %v1320_v39 = vadd.f32 %v12497_v32, %v8393_v2  ;;  %v1885_v56 = vand.u32 2147483648, %v8660_v45  ;;  %vm8841_vm14 = vmor %vm1894_vm13, %vm1895_vm7  ;;  %6396 = vrcp.f32 %v8815_v51  ;;  %vm1879_vm15 = vweird.f32 %v8660_v45  ;;  %3182 = vrot.lane.b32.xlu1 %v3102_v21, %s6705_s17 }
 0x249   : > { %v1883_v58 = vand.u32 2147483647, %v8660_v45  ;;  %v1897_v55 = vsel %vm8841_vm14, %v8714_v8, %v1893_v9  ;;  %v6393_v20 = vpop.eup %6392  ;;  %v6035_v62 = vmul.f32 -1.442695, %v2139_v17  ;;  %6398 = vpow2.f32 %v6013_v3  ;;  %vm8854_vm1 = vmor %vm1879_vm15, %vm1880_vm0  ;;  %3344 = vrot.lane.b32.xlu0 %v8775_v33, %s6707_s20  ;;  %v12502_v8 = vld [vmem:[#allocation86_spill] sm:$0xff] }
 0x24a   : > { %v1725_v45 = vmul.f32 %v8750_v54, %v8687_v59  ;;  %v1901_v50 = vor.u32 1.1754944e-38, %v1900_v4  ;;  %v8863_v49 = vadd.f32 1.0, %v8770_v57  ;;  %v1319_v17 = vadd.f32 %v12502_v8, %v8317_v28 }
 0x24b   : > { %v1882_v40 = vsel %vm8854_vm1, %v8722_v22, %v1878_v61  ;;  %vm1899_vm3 = vcmp.eq.f32.partialorder %v1898_v42, 8.507059e+37  ;;  %6400 = vrcp.f32 %v8735_v26  ;;  %v6016_v23 = vmul.f32 -1.442695, %v1320_v39  ;;  %v3049_v9 = vpop.permute.xlu0 %3048 }
 0x24c   : > { %v1886_v16 = vor.u32 1.1754944e-38, %v1885_v56  ;;  %v1902_v33 = vsel %vm1899_vm3, %v1901_v50, %v1897_v55  ;;  %6402 = vrcp.f32 %v8752_v31  ;;  %v6036_v3 = vmul.f32 -1.442695, %v2140_v43  ;;  %v8872_v57 = vpop.permute.xlu1 %3026 }
 0x24d   : > { %vm1884_vm4 = vcmp.eq.f32.partialorder %v1883_v58, 8.507059e+37  ;;  %v3115_v37 = vmul.f32 %v3049_v9, %v1902_v33  ;;  %v6395_v4 = vpop.eup %6394  ;;  %6404 = vpow2.f32 %v6035_v62  ;;  %v8874_v21 = vadd.f32 1.0, %v6391_v47 }
 0x24e   : > { %v1887_v63 = vsel %vm1884_vm4, %v1886_v16, %v1882_v40  ;;  %v1726_v22 = vsub.f32 1.0, %v1725_v45  ;;  %v8876_v61 = vpop.eup %6396  ;;  %v12505_v43 = vand.u32 2147483648, %v8548_v1  ;;  %6406 = vrcp.f32 %v8863_v49  ;;  %v3161_v45 = vpop.permute.xlu2 %3160  ;;  %v12508_v40 = vld [vmem:[#allocation41_spill] sm:$0xff] }
 0x24f   : > { %v6015_v39 = vmul.f32 -1.442695, %v1319_v17  ;;  %v3114_v47 = vmul.f32 %v8652_v10, %v1887_v63  ;;  %v6399_v56 = vpop.eup %6398  ;;  %v2399_v35 = vsel %vm8882_vm5, %v8599_v12, %v8717_v38  ;;  %v8894_v58 = vadd.f32 1.0, %v6393_v20  ;;  %3208 = vrot.lane.b32.xlu2 %v3115_v37, %s6705_s17 }
 0x250   : > { %v2403_v32 = vor.u32 1.1754944e-38, %v12505_v43  ;;  %6408 = vpow2.f32 %v6016_v23  ;;  %v1740_v55 = vmul.f32 %v8795_v34, %v8724_v7  ;;  %v8899_v62 = vadd.f32 1.0, %v6395_v4 }
 0x251   : > { %6410 = vpow2.f32 %v6036_v3  ;;  %v1321_v10 = vadd.f32 %v12506_v19, %v8413_v24  ;;  %3206 = vrot.lane.b32.xlu1 %v3114_v47, %s6705_s17  ;;  %v1905_v12 = vmul.f32 %v8763_v11, %v8697_v44  ;;  %v8906_v38 = vpop.eup %6400  ;;  %v12507_v20 = vand.u32 2147483647, %v8548_v1  ;;  %v12509_v3 = vld [vmem:[#allocation17_spill] sm:$0xff] }
 0x252   : > { %6412 = vrcp.f32 %v8874_v21  ;;  %v1727_v50 = vmul.f32 %v8750_v54, %v1726_v22  ;;  %v1755_v8 = vmul.f32 %v8876_v61, %v8815_v51  ;;  %v8914_v17 = vpop.eup %6402  ;;  %v2899_v23 = vmul.f32 %v12508_v40, %v8711_v53 }
 0x253   : > { %vm2401_vm6 = vcmp.eq.f32.partialorder %v12507_v20, 8.507059e+37  ;;  %6414 = vpow2.f32 %v6015_v39  ;;  %v8920_v33 = vadd.f32 1.0, %v6399_v56  ;;  %v8922_v9 = vpop.eup %6404  ;;  %v8925_v1 = vadd.f32 1.0, %v8740_v60  ;;  %v3157_v63 = vpop.permute.xlu0 %3156 }
 0x254   : > { %v8918_v16 = vsel %vm2401_vm6, %v2403_v32, %v2399_v35  ;;  %v8929_v37 = vadd.f32 %v12509_v3, %v7887_v27  ;;  %6416 = vrcp.f32 %v8894_v58  ;;  %v1741_v4 = vsub.f32 1.0, %v1740_v55  ;;  %v8932_v22 = vpop.eup %6406  ;;  %v8935_v43 = vpop.permute.xlu1 %3050 }
 0x255   : > { %6418 = vrcp.f32 %v8899_v62  ;;  %v6017_v53 = vmul.f32 -1.442695, %v1321_v10  ;;  %v1906_v42 = vsub.f32 1.0, %v1905_v12  ;;  %v3249_v32 = vadd.f32 %v3157_v63, %v8582_v13 }
 0x256   : > { %v6409_v60 = vpop.eup %6408  ;;  %v1728_v39 = vadd.f32 %v8750_v54, %v1727_v50  ;;  %vm1730_vm8 = vweird.f32 %v8750_v54  ;;  %v1756_v47 = vsub.f32 1.0, %v1755_v8  ;;  %v2377_v56 = vmul.f32 %v8676_v15, %v8593_v25  ;;  %v8984_v5 = vpop.permute.xlu2 %3034 }
 0x257   : > { %v8942_v35 = vpop.eup %6410  ;;  %6420 = vrcp.f32 %v8920_v33  ;;  %v1748_v55 = vand.u32 2147483647, %v8724_v7  ;;  %v1735_v19 = vand.u32 2147483648, %v8687_v59  ;;  %v4241_v10 = vmax.f32 %v3249_v32, 0.0  ;;  %3348 = vrot.lane.b32.xlu2 %v3249_v32, %s6707_s20 }
 0x258   : > { %v8947_v12 = vpop.eup %6412  ;;  %v1742_v13 = vmul.f32 %v8795_v34, %v1741_v4  ;;  %v1920_v20 = vmul.f32 %v8932_v22, %v8863_v49  ;;  %vm1729_vm9 = vweird.f32 %v8687_v59  ;;  %v1733_v50 = vand.u32 2147483647, %v8687_v59 }
 0x259   : > { %v8955_v8 = vpop.eup %6414  ;;  %v8957_v40 = vadd.f32 1.0, %v6409_v60  ;;  %6422 = vpow2.f32 %v6017_v53  ;;  %vm8961_vm11 = vmor %vm1729_vm9, %vm1730_vm8  ;;  %v1907_v4 = vmul.f32 %v8763_v11, %v1906_v42  ;;  %3346 = vrot.lane.b32.xlu1 %v8745_v30, %s6707_s20  ;;  %4308 = vrot.lane.b32.xlu0 %v4241_v10, %s6706_s10  ;;  %v2407_v59 = vmul.f32 %v8699_v46, %v8623_v36 }
 0x25a   : > { %v8971_v63 = vpop.eup %6416  ;;  %v8973_v32 = vadd.f32 %v3161_v45, %v2899_v23  ;;  %v1732_v53 = vsel %vm8961_vm11, %v8750_v54, %v1728_v39  ;;  %v1757_v60 = vmul.f32 %v8876_v61, %v1756_v47  ;;  %v2378_v27 = vsub.f32 1.0, %v2377_v56 }
 0x25b   : > { %v8979_v42 = vpop.eup %6418  ;;  %vm1744_vm12 = vweird.f32 %v8724_v7  ;;  %vm1745_vm7 = vweird.f32 %v8795_v34  ;;  %v1750_v30 = vand.u32 2147483648, %v8724_v7  ;;  %v1736_v10 = vor.u32 1.1754944e-38, %v1735_v19 }
 0x25c   : > { %v1743_v45 = vadd.f32 %v8795_v34, %v1742_v13  ;;  %vm8987_vm10 = vcmp.eq.f32.partialorder %v1748_v55, 8.507059e+37  ;;  %v1921_v54 = vsub.f32 1.0, %v1920_v20  ;;  %vm1734_vm0 = vcmp.eq.f32.partialorder %v1733_v50, 8.507059e+37  ;;  %v3159_v3 = vpop.permute.xlu1 %3158  ;;  %vm9008_vm15 = vmor %vm1744_vm12, %vm1745_vm7 }
 0x25d   : > { %vm1910_vm13 = vweird.f32 %v8763_v11  ;;  %v8992_v39 = vpop.eup %6420  ;;  %v1737_v47 = vsel %vm1734_vm0, %v1736_v10, %v1732_v53  ;;  %v1908_v56 = vadd.f32 %v8763_v11, %v1907_v4  ;;  %vm1760_vm14 = vweird.f32 %v8876_v61 }
 0x25e   : > { %v2408_v19 = vsub.f32 1.0, %v2407_v59  ;;  %v4243_v48 = vmax.f32 %v8973_v32, 0.0  ;;  %v8998_v55 = vadd.f32 %v3159_v3, %v8703_v14  ;;  %v1758_v13 = vadd.f32 %v8876_v61, %v1757_v60 }
 0x25f   : > { %v2379_v20 = vmul.f32 %v8676_v15, %v2378_v27  ;;  %v9002_v50 = vpop.eup %6422  ;;  %v3104_v59 = vmul.f32 %v8872_v57, %v1737_v47  ;;  %vm1909_vm1 = vweird.f32 %v8697_v44  ;;  %v1915_v14 = vand.u32 2147483648, %v8697_v44 }
 0x260   : > { %v1765_v53 = vand.u32 2147483648, %v8815_v51  ;;  %vm9018_vm3 = vmor %vm1909_vm1, %vm1910_vm13  ;;  %v1913_v7 = vand.u32 2147483647, %v8697_v44  ;;  %v4242_v60 = vmax.f32 %v8998_v55, 0.0  ;;  %vm1759_vm4 = vweird.f32 %v8815_v51  ;;  %4312 = vrot.lane.b32.xlu2 %v4243_v48, %s6706_s10 }
 0x261   : > { %v1763_v57 = vand.u32 2147483647, %v8815_v51  ;;  %v1747_v10 = vsel %vm9008_vm15, %v8795_v34, %v1743_v45  ;;  %v1751_v47 = vor.u32 1.1754944e-38, %v1750_v30  ;;  %v1922_v3 = vmul.f32 %v8932_v22, %v1921_v54  ;;  %vm9036_vm5 = vmor %vm1759_vm4, %vm1760_vm14  ;;  %v3031_v51 = vpop.permute.xlu0 %3030  ;;  %3186 = vrot.lane.b32.xlu0 %v3104_v59, %s6705_s17 }
 0x262   : > { %v1912_v24 = vsel %vm9018_vm3, %v8763_v11, %v1908_v56  ;;  %v1762_v34 = vsel %vm9036_vm5, %v8876_v61, %v1758_v13  ;;  %4310 = vrot.lane.b32.xlu1 %v4242_v60, %s6706_s10  ;;  %v2409_v48 = vmul.f32 %v8699_v46, %v2408_v19  ;;  %v2380_v30 = vadd.f32 %v8676_v15, %v2379_v20  ;;  %v9055_v20 = vpop.permute.xlu2 %3040 }
 0x263   : > { %vm2382_vm6 = vweird.f32 %v8676_v15  ;;  %vm1925_vm8 = vweird.f32 %v8932_v22  ;;  %v1916_v11 = vor.u32 1.1754944e-38, %v1915_v14  ;;  %v1766_v45 = vor.u32 1.1754944e-38, %v1765_v53 }
 0x264   : > { %v2387_v54 = vand.u32 2147483648, %v8593_v25  ;;  %vm1914_vm9 = vcmp.eq.f32.partialorder %v1913_v7, 8.507059e+37  ;;  %vm1764_vm11 = vcmp.eq.f32.partialorder %v1763_v57, 8.507059e+37  ;;  %vm2381_vm12 = vweird.f32 %v8593_v25  ;;  %v9057_v59 = vpop.permute.xlu1 %3032 }
 0x265   : > { %v2385_v61 = vand.u32 2147483647, %v8593_v25  ;;  %v1752_v56 = vsel %vm8987_vm10, %v1751_v47, %v1747_v10  ;;  %v1923_v19 = vadd.f32 %v8932_v22, %v1922_v3  ;;  %v1917_v13 = vsel %vm1914_vm9, %v1916_v11, %v1912_v24  ;;  %vm9061_vm7 = vmor %vm2381_vm12, %vm2382_vm6 }
 0x266   : > { %v1767_v4 = vsel %vm1764_vm11, %v1766_v45, %v1762_v34  ;;  %v2410_v25 = vadd.f32 %v8699_v46, %v2409_v48  ;;  %vm2412_vm0 = vweird.f32 %v8699_v46  ;;  %v2384_v24 = vsel %vm9061_vm7, %v8676_v15, %v2380_v30  ;;  %v12526_v45 = vld [vmem:[#allocation36_spill] sm:$0xff] }
 0x267   : > { %v3106_v53 = vmul.f32 %v3031_v51, %v1767_v4  ;;  %v1785_v23 = vmul.f32 %v8979_v42, %v8899_v62  ;;  %v3116_v27 = vmul.f32 %v8935_v43, %v1917_v13  ;;  %v2417_v7 = vand.u32 2147483648, %v8623_v36 }
 0x268   : > { %v2388_v60 = vor.u32 1.1754944e-38, %v2387_v54  ;;  %v3105_v57 = vmul.f32 %v8772_v6, %v1752_v56  ;;  %vm2411_vm10 = vweird.f32 %v8623_v36  ;;  %v2415_v10 = vand.u32 2147483647, %v8623_v36 }
 0x269   : > { %vm2386_vm13 = vcmp.eq.f32.partialorder %v2385_v61, 8.507059e+37  ;;  %3190 = vrot.lane.b32.xlu2 %v3106_v53, %s6705_s17  ;;  %6424 = vrcp.f32 %v8957_v40  ;;  %v1930_v15 = vand.u32 2147483648, %v8863_v49  ;;  %vm9080_vm14 = vmor %vm2411_vm10, %vm2412_vm0  ;;  %v1770_v43 = vmul.f32 %v8947_v12, %v8874_v21  ;;  %3210 = vrot.lane.b32.xlu0 %v3116_v27, %s6705_s17  ;;  %v3163_v48 = vpop.permute.xlu0 %3162 }
 0x26a   : > { %v2389_v3 = vsel %vm2386_vm13, %v2388_v60, %v2384_v24  ;;  %vm1924_vm15 = vweird.f32 %v8863_v49  ;;  %v1928_v36 = vand.u32 2147483647, %v8863_v49  ;;  %v2414_v6 = vsel %vm9080_vm14, %v8699_v46, %v2410_v25  ;;  %3188 = vrot.lane.b32.xlu1 %v3105_v57, %s6705_s17  ;;  %v12527_v25 = vld [vmem:[#allocation16_spill] sm:$0xff]  ;;  %v3167_v24 = vpop.permute.xlu2 %3166 }
 0x26b   : > { %v1800_v44 = vmul.f32 %v8992_v39, %v8920_v33  ;;  %6426 = vrcp.f32 %v8925_v1  ;;  %v9097_v51 = vadd.f32 1.0, %v8922_v9  ;;  %v9100_v34 = vadd.f32 1.0, %v8955_v8  ;;  %vm9104_vm1 = vmor %vm1924_vm15, %vm1925_vm8 }
 0x26c   : > { %v2418_v46 = vor.u32 1.1754944e-38, %v2417_v7  ;;  %v1927_v30 = vsel %vm9104_vm1, %v8932_v22, %v1923_v19  ;;  %v1786_v11 = vsub.f32 1.0, %v1785_v23  ;;  %vm2416_vm3 = vcmp.eq.f32.partialorder %v2415_v10, 8.507059e+37  ;;  %v9124_v23 = vpop.permute.xlu1 %3038  ;;  %v12528_v7 = vld [vmem:[#allocation44_spill] sm:$0xff]  ;;  %v12529_v10 = vld [vmem:[#allocation45_spill] sm:$0xff] }
 0x26d   : > { %v2900_v9 = vmul.f32 %v12526_v45, %v2389_v3  ;;  %v6037_v54 = vmul.f32 -1.442695, %v8929_v37  ;;  %v1931_v8 = vor.u32 1.1754944e-38, %v1930_v15  ;;  %v1771_v56 = vsub.f32 1.0, %v1770_v43 }
 0x26e   : > { %v2419_v61 = vsel %vm2416_vm3, %v2418_v46, %v2414_v6  ;;  %v9114_v13 = vadd.f32 1.0, %v8942_v35  ;;  %vm1929_vm4 = vcmp.eq.f32.partialorder %v1928_v36, 8.507059e+37  ;;  %v1801_v14 = vsub.f32 1.0, %v1800_v44 }
 0x26f   : > { %v3252_v4 = vadd.f32 %v3163_v48, %v2900_v9  ;;  %v9116_v53 = vpop.eup %6424  ;;  %v2142_v22 = vadd.f32 %v12527_v25, %v7952_v29  ;;  %6428 = vrcp.f32 %v9100_v34  ;;  %v9122_v19 = vadd.f32 1.0, %v9002_v50 }
 0x270   : > { %v1932_v37 = vsel %vm1929_vm4, %v1931_v8, %v1927_v30  ;;  %6430 = vrcp.f32 %v9097_v51  ;;  %v1787_v27 = vmul.f32 %v8979_v42, %v1786_v11  ;;  %v2902_v60 = vmul.f32 %v12528_v7, %v2419_v61  ;;  %v12531_v30 = vld [vmem:[#allocation60_spill] sm:$0xff] }
 0x271   : > { %v3117_v35 = vmul.f32 %v8829_v41, %v1932_v37  ;;  %3354 = vrot.lane.b32.xlu2 %v3252_v4, %s6707_s20  ;;  %v9131_v57 = vpop.eup %6426  ;;  %v2901_v50 = vmul.f32 %v12529_v10, %v8918_v16  ;;  %6432 = vpow2.f32 %v6037_v54  ;;  %v1772_v15 = vmul.f32 %v8947_v12, %v1771_v56  ;;  %3350 = vrot.lane.b32.xlu0 %v8998_v55, %s6707_s20  ;;  %v12530_v16 = vld [vmem:[#allocation9_spill] sm:$0xff] }
 0x272   : > { %6434 = vrcp.f32 %v9114_v13  ;;  %v9139_v41 = vadd.f32 %v3167_v24, %v2902_v60  ;;  %v1802_v47 = vmul.f32 %v8992_v39, %v1801_v14  ;;  %v1845_v43 = vmul.f32 %v9116_v53, %v8957_v40 }
 0x273   : > { %3212 = vrot.lane.b32.xlu1 %v3117_v35, %s6705_s17  ;;  %v9145_v3 = vmul.f32 -1.442695, %v2142_v22  ;;  %v9149_v36 = vadd.f32 %v12530_v16, %v7999_v0  ;;  %6436 = vrcp.f32 %v9122_v19  ;;  %v1815_v55 = vmul.f32 %v8971_v63, %v8894_v58  ;;  %v3037_v37 = vpop.permute.xlu0 %3036 }
 0x274   : > { %v9155_v6 = vadd.f32 %v8979_v42, %v1787_v27  ;;  %vm1790_vm5 = vweird.f32 %v8979_v42  ;;  %v1793_v44 = vand.u32 2147483647, %v8899_v62  ;;  %v1795_v49 = vand.u32 2147483648, %v8899_v62 }
 0x275   : > { %v9160_v46 = vpop.eup %6428  ;;  %v1773_v48 = vadd.f32 %v8947_v12, %v1772_v15  ;;  %vm1774_vm6 = vweird.f32 %v8874_v21  ;;  %vm1775_vm8 = vweird.f32 %v8947_v12  ;;  %v2422_v11 = vmul.f32 %v12531_v30, %v8665_v52 }
 0x276   : > { %v9167_v45 = vpop.eup %6430  ;;  %v4246_v9 = vmax.f32 %v9139_v41, 0.0  ;;  %v1803_v54 = vadd.f32 %v8992_v39, %v1802_v47  ;;  %vm1805_vm9 = vweird.f32 %v8992_v39  ;;  %v1846_v8 = vsub.f32 1.0, %v1845_v43  ;;  %vm9184_vm11 = vmor %vm1774_vm6, %vm1775_vm8  ;;  %v3165_v47 = vpop.permute.xlu1 %3164 }
 0x277   : > { %v9172_v61 = vpop.eup %6432  ;;  %v1780_v56 = vand.u32 2147483648, %v8874_v21  ;;  %v4244_v14 = vmax.f32 %v3252_v4, 0.0  ;;  %v1816_v25 = vsub.f32 1.0, %v1815_v55  ;;  %v1810_v22 = vand.u32 2147483648, %v8920_v33 }
 0x278   : > { %v9176_v24 = vpop.eup %6434  ;;  %v1830_v35 = vmul.f32 %v9160_v46, %v9100_v34  ;;  %v1778_v7 = vand.u32 2147483647, %v8874_v21  ;;  %vm1804_vm12 = vweird.f32 %v8920_v33  ;;  %v1808_v4 = vand.u32 2147483647, %v8920_v33 }
 0x279   : > { %4318 = vrot.lane.b32.xlu2 %v4246_v9, %s6706_s10  ;;  %v9192_v60 = vpop.eup %6436  ;;  %vm1789_vm7 = vweird.f32 %v8899_v62  ;;  %vm9195_vm0 = vcmp.eq.f32.partialorder %v1793_v44, 8.507059e+37  ;;  %v1796_v15 = vor.u32 1.1754944e-38, %v1795_v49  ;;  %vm9201_vm10 = vmor %vm1804_vm12, %vm1805_vm9  ;;  %4314 = vrot.lane.b32.xlu0 %v4244_v14, %s6706_s10  ;;  %v2423_v33 = vsub.f32 1.0, %v2422_v11 }
 0x27a   : > { %vm9208_vm13 = vmor %vm1789_vm7, %vm1790_vm5  ;;  %v1777_v62 = vsel %vm9184_vm11, %v8947_v12, %v1773_v48  ;;  %v2452_v16 = vmul.f32 %v8914_v17, %v8752_v31  ;;  %v1807_v55 = vsel %vm9201_vm10, %v8992_v39, %v1803_v54  ;;  %v1847_v44 = vmul.f32 %v9116_v53, %v1846_v8 }
 0x27b   : > { %3352 = vrot.lane.b32.xlu1 %v8973_v32, %s6707_s20  ;;  %v1792_v49 = vsel %vm9208_vm13, %v8979_v42, %v9155_v6  ;;  %v1781_v11 = vor.u32 1.1754944e-38, %v1780_v56  ;;  %v1817_v12 = vmul.f32 %v8971_v63, %v1816_v25  ;;  %v1811_v48 = vor.u32 1.1754944e-38, %v1810_v22 }
 0x27c   : > { %v1831_v9 = vsub.f32 1.0, %v1830_v35  ;;  %vm1779_vm14 = vcmp.eq.f32.partialorder %v1778_v7, 8.507059e+37  ;;  %v9228_v14 = vadd.f32 %v3165_v47, %v2901_v50  ;;  %vm1809_vm15 = vcmp.eq.f32.partialorder %v1808_v4, 8.507059e+37  ;;  %v3043_v7 = vpop.permute.xlu0 %3042  ;;  %v12549_v35 = vld [vmem:[#allocation29_spill] sm:$0xff] }
 0x27d   : > { %v1782_v39 = vsel %vm1779_vm14, %v1781_v11, %v1777_v62  ;;  %vm1820_vm1 = vweird.f32 %v8971_v63  ;;  %v1812_v32 = vsel %vm1809_vm15, %v1811_v48, %v1807_v55  ;;  %v2424_v54 = vmul.f32 %v12531_v30, %v2423_v33 }
 0x27e   : > { %v2453_v8 = vsub.f32 1.0, %v2452_v16  ;;  %v3109_v27 = vmul.f32 %v3037_v37, %v1812_v32  ;;  %v1848_v21 = vadd.f32 %v9116_v53, %v1847_v44  ;;  %vm1850_vm3 = vweird.f32 %v9116_v53 }
 0x27f   : > { %v3107_v42 = vmul.f32 %v9057_v59, %v1782_v39  ;;  %v1818_v6 = vadd.f32 %v8971_v63, %v1817_v12  ;;  %v1823_v50 = vand.u32 2147483647, %v8894_v58  ;;  %v1855_v56 = vand.u32 2147483648, %v8957_v40  ;;  %v9245_v59 = vpop.permute.xlu2 %3172 }
 0x280   : > { %vm1835_vm4 = vweird.f32 %v9160_v46  ;;  %v1825_v25 = vand.u32 2147483648, %v8894_v58  ;;  %v4245_v22 = vmax.f32 %v9228_v14, 0.0  ;;  %vm1849_vm5 = vweird.f32 %v8957_v40 }
 0x281   : > { %v1853_v37 = vand.u32 2147483647, %v8957_v40  ;;  %3196 = vrot.lane.b32.xlu2 %v3109_v27, %s6705_s17  ;;  %vm1819_vm6 = vweird.f32 %v8894_v58  ;;  %vm9247_vm8 = vmor %vm1849_vm5, %vm1850_vm3  ;;  %3192 = vrot.lane.b32.xlu0 %v3107_v42, %s6705_s17  ;;  %v2425_v4 = vadd.f32 %v12531_v30, %v2424_v54  ;;  %vm2427_vm9 = vweird.f32 %v12531_v30 }
 0x282   : > { %v2437_v40 = vmul.f32 %v8906_v38, %v8735_v26  ;;  %v1797_v47 = vsel %vm9195_vm0, %v1796_v15, %v1792_v49  ;;  %v1832_v58 = vmul.f32 %v9160_v46, %v1831_v9  ;;  %vm9261_vm11 = vmor %vm1819_vm6, %vm1820_vm1  ;;  %v2454_v43 = vmul.f32 %v8914_v17, %v2453_v8 }
 0x283   : > { %v1852_v62 = vsel %vm9247_vm8, %v9116_v53, %v1848_v21  ;;  %4316 = vrot.lane.b32.xlu1 %v4245_v22, %s6706_s10  ;;  %v1822_v10 = vsel %vm9261_vm11, %v8971_v63, %v1818_v6  ;;  %v1856_v15 = vor.u32 1.1754944e-38, %v1855_v56  ;;  %vm2426_vm12 = vweird.f32 %v8665_v52 }
 0x284   : > { %v2432_v16 = vand.u32 2147483648, %v8665_v52  ;;  %vm1824_vm7 = vcmp.eq.f32.partialorder %v1823_v50, 8.507059e+37  ;;  %v1826_v55 = vor.u32 1.1754944e-38, %v1825_v25  ;;  %vm1854_vm0 = vcmp.eq.f32.partialorder %v1853_v37, 8.507059e+37  ;;  %vm9277_vm10 = vmor %vm2426_vm12, %vm2427_vm9  ;;  %v12548_v37 = vld [vmem:[#allocation101_spill] sm:$0xff] }
 0x285   : > { %v2430_v53 = vand.u32 2147483647, %v8665_v52  ;;  %vm2457_vm13 = vweird.f32 %v8914_v17  ;;  %v1857_v49 = vsel %vm1854_vm0, %v1856_v15, %v1852_v62  ;;  %v2429_v63 = vsel %vm9277_vm10, %v12531_v30, %v2425_v4 }
 0x286   : > { %v2438_v11 = vsub.f32 1.0, %v2437_v40  ;;  %v1827_v12 = vsel %vm1824_vm7, %v1826_v55, %v1822_v10  ;;  %v2455_v48 = vadd.f32 %v8914_v17, %v2454_v43  ;;  %v3112_v9 = vmul.f32 %v3043_v7, %v1857_v49  ;;  %v3169_v40 = vpop.permute.xlu0 %3168 }
 0x287   : > { %v2467_v39 = vmul.f32 %v9131_v57, %v8925_v1  ;;  %v1833_v32 = vadd.f32 %v9160_v46, %v1832_v58  ;;  %v3110_v54 = vmul.f32 %v9124_v23, %v1827_v12  ;;  %v2462_v52 = vand.u32 2147483648, %v8752_v31  ;;  %v12552_v58 = vld [vmem:[#allocation40_spill] sm:$0xff]  ;;  %v12566_v12 = vld [vmem:[#allocation103_spill] sm:$0xff] }
 0x288   : > { %v2433_v8 = vor.u32 1.1754944e-38, %v2432_v16  ;;  %v3108_v27 = vmul.f32 %v8984_v5, %v1797_v47  ;;  %vm2456_vm14 = vweird.f32 %v8752_v31  ;;  %v2460_v30 = vand.u32 2147483647, %v8752_v31 }
 0x289   : > { %vm2431_vm15 = vcmp.eq.f32.partialorder %v2430_v53, 8.507059e+37  ;;  %3202 = vrot.lane.b32.xlu2 %v3112_v9, %s6705_s17  ;;  %vm1834_vm1 = vweird.f32 %v9100_v34  ;;  %v1840_v21 = vand.u32 2147483648, %v9100_v34  ;;  %vm9300_vm3 = vmor %vm2456_vm14, %vm2457_vm13  ;;  %v2439_v5 = vmul.f32 %v8906_v38, %v2438_v11  ;;  %v9305_v6 = vpop.permute.xlu2 %3178  ;;  %3198 = vrot.lane.b32.xlu0 %v3110_v54, %s6705_s17  ;;  %v9336_v53 = vpop.permute.xlu1 %3044  ;;  %v12556_v9 = vld [vmem:[#allocation102_spill] sm:$0xff] }
 0x28a   : > { %v2434_v42 = vsel %vm2431_vm15, %v2433_v8, %v2429_v63  ;;  %v1838_v31 = vand.u32 2147483647, %v9100_v34  ;;  %v2459_v50 = vsel %vm9300_vm3, %v8914_v17, %v2455_v48  ;;  %v2497_v56 = vmul.f32 %v9176_v24, %v9114_v13  ;;  %vm9322_vm5 = vmor %vm1834_vm1, %vm1835_vm4  ;;  %v12553_v63 = vld [vmem:[#allocation48_spill] sm:$0xff] }
 0x28b   : > { %3194 = vrot.lane.b32.xlu1 %v3108_v27, %s6705_s17  ;;  %v2468_v25 = vsub.f32 1.0, %v2467_v39  ;;  %v9316_v22 = vadd.f32 1.0, %v9172_v61  ;;  %v2154_v7 = vadd.f32 %v12549_v35, %v12548_v37  ;;  %v2463_v4 = vor.u32 1.1754944e-38, %v2462_v52  ;;  %v12557_v39 = vld [vmem:[#allocation22_spill] sm:$0xff] }
 0x28c   : > { %v1860_v17 = vmul.f32 %v9192_v60, %v9122_v19  ;;  %v6039_v47 = vmul.f32 -1.442695, %v9149_v36  ;;  %v1837_v61 = vsel %vm9322_vm5, %v9160_v46, %v1833_v32  ;;  %vm2461_vm6 = vcmp.eq.f32.partialorder %v2460_v30, 8.507059e+37 }
 0x28d   : > { %v2903_v33 = vmul.f32 %v12552_v58, %v2434_v42  ;;  %v1841_v43 = vor.u32 1.1754944e-38, %v1840_v21  ;;  %v2464_v62 = vsel %vm2461_vm6, %v2463_v4, %v2459_v50  ;;  %v2440_v10 = vadd.f32 %v8906_v38, %v2439_v5  ;;  %v12571_v58 = vld [vmem:[#allocation54_spill] sm:$0xff] }
 0x28e   : > { %vm2442_vm4 = vweird.f32 %v8906_v38  ;;  %vm1839_vm8 = vcmp.eq.f32.partialorder %v1838_v31, 8.507059e+37  ;;  %v2498_v16 = vsub.f32 1.0, %v2497_v56  ;;  %v2469_v55 = vmul.f32 %v9131_v57, %v2468_v25 }
 0x28f   : > { %v3255_v15 = vadd.f32 %v3169_v40, %v2903_v33  ;;  %v1842_v44 = vsel %vm1839_vm8, %v1841_v43, %v1837_v61  ;;  %v1861_v36 = vsub.f32 1.0, %v1860_v17  ;;  %vm2441_vm9 = vweird.f32 %v8735_v26  ;;  %v12564_v43 = vld [vmem:[#allocation49_spill] sm:$0xff] }
 0x290   : > { %v2447_v46 = vand.u32 2147483648, %v8735_v26  ;;  %6438 = vpow2.f32 %v9145_v3  ;;  %v3111_v49 = vmul.f32 %v9055_v20, %v1842_v44  ;;  %v2905_v11 = vmul.f32 %v12553_v63, %v2464_v62  ;;  %vm9343_vm11 = vmor %vm2441_vm9, %vm2442_vm4  ;;  %v12565_v63 = vld [vmem:[#allocation46_spill] sm:$0xff] }
 0x291   : > { %v2445_v48 = vand.u32 2147483647, %v8735_v26  ;;  %3360 = vrot.lane.b32.xlu2 %v3255_v15, %s6707_s20  ;;  %6440 = vpow2.f32 %v6039_v47  ;;  %v2155_v32 = vadd.f32 %v12557_v39, %v12556_v9  ;;  %v2444_v3 = vsel %vm9343_vm11, %v8906_v38, %v2440_v10  ;;  %3356 = vrot.lane.b32.xlu0 %v9228_v14, %s6707_s20  ;;  %v9362_v52 = vpop.permute.xlu2 %3342  ;;  %v3171_v61 = vpop.permute.xlu1 %3170 }
 0x292   : > { %v2477_v20 = vand.u32 2147483648, %v8925_v1  ;;  %v9358_v54 = vadd.f32 %v9245_v59, %v2905_v11  ;;  %v2499_v26 = vmul.f32 %v9176_v24, %v2498_v16  ;;  %v2470_v8 = vadd.f32 %v9131_v57, %v2469_v55  ;;  %4430 = vst.msk [vmem:[#allocation3] sm:$0xff] %vm850_vm2, %v9362_v52 }
 0x293   : > { %3200 = vrot.lane.b32.xlu1 %v3111_v49, %s6705_s17  ;;  %vm2472_vm12 = vweird.f32 %v9131_v57  ;;  %6442 = vrcp.f32 %v9316_v22  ;;  %v6050_v38 = vmul.f32 -1.442695, %v2154_v7  ;;  %v1862_v14 = vmul.f32 %v9192_v60, %v1861_v36  ;;  %v3175_v36 = vpop.permute.xlu0 %3174 }
 0x294   : > { %v2448_v27 = vor.u32 1.1754944e-38, %v2447_v46  ;;  %vm2446_vm7 = vcmp.eq.f32.partialorder %v2445_v48, 8.507059e+37  ;;  %v2482_v59 = vmul.f32 %v9167_v45, %v9097_v51  ;;  %vm2471_vm0 = vweird.f32 %v8925_v1  ;;  %v12567_v48 = vld [vmem:[#allocation20_spill] sm:$0xff] }
 0x295   : > { %v2475_v30 = vand.u32 2147483647, %v8925_v1  ;;  %v6051_v21 = vmul.f32 -1.442695, %v2155_v32  ;;  %vm1865_vm10 = vweird.f32 %v9192_v60  ;;  %vm9375_vm13 = vmor %vm2471_vm0, %vm2472_vm12  ;;  %v2478_v5 = vor.u32 1.1754944e-38, %v2477_v20 }
 0x296   : > { %v2449_v23 = vsel %vm2446_vm7, %v2448_v27, %v2444_v3  ;;  %v6439_v31 = vpop.eup %6438  ;;  %v4249_v50 = vmax.f32 %v9358_v54, 0.0  ;;  %v2500_v56 = vadd.f32 %v9176_v24, %v2499_v26  ;;  %vm2502_vm14 = vweird.f32 %v9176_v24 }
 0x297   : > { %v2474_v1 = vsel %vm9375_vm13, %v9131_v57, %v2470_v8  ;;  %v6441_v25 = vpop.eup %6440  ;;  %v1863_v35 = vadd.f32 %v9192_v60, %v1862_v14  ;;  %v1870_v7 = vand.u32 2147483648, %v9122_v19  ;;  %v4247_v34 = vmax.f32 %v3255_v15, 0.0  ;;  %v12568_v14 = vld [vmem:[#allocation53_spill] sm:$0xff] }
 0x298   : > { %v2507_v4 = vand.u32 2147483648, %v9114_v13  ;;  %vm2501_vm15 = vweird.f32 %v9114_v13  ;;  %v2505_v17 = vand.u32 2147483647, %v9114_v13  ;;  %v2483_v40 = vsub.f32 1.0, %v2482_v59 }
 0x299   : > { %vm2476_vm1 = vcmp.eq.f32.partialorder %v2475_v30, 8.507059e+37  ;;  %4324 = vrot.lane.b32.xlu2 %v4249_v50, %s6706_s10  ;;  %v9391_v47 = vpop.eup %6442  ;;  %6444 = vpow2.f32 %v6050_v38  ;;  %vm1864_vm3 = vweird.f32 %v9122_v19  ;;  %v1868_v57 = vand.u32 2147483647, %v9122_v19  ;;  %vm9397_vm5 = vmor %vm2501_vm15, %vm2502_vm14  ;;  %4320 = vrot.lane.b32.xlu0 %v4247_v34, %s6706_s10  ;;  %v9414_v10 = vpop.permute.xlu2 %4306 }
 0x29a   : > { %v2479_v33 = vsel %vm2476_vm1, %v2478_v5, %v2474_v1  ;;  %6446 = vpow2.f32 %v6051_v21  ;;  %vm9404_vm6 = vmor %vm1864_vm3, %vm1865_vm10  ;;  %v2904_v62 = vmul.f32 %v12564_v43, %v2449_v23  ;;  %v2504_v19 = vsel %vm9397_vm5, %v9176_v24, %v2500_v56 }
 0x29b   : > { %3358 = vrot.lane.b32.xlu1 %v9139_v41, %s6707_s20  ;;  %v9416_v15 = vadd.f32 1.0, %v6441_v25  ;;  %v1867_v16 = vsel %vm9404_vm6, %v9192_v60, %v1863_v35  ;;  %v1871_v55 = vor.u32 1.1754944e-38, %v1870_v7  ;;  %v2508_v44 = vor.u32 1.1754944e-38, %v2507_v4  ;;  %v12570_v35 = vld [vmem:[#allocation34_spill] sm:$0xff] }
 0x29c   : > { %v3256_v46 = vadd.f32 %v3171_v61, %v2904_v62  ;;  %vm2506_vm4 = vcmp.eq.f32.partialorder %v2505_v17, 8.507059e+37  ;;  %v2484_v49 = vmul.f32 %v9167_v45, %v2483_v40  ;;  %v2906_v24 = vmul.f32 %v12565_v63, %v2479_v33  ;;  %v3177_v17 = vpop.permute.xlu1 %3176 }
 0x29d   : > { %vm1869_vm8 = vcmp.eq.f32.partialorder %v1868_v57, 8.507059e+37  ;;  %v2509_v11 = vsel %vm2506_vm4, %v2508_v44, %v2504_v19  ;;  %v2512_v41 = vmul.f32 %v9391_v47, %v9316_v22  ;;  %v2144_v39 = vadd.f32 %v12567_v48, %v12566_v12 }
 0x29e   : > { %v1872_v32 = vsel %vm1869_vm8, %v1871_v55, %v1867_v16  ;;  %v9427_v3 = vadd.f32 %v3175_v36, %v2906_v24  ;;  %v9429_v20 = vadd.f32 1.0, %v6439_v31  ;;  %6448 = vrcp.f32 %v9416_v15 }
 0x29f   : > { %v6445_v60 = vpop.eup %6444  ;;  %v3113_v26 = vmul.f32 %v9336_v53, %v1872_v32  ;;  %v4248_v38 = vmax.f32 %v3256_v46, 0.0  ;;  %v2908_v27 = vmul.f32 %v12568_v14, %v2509_v11  ;;  %v2485_v59 = vadd.f32 %v9167_v45, %v2484_v49  ;;  %v12572_v11 = vld [vmem:[#allocation105_spill] sm:$0xff] }
 0x2a0   : > { %v6447_v8 = vpop.eup %6446  ;;  %vm2487_vm9 = vweird.f32 %v9167_v45  ;;  %v2492_v30 = vand.u32 2147483648, %v9097_v51  ;;  %v2513_v21 = vsub.f32 1.0, %v2512_v41  ;;  %v6040_v23 = vmul.f32 -1.442695, %v2144_v39  ;;  %v12573_v41 = vld [vmem:[#allocation19_spill] sm:$0xff] }
 0x2a1   : > { %3366 = vrot.lane.b32.xlu2 %v9427_v3, %s6707_s20  ;;  %3204 = vrot.lane.b32.xlu0 %v3113_v26, %s6705_s17  ;;  %v9441_v42 = vadd.f32 %v9305_v6, %v2908_v27  ;;  %vm2486_vm11 = vweird.f32 %v9097_v51  ;;  %v2490_v53 = vand.u32 2147483647, %v9097_v51  ;;  %v9446_v5 = vpop.permute.xlu2 %3184  ;;  %6450 = vrcp.f32 %v9429_v20  ;;  %v12569_v51 = vld [vmem:[#allocation104_spill] sm:$0xff] }
 0x2a2   : > { %vm2488_vm12 = vmor %vm2486_vm11, %vm2487_vm9  ;;  %v9449_v31 = vadd.f32 1.0, %v6447_v8  ;;  %v9454_v1 = vadd.f32 1.0, %v6445_v60  ;;  %v2493_v6 = vor.u32 1.1754944e-38, %v2492_v30  ;;  %v2514_v25 = vmul.f32 %v9391_v47, %v2513_v21  ;;  %v12574_v8 = vld [vmem:[#allocation72_spill] sm:$0xff] }
 0x2a3   : > { %4322 = vrot.lane.b32.xlu1 %v4248_v38, %s6706_s10  ;;  %v2489_v50 = vsel %vm2488_vm12, %v9167_v45, %v2485_v59  ;;  %6452 = vpow2.f32 %v6040_v23  ;;  %v2156_v7 = vadd.f32 %v12570_v35, %v12569_v51  ;;  %v4252_v34 = vmax.f32 %v9441_v42, 0.0  ;;  %v12575_v38 = vld [vmem:[#allocation12_spill] sm:$0xff] }
 0x2a4   : > { %v9452_v56 = vpop.eup %6448  ;;  %vm2491_vm7 = vcmp.eq.f32.partialorder %v2490_v53, 8.507059e+37  ;;  %6454 = vrcp.f32 %v9449_v31  ;;  %v2515_v57 = vadd.f32 %v9391_v47, %v2514_v25  ;;  %vm2517_vm0 = vweird.f32 %v9391_v47  ;;  %v12576_v59 = vld [vmem:[#allocation52_spill] sm:$0xff] }
 0x2a5   : > { %v2494_v4 = vsel %vm2491_vm7, %v2493_v6, %v2489_v50  ;;  %v2542_v40 = vmul.f32 %v9452_v56, %v9416_v15  ;;  %6456 = vrcp.f32 %v9454_v1  ;;  %v6052_v61 = vmul.f32 -1.442695, %v2156_v7 }
 0x2a6   : > { %v2907_v33 = vmul.f32 %v12571_v58, %v2494_v4  ;;  %v2522_v43 = vand.u32 2147483648, %v9316_v22  ;;  %vm2516_vm10 = vweird.f32 %v9316_v22  ;;  %v2520_v62 = vand.u32 2147483647, %v9316_v22 }
 0x2a7   : > { %v9462_v45 = vpop.eup %6450  ;;  %vm2518_vm13 = vmor %vm2516_vm10, %vm2517_vm0  ;;  %v2543_v36 = vsub.f32 1.0, %v2542_v40  ;;  %6458 = vpow2.f32 %v6052_v61  ;;  %v4250_v24 = vmax.f32 %v9427_v3, 0.0  ;;  %v2145_v48 = vadd.f32 %v12573_v41, %v12572_v11  ;;  %v12582_v41 = vld [vmem:[#allocation24_spill] sm:$0xff] }
 0x2a8   : > { %v3259_v16 = vadd.f32 %v3177_v17, %v2907_v33  ;;  %v2527_v44 = vmul.f32 %v9462_v45, %v9429_v20  ;;  %v2523_v49 = vor.u32 1.1754944e-38, %v2522_v43  ;;  %vm2521_vm14 = vcmp.eq.f32.partialorder %v2520_v62, 8.507059e+37 }
 0x2a9   : > { %4330 = vrot.lane.b32.xlu2 %v4252_v34, %s6706_s10  ;;  %3362 = vrot.lane.b32.xlu0 %v3256_v46, %s6707_s20  ;;  %v9473_v13 = vpop.permute.xlu2 %3208  ;;  %v6453_v19 = vpop.eup %6452  ;;  %v2519_v46 = vsel %vm2518_vm13, %v9391_v47, %v2515_v57  ;;  %v2544_v26 = vmul.f32 %v9452_v56, %v2543_v36  ;;  %v2146_v14 = vadd.f32 %v12575_v38, %v12574_v8  ;;  %v6041_v53 = vmul.f32 -1.442695, %v2145_v48  ;;  %v12580_v36 = vld [vmem:[#allocation33_spill] sm:$0xff] }
 0x2aa   : > { %v9485_v63 = vadd.f32 1.0, %v6453_v19  ;;  %v4251_v39 = vmax.f32 %v3259_v16, 0.0  ;;  %v2524_v32 = vsel %vm2521_vm14, %v2523_v49, %v2519_v46  ;;  %v2528_v60 = vsub.f32 1.0, %v2527_v44  ;;  %v12579_v44 = vld [vmem:[#allocation70_spill] sm:$0xff] }
 0x2ab   : > { %3364 = vrot.lane.b32.xlu1 %v9358_v54, %s6707_s20  ;;  %v9478_v55 = vpop.permute.xlu0 %4302  ;;  %v9483_v54 = vpop.eup %6454  ;;  %v2909_v30 = vmul.f32 %v12576_v59, %v2524_v32  ;;  %v2545_v25 = vadd.f32 %v9452_v56, %v2544_v26  ;;  %vm2547_vm15 = vweird.f32 %v9452_v56  ;;  %v6042_v34 = vmul.f32 -1.442695, %v2146_v14  ;;  %v3278_v14 = vld [vmem:[%s12163_s5] sm:$0xff] }
 0x2ac   : > { %v9488_v22 = vpop.eup %6456  ;;  %v2722_v47 = vmul.f32 %v9483_v54, %v9449_v31  ;;  %6460 = vrcp.f32 %v9485_v63  ;;  %v2529_v6 = vmul.f32 %v9462_v45, %v2528_v60  ;;  %v2552_v4 = vand.u32 2147483648, %v9416_v15 }
 0x2ad   : > { %v2707_v21 = vmul.f32 %v9488_v22, %v9454_v1  ;;  %v6459_v23 = vpop.eup %6458  ;;  %vm2546_vm1 = vweird.f32 %v9416_v15  ;;  %v2550_v40 = vand.u32 2147483647, %v9416_v15  ;;  %vm2532_vm5 = vweird.f32 %v9462_v45 }
 0x2ae   : > { %v2723_v35 = vsub.f32 1.0, %v2722_v47  ;;  %v9513_v17 = vadd.f32 1.0, %v6459_v23  ;;  %vm9518_vm3 = vmor %vm2546_vm1, %vm2547_vm15  ;;  %v2530_v58 = vadd.f32 %v9462_v45, %v2529_v6  ;;  %v2535_v33 = vand.u32 2147483647, %v9429_v20 }
 0x2af   : > { %v2708_v57 = vsub.f32 1.0, %v2707_v21  ;;  %6462 = vpow2.f32 %v6041_v53  ;;  %v2549_v15 = vsel %vm9518_vm3, %v9452_v56, %v2545_v25  ;;  %v2537_v19 = vand.u32 2147483648, %v9429_v20  ;;  %v3279_v56 = vld [vmem:[%s12163_s5 + $0x8] sm:$0xff] }
 0x2b0   : > { %v2724_v62 = vmul.f32 %v9483_v54, %v2723_v35  ;;  %v2157_v46 = vadd.f32 %v12580_v36, %v12579_v44  ;;  %6464 = vpow2.f32 %v6042_v34  ;;  %v2553_v49 = vor.u32 1.1754944e-38, %v2552_v4 }
 0x2b1   : > { %4326 = vrot.lane.b32.xlu0 %v4250_v24, %s6706_s10  ;;  %v9499_v3 = vpop.permute.xlu2 %3348  ;;  %vm2531_vm6 = vweird.f32 %v9429_v20  ;;  %6466 = vrcp.f32 %v9513_v17  ;;  %vm2551_vm4 = vcmp.eq.f32.partialorder %v2550_v40, 8.507059e+37  ;;  %v2709_v32 = vmul.f32 %v9488_v22, %v2708_v57 }
 0x2b2   : > { %4433 = vst.msk [vmem:[#allocation3 + $0x18] sm:$0xff] %vm850_vm2, %v9499_v3  ;;  %v9504_v27 = vpop.permute.xlu1 %4304  ;;  %v9525_v43 = vpop.eup %6460  ;;  %vm9548_vm8 = vmor %vm2531_vm6, %vm2532_vm5  ;;  %v2554_v20 = vsel %vm2551_vm4, %v2553_v49, %v2549_v15  ;;  %vm9556_vm9 = vcmp.eq.f32.partialorder %v2535_v33, 8.507059e+37  ;;  %v2725_v59 = vadd.f32 %v9483_v54, %v2724_v62  ;;  %vm2727_vm11 = vweird.f32 %v9483_v54 }
 0x2b3   : > { %4328 = vrot.lane.b32.xlu1 %v4251_v39, %s6706_s10  ;;  %v3181_v50 = vpop.permute.xlu0 %3180  ;;  %v2534_v60 = vsel %vm9548_vm8, %v9462_v45, %v2530_v58  ;;  %v2557_v38 = vmul.f32 %v9525_v43, %v9485_v63  ;;  %vm2726_vm12 = vweird.f32 %v9449_v31  ;;  %v2730_v45 = vand.u32 2147483647, %v9449_v31 }
 0x2b4   : > { %v3261_v7 = vadd.f32 %v3181_v50, %v2909_v30  ;;  %v2538_v30 = vor.u32 1.1754944e-38, %v2537_v19  ;;  %v2732_v23 = vand.u32 2147483648, %v9449_v31  ;;  %vm2712_vm7 = vweird.f32 %v9488_v22  ;;  %v12587_v50 = vld [vmem:[#allocation58_spill] sm:$0xff]  ;;  %vm9580_vm0 = vmor %vm2726_vm12, %vm2727_vm11  ;;  %v12590_v19 = vld [vmem:[#allocation61_spill] sm:$0xff] }
 0x2b5   : > { %v6463_v53 = vpop.eup %6462  ;;  %v2911_v6 = vmul.f32 %v12587_v50, %v2554_v20  ;;  %v2710_v34 = vadd.f32 %v9488_v22, %v2709_v32  ;;  %v6053_v40 = vmul.f32 -1.442695, %v2157_v46  ;;  %v3438_v57 = vmul.f32 %v9362_v52, %v3278_v14 }
 0x2b6   : > { %3372 = vrot.lane.b32.xlu2 %v3261_v7, %s6707_s20  ;;  %v4253_v25 = vmax.f32 %v3261_v7, 0.0  ;;  %v2539_v35 = vsel %vm9556_vm9, %v2538_v30, %v2534_v60  ;;  %v6465_v4 = vpop.eup %6464  ;;  %v2558_v61 = vsub.f32 1.0, %v2557_v38  ;;  %v2729_v33 = vsel %vm9580_vm0, %v9483_v54, %v2725_v59  ;;  %v12594_v38 = vld [vmem:[#allocation27_spill] sm:$0xff] }
 0x2b7   : > { %v9584_v58 = vpop.eup %6466  ;;  %v9587_v7 = vadd.f32 %v9446_v5, %v2911_v6  ;;  %vm2711_vm10 = vweird.f32 %v9454_v1  ;;  %v2717_v52 = vand.u32 2147483648, %v9454_v1  ;;  %v2733_v62 = vor.u32 1.1754944e-38, %v2732_v23  ;;  %v12596_v6 = vld [vmem:[#allocation98_spill] sm:$0xff] }
 0x2b8   : > { %v2910_v36 = vmul.f32 %v12590_v19, %v2539_v35  ;;  %vm9601_vm13 = vmor %vm2711_vm10, %vm2712_vm7  ;;  %v2715_v54 = vand.u32 2147483647, %v9454_v1  ;;  %v9606_v49 = vadd.f32 1.0, %v6465_v4  ;;  %vm2731_vm14 = vcmp.eq.f32.partialorder %v2730_v45, 8.507059e+37 }
 0x2b9   : > { %3368 = vrot.lane.b32.xlu0 %v3259_v16, %s6707_s20  ;;  %v12581_v16 = vld [vmem:[#allocation71_spill] sm:$0xff]  ;;  %v2559_v32 = vmul.f32 %v9525_v43, %v2558_v61  ;;  %v2737_v20 = vmul.f32 %v9584_v58, %v9513_v17  ;;  %v9614_v60 = vadd.f32 1.0, %v6463_v53  ;;  %6468 = vpow2.f32 %v6053_v40 }
 0x2ba   : > { %v9537_v24 = vpop.permute.xlu2 %4312  ;;  %v2147_v48 = vadd.f32 %v12582_v41, %v12581_v16  ;;  %v4255_v1 = vmax.f32 %v9587_v7, 0.0  ;;  %v2718_v26 = vor.u32 1.1754944e-38, %v2717_v52  ;;  %vm2716_vm15 = vcmp.eq.f32.partialorder %v2715_v54, 8.507059e+37 }
 0x2bb   : > { %3370 = vrot.lane.b32.xlu1 %v9441_v42, %s6707_s20  ;;  %v3183_v42 = vpop.permute.xlu1 %3182  ;;  %v3345_v47 = vpop.permute.xlu0 %3344  ;;  %vm2562_vm1 = vweird.f32 %v9525_v43  ;;  %v2738_v45 = vsub.f32 1.0, %v2737_v20  ;;  %v2567_v53 = vand.u32 2147483648, %v9485_v63  ;;  %vm2561_vm3 = vweird.f32 %v9485_v63 }
 0x2bc   : > { %v3439_v21 = vmul.f32 %v3345_v47, %v3279_v56  ;;  %4431 = vst.msk [vmem:[#allocation3 + $0x8] sm:$0xff] %vm850_vm2, %v3345_v47  ;;  %v6043_v15 = vmul.f32 -1.442695, %v2147_v48  ;;  %v2714_v56 = vsel %vm9601_vm13, %v9488_v22, %v2710_v34  ;;  %v2734_v48 = vsel %vm2731_vm14, %v2733_v62, %v2729_v33  ;;  %v12593_v47 = vld [vmem:[#allocation51_spill] sm:$0xff]  ;;  %v12595_v22 = vld [vmem:[#allocation92_spill] sm:$0xff]  ;;  %vm9642_vm5 = vmor %vm2561_vm3, %vm2562_vm1 }
 0x2bd   : > { %v3262_v39 = vadd.f32 %v3183_v42, %v2910_v36  ;;  %v2150_v14 = vadd.f32 %v12594_v38, %v12593_v47  ;;  %v2923_v42 = vmul.f32 %v12595_v22, %v2734_v48  ;;  %v2719_v59 = vsel %vm2716_vm15, %v2718_v26, %v2714_v56 }
 0x2be   : > { %3504 = vrot.lane.b32.xlu2 %v3439_v21, %s6707_s20  ;;  %6470 = vpow2.f32 %v6043_v15  ;;  %v2560_v21 = vadd.f32 %v9525_v43, %v2559_v32  ;;  %v2565_v34 = vand.u32 2147483647, %v9485_v63  ;;  %v2739_v33 = vmul.f32 %v9584_v58, %v2738_v45 }
 0x2bf   : > { %6472 = vrcp.f32 %v9606_v49  ;;  %v4254_v30 = vmax.f32 %v3262_v39, 0.0  ;;  %v9626_v23 = vadd.f32 %v9473_v13, %v2923_v42  ;;  %v6046_v50 = vmul.f32 -1.442695, %v2150_v14  ;;  %v6469_v4 = vpop.eup %6468 }
 0x2c0   : > { %6474 = vrcp.f32 %v9614_v60  ;;  %v2564_v63 = vsel %vm9642_vm5, %v9525_v43, %v2560_v21  ;;  %v2568_v62 = vor.u32 1.1754944e-38, %v2567_v53  ;;  %v9654_v19 = vadd.f32 1.0, %v6469_v4  ;;  %v12604_v21 = vld [vmem:[#allocation23_spill] sm:$0xff]  ;;  %v3280_v53 = vld [vmem:[%s12163_s5 + $0x10] sm:$0xff] }
 0x2c1   : > { %4332 = vrot.lane.b32.xlu0 %v4253_v25, %s6706_s10  ;;  %v2922_v25 = vmul.f32 %v12596_v6, %v2719_v59  ;;  %v4267_v15 = vmax.f32 %v9626_v23, 0.0  ;;  %6476 = vpow2.f32 %v6046_v50  ;;  %vm2566_vm6 = vcmp.eq.f32.partialorder %v2565_v34, 8.507059e+37 }
 0x2c2   : > { %v2569_v54 = vsel %vm2566_vm6, %v2568_v62, %v2564_v63  ;;  %v2740_v43 = vadd.f32 %v9584_v58, %v2739_v33  ;;  %vm2742_vm4 = vweird.f32 %v9584_v58  ;;  %v2747_v32 = vand.u32 2147483648, %v9513_v17 }
 0x2c3   : > { %3502 = vrot.lane.b32.xlu1 %v3438_v57, %s6707_s20  ;;  %v9597_v46 = vpop.permute.xlu2 %3190  ;;  %v3207_v41 = vpop.permute.xlu1 %3206  ;;  %6478 = vrcp.f32 %v9654_v19  ;;  %vm2741_vm8 = vweird.f32 %v9513_v17  ;;  %v2745_v38 = vand.u32 2147483647, %v9513_v17  ;;  %vm2591_vm7 = vweird.f32 %v9606_v49 }
 0x2c4   : > { %v6471_v31 = vpop.eup %6470  ;;  %v3274_v61 = vadd.f32 %v3207_v41, %v2922_v25  ;;  %v12599_v41 = vld [vmem:[#allocation15_spill] sm:$0xff]  ;;  %vm9679_vm9 = vmor %vm2741_vm8, %vm2742_vm4  ;;  %v2748_v4 = vor.u32 1.1754944e-38, %v2747_v32  ;;  %vm2576_vm13 = vweird.f32 %v9614_v60  ;;  %vm2756_vm6 = vweird.f32 %v9654_v19 }
 0x2c5   : > { %v9651_v52 = vpop.eup %6472  ;;  %v9658_v5 = vadd.f32 1.0, %v6471_v31  ;;  %v2149_v48 = vadd.f32 %v12599_v41, %v8328_v18  ;;  %v2744_v6 = vsel %vm9679_vm9, %v9584_v58, %v2740_v43  ;;  %vm2746_vm11 = vcmp.eq.f32.partialorder %v2745_v38, 8.507059e+37  ;;  %v12605_v58 = vld [vmem:[#allocation18_spill] sm:$0xff]  ;;  %v12606_v43 = vld [vmem:[#allocation96_spill] sm:$0xff] }
 0x2c6   : > { %4336 = vrot.lane.b32.xlu2 %v4255_v1, %s6706_s10  ;;  %v9656_v36 = vpop.eup %6474  ;;  %v4266_v56 = vmax.f32 %v3274_v61, 0.0  ;;  %v12600_v1 = vld [vmem:[#allocation57_spill] sm:$0xff]  ;;  %v2749_v63 = vsel %vm2746_vm11, %v2748_v4, %v2744_v6  ;;  %v12607_v38 = vld [vmem:[#allocation26_spill] sm:$0xff]  ;;  %vm2592_vm12 = vweird.f32 %v9651_v52 }
 0x2c7   : > { %v2912_v26 = vmul.f32 %v12600_v1, %v2569_v54  ;;  %6480 = vrcp.f32 %v9658_v5  ;;  %v2572_v22 = vmul.f32 %v9656_v36, %v9614_v60  ;;  %v6477_v59 = vpop.eup %6476  ;;  %v6045_v25 = vmul.f32 -1.442695, %v2149_v48  ;;  %vm9730_vm10 = vmor %vm2591_vm7, %vm2592_vm12 }
 0x2c8   : > { %v9693_v57 = vadd.f32 1.0, %v6477_v59  ;;  %v2924_v41 = vmul.f32 %v12606_v43, %v2749_v63  ;;  %v2597_v59 = vand.u32 2147483648, %v9606_v49  ;;  %vm2577_vm0 = vweird.f32 %v9656_v36 }
 0x2c9   : > { %3374 = vrot.lane.b32.xlu0 %v3262_v39, %s6707_s20  ;;  %v2587_v39 = vmul.f32 %v9651_v52, %v9606_v49  ;;  %v9696_v33 = vpop.eup %6478  ;;  %6482 = vpow2.f32 %v6045_v25  ;;  %vm9749_vm14 = vmor %vm2576_vm13, %vm2577_vm0  ;;  %vm2606_vm8 = vweird.f32 %v9658_v5 }
 0x2ca   : > { %6484 = vrcp.f32 %v9693_v57  ;;  %v2752_v32 = vmul.f32 %v9696_v33, %v9654_v19  ;;  %vm2757_vm3 = vweird.f32 %v9696_v33  ;;  %vm2651_vm0 = vweird.f32 %v9693_v57 }
 0x2cb   : > { %4334 = vrot.lane.b32.xlu1 %v4254_v30, %s6706_s10  ;;  %v9632_v35 = vpop.permute.xlu2 %3354  ;;  %v3347_v13 = vpop.permute.xlu1 %3346  ;;  %v12603_v30 = vld [vmem:[#allocation106_spill] sm:$0xff]  ;;  %v2588_v34 = vsub.f32 1.0, %v2587_v39  ;;  %vm9794_vm4 = vmor %vm2756_vm6, %vm2757_vm3 }
 0x2cc   : > { %4436 = vst.msk [vmem:[#allocation3 + $0x30] sm:$0xff] %vm850_vm2, %v9632_v35  ;;  %v9638_v40 = vpop.permute.xlu0 %4308  ;;  %v2148_v45 = vadd.f32 %v12604_v21, %v12603_v30  ;;  %v3440_v31 = vmul.f32 %v3347_v13, %v3280_v53  ;;  %v2753_v25 = vsub.f32 1.0, %v2752_v32 }
 0x2cd   : > { %4432 = vst.msk [vmem:[#allocation3 + $0x10] sm:$0xff] %vm850_vm2, %v3347_v13  ;;  %v9698_v62 = vpop.eup %6480  ;;  %v2589_v54 = vmul.f32 %v9651_v52, %v2588_v34 }
 0x2ce   : > { %4360 = vrot.lane.b32.xlu2 %v4267_v15, %s6706_s10  ;;  %v6044_v15 = vmul.f32 -1.442695, %v2148_v45  ;;  %v2595_v45 = vand.u32 2147483647, %v9606_v49  ;;  %v2582_v49 = vand.u32 2147483648, %v9614_v60  ;;  %vm2607_vm5 = vweird.f32 %v9698_v62 }
 0x2cf   : > { %v6483_v21 = vpop.eup %6482  ;;  %vm9813_vm9 = vmor %vm2606_vm8, %vm2607_vm5 }
 0x2d0   : > { %6486 = vpow2.f32 %v6044_v15  ;;  %vm2596_vm15 = vcmp.eq.f32.partialorder %v2595_v45, 8.507059e+37  ;;  %v12614_v45 = vld [vmem:[#allocation63_spill] sm:$0xff] }
 0x2d1   : > { %3398 = vrot.lane.b32.xlu0 %v3274_v61, %s6707_s20  ;;  %v2573_v61 = vsub.f32 1.0, %v2572_v22  ;;  %v2590_v22 = vadd.f32 %v9651_v52, %v2589_v54  ;;  %v9745_v54 = vadd.f32 1.0, %v6483_v21 }
 0x2d3   : > { %4358 = vrot.lane.b32.xlu1 %v4266_v56, %s6706_s10  ;;  %v9671_v20 = vpop.permute.xlu2 %4318  ;;  %v2152_v56 = vadd.f32 %v12605_v58, %v8393_v2  ;;  %v2574_v48 = vmul.f32 %v9656_v36, %v2573_v61  ;;  %v2594_v63 = vsel %vm9730_vm10, %v9651_v52, %v2590_v22  ;;  %v2598_v58 = vor.u32 1.1754944e-38, %v2597_v59  ;;  %v12613_v59 = vld [vmem:[#allocation30_spill] sm:$0xff] }
 0x2d4   : > { %v3187_v14 = vpop.permute.xlu0 %3186  ;;  %v9688_v50 = vpop.permute.xlu1 %4310  ;;  %v2580_v52 = vand.u32 2147483647, %v9614_v60  ;;  %v2583_v22 = vor.u32 1.1754944e-38, %v2582_v49 }
 0x2d5   : > { %v3264_v17 = vadd.f32 %v3187_v14, %v2912_v26  ;;  %v2151_v14 = vadd.f32 %v12607_v38, %v8317_v28  ;;  %v6048_v42 = vmul.f32 -1.442695, %v2152_v56  ;;  %v2575_v6 = vadd.f32 %v9656_v36, %v2574_v48 }
 0x2d6   : > { %v2754_v48 = vmul.f32 %v9696_v33, %v2753_v25  ;;  %v2599_v32 = vsel %vm2596_vm15, %v2598_v58, %v2594_v63  ;;  %vm2581_vm1 = vcmp.eq.f32.partialorder %v2580_v52, 8.507059e+37  ;;  %v12615_v58 = vld [vmem:[#allocation66_spill] sm:$0xff]  ;;  %v2760_v52 = vand.u32 2147483647, %v9654_v19 }
 0x2d7   : > { %3378 = vrot.lane.b32.xlu2 %v3264_v17, %s6707_s20  ;;  %v4256_v53 = vmax.f32 %v3264_v17, 0.0  ;;  %v6047_v61 = vmul.f32 -1.442695, %v2151_v14  ;;  %v3282_v17 = vld [vmem:[%s12163_s5 + $0x20] sm:$0xff]  ;;  %6488 = vpow2.f32 %v6048_v42  ;;  %v12612_v42 = vld [vmem:[#allocation7_spill] sm:$0xff]  ;;  %vm2636_vm15 = vweird.f32 %v9745_v54 }
 0x2d8   : > { %v2153_v21 = vadd.f32 %v12613_v59, %v12612_v42  ;;  %v2755_v34 = vadd.f32 %v9696_v33, %v2754_v48  ;;  %vm2761_vm11 = vcmp.eq.f32.partialorder %v2760_v52, 8.507059e+37 }
 0x2d9   : > { %3506 = vrot.lane.b32.xlu0 %v3440_v31, %s6707_s20  ;;  %v9734_v31 = vpop.eup %6484  ;;  %6490 = vpow2.f32 %v6047_v61 }
 0x2da   : > { %v6487_v15 = vpop.eup %6486  ;;  %6492 = vrcp.f32 %v9745_v54  ;;  %vm2652_vm7 = vweird.f32 %v9734_v31 }
 0x2db   : > { %3376 = vrot.lane.b32.xlu1 %v9587_v7, %s6707_s20  ;;  %v9706_v13 = vpop.permute.xlu2 %3196  ;;  %v2602_v7 = vmul.f32 %v9698_v62, %v9658_v5  ;;  %v9768_v14 = vadd.f32 1.0, %v6487_v15  ;;  %v2762_v15 = vand.u32 2147483648, %v9654_v19  ;;  %vm2653_vm10 = vmor %vm2651_vm0, %vm2652_vm7 }
 0x2dc   : > { %v3211_v39 = vpop.permute.xlu0 %3210  ;;  %v9713_v1 = vpop.permute.xlu1 %3188 }
 0x2dd   : > { %v9715_v26 = vadd.f32 %v3211_v39, %v2924_v41  ;;  %v2603_v4 = vsub.f32 1.0, %v2602_v7  ;;  %v2579_v41 = vsel %vm9749_vm14, %v9656_v36, %v2575_v6  ;;  %v3281_v36 = vld [vmem:[%s12163_s5 + $0x18] sm:$0xff]  ;;  %6494 = vrcp.f32 %v9768_v14 }
 0x2de   : > { %v2584_v6 = vsel %vm2581_vm1, %v2583_v22, %v2579_v41  ;;  %v3441_v61 = vmul.f32 %v9499_v3, %v3281_v36  ;;  %v2610_v41 = vand.u32 2147483647, %v9658_v5  ;;  %vm2621_vm5 = vweird.f32 %v9768_v14 }
 0x2df   : > { %3402 = vrot.lane.b32.xlu2 %v9715_v26, %s6707_s20  ;;  %v2604_v60 = vmul.f32 %v9698_v62, %v2603_v4  ;;  %v4268_v25 = vmax.f32 %v9715_v26, 0.0  ;;  %v6489_v4 = vpop.eup %6488  ;;  %v2612_v26 = vand.u32 2147483648, %v9658_v5  ;;  %v2913_v56 = vmul.f32 %v12615_v58, %v2584_v6 }
 0x2e0   : > { %v6491_v48 = vpop.eup %6490  ;;  %vm2611_vm12 = vcmp.eq.f32.partialorder %v2610_v41, 8.507059e+37 }
 0x2e1   : > { %4338 = vrot.lane.b32.xlu0 %v4256_v53, %s6706_s10  ;;  %v2914_v53 = vmul.f32 %v12614_v45, %v2599_v32  ;;  %v2605_v63 = vadd.f32 %v9698_v62, %v2604_v60  ;;  %v6049_v32 = vmul.f32 -1.442695, %v2153_v21  ;;  %v9817_v60 = vpop.eup %6492  ;;  %v3265_v5 = vadd.f32 %v9713_v1, %v2913_v56 }
 0x2e2   : > { %v2763_v45 = vor.u32 1.1754944e-38, %v2762_v15  ;;  %v9832_v1 = vadd.f32 1.0, %v6491_v48  ;;  %v2655_v56 = vand.u32 2147483647, %v9693_v57  ;;  %vm2637_vm14 = vweird.f32 %v9817_v60 }
 0x2e3   : > { %3400 = vrot.lane.b32.xlu1 %v9626_v23, %s6707_s20  ;;  %v9756_v43 = vpop.permute.xlu2 %3202  ;;  %v2647_v23 = vmul.f32 %v9734_v31, %v9693_v57  ;;  %v2609_v22 = vsel %vm9813_vm9, %v9698_v62, %v2605_v63  ;;  %6496 = vpow2.f32 %v6049_v32  ;;  %v4257_v62 = vmax.f32 %v3265_v5, 0.0  ;;  %v12620_v63 = vld [vmem:[#allocation100_spill] sm:$0xff]  ;;  %vm9897_vm1 = vmor %vm2636_vm15, %vm2637_vm14 }
 0x2e4   : > { %v3351_v39 = vpop.permute.xlu0 %3350  ;;  %vm2656_vm13 = vcmp.eq.f32.partialorder %v2655_v56, 8.507059e+37  ;;  %vm2666_vm0 = vweird.f32 %v9832_v1 }
 0x2e5   : > { %v9762_v7 = vpop.permute.xlu1 %3212  ;;  %v3442_v38 = vmul.f32 %v3351_v39, %v3282_v17  ;;  %4434 = vst.msk [vmem:[#allocation3 + $0x20] sm:$0xff] %vm850_vm2, %v3351_v39  ;;  %v2648_v49 = vsub.f32 1.0, %v2647_v23  ;;  %v9785_v17 = vadd.f32 %v9597_v46, %v2914_v53  ;;  %v9805_v39 = vadd.f32 1.0, %v6489_v4 }
 0x2e6   : > { %v2759_v23 = vsel %vm9794_vm4, %v9696_v33, %v2755_v34  ;;  %v2613_v53 = vor.u32 1.1754944e-38, %v2612_v26  ;;  %v9838_v34 = vpop.eup %6494  ;;  %v2632_v4 = vmul.f32 %v9817_v60, %v9745_v54  ;;  %v12621_v26 = vld [vmem:[#allocation62_spill] sm:$0xff] }
 0x2e7   : > { %3510 = vrot.lane.b32.xlu2 %v3442_v38, %s6707_s20  ;;  %v2649_v59 = vmul.f32 %v9734_v31, %v2648_v49  ;;  %v4258_v21 = vmax.f32 %v9785_v17, 0.0  ;;  %v2764_v33 = vsel %vm2761_vm11, %v2763_v45, %v2759_v23  ;;  %6498 = vrcp.f32 %v9805_v39 }
 0x2e8   : > { %v2614_v6 = vsel %vm2611_vm12, %v2613_v53, %v2609_v22  ;;  %v2925_v49 = vmul.f32 %v12620_v63, %v2764_v33  ;;  %6500 = vrcp.f32 %v9832_v1  ;;  %v2617_v32 = vmul.f32 %v9838_v34, %v9768_v14 }
 0x2e9   : > { %4362 = vrot.lane.b32.xlu0 %v4268_v25, %s6706_s10  ;;  %v2650_v25 = vadd.f32 %v9734_v31, %v2649_v59  ;;  %v2915_v58 = vmul.f32 %v12621_v26, %v2614_v6  ;;  %v2633_v23 = vsub.f32 1.0, %v2632_v4  ;;  %vm2622_vm3 = vweird.f32 %v9838_v34 }
 0x2ea   : > { %v3277_v52 = vadd.f32 %v9762_v7, %v2925_v49  ;;  %v2618_v45 = vsub.f32 1.0, %v2617_v32  ;;  %v2640_v32 = vand.u32 2147483647, %v9745_v54  ;;  %vm9918_vm4 = vmor %vm2621_vm5, %vm2622_vm3  ;;  %vm2681_vm9 = vweird.f32 %v9805_v39 }
 0x2eb   : > { %3508 = vrot.lane.b32.xlu1 %v3441_v61, %s6707_s20  ;;  %v9800_v46 = vpop.permute.xlu2 %3360  ;;  %v2657_v61 = vand.u32 2147483648, %v9693_v57  ;;  %v2654_v19 = vsel %vm2653_vm10, %v9734_v31, %v2650_v25  ;;  %v2634_v33 = vmul.f32 %v9817_v60, %v2633_v23 }
 0x2ec   : > { %4439 = vst.msk [vmem:[#allocation3 + $0x48] sm:$0xff] %vm850_vm2, %v9800_v46  ;;  %v9809_v38 = vpop.permute.xlu0 %4314  ;;  %v2619_v63 = vmul.f32 %v9838_v34, %v2618_v45  ;;  %vm2641_vm6 = vcmp.eq.f32.partialorder %v2640_v32, 8.507059e+37 }
 0x2ed   : > { %v9823_v36 = vpop.permute.xlu1 %3352  ;;  %v2658_v22 = vor.u32 1.1754944e-38, %v2657_v61  ;;  %v3283_v61 = vld [vmem:[%s12163_s5 + $0x28] sm:$0xff]  ;;  %v2635_v56 = vadd.f32 %v9817_v60, %v2634_v33 }
 0x2ee   : > { %4435 = vst.msk [vmem:[#allocation3 + $0x28] sm:$0xff] %vm850_vm2, %v9823_v36  ;;  %v2620_v23 = vadd.f32 %v9838_v34, %v2619_v63 }
 0x2ef   : > { %4342 = vrot.lane.b32.xlu2 %v4258_v21, %s6706_s10  ;;  %v2659_v57 = vsel %vm2656_vm13, %v2658_v22, %v2654_v19  ;;  %v4269_v21 = vmax.f32 %v3277_v52, 0.0  ;;  %v3443_v19 = vmul.f32 %v9823_v36, %v3283_v61  ;;  %v2627_v36 = vand.u32 2147483648, %v9768_v14 }
 0x2f1   : > { %3380 = vrot.lane.b32.xlu0 %v3265_v5, %s6707_s20  ;;  %v6497_v5 = vpop.eup %6496 }
 0x2f2   : > { %v9860_v59 = vpop.eup %6498  ;;  %v9864_v7 = vadd.f32 1.0, %v6497_v5 }
 0x2f3   : > { %4340 = vrot.lane.b32.xlu1 %v4257_v62, %s6706_s10  ;;  %v9846_v15 = vpop.permute.xlu2 %4324  ;;  %v9866_v53 = vpop.eup %6500  ;;  %v2677_v31 = vmul.f32 %v9860_v59, %v9805_v39  ;;  %v12622_v62 = vld [vmem:[#allocation68_spill] sm:$0xff]  ;;  %vm2682_vm8 = vweird.f32 %v9860_v59 }
 0x2f4   : > { %v3193_v3 = vpop.permute.xlu0 %3192  ;;  %v2918_v25 = vmul.f32 %v12622_v62, %v2659_v57  ;;  %6502 = vrcp.f32 %v9864_v7  ;;  %v2639_v57 = vsel %vm9897_vm1, %v9817_v60, %v2635_v56  ;;  %v2628_v56 = vor.u32 1.1754944e-38, %v2627_v36  ;;  %vm9941_vm12 = vmor %vm2681_vm9, %vm2682_vm8 }
 0x2f5   : > { %v9853_v41 = vpop.permute.xlu1 %4316  ;;  %v9855_v48 = vadd.f32 %v3193_v3, %v2915_v58  ;;  %v2662_v58 = vmul.f32 %v9866_v53, %v9832_v1  ;;  %v2678_v3 = vsub.f32 1.0, %v2677_v31  ;;  %v2625_v31 = vand.u32 2147483647, %v9768_v14  ;;  %v3284_v14 = vld [vmem:[%s12163_s5 + $0x30] sm:$0xff] }
 0x2f6   : > { %vm2667_vm7 = vweird.f32 %v9866_v53  ;;  %vm2696_vm1 = vweird.f32 %v9864_v7 }
 0x2f7   : > { %3384 = vrot.lane.b32.xlu2 %v9855_v48, %s6707_s20  ;;  %v2663_v22 = vsub.f32 1.0, %v2662_v58  ;;  %vm2626_vm11 = vcmp.eq.f32.partialorder %v2625_v31, 8.507059e+37  ;;  %v4259_v5 = vmax.f32 %v9855_v48, 0.0  ;;  %v12630_v31 = vld [vmem:[#allocation76_spill] sm:$0xff]  ;;  %vm2668_vm13 = vmor %vm2666_vm0, %vm2667_vm7 }
 0x2f9   : > { %3404 = vrot.lane.b32.xlu0 %v3277_v52, %s6707_s20  ;;  %v2642_v52 = vand.u32 2147483648, %v9745_v54  ;;  %v2679_v54 = vmul.f32 %v9860_v59, %v2678_v3  ;;  %v2664_v61 = vmul.f32 %v9866_v53, %v2663_v22  ;;  %v3444_v22 = vmul.f32 %v9632_v35, %v3284_v14 }
 0x2fa   : > { %v9912_v45 = vpop.eup %6502 }
 0x2fb   : > { %4364 = vrot.lane.b32.xlu1 %v4269_v21, %s6706_s10  ;;  %v9873_v6 = vpop.permute.xlu2 %3366  ;;  %v3285_v21 = vld [vmem:[%s12163_s5 + $0x38] sm:$0xff]  ;;  %v2643_v33 = vor.u32 1.1754944e-38, %v2642_v52  ;;  %v2692_v3 = vmul.f32 %v9912_v45, %v9864_v7  ;;  %vm2697_vm15 = vweird.f32 %v9912_v45 }
 0x2fc   : > { %4442 = vst.msk [vmem:[#allocation3 + $0x60] sm:$0xff] %vm850_vm2, %v9873_v6  ;;  %v3199_v4 = vpop.permute.xlu0 %3198  ;;  %v12627_v52 = vld [vmem:[#allocation67_spill] sm:$0xff]  ;;  %vm2698_vm3 = vmor %vm2696_vm1, %vm2697_vm15  ;;  %vm4911_vm15 = vcmask 1046528  }
 0x2fd   : > { %v9883_v49 = vpop.permute.xlu1 %3194  ;;  %v9885_v26 = vadd.f32 %v3199_v4, %v2918_v25  ;;  %v2644_v25 = vsel %vm2641_vm6, %v2643_v33, %v2639_v57  ;;  %v2624_v4 = vsel %vm9918_vm4, %v9838_v34, %v2620_v23  ;;  %v2687_v34 = vand.u32 2147483648, %v9805_v39 }
 0x2fe   : > { %v2917_v32 = vmul.f32 %v12627_v52, %v2644_v25  ;;  %v2629_v23 = vsel %vm2626_vm11, %v2628_v56, %v2624_v4  ;;  %v2693_v35 = vsub.f32 1.0, %v2692_v3 }
 0x2ff   : > { %3390 = vrot.lane.b32.xlu2 %v9885_v26, %s6707_s20  ;;  %v2688_v33 = vor.u32 1.1754944e-38, %v2687_v34  ;;  %v2916_v60 = vmul.f32 %v12630_v31, %v2629_v23  ;;  %v4262_v3 = vmax.f32 %v9885_v26, 0.0  ;;  %v2702_v26 = vand.u32 2147483648, %v9864_v7 }
 0x300   : > { %v3269_v36 = vadd.f32 %v9706_v13, %v2917_v32 }
 0x301   : > { %3512 = vrot.lane.b32.xlu0 %v3443_v19, %s6707_s20  ;;  %v2685_v19 = vand.u32 2147483647, %v9805_v39  ;;  %v3268_v25 = vadd.f32 %v9883_v49, %v2916_v60 }
 0x303   : > { %3382 = vrot.lane.b32.xlu1 %v9785_v17, %s6707_s20  ;;  %v2680_v17 = vadd.f32 %v9860_v59, %v2679_v54  ;;  %v2665_v54 = vadd.f32 %v9866_v53, %v2664_v61  ;;  %v9951_v48 = vpop.permute.xlu2 %4330  ;;  %vm2686_vm10 = vcmp.eq.f32.partialorder %v2685_v19, 8.507059e+37  ;;  %v4260_v52 = vmax.f32 %v3268_v25, 0.0  ;;  %v12632_v19 = vld [vmem:[#allocation94_spill] sm:$0xff] }
 0x304   : > { %v3357_v62 = vpop.permute.xlu0 %3356 }
 0x305   : > { %v3201_v63 = vpop.permute.xlu1 %3200  ;;  %v3445_v58 = vmul.f32 %v3357_v62, %v3285_v21  ;;  %4437 = vst.msk [vmem:[#allocation3 + $0x38] sm:$0xff] %vm850_vm2, %v3357_v62  ;;  %v2684_v39 = vsel %vm9941_vm12, %v9860_v59, %v2680_v17  ;;  %v2672_v21 = vand.u32 2147483648, %v9832_v1  ;;  %v2670_v62 = vand.u32 2147483647, %v9832_v1  ;;  %v12631_v1 = vld [vmem:[#allocation77_spill] sm:$0xff] }
 0x306   : > { %v2689_v59 = vsel %vm2686_vm10, %v2688_v33, %v2684_v39  ;;  %v2669_v4 = vsel %vm2668_vm13, %v9866_v53, %v2665_v54  ;;  %v2694_v17 = vmul.f32 %v9912_v45, %v2693_v35  ;;  %vm5116_vm10 = vcmask 1048320  }
 0x307   : > { %3516 = vrot.lane.b32.xlu2 %v3445_v58, %s6707_s20  ;;  %v4261_v58 = vmax.f32 %v3269_v36, 0.0  ;;  %v2673_v14 = vor.u32 1.1754944e-38, %v2672_v21  ;;  %vm2671_vm14 = vcmp.eq.f32.partialorder %v2670_v62, 8.507059e+37  ;;  %v2920_v56 = vmul.f32 %v12631_v1, %v2689_v59 }
 0x308   : > { %v2695_v53 = vadd.f32 %v9912_v45, %v2694_v17  ;;  %v2703_v21 = vor.u32 1.1754944e-38, %v2702_v26  ;;  %vm5114_vm13 = vcmask 1048321  }
 0x309   : > { %4344 = vrot.lane.b32.xlu0 %v4259_v5, %s6706_s10  ;;  %v2674_v34 = vsel %vm2671_vm14, %v2673_v14, %v2669_v4  ;;  %v3272_v49 = vadd.f32 %v9756_v43, %v2920_v56  ;;  %v2700_v43 = vand.u32 2147483647, %v9864_v7  ;;  %v12633_v7 = vld [vmem:[#allocation88_spill] sm:$0xff] }
 0x30a   : > { %v2919_v5 = vmul.f32 %v12632_v19, %v2674_v34  ;;  %v2699_v39 = vsel %vm2698_vm3, %v9912_v45, %v2695_v53  ;;  %v12634_v34 = vld [vmem:[#allocation25_spill] sm:$0xff] }
 0x30b   : > { %3514 = vrot.lane.b32.xlu1 %v3444_v22, %s6707_s20  ;;  %v4264_v54 = vmax.f32 %v3272_v49, 0.0  ;;  %vm2701_vm5 = vcmp.eq.f32.partialorder %v2700_v43, 8.507059e+37 }
 0x30c   : > { %v9959_v13 = vpop.permute.xlu0 %4320  ;;  %v3271_v22 = vadd.f32 %v3201_v63, %v2919_v5  ;;  %v2704_v33 = vsel %vm2701_vm5, %v2703_v21, %v2699_v39  ;;  %v12635_v39 = vld [vmem:[#allocation21_spill] sm:$0xff] }
 0x30d   : > { %v3359_v61 = vpop.permute.xlu1 %3358  ;;  %v2921_v60 = vmul.f32 %v12633_v7, %v2704_v33 }
 0x30e   : > { %4438 = vst.msk [vmem:[#allocation3 + $0x40] sm:$0xff] %vm850_vm2, %v3359_v61  ;;  %v4263_v35 = vmax.f32 %v3271_v22, 0.0 }
 0x30f   : > { %4348 = vrot.lane.b32.xlu2 %v4261_v58, %s6706_s10  ;;  %v3286_v58 = vld [vmem:[%s12163_s5 + $0x40] sm:$0xff] }
 0x310   : > { %v9969_v32 = vpop.permute.xlu2 %3372  ;;  %v3446_v1 = vmul.f32 %v3359_v61, %v3286_v58  ;;  %v3287_v61 = vld [vmem:[%s12163_s5 + $0x48] sm:$0xff]  ;;  %v3293_v58 = vld [vmem:[%s12163_s5 + $0x78] sm:$0xff] }
 0x311   : > { %4350 = vrot.lane.b32.xlu0 %v4262_v3, %s6706_s10  ;;  %4445 = vst.msk [vmem:[#allocation3 + $0x78] sm:$0xff] %vm850_vm2, %v9969_v32  ;;  %v3447_v26 = vmul.f32 %v9800_v46, %v3287_v61  ;;  %v3290_v46 = vld [vmem:[%s12163_s5 + $0x60] sm:$0xff] }
 0x313   : > { %4346 = vrot.lane.b32.xlu1 %v4260_v52, %s6706_s10 }
 0x314   : > { %v3205_v23 = vpop.permute.xlu0 %3204 }
 0x315   : > { %v9981_v57 = vpop.permute.xlu1 %4322  ;;  %v3273_v59 = vadd.f32 %v3205_v23, %v2921_v60  ;;  %v3294_v60 = vld [vmem:[%s12163_s5 + $0x80] sm:$0xff] }
 0x317   : > { %4354 = vrot.lane.b32.xlu2 %v4264_v54, %s6706_s10  ;;  %v4265_v5 = vmax.f32 %v3273_v59, 0.0 }
 0x318   : > { %v3505_v31 = vpop.permute.xlu2 %3504 }
 0x319   : > { %3386 = vrot.lane.b32.xlu0 %v3268_v25, %s6707_s20  ;;  %v3288_v25 = vld [vmem:[%s12163_s5 + $0x50] sm:$0xff]  ;;  %v3599_v52 = vadd.f32 %v3505_v31, %v12634_v34  ;;  %v3450_v31 = vmul.f32 %v9873_v6, %v3290_v46 }
 0x31a   : > { %v3292_v6 = vld [vmem:[%s12163_s5 + $0x70] sm:$0xff] }
 0x31b   : > { %4352 = vrot.lane.b32.xlu1 %v4263_v35, %s6706_s10  ;;  %v6055_v43 = vmul.f32 -1.442695, %v3599_v52 }
 0x31c   : > { %v3363_v63 = vpop.permute.xlu0 %3362 }
 0x31d   : > { %v3365_v62 = vpop.permute.xlu1 %3364  ;;  %4440 = vst.msk [vmem:[#allocation3 + $0x50] sm:$0xff] %vm850_vm2, %v3363_v63  ;;  %v3448_v17 = vmul.f32 %v3363_v63, %v3288_v25  ;;  %6504 = vpow2.f32 %v6055_v43 }
 0x31e   : > { %4441 = vst.msk [vmem:[#allocation3 + $0x58] sm:$0xff] %vm850_vm2, %v3365_v62 }
 0x31f   : > { %3396 = vrot.lane.b32.xlu2 %v3273_v59, %s6707_s20 }
 0x320   : > { %v9991_v45 = vpop.permute.xlu2 %4336 }
 0x321   : > { %3392 = vrot.lane.b32.xlu0 %v3271_v22, %s6707_s20  ;;  %v3289_v22 = vld [vmem:[%s12163_s5 + $0x58] sm:$0xff] }
 0x322   : > { %v3449_v35 = vmul.f32 %v3365_v62, %v3289_v22 }
 0x323   : > { %3388 = vrot.lane.b32.xlu1 %v3269_v36, %s6707_s20  ;;  %v3291_v36 = vld [vmem:[%s12163_s5 + $0x68] sm:$0xff]  ;;  %v6505_v63 = vpop.eup %6504 }
 0x324   : > { %v9998_v4 = vpop.permute.xlu0 %4326 }
 0x325   : > { %v10003_v14 = vpop.permute.xlu1 %4328 }
 0x327   : > { %3522 = vrot.lane.b32.xlu2 %v3448_v17, %s6707_s20  ;;  %v10052_v17 = vadd.f32 1.0, %v6505_v63  ;;  %v12637_v63 = vld [vmem:[#allocation28_spill] sm:$0xff] }
 0x328   : > { %v10006_v56 = vpop.permute.xlu2 %4360 }
 0x329   : > { %3518 = vrot.lane.b32.xlu0 %v3446_v1, %s6707_s20  ;;  %vm3778_vm12 = vweird.f32 %v10052_v17 }
 0x32b   : > { %3394 = vrot.lane.b32.xlu1 %v3272_v49, %s6707_s20 }
 0x32c   : > { %v3369_v3 = vpop.permute.xlu0 %3368 }
 0x32d   : > { %v3371_v53 = vpop.permute.xlu1 %3370  ;;  %v3451_v19 = vmul.f32 %v3369_v3, %v3291_v36  ;;  %4443 = vst.msk [vmem:[#allocation3 + $0x68] sm:$0xff] %vm850_vm2, %v3369_v3  ;;  %v3453_v3 = vmul.f32 %v9969_v32, %v3293_v58  ;;  %v3296_v32 = vld [vmem:[%s12163_s5 + $0x90] sm:$0xff] }
 0x32e   : > { %4444 = vst.msk [vmem:[#allocation3 + $0x70] sm:$0xff] %vm850_vm2, %v3371_v53  ;;  %v3452_v36 = vmul.f32 %v3371_v53, %v3292_v6 }
 0x32f   : > { %3528 = vrot.lane.b32.xlu2 %v3451_v19, %s6707_s20  ;;  %v3306_v19 = vld [vmem:[%s12163_s5 + $0xe0] sm:$0xff] }
 0x331   : > { %v3379_v49 = vpop.permute.xlu2 %3378  ;;  %4356 = vrot.lane.b32.xlu0 %v4265_v5, %s6706_s10 }
 0x332   : > { %4448 = vst.msk [vmem:[#allocation3 + $0x90] sm:$0xff] %vm850_vm2, %v3379_v49  ;;  %v3456_v22 = vmul.f32 %v3379_v49, %v3296_v32  ;;  %v3307_v32 = vld [vmem:[%s12163_s5 + $0xe8] sm:$0xff] }
 0x333   : > { %3520 = vrot.lane.b32.xlu1 %v3447_v26, %s6707_s20 }
 0x334   : > { %v10024_v23 = vpop.permute.xlu0 %4332 }
 0x335   : > { %v3503_v54 = vpop.permute.xlu1 %3502 }
 0x336   : > { %v3598_v21 = vadd.f32 %v3503_v54, %v12635_v39 }
 0x338   : > { %v6054_v33 = vmul.f32 -1.442695, %v3598_v21  ;;  %v3295_v21 = vld [vmem:[%s12163_s5 + $0x88] sm:$0xff] }
 0x339   : > { %v10034_v7 = vpop.permute.xlu2 %3402  ;;  %3524 = vrot.lane.b32.xlu0 %v3449_v35, %s6707_s20 }
 0x33a   : > { %6506 = vpow2.f32 %v6054_v33  ;;  %4460 = vst.msk [vmem:[#allocation3 + $0xf0] sm:$0xff] %vm850_vm2, %v10034_v7 }
 0x33b   : > { %3526 = vrot.lane.b32.xlu1 %v3450_v31, %s6707_s20  ;;  %6508 = vrcp.f32 %v10052_v17 }
 0x33c   : > { %v3375_v59 = vpop.permute.xlu0 %3374 }
 0x33d   : > { %v10046_v62 = vpop.permute.xlu1 %4334  ;;  %v3454_v25 = vmul.f32 %v3375_v59, %v3294_v60  ;;  %4446 = vst.msk [vmem:[#allocation3 + $0x80] sm:$0xff] %vm850_vm2, %v3375_v59 }
 0x33f   : > { %3534 = vrot.lane.b32.xlu2 %v3454_v25, %s6707_s20 }
 0x340   : > { %v6507_v1 = vpop.eup %6506 }
 0x341   : > { %v3726_v34 = vadd.f32 1.0, %v6507_v1  ;;  %v10057_v52 = vpop.permute.xlu2 %3510  ;;  %3530 = vrot.lane.b32.xlu0 %v3452_v36, %s6707_s20  ;;  %v10071_v26 = vpop.eup %6508 }
 0x342   : > { %v3774_v39 = vmul.f32 %v10071_v26, %v10052_v17  ;;  %vm3779_vm11 = vweird.f32 %v10071_v26 }
 0x343   : > { %6510 = vrcp.f32 %v3726_v34  ;;  %3532 = vrot.lane.b32.xlu1 %v3453_v3, %s6707_s20  ;;  %v3769_v31 = vand.u32 2147483648, %v3726_v34  ;;  %v3767_v49 = vand.u32 2147483647, %v3726_v34  ;;  %vm3763_vm4 = vweird.f32 %v3726_v34  ;;  %vm3780_vm7 = vmor %vm3778_vm12, %vm3779_vm11 }
 0x344   : > { %v3399_v61 = vpop.permute.xlu0 %3398  ;;  %v3775_v58 = vsub.f32 1.0, %v3774_v39  ;;  %vm4622_vm11 = vcmask 1040384  }
 0x345   : > { %v10064_v5 = vpop.permute.xlu1 %4358  ;;  %v3466_v53 = vmul.f32 %v3399_v61, %v3306_v19  ;;  %4458 = vst.msk [vmem:[#allocation3 + $0xe0] sm:$0xff] %vm850_vm2, %v3399_v61  ;;  %v3770_v3 = vor.u32 1.1754944e-38, %v3769_v31  ;;  %vm3768_vm9 = vcmp.eq.f32.partialorder %v3767_v49, 8.507059e+37  ;;  %v3308_v31 = vld [vmem:[%s12163_s5 + $0xf0] sm:$0xff] }
 0x346   : > { %v3468_v49 = vmul.f32 %v10034_v7, %v3308_v31 }
 0x347   : > { %3558 = vrot.lane.b32.xlu2 %v3466_v53, %s6707_s20  ;;  %v3776_v53 = vmul.f32 %v10071_v26, %v3775_v58  ;;  %v12638_v58 = vld [vmem:[#allocation31_spill] sm:$0xff] }
 0x349   : > { %v6511_v43 = vpop.eup %6510  ;;  %v10073_v46 = vpop.permute.xlu2 %4342 }
 0x34a   : > { %v3759_v54 = vmul.f32 %v6511_v43, %v3726_v34  ;;  %12636 = vst [vmem:[#allocation8_spill] sm:$0xff] %v10073_v46  ;;  %vm3764_vm6 = vweird.f32 %v6511_v43 }
 0x34b   : > { %3538 = vrot.lane.b32.xlu1 %v3456_v22, %s6707_s20  ;;  %vm3765_vm8 = vmor %vm3763_vm4, %vm3764_vm6 }
 0x34c   : > { %v3760_v35 = vsub.f32 1.0, %v3759_v54  ;;  %v3507_v33 = vpop.permute.xlu0 %3506 }
 0x34d   : > { %v3377_v60 = vpop.permute.xlu1 %3376  ;;  %v3600_v59 = vadd.f32 %v3507_v33, %v12637_v63  ;;  %v3784_v33 = vand.u32 2147483648, %v10052_v17 }
 0x34e   : > { %v3761_v6 = vmul.f32 %v6511_v43, %v3760_v35  ;;  %v3455_v25 = vmul.f32 %v3377_v60, %v3295_v21  ;;  %4447 = vst.msk [vmem:[#allocation3 + $0x88] sm:$0xff] %vm850_vm2, %v3377_v60  ;;  %v3777_v21 = vadd.f32 %v10071_v26, %v3776_v53 }
 0x34f   : > { %v6056_v1 = vmul.f32 -1.442695, %v3600_v59 }
 0x350   : > { %v3762_v36 = vadd.f32 %v6511_v43, %v3761_v6  ;;  %3536 = vrot.lane.b32.xlu0 %v3455_v25, %s6707_s20  ;;  %v3781_v59 = vsel %vm3780_vm7, %v10071_v26, %v3777_v21  ;;  %v3785_v6 = vor.u32 1.1754944e-38, %v3784_v33  ;;  %v12641_v33 = vld [vmem:[#allocation35_spill] sm:$0xff] }
 0x351   : > { %6512 = vpow2.f32 %v6056_v1  ;;  %v10084_v61 = vpop.permute.xlu2 %3384 }
 0x352   : > { %v3766_v19 = vsel %vm3765_vm8, %v6511_v43, %v3762_v36  ;;  %4451 = vst.msk [vmem:[#allocation3 + $0xa8] sm:$0xff] %vm850_vm2, %v10084_v61 }
 0x353   : > { %v3771_v22 = vsel %vm3768_vm9, %v3770_v3, %v3766_v19 }
 0x354   : > { %v10092_v34 = vpop.permute.xlu0 %4338  ;;  %v10095_v54 = vmul.f32 %v9478_v55, %v3771_v22  ;;  %v3782_v55 = vand.u32 2147483647, %v10052_v17 }
 0x355   : > { %v3401_v43 = vpop.permute.xlu1 %3400 }
 0x356   : > { %v3467_v39 = vmul.f32 %v3401_v43, %v3307_v32  ;;  %4459 = vst.msk [vmem:[#allocation3 + $0xe8] sm:$0xff] %vm850_vm2, %v3401_v43  ;;  %4790 = vrot.lane.b32.xlu1 %v10095_v54, %s6706_s10  ;;  %4494 = vrot.lane.b32.xlu2 %v10095_v54, %s6705_s17  ;;  %vm3783_vm0 = vcmp.eq.f32.partialorder %v3782_v55, 8.507059e+37  ;;  %v5653_v17 = vmul.f32 %v10095_v54, %v10095_v54  ;;  %v5584_v19 = vsel %vm5116_vm10, %v10095_v54, 0.0 }
 0x357   : > { %v6513_v35 = vpop.eup %6512  ;;  %v3786_v26 = vsel %vm3783_vm0, %v3785_v6, %v3781_v59  ;;  %v3602_v55 = vadd.f32 %v10057_v52, %v12641_v33 }
 0x358   : > { %3560 = vrot.lane.b32.xlu0 %v3467_v39, %s6707_s20  ;;  %v10111_v60 = vadd.f32 1.0, %v6513_v35  ;;  %v10127_v3 = vmul.f32 %v9504_v27, %v3786_v26  ;;  %v5685_v32 = vsel %vm5116_vm10, %v5653_v17, 0.0 }
 0x359   : > { %v10113_v63 = vpop.permute.xlu2 %3390 }
 0x35a   : > { %6514 = vrcp.f32 %v10111_v60  ;;  %4454 = vst.msk [vmem:[#allocation3 + $0xc0] sm:$0xff] %vm850_vm2, %v10113_v63  ;;  %v5654_v22 = vmul.f32 %v10127_v3, %v10127_v3  ;;  %v5585_v27 = vsel %vm5116_vm10, %v10127_v3, 0.0  ;;  %vm3793_vm1 = vweird.f32 %v10111_v60 }
 0x35b   : > { %v10139_v39 = vadd.f32 %v5585_v27, %v5584_v19  ;;  %v10170_v27 = vrot.slane %v10127_v3, 1 }
 0x35c   : > { %v10123_v36 = vpop.permute.xlu0 %4362  ;;  %v5686_v21 = vsel %vm5116_vm10, %v5654_v22, 0.0 }
 0x35d   : > { %v3509_v25 = vpop.permute.xlu1 %3508  ;;  %12639 = vst [vmem:[#allocation65_spill] sm:$0xff] %v10123_v36  ;;  %v10146_v31 = vadd.f32 %v5686_v21, %v5685_v32  ;;  %v4912_v32 = vrot.slane %v10095_v54, 1  ;;  %v3797_v21 = vand.u32 2147483647, %v10111_v60 }
 0x35e   : > { %v3601_v1 = vadd.f32 %v3509_v25, %v12638_v58  ;;  %3562 = vrot.lane.b32.xlu1 %v3468_v49, %s6707_s20  ;;  %12640 = vst [vmem:[#allocation75_spill] sm:$0xff] %v10139_v39  ;;  %v3297_v49 = vld [vmem:[%s12163_s5 + $0x98] sm:$0xff]  ;;  %v10154_v25 = vrot.slane %v10095_v54, 7 }
 0x35f   : > { %12642 = vst [vmem:[#allocation74_spill] sm:$0xff] %v10146_v31  ;;  %v10179_v54 = vsel %vm4911_vm15, %v4912_v32, %v10170_v27  ;;  %vm3798_vm5 = vcmp.eq.f32.partialorder %v3797_v21, 8.507059e+37 }
 0x360   : > { %v6057_v7 = vmul.f32 -1.442695, %v3601_v1  ;;  %v6515_v53 = vpop.eup %6514  ;;  %4496 = vrot.lane.b32.xlu0 %v10127_v3, %s6705_s17  ;;  %v6058_v1 = vmul.f32 -1.442695, %v3602_v55  ;;  %5115 = vst.msk [vmem:[#allocation2] sm:$0xfe] %vm5114_vm13, %v10154_v25 }
 0x361   : > { %v3789_v43 = vmul.f32 %v6515_v53, %v10111_v60  ;;  %v10142_v35 = vpop.permute.xlu2 %3516  ;;  %vm3794_vm14 = vweird.f32 %v6515_v53  ;;  %12645 = vst [vmem:[#allocation11_spill] sm:$0xff] %v10170_v27 }
 0x362   : > { %6516 = vpow2.f32 %v6057_v7  ;;  %vm3795_vm3 = vmor %vm3793_vm1, %vm3794_vm14  ;;  %12647 = vst [vmem:[#allocation37_spill] sm:$0xff] %v10179_v54 }
 0x363   : > { %v3790_v59 = vsub.f32 1.0, %v3789_v43  ;;  %v3799_v43 = vand.u32 2147483648, %v10111_v60 }
 0x364   : > { %v3381_v17 = vpop.permute.xlu0 %3380 }
 0x365   : > { %v10148_v6 = vpop.permute.xlu1 %4340  ;;  %v3457_v26 = vmul.f32 %v3381_v17, %v3297_v49  ;;  %4449 = vst.msk [vmem:[#allocation3 + $0x98] sm:$0xff] %vm850_vm2, %v3381_v17  ;;  %v3791_v52 = vmul.f32 %v6515_v53, %v3790_v59 }
 0x366   : > { %12643 = vst [vmem:[#allocation78_spill] sm:$0xff] %v10148_v6  ;;  %4668 = vrot.lane.b32.xlu1 %v10154_v25, %s6705_s17 }
 0x367   : > { %3540 = vrot.lane.b32.xlu2 %v3457_v26, %s6707_s20  ;;  %v3792_v22 = vadd.f32 %v6515_v53, %v3791_v52 }
 0x368   : > { %v6517_v58 = vpop.eup %6516 }
 0x369   : > { %v10157_v19 = vadd.f32 1.0, %v6517_v58  ;;  %v10165_v7 = vpop.permute.xlu2 %4348  ;;  %v3796_v49 = vsel %vm3795_vm3, %v6515_v53, %v3792_v22  ;;  %v3800_v58 = vor.u32 1.1754944e-38, %v3799_v43  ;;  %v3309_v53 = vld [vmem:[%s12163_s5 + $0xf8] sm:$0xff]  ;;  %v3298_v22 = vld [vmem:[%s12163_s5 + $0xa0] sm:$0xff] }
 0x36a   : > { %12644 = vst [vmem:[#allocation4_spill] sm:$0xff] %v10165_v7 }
 0x36b   : > { %6518 = vrcp.f32 %v10157_v19  ;;  %v3801_v26 = vsel %vm3798_vm5, %v3800_v58, %v3796_v49  ;;  %v12650_v49 = vld [vmem:[#allocation39_spill] sm:$0xff]  ;;  %vm3808_vm4 = vweird.f32 %v10157_v19 }
 0x36c   : > { %6520 = vpow2.f32 %v6058_v1  ;;  %v3405_v55 = vpop.permute.xlu0 %3404  ;;  %v10197_v43 = vmul.f32 %v9414_v10, %v3801_v26 }
 0x36d   : > { %v10174_v33 = vpop.permute.xlu1 %4364  ;;  %4461 = vst.msk [vmem:[#allocation3 + $0xf8] sm:$0xff] %vm850_vm2, %v3405_v55  ;;  %v3469_v21 = vmul.f32 %v3405_v55, %v3309_v53  ;;  %v3299_v55 = vld [vmem:[%s12163_s5 + $0xa8] sm:$0xff] }
 0x36e   : > { %12646 = vst [vmem:[#allocation38_spill] sm:$0xff] %v10174_v33  ;;  %4957 = vrot.lane.b32.xlu1 %v10179_v54, %s6707_s20 }
 0x36f   : > { %4792 = vrot.lane.b32.xlu2 %v10127_v3, %s6706_s10  ;;  %12649 = vst [vmem:[#allocation95_spill] sm:$0xff] %v10197_v43 }
 0x371   : > { %v6519_v59 = vpop.eup %6518  ;;  %v10186_v60 = vpop.permute.xlu2 %4354 }
 0x372   : > { %v6521_v17 = vpop.eup %6520  ;;  %v3804_v1 = vmul.f32 %v6519_v59, %v10157_v19  ;;  %12648 = vst [vmem:[#allocation81_spill] sm:$0xff] %v10186_v60  ;;  %vm3809_vm6 = vweird.f32 %v6519_v59  ;;  %v10235_v60 = vrot.slane %v10197_v43, 7 }
 0x373   : > { %v10188_v52 = vadd.f32 1.0, %v6521_v17  ;;  %vm3810_vm8 = vmor %vm3808_vm4, %vm3809_vm6 }
 0x374   : > { %v3805_v32 = vsub.f32 1.0, %v3804_v1  ;;  %v3513_v31 = vpop.permute.xlu0 %3512  ;;  %12655 = vst [vmem:[#allocation5_spill] sm:$0xff] %v10235_v60 }
 0x375   : > { %v3383_v54 = vpop.permute.xlu1 %3382  ;;  %v3603_v17 = vadd.f32 %v3513_v31, %v12650_v49  ;;  %6522 = vrcp.f32 %v10188_v52  ;;  %vm3823_vm7 = vweird.f32 %v10188_v52 }
 0x376   : > { %v3458_v39 = vmul.f32 %v3383_v54, %v3298_v22  ;;  %4450 = vst.msk [vmem:[#allocation3 + $0xa0] sm:$0xff] %vm850_vm2, %v3383_v54  ;;  %v3806_v58 = vmul.f32 %v6519_v59, %v3805_v32  ;;  %4498 = vrot.lane.b32.xlu1 %v10197_v43, %s6705_s17  ;;  %v3814_v54 = vand.u32 2147483648, %v10157_v19  ;;  %v3459_v32 = vmul.f32 %v10084_v61, %v3299_v55 }
 0x377   : > { %v6059_v1 = vmul.f32 -1.442695, %v3603_v17  ;;  %3564 = vrot.lane.b32.xlu2 %v3469_v21, %s6707_s20 }
 0x378   : > { %3542 = vrot.lane.b32.xlu0 %v3458_v39, %s6707_s20  ;;  %v3807_v31 = vadd.f32 %v6519_v59, %v3806_v58  ;;  %v3812_v39 = vand.u32 2147483647, %v10157_v19  ;;  %v3815_v17 = vor.u32 1.1754944e-38, %v3814_v54  ;;  %v4624_v54 = vrot.slane %v10127_v3, 7  ;;  %v3302_v3 = vld [vmem:[%s12163_s5 + $0xc0] sm:$0xff] }
 0x379   : > { %v10206_v10 = vpop.permute.xlu2 %3396  ;;  %6524 = vpow2.f32 %v6059_v1 }
 0x37a   : > { %4457 = vst.msk [vmem:[#allocation3 + $0xd8] sm:$0xff] %vm850_vm2, %v10206_v10  ;;  %v3811_v22 = vsel %vm3810_vm8, %v6519_v59, %v3807_v31  ;;  %vm3813_vm9 = vcmp.eq.f32.partialorder %v3812_v39, 8.507059e+37  ;;  %v12652_v59 = vld [vmem:[#allocation43_spill] sm:$0xff]  ;;  %v4625_v39 = vsel %vm4622_vm11, %v10154_v25, %v4624_v54 }
 0x37b   : > { %v6523_v26 = vpop.eup %6522  ;;  %v3816_v58 = vsel %vm3813_vm9, %v3815_v17, %v3811_v22  ;;  %5117 = vst.msk [vmem:[#allocation2 + $0x18] sm:$0xff] %vm5116_vm10, %v4625_v39  ;;  %v3829_v17 = vand.u32 2147483648, %v10188_v52 }
 0x37c   : > { %v3819_v49 = vmul.f32 %v6523_v26, %v10188_v52  ;;  %v10223_v61 = vpop.permute.xlu0 %4344  ;;  %v10229_v31 = vmul.f32 %v9638_v40, %v3816_v58  ;;  %vm3824_vm12 = vweird.f32 %v6523_v26  ;;  %v3462_v58 = vmul.f32 %v10113_v63, %v3302_v3 }
 0x37d   : > { %v3515_v53 = vpop.permute.xlu1 %3514  ;;  %12651 = vst [vmem:[#allocation32_spill] sm:$0xff] %v10223_v61  ;;  %vm3825_vm0 = vmor %vm3823_vm7, %vm3824_vm12  ;;  %v3830_v63 = vor.u32 1.1754944e-38, %v3829_v17 }
 0x37e   : > { %3544 = vrot.lane.b32.xlu1 %v3459_v32, %s6707_s20  ;;  %v3820_v1 = vsub.f32 1.0, %v3819_v49  ;;  %v3604_v55 = vadd.f32 %v3515_v53, %v12652_v59  ;;  %12653 = vst [vmem:[#allocation79_spill] sm:$0xff] %v10229_v31  ;;  %v10252_v25 = vrot.slane %v10229_v31, 1  ;;  %v4915_v59 = vrot.slane %v10197_v43, 1 }
 0x37f   : > { %v6525_v21 = vpop.eup %6524  ;;  %4959 = vrot.lane.b32.xlu2 %v10170_v27, %s6707_s20 }
 0x380   : > { %4794 = vrot.lane.b32.xlu0 %v10197_v43, %s6706_s10  ;;  %v10225_v19 = vadd.f32 1.0, %v6525_v21  ;;  %v3821_v53 = vmul.f32 %v6523_v26, %v3820_v1  ;;  %v6060_v22 = vmul.f32 -1.442695, %v3604_v55  ;;  %12657 = vst [vmem:[#allocation91_spill] sm:$0xff] %v10252_v25  ;;  %v3827_v55 = vand.u32 2147483647, %v10188_v52 }
 0x381   : > { %v10264_v54 = vsel %vm4911_vm15, %v4915_v59, %v10252_v25  ;;  %v4627_v43 = vrot.slane %v10229_v31, 7 }
 0x382   : > { %6526 = vrcp.f32 %v10225_v19  ;;  %v3822_v21 = vadd.f32 %v6523_v26, %v3821_v53  ;;  %12659 = vst [vmem:[#allocation42_spill] sm:$0xff] %v10264_v54  ;;  %vm3828_vm14 = vcmp.eq.f32.partialorder %v3827_v55, 8.507059e+37  ;;  %vm3838_vm3 = vweird.f32 %v10225_v19 }
 0x383   : > { %6528 = vpow2.f32 %v6060_v22 }
 0x384   : > { %v10246_v40 = vpop.permute.xlu0 %4350 }
 0x385   : > { %v10231_v32 = vpop.permute.xlu1 %4346  ;;  %12656 = vst [vmem:[#allocation14_spill] sm:$0xff] %v10246_v40 }
 0x386   : > { %12654 = vst [vmem:[#allocation10_spill] sm:$0xff] %v10231_v32  ;;  %4796 = vrot.lane.b32.xlu1 %v10229_v31, %s6706_s10 }
 0x387   : > { %4670 = vrot.lane.b32.xlu2 %v4625_v39, %s6705_s17  ;;  %v3826_v39 = vsel %vm3825_vm0, %v6523_v26, %v3822_v21 }
 0x388   : > { %4672 = vrot.lane.b32.xlu0 %v10235_v60, %s6705_s17  ;;  %v6527_v49 = vpop.eup %6526  ;;  %v3831_v52 = vsel %vm3828_vm14, %v3830_v63, %v3826_v39  ;;  %v12661_v39 = vld [vmem:[#allocation47_spill] sm:$0xff] }
 0x389   : > { %v3834_v53 = vmul.f32 %v6527_v49, %v10225_v19  ;;  %v6529_v3 = vpop.eup %6528  ;;  %vm3839_vm1 = vweird.f32 %v6527_v49 }
 0x38a   : > { %v10275_v21 = vadd.f32 1.0, %v6529_v3  ;;  %v3844_v3 = vand.u32 2147483648, %v10225_v19  ;;  %vm3840_vm5 = vmor %vm3838_vm3, %vm3839_vm1 }
 0x38b   : > { %v3835_v26 = vsub.f32 1.0, %v3834_v53  ;;  %v3605_v53 = vadd.f32 %v10142_v35, %v12661_v39 }
 0x38c   : > { %v3387_v22 = vpop.permute.xlu0 %3386  ;;  %6530 = vrcp.f32 %v10275_v21  ;;  %vm3853_vm8 = vweird.f32 %v10275_v21 }
 0x38d   : > { %v10256_v1 = vpop.permute.xlu1 %4352  ;;  %4452 = vst.msk [vmem:[#allocation3 + $0xb0] sm:$0xff] %vm850_vm2, %v3387_v22  ;;  %v3836_v17 = vmul.f32 %v6527_v49, %v3835_v26 }
 0x38e   : > { %12658 = vst [vmem:[#allocation82_spill] sm:$0xff] %v10256_v1  ;;  %3550 = vrot.lane.b32.xlu1 %v3462_v58, %s6707_s20  ;;  %v3300_v58 = vld [vmem:[%s12163_s5 + $0xb0] sm:$0xff] }
 0x38f   : > { %4500 = vrot.lane.b32.xlu2 %v10229_v31, %s6705_s17  ;;  %v3460_v27 = vmul.f32 %v3387_v22, %v3300_v58  ;;  %v3837_v63 = vadd.f32 %v6527_v49, %v3836_v17  ;;  %v10293_v22 = vpop.permute.xlu2 %3522  ;;  %v3842_v58 = vand.u32 2147483647, %v10225_v19  ;;  %v3845_v17 = vor.u32 1.1754944e-38, %v3844_v3  ;;  %v3303_v19 = vld [vmem:[%s12163_s5 + $0xc8] sm:$0xff] }
 0x390   : > { %4961 = vrot.lane.b32.xlu0 %v10264_v54, %s6707_s20  ;;  %v10278_v54 = vmul.f32 %v9688_v50, %v3831_v52  ;;  %v3301_v50 = vld [vmem:[%s12163_s5 + $0xb8] sm:$0xff] }
 0x391   : > { %v3841_v39 = vsel %vm3840_vm5, %v6527_v49, %v3837_v63  ;;  %vm3843_vm6 = vcmp.eq.f32.partialorder %v3842_v58, 8.507059e+37 }
 0x392   : > { %12660 = vst [vmem:[#allocation99_spill] sm:$0xff] %v10278_v54  ;;  %v6531_v35 = vpop.eup %6530 }
 0x393   : > { %vm3854_vm4 = vweird.f32 %v6531_v35 }
 0x394   : > { %v3393_v55 = vpop.permute.xlu0 %3392  ;;  %vm3855_vm9 = vmor %vm3853_vm8, %vm3854_vm4 }
 0x395   : > { %v3389_v59 = vpop.permute.xlu1 %3388  ;;  %4455 = vst.msk [vmem:[#allocation3 + $0xc8] sm:$0xff] %vm850_vm2, %v3393_v55 }
 0x396   : > { %4453 = vst.msk [vmem:[#allocation3 + $0xb8] sm:$0xff] %vm850_vm2, %v3389_v59  ;;  %4963 = vrot.lane.b32.xlu1 %v10252_v25, %s6707_s20  ;;  %v3461_v26 = vmul.f32 %v3389_v59, %v3301_v50  ;;  %v3846_v25 = vsel %vm3843_vm6, %v3845_v17, %v3841_v39  ;;  %v10318_v39 = vsel %vm4622_vm11, %v10235_v60, %v4627_v43  ;;  %v3859_v43 = vand.u32 2147483648, %v10275_v21 }
 0x397   : > { %3546 = vrot.lane.b32.xlu2 %v3460_v27, %s6707_s20  ;;  %v6061_v27 = vmul.f32 -1.442695, %v3605_v53  ;;  %v3849_v53 = vmul.f32 %v6531_v35, %v10275_v21  ;;  %v10307_v50 = vmul.f32 %v9537_v24, %v3846_v25  ;;  %v10309_v63 = vpop.permute.xlu2 %3528 }
 0x398   : > { %4502 = vrot.lane.b32.xlu0 %v10278_v54, %s6705_s17 }
 0x399   : > { %6532 = vpow2.f32 %v6061_v27  ;;  %12662 = vst [vmem:[#allocation84_spill] sm:$0xff] %v10307_v50  ;;  %v3850_v49 = vsub.f32 1.0, %v3849_v53  ;;  %v12663_v27 = vld [vmem:[#allocation50_spill] sm:$0xff]  ;;  %v10380_v40 = vrot.slane %v10307_v50, 1 }
 0x39b   : > { %v3851_v24 = vmul.f32 %v6531_v35, %v3850_v49  ;;  %v3857_v49 = vand.u32 2147483647, %v10275_v21  ;;  %12671 = vst [vmem:[#allocation85_spill] sm:$0xff] %v10380_v40 }
 0x39c   : > { %v3519_v59 = vpop.permute.xlu0 %3518 }
 0x39d   : > { %v3395_v52 = vpop.permute.xlu1 %3394  ;;  %v3606_v58 = vadd.f32 %v3519_v59, %v12663_v27  ;;  %v3852_v53 = vadd.f32 %v6531_v35, %v3851_v24  ;;  %vm3858_vm12 = vcmp.eq.f32.partialorder %v3857_v49, 8.507059e+37 }
 0x39e   : > { %4456 = vst.msk [vmem:[#allocation3 + $0xd0] sm:$0xff] %vm850_vm2, %v3395_v52  ;;  %4674 = vrot.lane.b32.xlu1 %v10318_v39, %s6705_s17 }
 0x39f   : > { %4798 = vrot.lane.b32.xlu2 %v10278_v54, %s6706_s10  ;;  %v6533_v3 = vpop.eup %6532  ;;  %v6062_v17 = vmul.f32 -1.442695, %v3606_v58  ;;  %v3856_v58 = vsel %vm3855_vm9, %v6531_v35, %v3852_v53 }
 0x3a0   : > { %3548 = vrot.lane.b32.xlu0 %v3461_v26, %s6707_s20  ;;  %v3463_v26 = vmul.f32 %v3393_v55, %v3303_v19  ;;  %v10322_v25 = vadd.f32 1.0, %v6533_v3  ;;  %v3304_v55 = vld [vmem:[%s12163_s5 + $0xd0] sm:$0xff]  ;;  %v10327_v19 = vpop.permute.xlu2 %3534  ;;  %v12664_v3 = vld [vmem:[#allocation55_spill] sm:$0xff] }
 0x3a1   : > { %v3464_v59 = vmul.f32 %v3395_v52, %v3304_v55  ;;  %v3860_v52 = vor.u32 1.1754944e-38, %v3859_v43 }
 0x3a2   : > { %6534 = vrcp.f32 %v10322_v25  ;;  %vm3868_vm0 = vweird.f32 %v10322_v25 }
 0x3a3   : > { %6536 = vpow2.f32 %v6062_v17  ;;  %v3861_v55 = vsel %vm3858_vm12, %v3860_v52, %v3856_v58  ;;  %v10357_v52 = vrot.slane %v10278_v54, 7 }
 0x3a4   : > { %v10337_v1 = vpop.permute.xlu0 %4356  ;;  %v10340_v21 = vmul.f32 %v9809_v38, %v3861_v55  ;;  %v3305_v38 = vld [vmem:[%s12163_s5 + $0xd8] sm:$0xff] }
 0x3a5   : > { %12665 = vst [vmem:[#allocation87_spill] sm:$0xff] %v10337_v1 }
 0x3a6   : > { %4504 = vrot.lane.b32.xlu1 %v10307_v50, %s6705_s17  ;;  %12666 = vst [vmem:[#allocation83_spill] sm:$0xff] %v10340_v21 }
 0x3a7   : > { %3552 = vrot.lane.b32.xlu2 %v3463_v26, %s6707_s20  ;;  %v3521_v26 = vpop.permute.xlu1 %3520  ;;  %12668 = vst [vmem:[#allocation13_spill] sm:$0xff] %v10357_v52 }
 0x3a8   : > { %4800 = vrot.lane.b32.xlu0 %v10307_v50, %s6706_s10  ;;  %v3607_v27 = vadd.f32 %v3521_v26, %v12664_v3  ;;  %v6535_v24 = vpop.eup %6534  ;;  %v10342_v17 = vpop.permute.xlu2 %3558  ;;  %v12667_v26 = vld [vmem:[#allocation59_spill] sm:$0xff] }
 0x3a9   : > { %v6537_v32 = vpop.eup %6536  ;;  %v3608_v43 = vadd.f32 %v10293_v22, %v12667_v26  ;;  %vm3869_vm7 = vweird.f32 %v6535_v24 }
 0x3aa   : > { %v6063_v31 = vmul.f32 -1.442695, %v3607_v27  ;;  %v10345_v35 = vadd.f32 1.0, %v6537_v32  ;;  %v3465_v32 = vmul.f32 %v10206_v10, %v3305_v38  ;;  %vm3870_vm14 = vmor %vm3868_vm0, %vm3869_vm7 }
 0x3ab   : > { %v6064_v58 = vmul.f32 -1.442695, %v3608_v43 }
 0x3ac   : > { %6538 = vpow2.f32 %v6063_v31  ;;  %v3525_v27 = vpop.permute.xlu0 %3524  ;;  %vm3883_vm5 = vweird.f32 %v10345_v35 }
 0x3ad   : > { %6540 = vrcp.f32 %v10345_v35 }
 0x3ae   : > { %4802 = vrot.lane.b32.xlu1 %v10340_v21, %s6706_s10  ;;  %6542 = vpow2.f32 %v6064_v58  ;;  %v12670_v58 = vld [vmem:[#allocation69_spill] sm:$0xff] }
 0x3af   : > { %v3527_v53 = vpop.permute.xlu1 %3526  ;;  %4676 = vrot.lane.b32.xlu2 %v10357_v52, %s6705_s17 }
 0x3b0   : > { %3554 = vrot.lane.b32.xlu0 %v3464_v59, %s6707_s20  ;;  %v3864_v59 = vmul.f32 %v6535_v24, %v10322_v25  ;;  %v4495_v31 = vpop.permute.xlu2 %4494 }
 0x3b1   : > { %4590 = vst.msk [vmem:[%s6795_s23] sm:$0xff] %vm850_vm2, %v4495_v31 }
 0x3b2   : > { %v3865_v49 = vsub.f32 1.0, %v3864_v59  ;;  %v6539_v3 = vpop.eup %6538  ;;  %v12669_v59 = vld [vmem:[#allocation64_spill] sm:$0xff]  ;;  %5148 = vst.msk [vmem:[#allocation2 + $0x8] sm:$0xff] %vm850_vm2, %v4495_v31 }
 0x3b3   : > { %v10361_v22 = vadd.f32 1.0, %v6539_v3  ;;  %v3609_v26 = vadd.f32 %v3525_v27, %v12669_v59  ;;  %v10368_v10 = vpop.eup %6540  ;;  %v3874_v27 = vand.u32 2147483648, %v10322_v25 }
 0x3b4   : > { %v3866_v55 = vmul.f32 %v6535_v24, %v3865_v49  ;;  %v3879_v49 = vmul.f32 %v10368_v10, %v10345_v35  ;;  %v3531_v59 = vpop.permute.xlu0 %3530  ;;  %v6543_v1 = vpop.eup %6542  ;;  %vm3884_vm3 = vweird.f32 %v10368_v10 }
 0x3b5   : > { %6544 = vrcp.f32 %v10361_v22  ;;  %v6065_v3 = vmul.f32 -1.442695, %v3609_v26  ;;  %v3875_v33 = vor.u32 1.1754944e-38, %v3874_v27  ;;  %v4918_v26 = vrot.slane %v10278_v54, 1  ;;  %vm3885_vm6 = vmor %vm3883_vm5, %vm3884_vm3 }
 0x3b6   : > { %3556 = vrot.lane.b32.xlu1 %v3465_v32, %s6707_s20  ;;  %v3867_v38 = vadd.f32 %v6535_v24, %v3866_v55  ;;  %v3872_v32 = vand.u32 2147483647, %v10322_v25  ;;  %v3880_v7 = vsub.f32 1.0, %v3879_v49  ;;  %v3610_v55 = vadd.f32 %v3527_v53, %v12670_v58 }
 0x3b7   : > { %v10370_v43 = vpop.permute.xlu1 %3532  ;;  %6546 = vpow2.f32 %v6065_v3  ;;  %v10396_v49 = vrot.slane %v10340_v21, 7  ;;  %v3889_v54 = vand.u32 2147483648, %v10345_v35  ;;  %vm3898_vm9 = vweird.f32 %v10361_v22 }
 0x3b8   : > { %v3871_v31 = vsel %vm3870_vm14, %v6535_v24, %v3867_v38  ;;  %vm3873_vm1 = vcmp.eq.f32.partialorder %v3872_v32, 8.507059e+37  ;;  %4967 = vrot.lane.b32.xlu0 %v10380_v40, %s6707_s20  ;;  %v10387_v24 = vadd.f32 1.0, %v6543_v1  ;;  %v10391_v38 = vsel %vm4911_vm15, %v4918_v26, %v10380_v40 }
 0x3b9   : > { %v3876_v25 = vsel %vm3873_vm1, %v3875_v33, %v3871_v31  ;;  %12672 = vst [vmem:[#allocation6_spill] sm:$0xff] %v10391_v38  ;;  %v3881_v3 = vmul.f32 %v10368_v10, %v3880_v7  ;;  %v6066_v27 = vmul.f32 -1.442695, %v3610_v55  ;;  %4965 = vrot.lane.b32.xlu2 %v10391_v38, %s6707_s20  ;;  %v4630_v1 = vrot.slane %v10307_v50, 7 }
 0x3ba   : > { %v10409_v58 = vmul.f32 %v9853_v41, %v3876_v25  ;;  %6548 = vrcp.f32 %v10387_v24  ;;  %v4921_v50 = vrot.slane %v10340_v21, 1  ;;  %v12675_v41 = vld [vmem:[#allocation80_spill] sm:$0xff]  ;;  %v3890_v6 = vor.u32 1.1754944e-38, %v3889_v54 }
 0x3bb   : > { %v10383_v36 = vpop.eup %6544  ;;  %v3882_v55 = vadd.f32 %v10368_v10, %v3881_v3  ;;  %6550 = vpow2.f32 %v6066_v27  ;;  %v10420_v38 = vsel %vm4622_vm11, %v10357_v52, %v4630_v1  ;;  %v3611_v25 = vadd.f32 %v10309_v63, %v12675_v41 }
 0x3bc   : > { %v3894_v33 = vmul.f32 %v10383_v36, %v10361_v22  ;;  %12673 = vst [vmem:[#allocation89_spill] sm:$0xff] %v10409_v58  ;;  %v10429_v3 = vrot.slane %v10409_v58, 1  ;;  %v3887_v27 = vand.u32 2147483647, %v10345_v35  ;;  %vm3899_vm8 = vweird.f32 %v10383_v36 }
 0x3bd   : > { %v6547_v31 = vpop.eup %6546  ;;  %12674 = vst [vmem:[#allocation86_spill] sm:$0xff] %v10420_v38  ;;  %v6067_v42 = vmul.f32 -1.442695, %v3611_v25  ;;  %v3904_v54 = vand.u32 2147483648, %v10361_v22  ;;  %v3902_v25 = vand.u32 2147483647, %v10361_v22  ;;  %vm3900_vm12 = vmor %vm3898_vm9, %vm3899_vm8  ;;  %vm3913_vm1 = vweird.f32 %v10387_v24 }
 0x3be   : > { %4680 = vrot.lane.b32.xlu1 %v10396_v49, %s6705_s17  ;;  %v3895_v26 = vsub.f32 1.0, %v3894_v33  ;;  %v10416_v40 = vadd.f32 1.0, %v6547_v31  ;;  %12676 = vst [vmem:[#allocation90_spill] sm:$0xff] %v10429_v3  ;;  %v10439_v63 = vsel %vm4911_vm15, %v4921_v50, %v10429_v3  ;;  %v3886_v31 = vsel %vm3885_vm6, %v10368_v10, %v3882_v55  ;;  %v12678_v50 = vld [vmem:[#allocation93_spill] sm:$0xff] }
 0x3bf   : > { %v10393_v53 = vpop.permute.xlu1 %3538  ;;  %12677 = vst [vmem:[#allocation41_spill] sm:$0xff] %v10439_v63  ;;  %vm3888_vm4 = vcmp.eq.f32.partialorder %v3887_v27, 8.507059e+37  ;;  %v3612_v28 = vadd.f32 %v3531_v59, %v12678_v50  ;;  %vm3903_vm7 = vcmp.eq.f32.partialorder %v3902_v25, 8.507059e+37  ;;  %vm4759_vm14 = vcmask 261121  }
 0x3c0   : > { %4678 = vrot.lane.b32.xlu0 %v10420_v38, %s6705_s17  ;;  %v10441_v1 = vpop.eup %6548  ;;  %v3896_v41 = vmul.f32 %v10383_v36, %v3895_v26  ;;  %6552 = vrcp.f32 %v10416_v40  ;;  %vm4880_vm6 = vcmask 523520   ;;  %vm3928_vm8 = vweird.f32 %v10416_v40 }
 0x3c1   : > { %v10401_v32 = vpop.permute.xlu2 %3540  ;;  %4506 = vrot.lane.b32.xlu2 %v10340_v21, %s6705_s17  ;;  %v6551_v35 = vpop.eup %6550  ;;  %v3891_v21 = vsel %vm3888_vm4, %v3890_v6, %v3886_v31  ;;  %v3909_v46 = vmul.f32 %v10441_v1, %v10387_v24  ;;  %6554 = vpow2.f32 %v6067_v42  ;;  %v6068_v27 = vmul.f32 -1.442695, %v3612_v28 }
 0x3c2   : > { %v10412_v7 = vpop.permute.xlu0 %3536  ;;  %v3897_v10 = vadd.f32 %v10383_v36, %v3896_v41  ;;  %v10455_v55 = vadd.f32 1.0, %v6551_v35  ;;  %v10465_v59 = vmul.f32 %v9671_v20, %v3891_v21  ;;  %v3905_v20 = vor.u32 1.1754944e-38, %v3904_v54  ;;  %v12680_v35 = vld [vmem:[#allocation97_spill] sm:$0xff] }
 0x3c3   : > { %v3910_v42 = vsub.f32 1.0, %v3909_v46  ;;  %v3613_v46 = vadd.f32 %v10370_v43, %v12680_v35  ;;  %vm3914_vm0 = vweird.f32 %v10441_v1  ;;  %v3919_v35 = vand.u32 2147483648, %v10387_v24 }
 0x3c4   : > { %12679 = vst [vmem:[#allocation17_spill] sm:$0xff] %v10465_v59  ;;  %v3901_v31 = vsel %vm3900_vm12, %v10383_v36, %v3897_v10  ;;  %6556 = vrcp.f32 %v10455_v55  ;;  %vm10508_vm3 = vmor %vm3913_vm1, %vm3914_vm0  ;;  %vm5047_vm4 = vcmask 785920   ;;  %vm5049_vm0 = vcmask 784896  }
 0x3c5   : > { %v3906_v22 = vsel %vm3903_vm7, %v3905_v20, %v3901_v31  ;;  %6558 = vpow2.f32 %v6068_v27  ;;  %v3911_v50 = vmul.f32 %v10441_v1, %v3910_v42  ;;  %v6069_v20 = vmul.f32 -1.442695, %v3613_v46 }
 0x3c6   : > { %4969 = vrot.lane.b32.xlu1 %v10439_v63, %s6707_s20  ;;  %v10462_v6 = vpop.eup %6552  ;;  %v10491_v25 = vmul.f32 %v9959_v13, %v3906_v22  ;;  %v3917_v22 = vand.u32 2147483647, %v10387_v24  ;;  %v3614_v46 = vadd.f32 %v10327_v19, %v7952_v29  ;;  %v3934_v19 = vand.u32 2147483648, %v10416_v40 }
 0x3c7   : > { %v3924_v21 = vmul.f32 %v10462_v6, %v10416_v40  ;;  %v6555_v28 = vpop.eup %6554  ;;  %v3912_v43 = vadd.f32 %v10441_v1, %v3911_v50  ;;  %vm3929_vm5 = vweird.f32 %v10462_v6 }
 0x3c8   : > { %v10433_v33 = vpop.permute.xlu1 %4790  ;;  %4508 = vrot.lane.b32.xlu0 %v10409_v58, %s6705_s17  ;;  %v10488_v63 = vadd.f32 1.0, %v6555_v28  ;;  %12681 = vst [vmem:[#allocation36_spill] sm:$0xff] %v10491_v25  ;;  %v4636_v29 = vrot.slane %v10491_v25, 7  ;;  %vm3918_vm9 = vcmp.eq.f32.partialorder %v3917_v22, 8.507059e+37  ;;  %vm10543_vm12 = vmor %vm3928_vm8, %vm3929_vm5  ;;  %v3935_v22 = vor.u32 1.1754944e-38, %v3934_v19 }
 0x3c9   : > { %v10448_v61 = vpop.permute.xlu2 %4792  ;;  %4804 = vrot.lane.b32.xlu2 %v10409_v58, %s6706_s10  ;;  %v3925_v10 = vsub.f32 1.0, %v3924_v21 }
 0x3ca   : > { %v10457_v26 = vpop.permute.xlu0 %3560  ;;  %v10486_v54 = vpop.eup %6556  ;;  %6560 = vrcp.f32 %v10488_v63 }
 0x3cb   : > { %v6559_v42 = vpop.eup %6558  ;;  %v3939_v13 = vmul.f32 %v10486_v54, %v10455_v55  ;;  %v3926_v21 = vmul.f32 %v10462_v6, %v3925_v10  ;;  %6562 = vpow2.f32 %v6069_v20  ;;  %v3916_v10 = vsel %vm10508_vm3, %v10441_v1, %v3912_v43 }
 0x3cc   : > { %v3920_v1 = vor.u32 1.1754944e-38, %v3919_v35  ;;  %v3932_v20 = vand.u32 2147483647, %v10416_v40  ;;  %v6070_v35 = vmul.f32 -1.442695, %v3614_v46  ;;  %vm3944_vm1 = vweird.f32 %v10486_v54 }
 0x3cd   : > { %v3940_v2 = vsub.f32 1.0, %v3939_v13  ;;  %v3927_v30 = vadd.f32 %v10462_v6, %v3926_v21  ;;  %vm3943_vm3 = vweird.f32 %v10455_v55 }
 0x3ce   : > { %4510 = vrot.lane.b32.xlu1 %v10465_v59, %s6705_s17  ;;  %v3921_v28 = vsel %vm3918_vm9, %v3920_v1, %v3916_v10  ;;  %vm3933_vm7 = vcmp.eq.f32.partialorder %v3932_v20, 8.507059e+37  ;;  %v3615_v10 = vadd.f32 %v10412_v7, %v7999_v0  ;;  %v3947_v7 = vand.u32 2147483647, %v10455_v55  ;;  %vm10592_vm5 = vmor %vm3943_vm3, %vm3944_vm1 }
 0x3cf   : > { %v3626_v20 = vadd.f32 %v10342_v17, %v12548_v37 }
 0x3d0   : > { %v10475_v41 = vpop.permute.xlu1 %3562  ;;  %4806 = vrot.lane.b32.xlu0 %v10465_v59, %s6706_s10  ;;  %v10541_v43 = vpop.eup %6560  ;;  %vm3948_vm8 = vcmp.eq.f32.partialorder %v3947_v7, 8.507059e+37 }
 0x3d1   : > { %v10481_v36 = vpop.permute.xlu2 %3564  ;;  %4971 = vrot.lane.b32.xlu2 %v10429_v3, %s6707_s20  ;;  %v10523_v3 = vrot.slane %v10465_v59, 7  ;;  %v6563_v21 = vpop.eup %6562  ;;  %v3954_v0 = vmul.f32 %v10541_v43, %v10488_v63  ;;  %vm3959_vm9 = vweird.f32 %v10541_v43 }
 0x3d2   : > { %v4497_v31 = vpop.permute.xlu0 %4496 }
 0x3d3   : > { %4591 = vst.msk [vmem:[%s6795_s23 + $0x8] sm:$0xff] %vm850_vm2, %v4497_v31  ;;  %v10550_v13 = vsel %vm4622_vm11, %v10523_v3, %v4636_v29  ;;  %v3955_v37 = vsub.f32 1.0, %v3954_v0 }
 0x3d4   : > { %5149 = vst.msk [vmem:[#allocation2 + $0x20] sm:$0xff] %vm850_vm2, %v4497_v31  ;;  %v10519_v31 = vadd.f32 1.0, %v6559_v42  ;;  %v3616_v42 = vadd.f32 %v10393_v53, %v12566_v12 }
 0x3d5   : > { %12684 = vst [vmem:[#allocation16_spill] sm:$0xff] %v10523_v3 }
 0x3d6   : > { %4808 = vrot.lane.b32.xlu1 %v10491_v25, %s6706_s10  ;;  %6564 = vrcp.f32 %v10519_v31  ;;  %12688 = vst [vmem:[#allocation45_spill] sm:$0xff] %v10550_v13  ;;  %vm3973_vm3 = vweird.f32 %v10519_v31 }
 0x3d7   : > { %6566 = vpow2.f32 %v6070_v35 }
 0x3d8   : > { %v4669_v27 = vpop.permute.xlu1 %4668  ;;  %4684 = vrot.lane.b32.xlu0 %v10523_v3, %s6705_s17 }
 0x3d9   : > { %4760 = vst.msk [vmem:[#allocation2 + $0x30] sm:$0xfe] %vm4759_vm14, %v4669_v27  ;;  %v4960_v50 = vpop.permute.xlu2 %4959  ;;  %v4633_v27 = vrot.slane %v10409_v58, 7 }
 0x3da   : > { %4881 = vst.msk [vmem:[#allocation2 + $0x30] sm:$0xff] %vm4880_vm6, %v10433_v33  ;;  %v3931_v33 = vsel %vm10543_vm12, %v10462_v6, %v3927_v30  ;;  %v10566_v30 = vadd.f32 1.0, %v6563_v21  ;;  %vm3958_vm12 = vweird.f32 %v10488_v63 }
 0x3db   : > { %v10531_v24 = vsel %vm4622_vm11, %v10396_v49, %v4633_v27  ;;  %v3941_v27 = vmul.f32 %v10486_v54, %v3940_v2  ;;  %v10564_v2 = vmul.f32 %v9981_v57, %v3921_v28  ;;  %v3936_v29 = vsel %vm3933_vm7, %v3935_v22, %v3931_v33  ;;  %vm10649_vm7 = vmor %vm3958_vm12, %vm3959_vm9 }
 0x3dc   : > { %12685 = vst [vmem:[#allocation44_spill] sm:$0xff] %v10531_v24  ;;  %4682 = vrot.lane.b32.xlu2 %v10531_v24, %s6705_s17  ;;  %v10573_v19 = vpop.eup %6564  ;;  %v3949_v57 = vand.u32 2147483648, %v10455_v55  ;;  %v10584_v1 = vmul.f32 %v9846_v15, %v3936_v29  ;;  %6568 = vrcp.f32 %v10566_v30  ;;  %v3627_v28 = vadd.f32 %v10457_v26, %v12556_v9 }
 0x3dd   : > { %12689 = vst [vmem:[#allocation9_spill] sm:$0xff] %v10564_v2  ;;  %v3942_v6 = vadd.f32 %v10486_v54, %v3941_v27  ;;  %v6567_v21 = vpop.eup %6566  ;;  %vm3974_vm1 = vweird.f32 %v10573_v19 }
 0x3de   : > { %4686 = vrot.lane.b32.xlu1 %v10550_v13, %s6705_s17  ;;  %12690 = vst [vmem:[#allocation60_spill] sm:$0xff] %v10584_v1  ;;  %v3950_v17 = vor.u32 1.1754944e-38, %v3949_v57  ;;  %v6083_v9 = vmul.f32 -1.442695, %v3627_v28  ;;  %v4639_v7 = vrot.slane %v10584_v1, 7 }
 0x3e0   : > { %v4958_v40 = vpop.permute.xlu1 %4957  ;;  %4514 = vrot.lane.b32.xlu0 %v10564_v2, %s6705_s17 }
 0x3e1   : > { %5048 = vst.msk [vmem:[#allocation2 + $0x30] sm:$0xff] %vm5047_vm4, %v4958_v40  ;;  %v4671_v46 = vpop.permute.xlu2 %4670  ;;  %v3969_v40 = vmul.f32 %v10573_v19, %v10519_v31 }
 0x3e2   : > { %5118 = vst.msk [vmem:[#allocation2 + $0x30] sm:$0xfe] %vm5114_vm13, %v10235_v60  ;;  %v10614_v22 = vpop.eup %6568 }
 0x3e3   : > { %4761 = vst.msk [vmem:[#allocation2 + $0x48] sm:$0xff] %vm850_vm2, %v4671_v46  ;;  %v3970_v33 = vsub.f32 1.0, %v3969_v40  ;;  %v10617_v46 = vadd.f32 1.0, %v6567_v21  ;;  %v3984_v0 = vmul.f32 %v10614_v22, %v10566_v30  ;;  %v3962_v40 = vand.u32 2147483647, %v10488_v63 }
 0x3e4   : > { %4882 = vst.msk [vmem:[#allocation2 + $0x48] sm:$0xff] %vm4880_vm6, %v10448_v61  ;;  %v6071_v61 = vmul.f32 -1.442695, %v3615_v10  ;;  %4512 = vrot.lane.b32.xlu2 %v10491_v25, %s6705_s17  ;;  %v3956_v10 = vmul.f32 %v10541_v43, %v3955_v37  ;;  %vm3989_vm12 = vweird.f32 %v10614_v22 }
 0x3e5   : > { %5050 = vst.msk [vmem:[#allocation2 + $0x48] sm:$0x7f] %vm5049_vm0, %v4960_v50  ;;  %v3946_v50 = vsel %vm10592_vm5, %v10486_v54, %v3942_v6  ;;  %v6082_v54 = vmul.f32 -1.442695, %v3626_v20  ;;  %v3971_v57 = vmul.f32 %v10573_v19, %v3970_v33  ;;  %v3985_v21 = vsub.f32 1.0, %v3984_v0 }
 0x3e6   : > { %5119 = vst.msk [vmem:[#allocation2 + $0x48] sm:$0xff] %vm5116_vm10, %v10318_v39  ;;  %4516 = vrot.lane.b32.xlu1 %v10584_v1, %s6705_s17  ;;  %6570 = vpow2.f32 %v6071_v61  ;;  %v3951_v27 = vsel %vm3948_vm8, %v3950_v17, %v3946_v50  ;;  %v3964_v61 = vand.u32 2147483648, %v10488_v63  ;;  %v6072_v33 = vmul.f32 -1.442695, %v3616_v42  ;;  %vm10674_vm8 = vmor %vm3973_vm3, %vm3974_vm1 }
 0x3e7   : > { %v10622_v29 = vmul.f32 %v9998_v4, %v3951_v27  ;;  %6572 = vpow2.f32 %v6082_v54  ;;  %v3957_v4 = vadd.f32 %v10541_v43, %v3956_v10  ;;  %v3972_v28 = vadd.f32 %v10573_v19, %v3971_v57 }
 0x3e8   : > { %v4499_v55 = vpop.permute.xlu1 %4498  ;;  %4812 = vrot.lane.b32.xlu0 %v10584_v1, %s6706_s10  ;;  %6574 = vrcp.f32 %v10617_v46  ;;  %v3979_v54 = vand.u32 2147483648, %v10519_v31  ;;  %v3977_v27 = vand.u32 2147483647, %v10519_v31  ;;  %vm3963_vm5 = vcmp.eq.f32.partialorder %v3962_v40, 8.507059e+37 }
 0x3e9   : > { %4592 = vst.msk [vmem:[%s6795_s23 + $0x10] sm:$0xff] %vm850_vm2, %v4499_v55  ;;  %v4501_v35 = vpop.permute.xlu2 %4500  ;;  %6576 = vpow2.f32 %v6083_v9  ;;  %v3961_v63 = vsel %vm10649_vm7, %v10541_v43, %v3957_v4  ;;  %v10670_v10 = vrot.slane %v10622_v29, 7  ;;  %v3976_v4 = vsel %vm10674_vm8, %v10573_v19, %v3972_v28 }
 0x3ea   : > { %v10597_v15 = vpop.permute.xlu0 %3542  ;;  %5150 = vst.msk [vmem:[#allocation2 + $0x38] sm:$0xff] %vm850_vm2, %v4499_v55  ;;  %v10641_v55 = vrot.slane %v10564_v2, 7  ;;  %vm3978_vm9 = vcmp.eq.f32.partialorder %v3977_v27, 8.507059e+37  ;;  %vm3988_vm7 = vweird.f32 %v10566_v30  ;;  %vm4003_vm8 = vweird.f32 %v10617_v46 }
 0x3eb   : > { %4593 = vst.msk [vmem:[%s6795_s23 + $0x18] sm:$0xff] %vm850_vm2, %v4501_v35  ;;  %vm3990_vm1 = vmor %vm3988_vm7, %vm3989_vm12 }
 0x3ec   : > { %5151 = vst.msk [vmem:[#allocation2 + $0x50] sm:$0xff] %vm850_vm2, %v4501_v35  ;;  %4810 = vrot.lane.b32.xlu2 %v10564_v2, %s6706_s10  ;;  %v6571_v6 = vpop.eup %6570  ;;  %v10657_v12 = vsel %vm4622_vm11, %v10641_v55, %v4639_v7  ;;  %v3965_v35 = vor.u32 1.1754944e-38, %v3964_v61  ;;  %v3986_v7 = vmul.f32 %v10614_v22, %v3985_v21  ;;  %v3980_v61 = vor.u32 1.1754944e-38, %v3979_v54 }
 0x3ed   : > { %12693 = vst [vmem:[#allocation101_spill] sm:$0xff] %v10622_v29  ;;  %v10647_v37 = vadd.f32 1.0, %v6571_v6  ;;  %v6573_v53 = vpop.eup %6572 }
 0x3ee   : > { %4814 = vrot.lane.b32.xlu1 %v10622_v29, %s6706_s10  ;;  %v10672_v9 = vpop.eup %6574  ;;  %v3966_v31 = vsel %vm3963_vm5, %v3965_v35, %v3961_v63  ;;  %v10681_v57 = vadd.f32 1.0, %v6573_v53  ;;  %v3981_v53 = vsel %vm3978_vm9, %v3980_v61, %v3976_v4  ;;  %v3987_v19 = vadd.f32 %v10614_v22, %v3986_v7 }
 0x3ef   : > { %6578 = vrcp.f32 %v10647_v37  ;;  %v6577_v0 = vpop.eup %6576  ;;  %v10693_v17 = vmul.f32 %v10003_v14, %v3966_v31  ;;  %v3999_v21 = vmul.f32 %v10672_v9, %v10617_v46  ;;  %v3994_v35 = vand.u32 2147483648, %v10566_v30 }
 0x3f0   : > { %v10626_v26 = vpop.permute.xlu1 %3544  ;;  %4690 = vrot.lane.b32.xlu0 %v10657_v12, %s6705_s17  ;;  %6580 = vpow2.f32 %v6072_v33  ;;  %v10697_v63 = vadd.f32 1.0, %v6577_v0  ;;  %v3992_v14 = vand.u32 2147483647, %v10566_v30  ;;  %v10711_v54 = vmul.f32 %v9951_v48, %v3981_v53 }
 0x3f1   : > { %v10643_v50 = vpop.permute.xlu2 %3546  ;;  %12698 = vst [vmem:[#allocation29_spill] sm:$0xff] %v10693_v17  ;;  %6582 = vrcp.f32 %v10681_v57  ;;  %v3991_v43 = vsel %vm3990_vm1, %v10614_v22, %v3987_v19  ;;  %v3995_v48 = vor.u32 1.1754944e-38, %v3994_v35  ;;  %v3618_v31 = vadd.f32 %v10597_v15, %v12574_v8 }
 0x3f2   : > { %v4795_v20 = vpop.permute.xlu0 %4794  ;;  %12699 = vst [vmem:[#allocation40_spill] sm:$0xff] %v10711_v54  ;;  %6584 = vrcp.f32 %v10697_v63  ;;  %vm3993_vm3 = vcmp.eq.f32.partialorder %v3992_v14, 8.507059e+37  ;;  %v4007_v8 = vand.u32 2147483647, %v10617_v46  ;;  %vm4004_vm5 = vweird.f32 %v10672_v9 }
 0x3f3   : > { %v6074_v35 = vmul.f32 -1.442695, %v3618_v31  ;;  %vm10757_vm9 = vmor %vm4003_vm8, %vm4004_vm5  ;;  %vm4018_vm1 = vweird.f32 %v10647_v37  ;;  %vm4183_vm8 = vweird.f32 %v10681_v57 }
 0x3f4   : > { %4688 = vrot.lane.b32.xlu2 %v10641_v55, %s6705_s17  ;;  %vm10761_vm12 = vcmp.eq.f32.partialorder %v4007_v8, 8.507059e+37  ;;  %v3617_v8 = vadd.f32 %v10401_v32, %v12572_v11  ;;  %v4022_v11 = vand.u32 2147483647, %v10647_v37  ;;  %v3628_v32 = vadd.f32 %v10475_v41, %v12569_v51 }
 0x3f5   : > { %v10703_v28 = vpop.eup %6578 }
 0x3f6   : > { %4692 = vrot.lane.b32.xlu1 %v10670_v10, %s6705_s17  ;;  %v6581_v33 = vpop.eup %6580  ;;  %v4014_v0 = vmul.f32 %v10703_v28, %v10647_v37  ;;  %vm4019_vm7 = vweird.f32 %v10703_v28 }
 0x3f7   : > { %v10723_v30 = vpop.eup %6582  ;;  %v10730_v22 = vadd.f32 1.0, %v6581_v33 }
 0x3f8   : > { %v10679_v6 = vpop.permute.xlu1 %4796  ;;  %4520 = vrot.lane.b32.xlu0 %v10693_v17, %s6705_s17  ;;  %v10735_v53 = vpop.eup %6584  ;;  %v4179_v19 = vmul.f32 %v10723_v30, %v10681_v57  ;;  %vm4184_vm5 = vweird.f32 %v10723_v30 }
 0x3f9   : > { %v10689_v40 = vpop.permute.xlu2 %4798  ;;  %6586 = vrcp.f32 %v10730_v22 }
 0x3fa   : > { %v4673_v42 = vpop.permute.xlu0 %4672  ;;  %6588 = vpow2.f32 %v6074_v35 }
 0x3fb   : > { %4762 = vst.msk [vmem:[#allocation2 + $0x60] sm:$0xfe] %vm4759_vm14, %v4673_v42  ;;  %v3996_v42 = vsel %vm3993_vm3, %v3995_v48, %v3991_v43  ;;  %v4194_v43 = vmul.f32 %v10735_v53, %v10697_v63  ;;  %vm10805_vm3 = vmor %vm4018_vm1, %vm4019_vm7  ;;  %vm4199_vm7 = vweird.f32 %v10735_v53  ;;  %vm4198_vm1 = vweird.f32 %v10697_v63 }
 0x3fc   : > { %4883 = vst.msk [vmem:[#allocation2 + $0x60] sm:$0xff] %vm4880_vm6, %v4795_v20  ;;  %4518 = vrot.lane.b32.xlu2 %v10622_v29, %s6705_s17  ;;  %v4000_v20 = vsub.f32 1.0, %v3999_v21  ;;  %v4015_v21 = vsub.f32 1.0, %v4014_v0  ;;  %v10743_v15 = vmul.f32 %v10024_v23, %v3996_v42  ;;  %v4009_v23 = vand.u32 2147483648, %v10617_v46 }
 0x3fd   : > { %v4180_v0 = vsub.f32 1.0, %v4179_v19  ;;  %v4642_v46 = vrot.slane %v10693_v17, 7 }
 0x3fe   : > { %4522 = vrot.lane.b32.xlu1 %v10711_v54, %s6705_s17  ;;  %v4001_v61 = vmul.f32 %v10672_v9, %v4000_v20  ;;  %12700 = vst [vmem:[#allocation48_spill] sm:$0xff] %v10743_v15  ;;  %v4016_v33 = vmul.f32 %v10703_v28, %v4015_v21  ;;  %v10772_v21 = vrot.slane %v10711_v54, 7  ;;  %v4645_v19 = vrot.slane %v10743_v15, 7 }
 0x3ff   : > { %v4181_v48 = vmul.f32 %v10723_v30, %v4180_v0  ;;  %v10788_v60 = vsel %vm4622_vm11, %v10670_v10, %v4642_v46 }
 0x400   : > { %v10716_v27 = vpop.permute.xlu1 %3550  ;;  %4818 = vrot.lane.b32.xlu0 %v10711_v54, %s6706_s10  ;;  %v4002_v14 = vadd.f32 %v10672_v9, %v4001_v61  ;;  %v4017_v35 = vadd.f32 %v10703_v28, %v4016_v33 }
 0x401   : > { %v10727_v7 = vpop.permute.xlu2 %3552 }
 0x402   : > { %v4962_v4 = vpop.permute.xlu0 %4961  ;;  %v4006_v42 = vsel %vm10757_vm9, %v10672_v9, %v4002_v14  ;;  %v10782_v9 = vpop.eup %6586  ;;  %v4010_v14 = vor.u32 1.1754944e-38, %v4009_v23  ;;  %vm4023_vm9 = vcmp.eq.f32.partialorder %v4022_v11, 8.507059e+37 }
 0x403   : > { %5051 = vst.msk [vmem:[#allocation2 + $0x60] sm:$0xff] %vm5047_vm4, %v4962_v4  ;;  %v3619_v4 = vadd.f32 %v10626_v26, %v12581_v16  ;;  %v4195_v16 = vsub.f32 1.0, %v4194_v43  ;;  %v6589_v41 = vpop.eup %6588  ;;  %v4029_v0 = vmul.f32 %v10782_v9, %v10730_v22 }
 0x404   : > { %5120 = vst.msk [vmem:[#allocation2 + $0x60] sm:$0xfe] %vm5114_vm13, %v10357_v52  ;;  %4816 = vrot.lane.b32.xlu2 %v10693_v17, %s6706_s10  ;;  %v4024_v52 = vand.u32 2147483648, %v10647_v37  ;;  %v4011_v43 = vsel %vm10761_vm12, %v4010_v14, %v4006_v42  ;;  %v10811_v37 = vsel %vm4622_vm11, %v10772_v21, %v4645_v19  ;;  %v4189_v42 = vand.u32 2147483648, %v10681_v57  ;;  %vm10841_vm12 = vmor %vm4183_vm8, %vm4184_vm5 }
 0x405   : > { %v6075_v33 = vmul.f32 -1.442695, %v3619_v4  ;;  %v6073_v4 = vmul.f32 -1.442695, %v3617_v8  ;;  %v4196_v31 = vmul.f32 %v10735_v53, %v4195_v16  ;;  %v10832_v8 = vmul.f32 %v10046_v62, %v4011_v43  ;;  %vm10862_vm5 = vmor %vm4198_vm1, %vm4199_vm7 }
 0x406   : > { %4820 = vrot.lane.b32.xlu1 %v10743_v15, %s6706_s10  ;;  %v4025_v46 = vor.u32 1.1754944e-38, %v4024_v52  ;;  %v4204_v14 = vand.u32 2147483648, %v10697_v63 }
 0x407   : > { %6590 = vpow2.f32 %v6075_v33  ;;  %12707 = vst [vmem:[#allocation102_spill] sm:$0xff] %v10832_v8 }
 0x408   : > { %v4964_v20 = vpop.permute.xlu1 %4963  ;;  %4696 = vrot.lane.b32.xlu0 %v10772_v21, %s6705_s17  ;;  %6592 = vpow2.f32 %v6073_v4  ;;  %v4205_v23 = vor.u32 1.1754944e-38, %v4204_v14  ;;  %v10920_v14 = vrot.slane %v10832_v8, 7 }
 0x409   : > { %v4677_v26 = vpop.permute.xlu2 %4676 }
 0x40a   : > { %v4503_v61 = vpop.permute.xlu0 %4502  ;;  %4764 = vst.msk [vmem:[#allocation2 + $0x90] sm:$0xfe] %vm4759_vm14, %v4677_v26  ;;  %v10835_v26 = vadd.f32 1.0, %v6589_v41 }
 0x40b   : > { %4594 = vst.msk [vmem:[%s6795_s23 + $0x20] sm:$0xff] %vm850_vm2, %v4503_v61 }
 0x40c   : > { %5152 = vst.msk [vmem:[#allocation2 + $0x68] sm:$0xff] %vm850_vm2, %v4503_v61  ;;  %4694 = vrot.lane.b32.xlu2 %v10788_v60, %s6705_s17  ;;  %v4182_v61 = vadd.f32 %v10723_v30, %v4181_v48  ;;  %v3629_v48 = vadd.f32 %v10481_v36, %v12579_v44 }
 0x40d   : > { %4885 = vst.msk [vmem:[#allocation2 + $0x90] sm:$0xff] %vm4880_vm6, %v10689_v40  ;;  %v4021_v40 = vsel %vm10805_vm3, %v10703_v28, %v4017_v35  ;;  %v6084_v28 = vmul.f32 -1.442695, %v3628_v32  ;;  %v4187_v35 = vand.u32 2147483647, %v10681_v57  ;;  %v4190_v57 = vor.u32 1.1754944e-38, %v4189_v42  ;;  %v6591_v36 = vpop.eup %6590 }
 0x40e   : > { %4698 = vrot.lane.b32.xlu1 %v10811_v37, %s6705_s17  ;;  %v4026_v16 = vsel %vm4023_vm9, %v4025_v46, %v4021_v40  ;;  %v4186_v62 = vsel %vm10841_vm12, %v10723_v30, %v4182_v61  ;;  %v4202_v32 = vand.u32 2147483647, %v10697_v63  ;;  %v6085_v41 = vmul.f32 -1.442695, %v3629_v48 }
 0x40f   : > { %v10856_v11 = vmul.f32 %v9991_v45, %v4026_v16  ;;  %6594 = vpow2.f32 %v6084_v28  ;;  %vm4188_vm3 = vcmp.eq.f32.partialorder %v4187_v35, 8.507059e+37  ;;  %vm4034_vm9 = vweird.f32 %v10782_v9 }
 0x410   : > { %v4675_v51 = vpop.permute.xlu1 %4674  ;;  %4526 = vrot.lane.b32.xlu0 %v10832_v8, %s6705_s17  ;;  %6596 = vrcp.f32 %v10835_v26  ;;  %v4191_v33 = vsel %vm4188_vm3, %v4190_v57, %v4186_v62  ;;  %vm4203_vm8 = vcmp.eq.f32.partialorder %v4202_v32, 8.507059e+37  ;;  %vm4033_vm12 = vweird.f32 %v10730_v22 }
 0x411   : > { %4763 = vst.msk [vmem:[#allocation2 + $0x78] sm:$0xff] %vm850_vm2, %v4675_v51  ;;  %v6593_v51 = vpop.eup %6592  ;;  %6598 = vpow2.f32 %v6085_v41  ;;  %vm4035_vm7 = vmor %vm4033_vm12, %vm4034_vm9 }
 0x412   : > { %4884 = vst.msk [vmem:[#allocation2 + $0x78] sm:$0xff] %vm4880_vm6, %v10679_v6  ;;  %v10829_v19 = vpop.permute.xlu0 %3548  ;;  %v4030_v6 = vsub.f32 1.0, %v4029_v0  ;;  %v3622_v0 = vadd.f32 %v10716_v27, %v12593_v47  ;;  %v4039_v47 = vand.u32 2147483648, %v10730_v22  ;;  %v10894_v27 = vadd.f32 1.0, %v6593_v51 }
 0x413   : > { %5052 = vst.msk [vmem:[#allocation2 + $0x78] sm:$0x7f] %vm5049_vm0, %v4964_v20  ;;  %v4197_v20 = vadd.f32 %v10735_v53, %v4196_v31  ;;  %v4966_v43 = vpop.permute.xlu2 %4965  ;;  %v10885_v31 = vadd.f32 1.0, %v6591_v36  ;;  %v3621_v41 = vadd.f32 %v10829_v19, %v8328_v18  ;;  %v4069_v18 = vand.u32 2147483648, %v10835_v26 }
 0x414   : > { %5121 = vst.msk [vmem:[#allocation2 + $0x78] sm:$0xff] %vm5116_vm10, %v10420_v38  ;;  %4524 = vrot.lane.b32.xlu2 %v10743_v15, %s6705_s17  ;;  %v4031_v45 = vmul.f32 %v10782_v9, %v4030_v6  ;;  %v6078_v35 = vmul.f32 -1.442695, %v3622_v0  ;;  %v4067_v19 = vand.u32 2147483647, %v10835_v26  ;;  %v12764_v38 = vld [vmem:[#allocation99_spill] sm:$0xff] }
 0x415   : > { %12710 = vst [vmem:[#allocation22_spill] sm:$0xff] %v10856_v11  ;;  %v4201_v63 = vsel %vm10862_vm5, %v10735_v53, %v4197_v20  ;;  %v10883_v53 = vmul.f32 %v10064_v5, %v4191_v33  ;;  %v6595_v61 = vpop.eup %6594  ;;  %v4037_v5 = vand.u32 2147483647, %v10730_v22  ;;  %6600 = vrcp.f32 %v10885_v31 }
 0x416   : > { %4528 = vrot.lane.b32.xlu1 %v10856_v11, %s6705_s17  ;;  %5053 = vst.msk [vmem:[#allocation2 + $0x90] sm:$0xff] %vm5047_vm4, %v4966_v43  ;;  %v4206_v40 = vsel %vm4203_vm8, %v4205_v23, %v4201_v63  ;;  %v4032_v42 = vadd.f32 %v10782_v9, %v4031_v45  ;;  %v10890_v46 = vpop.eup %6596  ;;  %v10908_v6 = vadd.f32 1.0, %v6595_v61  ;;  %6602 = vrcp.f32 %v10894_v27 }
 0x417   : > { %5122 = vst.msk [vmem:[#allocation2 + $0x90] sm:$0xfe] %vm5114_vm13, %v10396_v49  ;;  %v10900_v28 = vmul.f32 %v10006_v56, %v4206_v40  ;;  %v4059_v22 = vmul.f32 %v10890_v46, %v10835_v26  ;;  %v4040_v56 = vor.u32 1.1754944e-38, %v4039_v47  ;;  %vm4038_vm1 = vcmp.eq.f32.partialorder %v4037_v5, 8.507059e+37 }
 0x418   : > { %v4505_v44 = vpop.permute.xlu1 %4504  ;;  %12713 = vst [vmem:[#allocation49_spill] sm:$0xff] %v10883_v53  ;;  %4550 = vrot.lane.b32.xlu0 %v10883_v53, %s6705_s17  ;;  %v4036_v52 = vsel %vm4035_vm7, %v10782_v9, %v4032_v42  ;;  %6604 = vpow2.f32 %v6078_v35  ;;  %v6599_v9 = vpop.eup %6598  ;;  %vm4064_vm3 = vweird.f32 %v10890_v46  ;;  %vm4063_vm5 = vweird.f32 %v10835_v26 }
 0x419   : > { %4595 = vst.msk [vmem:[%s6795_s23 + $0x28] sm:$0xff] %vm850_vm2, %v4505_v44  ;;  %v4041_v62 = vsel %vm4038_vm1, %v4040_v56, %v4036_v52  ;;  %6606 = vrcp.f32 %v10908_v6  ;;  %v4060_v57 = vsub.f32 1.0, %v4059_v22  ;;  %v10933_v36 = vadd.f32 1.0, %v6599_v9  ;;  %vm10974_vm8 = vmor %vm4063_vm5, %vm4064_vm3 }
 0x41a   : > { %v10880_v4 = vpop.permute.xlu0 %4800  ;;  %5153 = vst.msk [vmem:[#allocation2 + $0x80] sm:$0xff] %vm850_vm2, %v4505_v44  ;;  %v10927_v30 = vmul.f32 %v10092_v34, %v4041_v62  ;;  %v4648_v34 = vrot.slane %v10856_v11, 7  ;;  %v6077_v35 = vmul.f32 -1.442695, %v3621_v41  ;;  %v12718_v62 = vld [vmem:[#allocation106_spill] sm:$0xff]  ;;  %vm4068_vm9 = vcmp.eq.f32.partialorder %v4067_v19, 8.507059e+37 }
 0x41b   : > { %12714 = vst [vmem:[#allocation46_spill] sm:$0xff] %v10900_v28  ;;  %v4507_v20 = vpop.permute.xlu2 %4506  ;;  %v10922_v32 = vpop.eup %6600  ;;  %v4061_v63 = vmul.f32 %v10890_v46, %v4060_v57  ;;  %6608 = vrcp.f32 %v10933_v36  ;;  %v3620_v9 = vadd.f32 %v10643_v50, %v12718_v62  ;;  %v12719_v50 = vld [vmem:[#allocation56_spill] sm:$0xff]  ;;  %vm4078_vm7 = vweird.f32 %v10885_v31 }
 0x41c   : > { %4822 = vrot.lane.b32.xlu2 %v10832_v8, %s6706_s10  ;;  %4596 = vst.msk [vmem:[%s6795_s23 + $0x30] sm:$0xff] %vm850_vm2, %v4507_v20  ;;  %v10931_v44 = vpop.eup %6602  ;;  %v4074_v43 = vmul.f32 %v10922_v32, %v10885_v31  ;;  %v10958_v47 = vsel %vm4622_vm11, %v10920_v14, %v4648_v34  ;;  %v10972_v22 = vrot.slane %v10927_v30, 7  ;;  %v4070_v34 = vor.u32 1.1754944e-38, %v4069_v18 }
 0x41d   : > { %5154 = vst.msk [vmem:[#allocation2 + $0x98] sm:$0xff] %vm850_vm2, %v4507_v20  ;;  %v4044_v0 = vmul.f32 %v10931_v44, %v10894_v27  ;;  %v4062_v61 = vadd.f32 %v10890_v46, %v4061_v63  ;;  %vm4079_vm12 = vweird.f32 %v10922_v32  ;;  %v4082_v62 = vand.u32 2147483647, %v10885_v31 }
 0x41e   : > { %4552 = vrot.lane.b32.xlu1 %v10900_v28, %s6705_s17  ;;  %12715 = vst [vmem:[#allocation103_spill] sm:$0xff] %v10927_v30  ;;  %v6605_v45 = vpop.eup %6604  ;;  %v4075_v42 = vsub.f32 1.0, %v4074_v43  ;;  %vm4048_vm1 = vweird.f32 %v10894_v27  ;;  %vm4049_vm3 = vweird.f32 %v10931_v44  ;;  %vm11021_vm5 = vmor %vm4078_vm7, %vm4079_vm12  ;;  %vm4213_vm7 = vweird.f32 %v10908_v6 }
 0x41f   : > { %v10945_v51 = vpop.eup %6606  ;;  %v10952_v40 = vadd.f32 1.0, %v6605_v45  ;;  %v4045_v20 = vsub.f32 1.0, %v4044_v0  ;;  %v4066_v26 = vsel %vm10974_vm8, %v10890_v46, %v4062_v61  ;;  %v6076_v61 = vmul.f32 -1.442695, %v3620_v9  ;;  %v12723_v9 = vld [vmem:[#allocation73_spill] sm:$0xff] }
 0x420   : > { %v10905_v16 = vpop.permute.xlu1 %4802  ;;  %4824 = vrot.lane.b32.xlu0 %v10856_v11, %s6706_s10  ;;  %v4209_v5 = vmul.f32 %v10945_v51, %v10908_v6  ;;  %v4076_v57 = vmul.f32 %v10922_v32, %v4075_v42  ;;  %v4071_v46 = vsel %vm4068_vm9, %v4070_v34, %v4066_v26  ;;  %v3623_v26 = vadd.f32 %v10727_v7, %v12723_v9  ;;  %vm11044_vm9 = vmor %vm4048_vm1, %vm4049_vm3 }
 0x421   : > { %6610 = vrcp.f32 %v10952_v40  ;;  %v10987_v63 = vpop.eup %6608  ;;  %v4046_v56 = vmul.f32 %v10931_v44, %v4045_v20  ;;  %vm4214_vm8 = vweird.f32 %v10945_v51  ;;  %vm4083_vm12 = vcmp.eq.f32.partialorder %v4082_v62, 8.507059e+37 }
 0x422   : > { %v3555_v48 = vpop.permute.xlu0 %3554  ;;  %v4210_v43 = vsub.f32 1.0, %v4209_v5  ;;  %6612 = vpow2.f32 %v6077_v35  ;;  %v4077_v42 = vadd.f32 %v10922_v32, %v4076_v57  ;;  %v10997_v5 = vrot.slane %v10883_v53, 7  ;;  %vm11068_vm1 = vmor %vm4213_vm7, %vm4214_vm8 }
 0x423   : > { %v10940_v23 = vpop.permute.xlu2 %4804  ;;  %v3624_v0 = vadd.f32 %v3555_v48, %v12719_v50  ;;  %v4224_v19 = vmul.f32 %v10987_v63, %v10933_v36  ;;  %v4084_v35 = vand.u32 2147483648, %v10885_v31  ;;  %v4047_v34 = vadd.f32 %v10931_v44, %v4046_v56 }
 0x424   : > { %4700 = vrot.lane.b32.xlu2 %v10920_v14, %s6705_s17  ;;  %12720 = vst [vmem:[#allocation20_spill] sm:$0xff] %v10997_v5  ;;  %v4211_v48 = vmul.f32 %v10945_v51, %v4210_v43  ;;  %6614 = vpow2.f32 %v6076_v61  ;;  %v4052_v31 = vand.u32 2147483647, %v10894_v27  ;;  %v4081_v50 = vsel %vm11021_vm5, %v10922_v32, %v4077_v42 }
 0x425   : > { %v6080_v57 = vmul.f32 -1.442695, %v3624_v0  ;;  %v4054_v61 = vand.u32 2147483648, %v10894_v27  ;;  %v4085_v9 = vor.u32 1.1754944e-38, %v4084_v35  ;;  %v4219_v35 = vand.u32 2147483648, %v10908_v6 }
 0x426   : > { %4826 = vrot.lane.b32.xlu1 %v10927_v30, %s6706_s10  ;;  %v4212_v42 = vadd.f32 %v10945_v51, %v4211_v48  ;;  %v4217_v48 = vand.u32 2147483647, %v10908_v6  ;;  %vm4053_vm3 = vcmp.eq.f32.partialorder %v4052_v31, 8.507059e+37  ;;  %vm4229_vm8 = vweird.f32 %v10987_v63 }
 0x427   : > { %v10999_v18 = vpop.eup %6610  ;;  %6616 = vpow2.f32 %v6080_v57 }
 0x428   : > { %v10935_v33 = vpop.permute.xlu1 %3556  ;;  %4702 = vrot.lane.b32.xlu0 %v10958_v47, %s6705_s17  ;;  %v6613_v7 = vpop.eup %6612  ;;  %v4119_v0 = vmul.f32 %v10999_v18, %v10952_v40  ;;  %v4216_v6 = vsel %vm11068_vm1, %v10945_v51, %v4212_v42  ;;  %vm4218_vm5 = vcmp.eq.f32.partialorder %v4217_v48, 8.507059e+37  ;;  %v4234_v42 = vand.u32 2147483648, %v10933_v36 }
 0x429   : > { %v11055_v27 = vadd.f32 1.0, %v6613_v7  ;;  %vm4124_vm7 = vweird.f32 %v10999_v18  ;;  %vm4123_vm1 = vweird.f32 %v10952_v40 }
 0x42a   : > { %v10969_v52 = vpop.permute.xlu0 %4967  ;;  %v4120_v62 = vsub.f32 1.0, %v4119_v0  ;;  %v4220_v0 = vor.u32 1.1754944e-38, %v4219_v35  ;;  %v4232_v35 = vand.u32 2147483647, %v10933_v36 }
 0x42b   : > { %v4972_v45 = vpop.permute.xlu2 %4971 }
 0x42c   : > { %4846 = vrot.lane.b32.xlu2 %v10883_v53, %s6706_s10 }
 0x42e   : > { %4704 = vrot.lane.b32.xlu1 %v10972_v22, %s6705_s17 }
 0x430   : > { %v4681_v41 = vpop.permute.xlu1 %4680  ;;  %4848 = vrot.lane.b32.xlu0 %v10900_v28, %s6706_s10 }
 0x431   : > { %4766 = vst.msk [vmem:[#allocation2 + $0xc0] sm:$0xfe] %vm4759_vm14, %v4681_v41  ;;  %v4086_v41 = vsel %vm4083_vm12, %v4085_v9, %v4081_v50 }
 0x432   : > { %4887 = vst.msk [vmem:[#allocation2 + $0xc0] sm:$0xff] %vm4880_vm6, %v10905_v16  ;;  %v12721_v16 = vld [vmem:[#allocation8_spill] sm:$0xff]  ;;  %v4679_v43 = vpop.permute.xlu0 %4678 }
 0x433   : > { %v11009_v20 = vmul.f32 %v12721_v16, %v4071_v46  ;;  %4765 = vst.msk [vmem:[#allocation2 + $0xa8] sm:$0xff] %vm850_vm2, %v4679_v43  ;;  %v4666_v46 = vrot.slane %v10900_v28, 7  ;;  %v4225_v16 = vsub.f32 1.0, %v4224_v19  ;;  %v6079_v43 = vmul.f32 -1.442695, %v3623_v26 }
 0x434   : > { %4724 = vrot.lane.b32.xlu2 %v10997_v5, %s6705_s17  ;;  %4886 = vst.msk [vmem:[#allocation2 + $0xa8] sm:$0xff] %vm4880_vm6, %v10880_v4  ;;  %v4051_v19 = vsel %vm11044_vm9, %v10931_v44, %v4047_v34  ;;  %v6615_v44 = vpop.eup %6614  ;;  %v4055_v26 = vor.u32 1.1754944e-38, %v4054_v61  ;;  %v12731_v34 = vld [vmem:[#allocation32_spill] sm:$0xff]  ;;  %vm4228_vm9 = vweird.f32 %v10933_v36  ;;  %v12738_v36 = vld [vmem:[#allocation65_spill] sm:$0xff] }
 0x435   : > { %12722 = vst [vmem:[#allocation53_spill] sm:$0xff] %v11009_v20  ;;  %v11081_v7 = vmul.f32 %v12731_v34, %v4086_v41  ;;  %6618 = vpow2.f32 %v6079_v43  ;;  %v6617_v31 = vpop.eup %6616  ;;  %v11089_v51 = vadd.f32 1.0, %v6615_v44  ;;  %v12735_v43 = vld [vmem:[#allocation7_spill] sm:$0xff]  ;;  %vm11114_vm12 = vmor %vm4228_vm9, %vm4229_vm8  ;;  %v11136_v34 = vrot.slane %v11009_v20, 7  ;;  %v12740_v44 = vld [vmem:[#allocation14_spill] sm:$0xff] }
 0x436   : > { %v4683_v56 = vpop.permute.xlu2 %4682  ;;  %4534 = vrot.lane.b32.xlu1 %v11009_v20, %s6705_s17  ;;  %5054 = vst.msk [vmem:[#allocation2 + $0xa8] sm:$0x7f] %vm5049_vm0, %v10969_v52  ;;  %v4056_v50 = vsel %vm4053_vm3, %v4055_v26, %v4051_v19  ;;  %6620 = vrcp.f32 %v11055_v27  ;;  %v3625_v19 = vadd.f32 %v10935_v33, %v12735_v43  ;;  %v11109_v41 = vadd.f32 1.0, %v6617_v31 }
 0x437   : > { %4767 = vst.msk [vmem:[#allocation2 + $0xd8] sm:$0xff] %vm850_vm2, %v4683_v56  ;;  %v4121_v56 = vmul.f32 %v10999_v18, %v4120_v62  ;;  %v4654_v48 = vrot.slane %v11081_v7, 7  ;;  %6622 = vrcp.f32 %v11089_v51  ;;  %vm4233_vm3 = vcmp.eq.f32.partialorder %v4232_v35, 8.507059e+37 }
 0x438   : > { %v4970_v32 = vpop.permute.xlu1 %4969  ;;  %4888 = vst.msk [vmem:[#allocation2 + $0xd8] sm:$0xff] %vm4880_vm6, %v10940_v23  ;;  %v11064_v23 = vsel %vm4622_vm11, %v10997_v5, %v4666_v46  ;;  %6624 = vrcp.f32 %v11109_v41 }
 0x439   : > { %5056 = vst.msk [vmem:[#allocation2 + $0xd8] sm:$0x7f] %vm5049_vm0, %v4972_v45  ;;  %v4226_v45 = vmul.f32 %v10987_v63, %v4225_v16  ;;  %4726 = vrot.lane.b32.xlu0 %v11064_v23, %s6705_s17  ;;  %v4221_v16 = vsel %vm4218_vm5, %v4220_v0, %v4216_v6  ;;  %v4122_v33 = vadd.f32 %v10999_v18, %v4121_v56  ;;  %v4129_v6 = vand.u32 2147483648, %v10952_v40  ;;  %vm4125_vm5 = vmor %vm4123_vm1, %vm4124_vm7 }
 0x43a   : > { %5125 = vst.msk [vmem:[#allocation2 + $0xd8] sm:$0xff] %vm5116_vm10, %v10550_v13  ;;  %v4509_v52 = vpop.permute.xlu0 %4508  ;;  %v11123_v26 = vmul.f32 %v12738_v36, %v4221_v16  ;;  %v6081_v0 = vmul.f32 -1.442695, %v3625_v19  ;;  %v11148_v31 = vsel %vm4622_vm11, %v11136_v34, %v4654_v48  ;;  %v12739_v19 = vld [vmem:[#allocation38_spill] sm:$0xff] }
 0x43b   : > { %12728 = vst [vmem:[#allocation104_spill] sm:$0xff] %v11064_v23  ;;  %v4227_v61 = vadd.f32 %v10987_v63, %v4226_v45  ;;  %v6619_v62 = vpop.eup %6618  ;;  %v4126_v56 = vsel %vm4125_vm5, %v10999_v18, %v4122_v33  ;;  %vm4093_vm5 = vweird.f32 %v11089_v51 }
 0x43c   : > { %12732 = vst [vmem:[#allocation34_spill] sm:$0xff] %v11081_v7  ;;  %4530 = vrot.lane.b32.xlu2 %v10927_v30, %s6705_s17  ;;  %v11125_v57 = vpop.eup %6620  ;;  %6626 = vpow2.f32 %v6081_v0 }
 0x43d   : > { %5123 = vst.msk [vmem:[#allocation2 + $0xa8] sm:$0xff] %vm5116_vm10, %v10531_v24  ;;  %v4231_v45 = vsel %vm11114_vm12, %v10987_v63, %v4227_v61  ;;  %vm4109_vm9 = vweird.f32 %v11125_v57  ;;  %vm4108_vm12 = vweird.f32 %v11055_v27 }
 0x43e   : > { %5055 = vst.msk [vmem:[#allocation2 + $0xc0] sm:$0xff] %vm5047_vm4, %v4970_v32  ;;  %v4513_v46 = vpop.permute.xlu2 %4512  ;;  %4832 = vrot.lane.b32.xlu1 %v11081_v7, %s6706_s10  ;;  %v12733_v32 = vld [vmem:[#allocation78_spill] sm:$0xff]  ;;  %vm11209_vm7 = vmor %vm4108_vm12, %vm4109_vm9  ;;  %vm4153_vm12 = vweird.f32 %v11109_v41 }
 0x43f   : > { %5124 = vst.msk [vmem:[#allocation2 + $0xc0] sm:$0xfe] %vm5114_vm13, %v10523_v3  ;;  %v11101_v4 = vmul.f32 %v12733_v32, %v4056_v50  ;;  %v4127_v50 = vand.u32 2147483647, %v10952_v40  ;;  %v11151_v40 = vadd.f32 1.0, %v6619_v62 }
 0x440   : > { %4599 = vst.msk [vmem:[%s6795_s23 + $0x48] sm:$0xff] %vm850_vm2, %v4513_v46  ;;  %v4511_v9 = vpop.permute.xlu1 %4510 }
 0x441   : > { %12734 = vst [vmem:[#allocation54_spill] sm:$0xff] %v11101_v4  ;;  %4532 = vrot.lane.b32.xlu0 %v11101_v4, %s6705_s17  ;;  %vm4128_vm8 = vcmp.eq.f32.partialorder %v4127_v50, 8.507059e+37  ;;  %6628 = vrcp.f32 %v11151_v40 }
 0x442   : > { %5157 = vst.msk [vmem:[#allocation2 + $0xe0] sm:$0xff] %vm850_vm2, %v4513_v46  ;;  %v4807_v63 = vpop.permute.xlu0 %4806  ;;  %v4104_v46 = vmul.f32 %v11125_v57, %v11055_v27 }
 0x443   : > { %4597 = vst.msk [vmem:[%s6795_s23 + $0x38] sm:$0xff] %vm850_vm2, %v4509_v52 }
 0x444   : > { %5155 = vst.msk [vmem:[#allocation2 + $0xb0] sm:$0xff] %vm850_vm2, %v4509_v52  ;;  %v4235_v52 = vor.u32 1.1754944e-38, %v4234_v42  ;;  %4554 = vrot.lane.b32.xlu2 %v11123_v26, %s6705_s17  ;;  %v11157_v42 = vpop.eup %6622  ;;  %v4105_v18 = vsub.f32 1.0, %v4104_v46 }
 0x445   : > { %4598 = vst.msk [vmem:[%s6795_s23 + $0x40] sm:$0xff] %vm850_vm2, %v4511_v9  ;;  %v11163_v48 = vpop.eup %6624  ;;  %v4089_v62 = vmul.f32 %v11157_v42, %v11089_v51  ;;  %vm4094_vm1 = vweird.f32 %v11157_v42 }
 0x446   : > { %5156 = vst.msk [vmem:[#allocation2 + $0xc8] sm:$0xff] %vm850_vm2, %v4511_v9  ;;  %v4811_v61 = vpop.permute.xlu2 %4810  ;;  %4710 = vrot.lane.b32.xlu1 %v11148_v31, %s6705_s17  ;;  %v4236_v16 = vsel %vm4233_vm3, %v4235_v52, %v4231_v45  ;;  %v4130_v9 = vor.u32 1.1754944e-38, %v4129_v6  ;;  %v6627_v45 = vpop.eup %6626  ;;  %v4106_v6 = vmul.f32 %v11125_v57, %v4105_v18  ;;  %v4149_v52 = vmul.f32 %v11163_v48, %v11109_v41 }
 0x447   : > { %v11160_v35 = vmul.f32 %v12739_v19, %v4236_v16  ;;  %v4090_v0 = vsub.f32 1.0, %v4089_v62  ;;  %v11182_v46 = vpop.eup %6628  ;;  %vm4154_vm9 = vweird.f32 %v11163_v48 }
 0x448   : > { %v4809_v32 = vpop.permute.xlu1 %4808  ;;  %v4131_v43 = vsel %vm4128_vm8, %v4130_v9, %v4126_v56  ;;  %v4651_v56 = vrot.slane %v11101_v4, 7  ;;  %v11185_v9 = vadd.f32 1.0, %v6627_v45  ;;  %v4150_v19 = vsub.f32 1.0, %v4149_v52  ;;  %vm11231_vm8 = vmor %vm4093_vm5, %vm4094_vm1 }
 0x449   : > { %4556 = vrot.lane.b32.xlu0 %v11160_v35, %s6705_s17  ;;  %v11170_v33 = vmul.f32 %v12740_v44, %v4131_v43  ;;  %v4107_v43 = vadd.f32 %v11125_v57, %v4106_v6  ;;  %v4091_v18 = vmul.f32 %v11157_v42, %v4090_v0  ;;  %v4134_v62 = vmul.f32 %v11182_v46, %v11151_v40  ;;  %vm11256_vm1 = vmor %vm4153_vm12, %vm4154_vm9 }
 0x44a   : > { %v4685_v36 = vpop.permute.xlu0 %4684  ;;  %v11197_v44 = vsel %vm4622_vm11, %v10972_v22, %v4651_v56  ;;  %6630 = vrcp.f32 %v11185_v9  ;;  %v4151_v52 = vmul.f32 %v11163_v48, %v4150_v19  ;;  %v4159_v45 = vand.u32 2147483648, %v11109_v41 }
 0x44b   : > { %4768 = vst.msk [vmem:[#allocation2 + $0xf0] sm:$0xfe] %vm4759_vm14, %v4685_v36  ;;  %v11207_v36 = vrot.slane %v11170_v33, 7  ;;  %v4111_v6 = vsel %vm11209_vm7, %v11125_v57, %v4107_v43  ;;  %v4135_v0 = vsub.f32 1.0, %v4134_v62  ;;  %v4097_v43 = vand.u32 2147483647, %v11089_v51 }
 0x44c   : > { %4828 = vrot.lane.b32.xlu2 %v11101_v4, %s6706_s10  ;;  %4889 = vst.msk [vmem:[#allocation2 + $0xf0] sm:$0xff] %vm4880_vm6, %v4807_v63  ;;  %v4112_v63 = vand.u32 2147483647, %v11055_v27  ;;  %v4152_v62 = vadd.f32 %v11163_v48, %v4151_v52 }
 0x44d   : > { %12741 = vst [vmem:[#allocation105_spill] sm:$0xff] %v11197_v44  ;;  %vm4098_vm7 = vcmp.eq.f32.partialorder %v4097_v43, 8.507059e+37  ;;  %v4160_v43 = vor.u32 1.1754944e-38, %v4159_v45  ;;  %v12752_v45 = vld [vmem:[#allocation81_spill] sm:$0xff] }
 0x44e   : > { %v4689_v50 = vpop.permute.xlu2 %4688  ;;  %4838 = vrot.lane.b32.xlu1 %v11170_v33, %s6706_s10  ;;  %vm4113_vm3 = vcmp.eq.f32.partialorder %v4112_v63, 8.507059e+37 }
 0x44f   : > { %4770 = vst.msk [vmem:[#allocation2 + $0x120] sm:$0xfe] %vm4759_vm14, %v4689_v50  ;;  %v4092_v50 = vadd.f32 %v11157_v42, %v4091_v18 }
 0x450   : > { %4891 = vst.msk [vmem:[#allocation2 + $0x120] sm:$0xff] %vm4880_vm6, %v4811_v61  ;;  %v4687_v16 = vpop.permute.xlu1 %4686  ;;  %v4114_v61 = vand.u32 2147483648, %v11055_v27 }
 0x451   : > { %4769 = vst.msk [vmem:[#allocation2 + $0x108] sm:$0xff] %vm850_vm2, %v4687_v16  ;;  %4830 = vrot.lane.b32.xlu0 %v11009_v20, %s6706_s10  ;;  %v4099_v16 = vand.u32 2147483648, %v11089_v51  ;;  %v4096_v63 = vsel %vm11231_vm8, %v11157_v42, %v4092_v50  ;;  %v4136_v51 = vmul.f32 %v11182_v46, %v4135_v0  ;;  %vm4138_vm8 = vweird.f32 %v11151_v40 }
 0x452   : > { %4890 = vst.msk [vmem:[#allocation2 + $0x108] sm:$0xff] %vm4880_vm6, %v4809_v32  ;;  %v4515_v32 = vpop.permute.xlu0 %4514  ;;  %v4115_v56 = vor.u32 1.1754944e-38, %v4114_v61  ;;  %v11239_v61 = vpop.eup %6630 }
 0x453   : > { %4600 = vst.msk [vmem:[%s6795_s23 + $0x50] sm:$0xff] %vm850_vm2, %v4515_v32 }
 0x454   : > { %4706 = vrot.lane.b32.xlu2 %v11197_v44, %s6705_s17  ;;  %v4116_v19 = vsel %vm4113_vm3, %v4115_v56, %v4111_v6  ;;  %5158 = vst.msk [vmem:[#allocation2 + $0xf8] sm:$0xff] %vm850_vm2, %v4515_v32  ;;  %v4100_v32 = vor.u32 1.1754944e-38, %v4099_v16  ;;  %v12746_v6 = vld [vmem:[#allocation4_spill] sm:$0xff]  ;;  %v4156_v56 = vsel %vm11256_vm1, %v11163_v48, %v4152_v62  ;;  %v4164_v16 = vmul.f32 %v11239_v61, %v11185_v9 }
 0x455   : > { %v11250_v52 = vmul.f32 %v12746_v6, %v4116_v19  ;;  %vm4139_vm3 = vweird.f32 %v11182_v46  ;;  %v4144_v19 = vand.u32 2147483648, %v11151_v40  ;;  %v4142_v48 = vand.u32 2147483647, %v11151_v40 }
 0x456   : > { %v4519_v27 = vpop.permute.xlu2 %4518  ;;  %4716 = vrot.lane.b32.xlu1 %v11207_v36, %s6705_s17  ;;  %v4101_v0 = vsel %vm4098_vm7, %v4100_v32, %v4096_v63  ;;  %v12750_v63 = vld [vmem:[#allocation10_spill] sm:$0xff]  ;;  %vm4140_vm9 = vmor %vm4138_vm8, %vm4139_vm3  ;;  %v4165_v6 = vsub.f32 1.0, %v4164_v16  ;;  %vm4169_vm7 = vweird.f32 %v11239_v61  ;;  %vm4168_vm1 = vweird.f32 %v11185_v9 }
 0x457   : > { %4602 = vst.msk [vmem:[%s6795_s23 + $0x60] sm:$0xff] %vm850_vm2, %v4519_v27  ;;  %v11271_v32 = vmul.f32 %v12750_v63, %v4101_v0  ;;  %vm4143_vm12 = vcmp.eq.f32.partialorder %v4142_v48, 8.507059e+37  ;;  %v12754_v16 = vld [vmem:[#allocation82_spill] sm:$0xff]  ;;  %vm4170_vm3 = vmor %vm4168_vm1, %vm4169_vm7 }
 0x458   : > { %5160 = vst.msk [vmem:[#allocation2 + $0x128] sm:$0xff] %vm850_vm2, %v4519_v27  ;;  %v4517_v57 = vpop.permute.xlu1 %4516  ;;  %v4157_v27 = vand.u32 2147483647, %v11109_v41  ;;  %v4137_v41 = vadd.f32 %v11182_v46, %v4136_v51  ;;  %v4145_v51 = vor.u32 1.1754944e-38, %v4144_v19  ;;  %v4166_v40 = vmul.f32 %v11239_v61, %v4165_v6 }
 0x459   : > { %4601 = vst.msk [vmem:[%s6795_s23 + $0x58] sm:$0xff] %vm850_vm2, %v4517_v57  ;;  %4708 = vrot.lane.b32.xlu0 %v11136_v34, %s6705_s17  ;;  %v4174_v19 = vand.u32 2147483648, %v11185_v9 }
 0x45a   : > { %5159 = vst.msk [vmem:[#allocation2 + $0x110] sm:$0xff] %vm850_vm2, %v4517_v57  ;;  %v4813_v50 = vpop.permute.xlu0 %4812  ;;  %vm4158_vm5 = vcmp.eq.f32.partialorder %v4157_v27, 8.507059e+37  ;;  %v4141_v42 = vsel %vm4140_vm9, %v11182_v46, %v4137_v41 }
 0x45b   : > { %12747 = vst [vmem:[#allocation19_spill] sm:$0xff] %v11250_v52  ;;  %v4161_v62 = vsel %vm4158_vm5, %v4160_v43, %v4156_v56  ;;  %v4146_v0 = vsel %vm4143_vm12, %v4145_v51, %v4141_v42  ;;  %v4167_v43 = vadd.f32 %v11239_v61, %v4166_v40  ;;  %v11317_v42 = vrot.slane %v11271_v32, 7 }
 0x45c   : > { %4536 = vrot.lane.b32.xlu2 %v11081_v7, %s6705_s17  ;;  %12751 = vst [vmem:[#allocation72_spill] sm:$0xff] %v11271_v32  ;;  %v11279_v5 = vmul.f32 %v12752_v45, %v4161_v62  ;;  %v11290_v41 = vmul.f32 %v12754_v16, %v4146_v0  ;;  %v4657_v0 = vrot.slane %v11250_v52, 7 }
 0x45d   : > { %v4171_v48 = vsel %vm4170_vm3, %v11239_v61, %v4167_v43  ;;  %12755 = vst [vmem:[#allocation52_spill] sm:$0xff] %v11317_v42  ;;  %v12756_v61 = vld [vmem:[#allocation87_spill] sm:$0xff] }
 0x45e   : > { %v4817_v57 = vpop.permute.xlu2 %4816  ;;  %4540 = vrot.lane.b32.xlu1 %v11250_v52, %s6705_s17  ;;  %12753 = vst [vmem:[#allocation12_spill] sm:$0xff] %v11279_v5  ;;  %v11340_v16 = vrot.slane %v11279_v5, 7 }
 0x460   : > { %v4815_v18 = vpop.permute.xlu1 %4814  ;;  %12758 = vst [vmem:[#allocation33_spill] sm:$0xff] %v11340_v16 }
 0x461   : > { %4538 = vrot.lane.b32.xlu0 %v11271_v32, %s6705_s17 }
 0x462   : > { %v4691_v27 = vpop.permute.xlu0 %4690 }
 0x463   : > { %4771 = vst.msk [vmem:[#allocation2 + $0x138] sm:$0xff] %vm850_vm2, %v4691_v27 }
 0x464   : > { %4542 = vrot.lane.b32.xlu2 %v11170_v33, %s6705_s17  ;;  %4892 = vst.msk [vmem:[#allocation2 + $0x138] sm:$0xff] %vm4880_vm6, %v4813_v50  ;;  %v11305_v50 = vrot.slane %v10491_v25, 1 }
 0x466   : > { %v4695_v56 = vpop.permute.xlu2 %4694  ;;  %4546 = vrot.lane.b32.xlu1 %v11279_v5, %s6705_s17 }
 0x467   : > { %4773 = vst.msk [vmem:[#allocation2 + $0x168] sm:$0xff] %vm850_vm2, %v4695_v56 }
 0x468   : > { %4894 = vst.msk [vmem:[#allocation2 + $0x168] sm:$0xff] %vm4880_vm6, %v4817_v57  ;;  %v4693_v46 = vpop.permute.xlu1 %4692  ;;  %v4172_v57 = vand.u32 2147483647, %v11185_v9 }
 0x469   : > { %4772 = vst.msk [vmem:[#allocation2 + $0x150] sm:$0xfe] %vm4759_vm14, %v4693_v46  ;;  %4544 = vrot.lane.b32.xlu0 %v11290_v41, %s6705_s17  ;;  %v11335_v46 = vsel %vm4622_vm11, %v11317_v42, %v4657_v0 }
 0x46a   : > { %4893 = vst.msk [vmem:[#allocation2 + $0x150] sm:$0xff] %vm4880_vm6, %v4815_v18  ;;  %v4521_v63 = vpop.permute.xlu0 %4520  ;;  %v4175_v18 = vor.u32 1.1754944e-38, %v4174_v19  ;;  %vm4173_vm5 = vcmp.eq.f32.partialorder %v4172_v57, 8.507059e+37 }
 0x46b   : > { %4603 = vst.msk [vmem:[%s6795_s23 + $0x68] sm:$0xff] %vm850_vm2, %v4521_v63 }
 0x46c   : > { %4834 = vrot.lane.b32.xlu2 %v11271_v32, %s6706_s10  ;;  %v4176_v6 = vsel %vm4173_vm5, %v4175_v18, %v4171_v48  ;;  %5161 = vst.msk [vmem:[#allocation2 + $0x140] sm:$0xff] %vm850_vm2, %v4521_v63  ;;  %v4660_v63 = vrot.slane %v11290_v41, 7 }
 0x46d   : > { %v11325_v51 = vmul.f32 %v12756_v61, %v4176_v6  ;;  %v12760_v6 = vld [vmem:[#allocation79_spill] sm:$0xff] }
 0x46e   : > { %v4525_v62 = vpop.permute.xlu2 %4524  ;;  %4975 = vrot.lane.b32.xlu1 %v11305_v50, %s6707_s20  ;;  %v5656_v61 = vmul.f32 %v12760_v6, %v12760_v6 }
 0x46f   : > { %4605 = vst.msk [vmem:[%s6795_s23 + $0x78] sm:$0xff] %vm850_vm2, %v4525_v62  ;;  %v4663_v56 = vrot.slane %v11325_v51, 7 }
 0x470   : > { %5163 = vst.msk [vmem:[#allocation2 + $0x170] sm:$0xff] %vm850_vm2, %v4525_v62  ;;  %v4523_v9 = vpop.permute.xlu1 %4522  ;;  %v12759_v62 = vld [vmem:[#allocation95_spill] sm:$0xff]  ;;  %v5690_v3 = vsel %vm5116_vm10, %v5656_v61, 0.0  ;;  %v5591_v61 = vsel %vm5116_vm10, %v12764_v38, 0.0 }
 0x471   : > { %4604 = vst.msk [vmem:[%s6795_s23 + $0x70] sm:$0xff] %vm850_vm2, %v4523_v9  ;;  %4836 = vrot.lane.b32.xlu0 %v11250_v52, %s6706_s10  ;;  %v11346_v19 = vsel %vm4622_vm11, %v11340_v16, %v4663_v56  ;;  %v5655_v18 = vmul.f32 %v12759_v62, %v12759_v62  ;;  %v5587_v0 = vsel %vm5116_vm10, %v12759_v62, 0.0  ;;  %v5589_v56 = vsel %vm5116_vm10, %v12760_v6, 0.0 }
 0x472   : > { %5162 = vst.msk [vmem:[#allocation2 + $0x158] sm:$0xff] %vm850_vm2, %v4523_v9  ;;  %v4819_v45 = vpop.permute.xlu0 %4818  ;;  %v4930_v9 = vrot.slane %v10622_v29, 1 }
 0x473   : > { %12757 = vst [vmem:[#allocation70_spill] sm:$0xff] %v11325_v51 }
 0x474   : > { %4712 = vrot.lane.b32.xlu2 %v11317_v42, %s6705_s17  ;;  %v12765_v42 = vld [vmem:[#allocation84_spill] sm:$0xff] }
 0x476   : > { %v4823_v27 = vpop.permute.xlu2 %4822  ;;  %4844 = vrot.lane.b32.xlu1 %v11325_v51, %s6706_s10 }
 0x478   : > { %v4821_v40 = vpop.permute.xlu1 %4820 }
 0x479   : > { %4714 = vrot.lane.b32.xlu0 %v11335_v46, %s6705_s17 }
 0x47a   : > { %v4697_v43 = vpop.permute.xlu0 %4696 }
 0x47b   : > { %4774 = vst.msk [vmem:[#allocation2 + $0x180] sm:$0xfe] %vm4759_vm14, %v4697_v43  ;;  %v5688_v43 = vsel %vm5116_vm10, %v5655_v18, 0.0 }
 0x47c   : > { %4840 = vrot.lane.b32.xlu2 %v11290_v41, %s6706_s10  ;;  %4895 = vst.msk [vmem:[#allocation2 + $0x180] sm:$0xff] %vm4880_vm6, %v4819_v45  ;;  %v11371_v45 = vrot.slane %v10693_v17, 1 }
 0x47e   : > { %v4701_v57 = vpop.permute.xlu2 %4700  ;;  %4722 = vrot.lane.b32.xlu1 %v11346_v19, %s6705_s17 }
 0x47f   : > { %4776 = vst.msk [vmem:[#allocation2 + $0x1b0] sm:$0xfe] %vm4759_vm14, %v4701_v57 }
 0x480   : > { %4897 = vst.msk [vmem:[#allocation2 + $0x1b0] sm:$0xff] %vm4880_vm6, %v4823_v27  ;;  %v4699_v48 = vpop.permute.xlu1 %4698  ;;  %v11365_v27 = vsel %vm4622_vm11, %v11207_v36, %v4660_v63  ;;  %v11380_v63 = vsel %vm4911_vm15, %v4930_v9, %v11371_v45  ;;  %v5657_v9 = vmul.f32 %v12764_v38, %v12764_v38 }
 0x481   : > { %4775 = vst.msk [vmem:[#allocation2 + $0x198] sm:$0xff] %vm850_vm2, %v4699_v48  ;;  %4842 = vrot.lane.b32.xlu0 %v11279_v5, %s6706_s10 }
 0x482   : > { %12761 = vst [vmem:[#allocation71_spill] sm:$0xff] %v11365_v27  ;;  %v4527_v57 = vpop.permute.xlu0 %4526 }
 0x483   : > { %4896 = vst.msk [vmem:[#allocation2 + $0x198] sm:$0xff] %vm4880_vm6, %v4821_v40  ;;  %v12762_v40 = vld [vmem:[#allocation75_spill] sm:$0xff] }
 0x484   : > { %4718 = vrot.lane.b32.xlu2 %v11365_v27, %s6705_s17  ;;  %v5588_v48 = vadd.f32 %v5587_v0, %v12762_v40  ;;  %4606 = vst.msk [vmem:[%s6795_s23 + $0x80] sm:$0xff] %vm850_vm2, %v4527_v57  ;;  %v12763_v27 = vld [vmem:[#allocation74_spill] sm:$0xff]  ;;  %v5658_v0 = vmul.f32 %v12765_v42, %v12765_v42 }
 0x485   : > { %5164 = vst.msk [vmem:[#allocation2 + $0x188] sm:$0xff] %vm850_vm2, %v4527_v57  ;;  %v5689_v18 = vadd.f32 %v5688_v43, %v12763_v27  ;;  %v12766_v27 = vld [vmem:[#allocation83_spill] sm:$0xff] }
 0x486   : > { %v4847_v62 = vpop.permute.xlu2 %4846  ;;  %4981 = vrot.lane.b32.xlu1 %v11380_v63, %s6707_s20  ;;  %v5590_v6 = vadd.f32 %v5589_v56, %v5588_v48  ;;  %v5593_v56 = vsel %vm5116_vm10, %v12765_v42, 0.0  ;;  %v5659_v43 = vmul.f32 %v12766_v27, %v12766_v27  ;;  %v5694_v48 = vsel %vm5116_vm10, %v5658_v0, 0.0 }
 0x487   : > { %v5691_v40 = vadd.f32 %v5690_v3, %v5689_v18  ;;  %v11408_v3 = vrot.slane %v10743_v15, 1  ;;  %v5595_v18 = vsel %vm5116_vm10, %v12766_v27, 0.0 }
 0x488   : > { %v4529_v24 = vpop.permute.xlu1 %4528  ;;  %v5592_v57 = vadd.f32 %v5591_v61, %v5590_v6  ;;  %v5696_v6 = vsel %vm5116_vm10, %v5659_v43, 0.0  ;;  %v11432_v43 = vrot.slane %v11101_v4, 1 }
 0x489   : > { %4607 = vst.msk [vmem:[%s6795_s23 + $0x88] sm:$0xff] %vm850_vm2, %v4529_v24  ;;  %4720 = vrot.lane.b32.xlu0 %v11340_v16, %s6705_s17 }
 0x48a   : > { %5165 = vst.msk [vmem:[#allocation2 + $0x1a0] sm:$0xff] %vm850_vm2, %v4529_v24  ;;  %v5692_v24 = vsel %vm5116_vm10, %v5657_v9, 0.0  ;;  %v4551_v42 = vpop.permute.xlu0 %4550  ;;  %v5594_v23 = vadd.f32 %v5593_v56, %v5592_v57  ;;  %v11421_v9 = vrot.slane %v10584_v1, 1  ;;  %v4924_v56 = vrot.slane %v10465_v59, 1 }
 0x48b   : > { %v5693_v38 = vadd.f32 %v5692_v24, %v5691_v40  ;;  %4618 = vst.msk [vmem:[%s6795_s23 + $0xe0] sm:$0xff] %vm850_vm2, %v4551_v42  ;;  %v5660_v57 = vmul.f32 %v10409_v58, %v10409_v58  ;;  %v5661_v24 = vmul.f32 %v10465_v59, %v10465_v59 }
 0x48c   : > { %4548 = vrot.lane.b32.xlu2 %v11325_v51, %s6705_s17  ;;  %v5596_v61 = vadd.f32 %v5595_v18, %v5594_v23  ;;  %5176 = vst.msk [vmem:[#allocation2 + $0x2a8] sm:$0xff] %vm850_vm2, %v4551_v42  ;;  %v5662_v42 = vmul.f32 %v10491_v25, %v10491_v25 }
 0x48d   : > { %v5695_v0 = vadd.f32 %v5694_v48, %v5693_v38  ;;  %v5597_v38 = vsel %vm5116_vm10, %v10409_v58, 0.0  ;;  %v5599_v48 = vsel %vm5116_vm10, %v10465_v59, 0.0  ;;  %v5700_v59 = vsel %vm5116_vm10, %v5661_v24, 0.0 }
 0x48e   : > { %v4725_v44 = vpop.permute.xlu2 %4724  ;;  %4987 = vrot.lane.b32.xlu1 %v11408_v3, %s6707_s20 }
 0x48f   : > { %4788 = vst.msk [vmem:[#allocation2 + $0x2d0] sm:$0xfe] %vm4759_vm14, %v4725_v44  ;;  %v4927_v44 = vrot.slane %v10564_v2, 1  ;;  %v5697_v23 = vadd.f32 %v5696_v6, %v5695_v0  ;;  %v4939_v6 = vrot.slane %v10927_v30, 1  ;;  %v5598_v0 = vadd.f32 %v5597_v38, %v5596_v61 }
 0x490   : > { %4909 = vst.msk [vmem:[#allocation2 + $0x2d0] sm:$0xff] %vm4880_vm6, %v4847_v62  ;;  %v4553_v40 = vpop.permute.xlu1 %4552  ;;  %v11440_v62 = vsel %vm4911_vm15, %v4924_v56, %v11305_v50  ;;  %v5698_v56 = vsel %vm5116_vm10, %v5660_v57, 0.0  ;;  %v5702_v61 = vsel %vm5116_vm10, %v5662_v42, 0.0  ;;  %v5605_v42 = vsel %vm5116_vm10, %v10584_v1, 0.0 }
 0x491   : > { %4619 = vst.msk [vmem:[%s6795_s23 + $0xe8] sm:$0xff] %vm850_vm2, %v4553_v40  ;;  %v11448_v18 = vsel %vm4911_vm15, %v4927_v44, %v11421_v9  ;;  %4973 = vrot.lane.b32.xlu0 %v11440_v62, %s6707_s20  ;;  %v5601_v44 = vsel %vm5116_vm10, %v10491_v25, 0.0  ;;  %v5699_v58 = vadd.f32 %v5698_v56, %v5697_v23  ;;  %v5600_v13 = vadd.f32 %v5599_v48, %v5598_v0 }
 0x492   : > { %5177 = vst.msk [vmem:[#allocation2 + $0x2c0] sm:$0xff] %vm850_vm2, %v4553_v40  ;;  %v4825_v27 = vpop.permute.xlu0 %4824  ;;  %v11462_v40 = vsel %vm4911_vm15, %v4939_v6, %v11432_v43  ;;  %v5663_v25 = vmul.f32 %v10564_v2, %v10564_v2  ;;  %v5664_v23 = vmul.f32 %v10584_v1, %v10584_v1  ;;  %v5603_v6 = vsel %vm5116_vm10, %v10564_v2, 0.0 }
 0x493   : > { %v5701_v57 = vadd.f32 %v5700_v59, %v5699_v58  ;;  %v5602_v24 = vadd.f32 %v5601_v44, %v5600_v13  ;;  %v11483_v59 = vrot.slane %v11081_v7, 1 }
 0x494   : > { %4977 = vrot.lane.b32.xlu2 %v11448_v18, %s6707_s20  ;;  %v5704_v13 = vsel %vm5116_vm10, %v5663_v25, 0.0  ;;  %v11496_v25 = vrot.slane %v10856_v11, 1 }
 0x495   : > { %v5703_v48 = vadd.f32 %v5702_v61, %v5701_v57  ;;  %v5604_v58 = vadd.f32 %v5603_v6, %v5602_v24  ;;  %v4933_v57 = vrot.slane %v10711_v54, 1  ;;  %v5665_v24 = vmul.f32 %v10622_v29, %v10622_v29 }
 0x496   : > { %v4531_v16 = vpop.permute.xlu2 %4530  ;;  %4993 = vrot.lane.b32.xlu1 %v11462_v40, %s6707_s20  ;;  %v5607_v6 = vsel %vm5116_vm10, %v10622_v29, 0.0 }
 0x497   : > { %4608 = vst.msk [vmem:[%s6795_s23 + $0x90] sm:$0xff] %vm850_vm2, %v4531_v16  ;;  %v5705_v56 = vadd.f32 %v5704_v13, %v5703_v48  ;;  %v5606_v44 = vadd.f32 %v5605_v42, %v5604_v58  ;;  %v4936_v42 = vrot.slane %v10832_v8, 1  ;;  %v11504_v58 = vrot.slane %v11290_v41, 1 }
 0x498   : > { %5166 = vst.msk [vmem:[#allocation2 + $0x1b8] sm:$0xff] %vm850_vm2, %v4531_v16  ;;  %v4827_v38 = vpop.permute.xlu1 %4826  ;;  %v5706_v16 = vsel %vm5116_vm10, %v5664_v23, 0.0  ;;  %v5666_v13 = vmul.f32 %v10693_v17, %v10693_v17 }
 0x499   : > { %4979 = vrot.lane.b32.xlu0 %v11421_v9, %s6707_s20  ;;  %v5707_v23 = vadd.f32 %v5706_v16, %v5705_v56  ;;  %v11511_v16 = vsel %vm4911_vm15, %v4933_v57, %v11408_v3  ;;  %v5708_v56 = vsel %vm5116_vm10, %v5665_v24, 0.0  ;;  %v5609_v57 = vsel %vm5116_vm10, %v10693_v17, 0.0 }
 0x49a   : > { %v4703_v0 = vpop.permute.xlu0 %4702  ;;  %v5611_v24 = vsel %vm5116_vm10, %v10711_v54, 0.0 }
 0x49b   : > { %4777 = vst.msk [vmem:[#allocation2 + $0x1c8] sm:$0xff] %vm850_vm2, %v4703_v0  ;;  %v5608_v0 = vadd.f32 %v5607_v6, %v5606_v44  ;;  %v4948_v44 = vrot.slane %v11170_v33, 1 }
 0x49c   : > { %4983 = vrot.lane.b32.xlu2 %v11371_v45, %s6707_s20  ;;  %4898 = vst.msk [vmem:[#allocation2 + $0x1c8] sm:$0xff] %vm4880_vm6, %v4825_v27  ;;  %v5667_v27 = vmul.f32 %v10711_v54, %v10711_v54  ;;  %v5668_v54 = vmul.f32 %v10743_v15, %v10743_v15 }
 0x49e   : > { %v4555_v61 = vpop.permute.xlu2 %4554  ;;  %4999 = vrot.lane.b32.xlu1 %v11483_v59, %s6707_s20 }
 0x49f   : > { %4620 = vst.msk [vmem:[%s6795_s23 + $0xf0] sm:$0xff] %vm850_vm2, %v4555_v61 }
 0x4a0   : > { %5178 = vst.msk [vmem:[#allocation2 + $0x2d8] sm:$0xff] %vm850_vm2, %v4555_v61  ;;  %v4705_v48 = vpop.permute.xlu1 %4704  ;;  %v11518_v61 = vsel %vm4911_vm15, %v4936_v42, %v11496_v25  ;;  %v5610_v42 = vadd.f32 %v5609_v57, %v5608_v0  ;;  %v5613_v0 = vsel %vm5116_vm10, %v10743_v15, 0.0 }
 0x4a1   : > { %4778 = vst.msk [vmem:[#allocation2 + $0x1e0] sm:$0xfe] %vm4759_vm14, %v4705_v48  ;;  %4985 = vrot.lane.b32.xlu0 %v11511_v16, %s6707_s20  ;;  %v5709_v48 = vadd.f32 %v5708_v56, %v5707_v23  ;;  %v5710_v23 = vsel %vm5116_vm10, %v5666_v13, 0.0  ;;  %v5712_v56 = vsel %vm5116_vm10, %v5667_v27, 0.0  ;;  %v11550_v13 = vrot.slane %v11325_v51, 1 }
 0x4a2   : > { %4899 = vst.msk [vmem:[#allocation2 + $0x1e0] sm:$0xff] %vm4880_vm6, %v4827_v38  ;;  %v4849_v6 = vpop.permute.xlu0 %4848  ;;  %v11532_v38 = vsel %vm4911_vm15, %v4948_v44, %v11504_v58  ;;  %v5612_v29 = vadd.f32 %v5611_v24, %v5610_v42 }
 0x4a3   : > { %v5711_v17 = vadd.f32 %v5710_v23, %v5709_v48  ;;  %v5669_v48 = vmul.f32 %v10832_v8, %v10832_v8  ;;  %v5615_v23 = vsel %vm5116_vm10, %v10832_v8, 0.0 }
 0x4a4   : > { %4989 = vrot.lane.b32.xlu2 %v11518_v61, %s6707_s20  ;;  %v5614_v27 = vadd.f32 %v5613_v0, %v5612_v29  ;;  %v11562_v29 = vrot.slane %v11250_v52, 1  ;;  %v4942_v0 = vrot.slane %v11009_v20, 1 }
 0x4a5   : > { %v5713_v44 = vadd.f32 %v5712_v56, %v5711_v17  ;;  %v5714_v17 = vsel %vm5116_vm10, %v5668_v54, 0.0  ;;  %v5617_v56 = vsel %vm5116_vm10, %v10856_v11, 0.0 }
 0x4a6   : > { %v4829_v1 = vpop.permute.xlu2 %4828  ;;  %5005 = vrot.lane.b32.xlu1 %v11532_v38, %s6707_s20  ;;  %v11576_v15 = vsel %vm4911_vm15, %v4942_v0, %v11483_v59  ;;  %v5672_v0 = vmul.f32 %v11101_v4, %v11101_v4 }
 0x4a7   : > { %v5715_v42 = vadd.f32 %v5714_v17, %v5713_v44  ;;  %v4945_v44 = vrot.slane %v11271_v32, 1  ;;  %v5716_v17 = vsel %vm5116_vm10, %v5669_v48, 0.0 }
 0x4a8   : > { %v4535_v2 = vpop.permute.xlu1 %4534 }
 0x4a9   : > { %4610 = vst.msk [vmem:[%s6795_s23 + $0xa0] sm:$0xff] %vm850_vm2, %v4535_v2  ;;  %4991 = vrot.lane.b32.xlu0 %v11496_v25, %s6707_s20  ;;  %v11580_v8 = vsel %vm4911_vm15, %v4945_v44, %v11562_v29 }
 0x4aa   : > { %5168 = vst.msk [vmem:[#allocation2 + $0x1e8] sm:$0xff] %vm850_vm2, %v4535_v2  ;;  %v5670_v2 = vmul.f32 %v10856_v11, %v10856_v11 }
 0x4ab   : > { %v4727_v57 = vpop.permute.xlu0 %4726 }
 0x4ac   : > { %4995 = vrot.lane.b32.xlu2 %v11432_v43, %s6707_s20  ;;  %4789 = vst.msk [vmem:[#allocation2 + $0x2e8] sm:$0xff] %vm850_vm2, %v4727_v57  ;;  %v5616_v57 = vadd.f32 %v5615_v23, %v5614_v27 }
 0x4ad   : > { %4910 = vst.msk [vmem:[#allocation2 + $0x2e8] sm:$0xff] %vm4880_vm6, %v4849_v6  ;;  %v5671_v6 = vmul.f32 %v10927_v30, %v10927_v30 }
 0x4ae   : > { %v4707_v24 = vpop.permute.xlu2 %4706  ;;  %5011 = vrot.lane.b32.xlu1 %v11550_v13, %s6707_s20  ;;  %v5618_v11 = vadd.f32 %v5617_v56, %v5616_v57  ;;  %v5673_v57 = vmul.f32 %v11009_v20, %v11009_v20 }
 0x4af   : > { %4779 = vst.msk [vmem:[#allocation2 + $0x1f8] sm:$0xff] %vm850_vm2, %v4707_v24  ;;  %v5718_v24 = vsel %vm5116_vm10, %v5670_v2, 0.0  ;;  %v5619_v2 = vsel %vm5116_vm10, %v10927_v30, 0.0  ;;  %v5720_v44 = vsel %vm5116_vm10, %v5671_v6, 0.0  ;;  %v5625_v6 = vsel %vm5116_vm10, %v11081_v7, 0.0 }
 0x4b0   : > { %4900 = vst.msk [vmem:[#allocation2 + $0x1f8] sm:$0xff] %vm4880_vm6, %v4829_v1  ;;  %v4833_v54 = vpop.permute.xlu1 %4832  ;;  %v5717_v1 = vadd.f32 %v5716_v17, %v5715_v42  ;;  %v12767_v42 = vld [vmem:[#allocation37_spill] sm:$0xff]  ;;  %v5620_v56 = vadd.f32 %v5619_v2, %v5618_v11  ;;  %v5623_v11 = vsel %vm5116_vm10, %v11009_v20, 0.0  ;;  %v5674_v2 = vmul.f32 %v11081_v7, %v11081_v7  ;;  %v12768_v20 = vld [vmem:[#allocation91_spill] sm:$0xff] }
 0x4b1   : > { %4997 = vrot.lane.b32.xlu0 %v11576_v15, %s6707_s20 }
 0x4b2   : > { %v5719_v27 = vadd.f32 %v5718_v24, %v5717_v1  ;;  %v5621_v1 = vsel %vm5116_vm10, %v11101_v4, 0.0 }
 0x4b3   : > { %v4533_v48 = vpop.permute.xlu0 %4532 }
 0x4b4   : > { %5001 = vrot.lane.b32.xlu2 %v11580_v8, %s6707_s20  ;;  %4609 = vst.msk [vmem:[%s6795_s23 + $0x98] sm:$0xff] %vm850_vm2, %v4533_v48  ;;  %v5721_v24 = vadd.f32 %v5720_v44, %v5719_v27  ;;  %v5722_v27 = vsel %vm5116_vm10, %v5672_v0, 0.0 }
 0x4b5   : > { %5167 = vst.msk [vmem:[#allocation2 + $0x1d0] sm:$0xff] %vm850_vm2, %v4533_v48  ;;  %v5724_v48 = vsel %vm5116_vm10, %v5673_v57, 0.0  ;;  %v11629_v57 = vrot.slane %v10900_v28, 1 }
 0x4b6   : > { %v4537_v23 = vpop.permute.xlu2 %4536  ;;  %5183 = vrot.lane.b32.xlu1 %v12767_v42, %s6706_s10  ;;  %v5622_v42 = vadd.f32 %v5621_v1, %v5620_v56  ;;  %v5723_v44 = vadd.f32 %v5722_v27, %v5721_v24  ;;  %v5726_v56 = vsel %vm5116_vm10, %v5674_v2, 0.0  ;;  %v5627_v24 = vsel %vm5116_vm10, %v11271_v32, 0.0 }
 0x4b7   : > { %4611 = vst.msk [vmem:[%s6795_s23 + $0xa8] sm:$0xff] %vm850_vm2, %v4537_v23 }
 0x4b8   : > { %5169 = vst.msk [vmem:[#allocation2 + $0x200] sm:$0xff] %vm850_vm2, %v4537_v23  ;;  %v4711_v17 = vpop.permute.xlu1 %4710  ;;  %v5624_v23 = vadd.f32 %v5623_v11, %v5622_v42  ;;  %v5725_v7 = vadd.f32 %v5724_v48, %v5723_v44  ;;  %v5676_v11 = vmul.f32 %v11250_v52, %v11250_v52  ;;  %v4951_v42 = vrot.slane %v11279_v5, 1 }
 0x4b9   : > { %4781 = vst.msk [vmem:[#allocation2 + $0x228] sm:$0xff] %vm850_vm2, %v4711_v17  ;;  %5003 = vrot.lane.b32.xlu0 %v11562_v29, %s6707_s20  ;;  %v5629_v48 = vsel %vm5116_vm10, %v11250_v52, 0.0 }
 0x4ba   : > { %4902 = vst.msk [vmem:[#allocation2 + $0x228] sm:$0xff] %vm4880_vm6, %v4833_v54  ;;  %v5675_v54 = vmul.f32 %v11271_v32, %v11271_v32  ;;  %v5626_v0 = vadd.f32 %v5625_v6, %v5624_v23  ;;  %v5727_v27 = vadd.f32 %v5726_v56, %v5725_v7  ;;  %v4954_v6 = vrot.slane %v10883_v53, 1 }
 0x4bb   : > { %v4557_v17 = vpop.permute.xlu0 %4556  ;;  %v11644_v44 = vsel %vm4911_vm15, %v4951_v42, %v11550_v13  ;;  %v5730_v7 = vsel %vm5116_vm10, %v5676_v11, 0.0  ;;  %v5677_v42 = vmul.f32 %v11170_v33, %v11170_v33  ;;  %v5679_v11 = vmul.f32 %v11279_v5, %v11279_v5 }
 0x4bc   : > { %5007 = vrot.lane.b32.xlu2 %v11504_v58, %s6707_s20  ;;  %4621 = vst.msk [vmem:[%s6795_s23 + $0xf8] sm:$0xff] %vm850_vm2, %v4557_v17  ;;  %v5728_v23 = vsel %vm5116_vm10, %v5675_v54, 0.0  ;;  %v5628_v32 = vadd.f32 %v5627_v24, %v5626_v0  ;;  %v12769_v0 = vld [vmem:[#allocation41_spill] sm:$0xff] }
 0x4bd   : > { %5179 = vst.msk [vmem:[#allocation2 + $0x2f0] sm:$0xff] %vm850_vm2, %v4557_v17  ;;  %v5729_v56 = vadd.f32 %v5728_v23, %v5727_v27  ;;  %v5732_v27 = vsel %vm5116_vm10, %v5677_v42, 0.0  ;;  %v5633_v23 = vsel %vm5116_vm10, %v11290_v41, 0.0  ;;  %v5736_v42 = vsel %vm5116_vm10, %v5679_v11, 0.0 }
 0x4be   : > { %v4543_v1 = vpop.permute.xlu2 %4542  ;;  %5189 = vrot.lane.b32.xlu1 %v12768_v20, %s6706_s10  ;;  %v5630_v17 = vadd.f32 %v5629_v48, %v5628_v32  ;;  %v5678_v32 = vmul.f32 %v11290_v41, %v11290_v41 }
 0x4bf   : > { %4614 = vst.msk [vmem:[%s6795_s23 + $0xc0] sm:$0xff] %vm850_vm2, %v4543_v1  ;;  %v5731_v24 = vadd.f32 %v5730_v7, %v5729_v56  ;;  %v12770_v7 = vld [vmem:[#allocation11_spill] sm:$0xff] }
 0x4c0   : > { %5172 = vst.msk [vmem:[#allocation2 + $0x248] sm:$0xff] %vm850_vm2, %v4543_v1  ;;  %v4839_v2 = vpop.permute.xlu1 %4838  ;;  %v11648_v1 = vsel %vm4911_vm15, %v4954_v6, %v11629_v57  ;;  %v5631_v6 = vsel %vm5116_vm10, %v11170_v33, 0.0 }
 0x4c1   : > { %5009 = vrot.lane.b32.xlu0 %v11644_v44, %s6707_s20  ;;  %v5632_v4 = vadd.f32 %v5631_v6, %v5630_v17  ;;  %v5733_v48 = vadd.f32 %v5732_v27, %v5731_v24  ;;  %v5734_v6 = vsel %vm5116_vm10, %v5678_v32, 0.0  ;;  %v5681_v32 = vmul.f32 %v10883_v53, %v10883_v53 }
 0x4c3   : > { %v4831_v54 = vpop.permute.xlu0 %4830  ;;  %v5634_v17 = vadd.f32 %v5633_v23, %v5632_v4  ;;  %v5735_v27 = vadd.f32 %v5734_v6, %v5733_v48  ;;  %v5680_v4 = vmul.f32 %v11325_v51, %v11325_v51  ;;  %v5639_v48 = vsel %vm5116_vm10, %v10883_v53, 0.0 }
 0x4c4   : > { %5013 = vrot.lane.b32.xlu2 %v11648_v1, %s6707_s20 }
 0x4c6   : > { %v4835_v52 = vpop.permute.xlu2 %4834  ;;  %5195 = vrot.lane.b32.xlu1 %v12769_v0, %s6706_s10 }
 0x4c8   : > { %v4717_v30 = vpop.permute.xlu1 %4716 }
 0x4c9   : > { %4784 = vst.msk [vmem:[#allocation2 + $0x270] sm:$0xfe] %vm4759_vm14, %v4717_v30  ;;  %5015 = vrot.lane.b32.xlu0 %v11629_v57, %s6707_s20  ;;  %v5635_v30 = vsel %vm5116_vm10, %v11279_v5, 0.0 }
 0x4ca   : > { %4905 = vst.msk [vmem:[#allocation2 + $0x270] sm:$0xff] %vm4880_vm6, %v4839_v2  ;;  %v5636_v24 = vadd.f32 %v5635_v30, %v5634_v17  ;;  %v5682_v30 = vmul.f32 %v10900_v28, %v10900_v28  ;;  %v5738_v17 = vsel %vm5116_vm10, %v5680_v4, 0.0 }
 0x4cb   : > { %v4709_v56 = vpop.permute.xlu0 %4708 }
 0x4cc   : > { %5185 = vrot.lane.b32.xlu2 %v12770_v7, %s6706_s10  ;;  %4780 = vst.msk [vmem:[#allocation2 + $0x210] sm:$0xfe] %vm4759_vm14, %v4709_v56  ;;  %v5637_v7 = vsel %vm5116_vm10, %v11325_v51, 0.0  ;;  %v5737_v56 = vadd.f32 %v5736_v42, %v5735_v27  ;;  %v5683_v42 = vmul.f32 %v11123_v26, %v11123_v26  ;;  %v12772_v27 = vld [vmem:[#allocation6_spill] sm:$0xff] }
 0x4cd   : > { %v5638_v23 = vadd.f32 %v5637_v7, %v5636_v24  ;;  %4901 = vst.msk [vmem:[#allocation2 + $0x210] sm:$0xff] %vm4880_vm6, %v4831_v54  ;;  %v5641_v54 = vsel %vm5116_vm10, %v10900_v28, 0.0  ;;  %v5740_v24 = vsel %vm5116_vm10, %v5681_v32, 0.0 }
 0x4ce   : > { %v4713_v2 = vpop.permute.xlu2 %4712  ;;  %5201 = vrot.lane.b32.xlu1 %v11305_v50, %s6706_s10 }
 0x4cf   : > { %4782 = vst.msk [vmem:[#allocation2 + $0x240] sm:$0xfe] %vm4759_vm14, %v4713_v2  ;;  %v5640_v6 = vadd.f32 %v5639_v48, %v5638_v23  ;;  %v5739_v2 = vadd.f32 %v5738_v17, %v5737_v56  ;;  %v5684_v56 = vmul.f32 %v11160_v35, %v11160_v35  ;;  %v5742_v48 = vsel %vm5116_vm10, %v5682_v30, 0.0 }
 0x4d0   : > { %4903 = vst.msk [vmem:[#allocation2 + $0x240] sm:$0xff] %vm4880_vm6, %v4835_v52  ;;  %v4541_v11 = vpop.permute.xlu1 %4540  ;;  %v12771_v52 = vld [vmem:[#allocation42_spill] sm:$0xff] }
 0x4d1   : > { %4613 = vst.msk [vmem:[%s6795_s23 + $0xb8] sm:$0xff] %vm850_vm2, %v4541_v11  ;;  %5187 = vrot.lane.b32.xlu0 %v12771_v52, %s6706_s10  ;;  %v5642_v7 = vadd.f32 %v5641_v54, %v5640_v6  ;;  %v5741_v4 = vadd.f32 %v5740_v24, %v5739_v2  ;;  %v5645_v6 = vsel %vm5116_vm10, %v11160_v35, 0.0  ;;  %v5744_v2 = vsel %vm5116_vm10, %v5683_v42, 0.0 }
 0x4d2   : > { %5171 = vst.msk [vmem:[#allocation2 + $0x230] sm:$0xff] %vm850_vm2, %v4541_v11  ;;  %v5643_v11 = vsel %vm5116_vm10, %v11123_v26, 0.0  ;;  %v5746_v30 = vsel %vm5116_vm10, %v5684_v56, 0.0 }
 0x4d3   : > { %v4539_v23 = vpop.permute.xlu0 %4538  ;;  %v5644_v32 = vadd.f32 %v5643_v11, %v5642_v7  ;;  %v5743_v28 = vadd.f32 %v5742_v48, %v5741_v4  ;;  %v12773_v4 = vld [vmem:[#allocation85_spill] sm:$0xff] }
 0x4d4   : > { %5191 = vrot.lane.b32.xlu2 %v12772_v27, %s6706_s10  ;;  %4612 = vst.msk [vmem:[%s6795_s23 + $0xb0] sm:$0xff] %vm850_vm2, %v4539_v23 }
 0x4d5   : > { %5170 = vst.msk [vmem:[#allocation2 + $0x218] sm:$0xff] %vm850_vm2, %v4539_v23  ;;  %v5646_v24 = vadd.f32 %v5645_v6, %v5644_v32  ;;  %v5745_v5 = vadd.f32 %v5744_v2, %v5743_v28  ;;  %v12774_v23 = vld [vmem:[#allocation90_spill] sm:$0xff] }
 0x4d6   : > { %v4841_v17 = vpop.permute.xlu2 %4840  ;;  %5207 = vrot.lane.b32.xlu1 %v11380_v63, %s6706_s10 }
 0x4d7   : > { %v5647_v51 = vrot.slane %v5646_v24, 4  ;;  %v5747_v7 = vadd.f32 %v5746_v30, %v5745_v5 }
 0x4d8   : > { %v4547_v54 = vpop.permute.xlu1 %4546 }
 0x4d9   : > { %4616 = vst.msk [vmem:[%s6795_s23 + $0xd0] sm:$0xff] %vm850_vm2, %v4547_v54  ;;  %5193 = vrot.lane.b32.xlu0 %v12773_v4, %s6706_s10  ;;  %v5648_v11 = vadd.f32 %v5647_v51, %v5646_v24  ;;  %v5748_v48 = vrot.slane %v5747_v7, 4 }
 0x4da   : > { %5174 = vst.msk [vmem:[#allocation2 + $0x278] sm:$0xff] %vm850_vm2, %v4547_v54 }
 0x4db   : > { %v4545_v42 = vpop.permute.xlu0 %4544  ;;  %v5649_v28 = vrot.slane %v5648_v11, 2  ;;  %v5749_v56 = vadd.f32 %v5748_v48, %v5747_v7 }
 0x4dc   : > { %5197 = vrot.lane.b32.xlu2 %v12774_v23, %s6706_s10  ;;  %4615 = vst.msk [vmem:[%s6795_s23 + $0xc8] sm:$0xff] %vm850_vm2, %v4545_v42 }
 0x4dd   : > { %v5650_v32 = vadd.f32 %v5649_v28, %v5648_v11  ;;  %v5750_v6 = vrot.slane %v5749_v56, 2  ;;  %5173 = vst.msk [vmem:[#allocation2 + $0x260] sm:$0xff] %vm850_vm2, %v4545_v42 }
 0x4de   : > { %v4719_v53 = vpop.permute.xlu2 %4718  ;;  %5213 = vrot.lane.b32.xlu1 %v11408_v3, %s6706_s10 }
 0x4df   : > { %4785 = vst.msk [vmem:[#allocation2 + $0x288] sm:$0xff] %vm850_vm2, %v4719_v53  ;;  %v5651_v51 = vrot.slane %v5650_v32, 1  ;;  %v5751_v2 = vadd.f32 %v5750_v6, %v5749_v56 }
 0x4e0   : > { %4906 = vst.msk [vmem:[#allocation2 + $0x288] sm:$0xff] %vm4880_vm6, %v4841_v17  ;;  %v4976_v5 = vpop.permute.xlu1 %4975 }
 0x4e1   : > { %5058 = vst.msk [vmem:[#allocation2 + $0x108] sm:$0x7f] %vm5049_vm0, %v4976_v5  ;;  %5199 = vrot.lane.b32.xlu0 %v11440_v62, %s6706_s10  ;;  %v5752_v53 = vrot.slane %v5751_v2, 1  ;;  %v5652_v24 = vadd.f32 %v5651_v51, %v5650_v32 }
 0x4e2   : > { %5127 = vst.msk [vmem:[#allocation2 + $0x108] sm:$0xff] %vm5116_vm10, %v10657_v12 }
 0x4e3   : > { %v4837_v17 = vpop.permute.xlu0 %4836  ;;  %v5753_v30 = vadd.f32 %v5752_v53, %v5751_v2  ;;  %v11787_v53 = vrot.slane %v11160_v35, 1 }
 0x4e4   : > { %5203 = vrot.lane.b32.xlu2 %v11448_v18, %s6706_s10 }
 0x4e5   : > { %v11748_v11 = vsel %vm4622_vm11, %v5652_v24, %v5753_v30 }
 0x4e6   : > { %v4549_v54 = vpop.permute.xlu2 %4548  ;;  %5219 = vrot.lane.b32.xlu1 %v11462_v40, %s6706_s10 }
 0x4e7   : > { %4617 = vst.msk [vmem:[%s6795_s23 + $0xd8] sm:$0xff] %vm850_vm2, %v4549_v54 }
 0x4e8   : > { %5175 = vst.msk [vmem:[#allocation2 + $0x290] sm:$0xff] %vm850_vm2, %v4549_v54  ;;  %v4845_v7 = vpop.permute.xlu1 %4844 }
 0x4e9   : > { %5205 = vrot.lane.b32.xlu0 %v11421_v9, %s6706_s10 }
 0x4eb   : > { %v4715_v48 = vpop.permute.xlu0 %4714 }
 0x4ec   : > { %5209 = vrot.lane.b32.xlu2 %v11371_v45, %s6706_s10  ;;  %4783 = vst.msk [vmem:[#allocation2 + $0x258] sm:$0xff] %vm850_vm2, %v4715_v48 }
 0x4ed   : > { %4904 = vst.msk [vmem:[#allocation2 + $0x258] sm:$0xff] %vm4880_vm6, %v4837_v17  ;;  %v5180_v17 = vrot.slane %v11123_v26, 1 }
 0x4ee   : > { %v4978_v42 = vpop.permute.xlu2 %4977  ;;  %5225 = vrot.lane.b32.xlu1 %v11483_v59, %s6706_s10 }
 0x4ef   : > { %5059 = vst.msk [vmem:[#allocation2 + $0x120] sm:$0xff] %vm5047_vm4, %v4978_v42  ;;  %v11799_v24 = vsel %vm4911_vm15, %v5180_v17, %v11787_v53  ;;  %vm5280_vm15 = vcmask 522496  }
 0x4f0   : > { %5128 = vst.msk [vmem:[#allocation2 + $0x120] sm:$0xfe] %vm5114_vm13, %v10670_v10  ;;  %v4723_v28 = vpop.permute.xlu1 %4722 }
 0x4f1   : > { %4787 = vst.msk [vmem:[#allocation2 + $0x2b8] sm:$0xff] %vm850_vm2, %v4723_v28  ;;  %5211 = vrot.lane.b32.xlu0 %v11511_v16, %s6706_s10 }
 0x4f2   : > { %4908 = vst.msk [vmem:[#allocation2 + $0x2b8] sm:$0xff] %vm4880_vm6, %v4845_v7 }
 0x4f3   : > { %v4843_v56 = vpop.permute.xlu0 %4842 }
 0x4f4   : > { %5215 = vrot.lane.b32.xlu2 %v11518_v61, %s6706_s10 }
 0x4f6   : > { %v4984_v5 = vpop.permute.xlu2 %4983  ;;  %5231 = vrot.lane.b32.xlu1 %v11532_v38, %s6706_s10 }
 0x4f7   : > { %5062 = vst.msk [vmem:[#allocation2 + $0x168] sm:$0x7f] %vm5049_vm0, %v4984_v5 }
 0x4f8   : > { %5131 = vst.msk [vmem:[#allocation2 + $0x168] sm:$0xff] %vm5116_vm10, %v10811_v37  ;;  %v4982_v32 = vpop.permute.xlu1 %4981 }
 0x4f9   : > { %5061 = vst.msk [vmem:[#allocation2 + $0x150] sm:$0xff] %vm5047_vm4, %v4982_v32  ;;  %5217 = vrot.lane.b32.xlu0 %v11496_v25, %s6706_s10  ;;  %v12775_v32 = vld [vmem:[#allocation33_spill] sm:$0xff] }
 0x4fa   : > { %5130 = vst.msk [vmem:[#allocation2 + $0x150] sm:$0xfe] %vm5114_vm13, %v10772_v21 }
 0x4fb   : > { %v4721_v6 = vpop.permute.xlu0 %4720 }
 0x4fc   : > { %5221 = vrot.lane.b32.xlu2 %v11432_v43, %s6706_s10  ;;  %4786 = vst.msk [vmem:[#allocation2 + $0x2a0] sm:$0xfe] %vm4759_vm14, %v4721_v6  ;;  %v11847_v6 = vrot.slane %v11123_v26, 7 }
 0x4fd   : > { %4907 = vst.msk [vmem:[#allocation2 + $0x2a0] sm:$0xff] %vm4880_vm6, %v4843_v56 }
 0x4fe   : > { %v4990_v51 = vpop.permute.xlu2 %4989  ;;  %5237 = vrot.lane.b32.xlu1 %v11550_v13, %s6706_s10 }
 0x4ff   : > { %5065 = vst.msk [vmem:[#allocation2 + $0x1b0] sm:$0xff] %vm5047_vm4, %v4990_v51 }
 0x500   : > { %5134 = vst.msk [vmem:[#allocation2 + $0x1b0] sm:$0xfe] %vm5114_vm13, %v10972_v22  ;;  %v4988_v2 = vpop.permute.xlu1 %4987 }
 0x501   : > { %5064 = vst.msk [vmem:[#allocation2 + $0x198] sm:$0x7f] %vm5049_vm0, %v4988_v2  ;;  %5223 = vrot.lane.b32.xlu0 %v11576_v15, %s6706_s10  ;;  %v12776_v2 = vld [vmem:[#allocation45_spill] sm:$0xff] }
 0x502   : > { %5133 = vst.msk [vmem:[#allocation2 + $0x198] sm:$0xff] %vm5116_vm10, %v10958_v47 }
 0x503   : > { %v4974_v54 = vpop.permute.xlu0 %4973 }
 0x504   : > { %5227 = vrot.lane.b32.xlu2 %v11580_v8, %s6706_s10  ;;  %5057 = vst.msk [vmem:[#allocation2 + $0xf0] sm:$0xff] %vm5047_vm4, %v4974_v54  ;;  %v12777_v54 = vld [vmem:[#allocation105_spill] sm:$0xff] }
 0x505   : > { %5126 = vst.msk [vmem:[#allocation2 + $0xf0] sm:$0xfe] %vm5114_vm13, %v10641_v55 }
 0x506   : > { %v4996_v30 = vpop.permute.xlu2 %4995  ;;  %5243 = vrot.lane.b32.xlu1 %v11799_v24, %s6706_s10 }
 0x507   : > { %5068 = vst.msk [vmem:[#allocation2 + $0x1f8] sm:$0x7f] %vm5049_vm0, %v4996_v30  ;;  %v12778_v30 = vld [vmem:[#allocation5_spill] sm:$0xff] }
 0x508   : > { %5137 = vst.msk [vmem:[#allocation2 + $0x1f8] sm:$0xff] %vm5116_vm10, %v11148_v31  ;;  %v4994_v7 = vpop.permute.xlu1 %4993 }
 0x509   : > { %5067 = vst.msk [vmem:[#allocation2 + $0x1e0] sm:$0xff] %vm5047_vm4, %v4994_v7  ;;  %5229 = vrot.lane.b32.xlu0 %v11562_v29, %s6706_s10  ;;  %v12779_v7 = vld [vmem:[#allocation104_spill] sm:$0xff] }
 0x50a   : > { %5136 = vst.msk [vmem:[#allocation2 + $0x1e0] sm:$0xfe] %vm5114_vm13, %v11136_v34 }
 0x50b   : > { %v4980_v48 = vpop.permute.xlu0 %4979 }
 0x50c   : > { %5233 = vrot.lane.b32.xlu2 %v11504_v58, %s6706_s10  ;;  %5060 = vst.msk [vmem:[#allocation2 + $0x138] sm:$0x7f] %vm5049_vm0, %v4980_v48  ;;  %v12780_v48 = vld [vmem:[#allocation13_spill] sm:$0xff] }
 0x50d   : > { %5129 = vst.msk [vmem:[#allocation2 + $0x138] sm:$0xff] %vm5116_vm10, %v10788_v60 }
 0x50e   : > { %v5002_v42 = vpop.permute.xlu2 %5001  ;;  %5314 = vrot.lane.b32.xlu1 %v10318_v39, %s6707_s20 }
 0x50f   : > { %5071 = vst.msk [vmem:[#allocation2 + $0x240] sm:$0xff] %vm5047_vm4, %v5002_v42 }
 0x510   : > { %5140 = vst.msk [vmem:[#allocation2 + $0x240] sm:$0xfe] %vm5114_vm13, %v11207_v36  ;;  %v5000_v28 = vpop.permute.xlu1 %4999 }
 0x511   : > { %5070 = vst.msk [vmem:[#allocation2 + $0x228] sm:$0x7f] %vm5049_vm0, %v5000_v28  ;;  %5235 = vrot.lane.b32.xlu0 %v11644_v44, %s6706_s10 }
 0x512   : > { %5139 = vst.msk [vmem:[#allocation2 + $0x228] sm:$0xff] %vm5116_vm10, %v11335_v46 }
 0x513   : > { %v4986_v39 = vpop.permute.xlu0 %4985 }
 0x514   : > { %5239 = vrot.lane.b32.xlu2 %v11648_v1, %s6706_s10  ;;  %5063 = vst.msk [vmem:[#allocation2 + $0x180] sm:$0xff] %vm5047_vm4, %v4986_v39  ;;  %v12781_v39 = vld [vmem:[#allocation52_spill] sm:$0xff] }
 0x515   : > { %5132 = vst.msk [vmem:[#allocation2 + $0x180] sm:$0xfe] %vm5114_vm13, %v10920_v14 }
 0x516   : > { %v5008_v56 = vpop.permute.xlu2 %5007  ;;  %5320 = vrot.lane.b32.xlu1 %v10396_v49, %s6707_s20 }
 0x517   : > { %5074 = vst.msk [vmem:[#allocation2 + $0x288] sm:$0x7f] %vm5049_vm0, %v5008_v56 }
 0x518   : > { %5143 = vst.msk [vmem:[#allocation2 + $0x288] sm:$0xff] %vm5116_vm10, %v11346_v19  ;;  %v5006_v5 = vpop.permute.xlu1 %5005 }
 0x519   : > { %5073 = vst.msk [vmem:[#allocation2 + $0x270] sm:$0xff] %vm5047_vm4, %v5006_v5  ;;  %5241 = vrot.lane.b32.xlu0 %v11629_v57, %s6706_s10  ;;  %v12782_v5 = vld [vmem:[#allocation86_spill] sm:$0xff] }
 0x51a   : > { %5142 = vst.msk [vmem:[#allocation2 + $0x270] sm:$0xfe] %vm5114_vm13, %v12775_v32 }
 0x51b   : > { %v4992_v49 = vpop.permute.xlu0 %4991 }
 0x51c   : > { %5245 = vrot.lane.b32.xlu2 %v11787_v53, %s6706_s10  ;;  %5066 = vst.msk [vmem:[#allocation2 + $0x1c8] sm:$0x7f] %vm5049_vm0, %v4992_v49  ;;  %v12783_v49 = vld [vmem:[#allocation44_spill] sm:$0xff] }
 0x51d   : > { %5135 = vst.msk [vmem:[#allocation2 + $0x1c8] sm:$0xff] %vm5116_vm10, %v12777_v54 }
 0x51e   : > { %v5014_v51 = vpop.permute.xlu2 %5013  ;;  %5326 = vrot.lane.b32.xlu1 %v12776_v2, %s6707_s20 }
 0x51f   : > { %5077 = vst.msk [vmem:[#allocation2 + $0x2d0] sm:$0xff] %vm5047_vm4, %v5014_v51 }
 0x520   : > { %5146 = vst.msk [vmem:[#allocation2 + $0x2d0] sm:$0xfe] %vm5114_vm13, %v11847_v6  ;;  %v5012_v17 = vpop.permute.xlu1 %5011 }
 0x521   : > { %5076 = vst.msk [vmem:[#allocation2 + $0x2b8] sm:$0x7f] %vm5049_vm0, %v5012_v17  ;;  %5312 = vrot.lane.b32.xlu0 %v12778_v30, %s6707_s20  ;;  %v12785_v30 = vld [vmem:[#allocation16_spill] sm:$0xff] }
 0x522   : > { %5145 = vst.msk [vmem:[#allocation2 + $0x2b8] sm:$0xff] %vm5116_vm10, %v12779_v7 }
 0x523   : > { %v4998_v42 = vpop.permute.xlu0 %4997 }
 0x524   : > { %5316 = vrot.lane.b32.xlu2 %v12780_v48, %s6707_s20  ;;  %5069 = vst.msk [vmem:[#allocation2 + $0x210] sm:$0xff] %vm5047_vm4, %v4998_v42 }
 0x525   : > { %5138 = vst.msk [vmem:[#allocation2 + $0x210] sm:$0xfe] %vm5114_vm13, %v12781_v39 }
 0x526   : > { %v5186_v28 = vpop.permute.xlu2 %5185  ;;  %5332 = vrot.lane.b32.xlu1 %v10670_v10, %s6707_s20  ;;  %v12784_v10 = vld [vmem:[#allocation71_spill] sm:$0xff] }
 0x527   : > { %5281 = vst.msk [vmem:[#allocation2 + $0x20] sm:$0x7f] %vm5280_vm15, %v5186_v28 }
 0x528   : > { %v5184_v56 = vpop.permute.xlu1 %5183 }
 0x529   : > { %5279 = vst.msk [vmem:[#allocation2 + $0x8] sm:$0xff] %vm4880_vm6, %v5184_v56  ;;  %5318 = vrot.lane.b32.xlu0 %v12782_v5, %s6707_s20 }
 0x52b   : > { %v5004_v51 = vpop.permute.xlu0 %5003 }
 0x52c   : > { %5322 = vrot.lane.b32.xlu2 %v12783_v49, %s6707_s20  ;;  %5072 = vst.msk [vmem:[#allocation2 + $0x258] sm:$0x7f] %vm5049_vm0, %v5004_v51 }
 0x52d   : > { %5141 = vst.msk [vmem:[#allocation2 + $0x258] sm:$0xff] %vm5116_vm10, %v12784_v10 }
 0x52e   : > { %v5192_v2 = vpop.permute.xlu2 %5191  ;;  %5338 = vrot.lane.b32.xlu1 %v10811_v37, %s6707_s20  ;;  %v12786_v37 = vld [vmem:[#allocation20_spill] sm:$0xff] }
 0x52f   : > { %5284 = vst.msk [vmem:[#allocation2 + $0x68] sm:$0xff] %vm4880_vm6, %v5192_v2 }
 0x530   : > { %v5190_v17 = vpop.permute.xlu1 %5189 }
 0x531   : > { %5283 = vst.msk [vmem:[#allocation2 + $0x50] sm:$0x7f] %vm5280_vm15, %v5190_v17  ;;  %5324 = vrot.lane.b32.xlu0 %v12785_v30, %s6707_s20 }
 0x533   : > { %v5010_v48 = vpop.permute.xlu0 %5009 }
 0x534   : > { %5328 = vrot.lane.b32.xlu2 %v10641_v55, %s6707_s20  ;;  %5075 = vst.msk [vmem:[#allocation2 + $0x2a0] sm:$0xff] %vm5047_vm4, %v5010_v48  ;;  %v5080_v55 = vrot.slane %v11160_v35, 7 }
 0x535   : > { %5144 = vst.msk [vmem:[#allocation2 + $0x2a0] sm:$0xfe] %vm5114_vm13, %v12786_v37  ;;  %vm5402_vm13 = vcmask 785921  }
 0x536   : > { %v5198_v42 = vpop.permute.xlu2 %5197  ;;  %5344 = vrot.lane.b32.xlu1 %v10972_v22, %s6707_s20  ;;  %v5081_v22 = vsel %vm4622_vm11, %v11847_v6, %v5080_v55  ;;  %vm5554_vm11 = vcmask 260096  }
 0x537   : > { %5287 = vst.msk [vmem:[#allocation2 + $0xb0] sm:$0x7f] %vm5280_vm15, %v5198_v42  ;;  %v12790_v42 = vld [vmem:[#allocation83_spill] sm:$0xff] }
 0x538   : > { %v5196_v28 = vpop.permute.xlu1 %5195 }
 0x539   : > { %5286 = vst.msk [vmem:[#allocation2 + $0x98] sm:$0xff] %vm4880_vm6, %v5196_v28  ;;  %5330 = vrot.lane.b32.xlu0 %v10657_v12, %s6707_s20  ;;  %v12792_v28 = vld [vmem:[#allocation36_spill] sm:$0xff] }
 0x53b   : > { %v5016_v56 = vpop.permute.xlu0 %5015 }
 0x53c   : > { %5334 = vrot.lane.b32.xlu2 %v10788_v60, %s6707_s20  ;;  %5078 = vst.msk [vmem:[#allocation2 + $0x2e8] sm:$0x7f] %vm5049_vm0, %v5016_v56  ;;  %v12794_v56 = vld [vmem:[#allocation95_spill] sm:$0xff] }
 0x53d   : > { %5147 = vst.msk [vmem:[#allocation2 + $0x2e8] sm:$0xff] %vm5116_vm10, %v5081_v22 }
 0x53e   : > { %v5204_v5 = vpop.permute.xlu2 %5203  ;;  %5350 = vrot.lane.b32.xlu1 %v11148_v31, %s6707_s20 }
 0x53f   : > { %5290 = vst.msk [vmem:[#allocation2 + $0xf8] sm:$0xff] %vm4880_vm6, %v5204_v5  ;;  %v12796_v5 = vld [vmem:[#allocation102_spill] sm:$0xff] }
 0x540   : > { %v5202_v49 = vpop.permute.xlu1 %5201 }
 0x541   : > { %5289 = vst.msk [vmem:[#allocation2 + $0xe0] sm:$0x7f] %vm5280_vm15, %v5202_v49  ;;  %5336 = vrot.lane.b32.xlu0 %v10772_v21, %s6707_s20  ;;  %v12797_v49 = vld [vmem:[#allocation84_spill] sm:$0xff] }
 0x543   : > { %v5188_v60 = vpop.permute.xlu0 %5187 }
 0x544   : > { %5340 = vrot.lane.b32.xlu2 %v10920_v14, %s6707_s20  ;;  %5282 = vst.msk [vmem:[#allocation2 + $0x38] sm:$0xff] %vm4880_vm6, %v5188_v60  ;;  %v12799_v60 = vld [vmem:[#allocation54_spill] sm:$0xff] }
 0x546   : > { %v5210_v12 = vpop.permute.xlu2 %5209  ;;  %5356 = vrot.lane.b32.xlu1 %v11207_v36, %s6707_s20 }
 0x547   : > { %5293 = vst.msk [vmem:[#allocation2 + $0x140] sm:$0x7f] %vm5280_vm15, %v5210_v12 }
 0x548   : > { %v5208_v31 = vpop.permute.xlu1 %5207 }
 0x549   : > { %5292 = vst.msk [vmem:[#allocation2 + $0x128] sm:$0xff] %vm4880_vm6, %v5208_v31  ;;  %5342 = vrot.lane.b32.xlu0 %v10958_v47, %s6707_s20  ;;  %v12800_v31 = vld [vmem:[#allocation17_spill] sm:$0xff] }
 0x54b   : > { %v5194_v21 = vpop.permute.xlu0 %5193 }
 0x54c   : > { %5346 = vrot.lane.b32.xlu2 %v12777_v54, %s6707_s20  ;;  %5285 = vst.msk [vmem:[#allocation2 + $0x80] sm:$0x7f] %vm5280_vm15, %v5194_v21  ;;  %v12802_v21 = vld [vmem:[#allocation72_spill] sm:$0xff] }
 0x54e   : > { %v5216_v14 = vpop.permute.xlu2 %5215  ;;  %5362 = vrot.lane.b32.xlu1 %v11346_v19, %s6707_s20 }
 0x54f   : > { %5296 = vst.msk [vmem:[#allocation2 + $0x188] sm:$0xff] %vm4880_vm6, %v5216_v14 }
 0x550   : > { %v5214_v36 = vpop.permute.xlu1 %5213 }
 0x551   : > { %5295 = vst.msk [vmem:[#allocation2 + $0x170] sm:$0x7f] %vm5280_vm15, %v5214_v36  ;;  %5348 = vrot.lane.b32.xlu0 %v11136_v34, %s6707_s20  ;;  %v12803_v36 = vld [vmem:[#allocation60_spill] sm:$0xff] }
 0x553   : > { %v5200_v47 = vpop.permute.xlu0 %5199 }
 0x554   : > { %5352 = vrot.lane.b32.xlu2 %v12781_v39, %s6707_s20  ;;  %5288 = vst.msk [vmem:[#allocation2 + $0xc8] sm:$0xff] %vm4880_vm6, %v5200_v47  ;;  %v12804_v47 = vld [vmem:[#allocation34_spill] sm:$0xff] }
 0x556   : > { %v5222_v54 = vpop.permute.xlu2 %5221  ;;  %5368 = vrot.lane.b32.xlu1 %v11847_v6, %s6707_s20 }
 0x557   : > { %5299 = vst.msk [vmem:[#allocation2 + $0x1d0] sm:$0x7f] %vm5280_vm15, %v5222_v54 }
 0x558   : > { %v5220_v19 = vpop.permute.xlu1 %5219 }
 0x559   : > { %5298 = vst.msk [vmem:[#allocation2 + $0x1b8] sm:$0xff] %vm4880_vm6, %v5220_v19  ;;  %5354 = vrot.lane.b32.xlu0 %v11335_v46, %s6707_s20  ;;  %v12805_v19 = vld [vmem:[#allocation40_spill] sm:$0xff] }
 0x55b   : > { %v5206_v34 = vpop.permute.xlu0 %5205 }
 0x55c   : > { %5358 = vrot.lane.b32.xlu2 %v12784_v10, %s6707_s20  ;;  %5291 = vst.msk [vmem:[#allocation2 + $0x110] sm:$0x7f] %vm5280_vm15, %v5206_v34 }
 0x55e   : > { %v5228_v39 = vpop.permute.xlu2 %5227  ;;  %5465 = vrot.lane.b32.xlu1 %v12768_v20, %s6705_s17 }
 0x55f   : > { %5302 = vst.msk [vmem:[#allocation2 + $0x218] sm:$0xff] %vm4880_vm6, %v5228_v39  ;;  %v12807_v39 = vld [vmem:[#allocation22_spill] sm:$0xff] }
 0x560   : > { %v5226_v6 = vpop.permute.xlu1 %5225 }
 0x561   : > { %5301 = vst.msk [vmem:[#allocation2 + $0x200] sm:$0x7f] %vm5280_vm15, %v5226_v6  ;;  %5360 = vrot.lane.b32.xlu0 %v12775_v32, %s6707_s20 }
 0x563   : > { %v5212_v46 = vpop.permute.xlu0 %5211 }
 0x564   : > { %5364 = vrot.lane.b32.xlu2 %v12786_v37, %s6707_s20  ;;  %5294 = vst.msk [vmem:[#allocation2 + $0x158] sm:$0xff] %vm4880_vm6, %v5212_v46  ;;  %v12809_v46 = vld [vmem:[#allocation53_spill] sm:$0xff] }
 0x566   : > { %v5234_v51 = vpop.permute.xlu2 %5233  ;;  %5471 = vrot.lane.b32.xlu1 %v12769_v0, %s6705_s17 }
 0x567   : > { %5305 = vst.msk [vmem:[#allocation2 + $0x260] sm:$0x7f] %vm5280_vm15, %v5234_v51 }
 0x568   : > { %v5232_v20 = vpop.permute.xlu1 %5231 }
 0x569   : > { %5304 = vst.msk [vmem:[#allocation2 + $0x248] sm:$0xff] %vm4880_vm6, %v5232_v20  ;;  %5366 = vrot.lane.b32.xlu0 %v12779_v7, %s6707_s20  ;;  %v12810_v20 = vld [vmem:[#allocation19_spill] sm:$0xff] }
 0x56b   : > { %v5218_v32 = vpop.permute.xlu0 %5217 }
 0x56c   : > { %5370 = vrot.lane.b32.xlu2 %v5081_v22, %s6707_s20  ;;  %5297 = vst.msk [vmem:[#allocation2 + $0x1a0] sm:$0x7f] %vm5280_vm15, %v5218_v32 }
 0x56e   : > { %v5240_v2 = vpop.permute.xlu2 %5239  ;;  %5477 = vrot.lane.b32.xlu1 %v11305_v50, %s6705_s17 }
 0x56f   : > { %5308 = vst.msk [vmem:[#allocation2 + $0x2a8] sm:$0xff] %vm4880_vm6, %v5240_v2 }
 0x570   : > { %v5238_v0 = vpop.permute.xlu1 %5237 }
 0x571   : > { %5307 = vst.msk [vmem:[#allocation2 + $0x290] sm:$0x7f] %vm5280_vm15, %v5238_v0  ;;  %5463 = vrot.lane.b32.xlu0 %v12771_v52, %s6705_s17 }
 0x573   : > { %v5224_v7 = vpop.permute.xlu0 %5223 }
 0x574   : > { %5467 = vrot.lane.b32.xlu2 %v12772_v27, %s6705_s17  ;;  %5300 = vst.msk [vmem:[#allocation2 + $0x1e8] sm:$0xff] %vm4880_vm6, %v5224_v7 }
 0x576   : > { %v5246_v10 = vpop.permute.xlu2 %5245  ;;  %5483 = vrot.lane.b32.xlu1 %v11380_v63, %s6705_s17  ;;  %v12787_v63 = vld [vmem:[#allocation99_spill] sm:$0xff] }
 0x577   : > { %5311 = vst.msk [vmem:[#allocation2 + $0x2f0] sm:$0x7f] %vm5280_vm15, %v5246_v10 }
 0x578   : > { %v5244_v50 = vpop.permute.xlu1 %5243 }
 0x579   : > { %5310 = vst.msk [vmem:[#allocation2 + $0x2d8] sm:$0xff] %vm4880_vm6, %v5244_v50  ;;  %5469 = vrot.lane.b32.xlu0 %v12773_v4, %s6705_s17  ;;  %v12788_v4 = vld [vmem:[#allocation79_spill] sm:$0xff]  ;;  %v12812_v50 = vld [vmem:[#allocation46_spill] sm:$0xff] }
 0x57b   : > { %v5230_v52 = vpop.permute.xlu0 %5229 }
 0x57c   : > { %5473 = vrot.lane.b32.xlu2 %v12774_v23, %s6705_s17  ;;  %5303 = vst.msk [vmem:[#allocation2 + $0x230] sm:$0x7f] %vm5280_vm15, %v5230_v52 }
 0x57e   : > { %v5317_v27 = vpop.permute.xlu2 %5316  ;;  %5489 = vrot.lane.b32.xlu1 %v11408_v3, %s6705_s17  ;;  %v12789_v3 = vld [vmem:[#allocation89_spill] sm:$0xff] }
 0x57f   : > { %5405 = vst.msk [vmem:[#allocation2 + $0x38] sm:$0xfe] %vm5402_vm13, %v5317_v27 }
 0x580   : > { %5435 = vst.msk [vmem:[#allocation2 + $0x38] sm:$0xff] %vm5116_vm10, %v12787_v63  ;;  %v5315_v17 = vpop.permute.xlu1 %5314 }
 0x581   : > { %5404 = vst.msk [vmem:[#allocation2 + $0x20] sm:$0xff] %vm5047_vm4, %v5315_v17  ;;  %5475 = vrot.lane.b32.xlu0 %v11440_v62, %s6705_s17 }
 0x582   : > { %5434 = vst.msk [vmem:[#allocation2 + $0x20] sm:$0xff] %vm5116_vm10, %v12788_v4 }
 0x583   : > { %v5236_v23 = vpop.permute.xlu0 %5235 }
 0x584   : > { %5479 = vrot.lane.b32.xlu2 %v11448_v18, %s6705_s17  ;;  %5306 = vst.msk [vmem:[#allocation2 + $0x278] sm:$0xff] %vm4880_vm6, %v5236_v23 }
 0x586   : > { %v5323_v30 = vpop.permute.xlu2 %5322  ;;  %5495 = vrot.lane.b32.xlu1 %v11462_v40, %s6705_s17  ;;  %v12791_v40 = vld [vmem:[#allocation9_spill] sm:$0xff] }
 0x587   : > { %5408 = vst.msk [vmem:[#allocation2 + $0x80] sm:$0xff] %vm5047_vm4, %v5323_v30 }
 0x588   : > { %5438 = vst.msk [vmem:[#allocation2 + $0x80] sm:$0xff] %vm5116_vm10, %v12789_v3  ;;  %v5321_v48 = vpop.permute.xlu1 %5320 }
 0x589   : > { %5407 = vst.msk [vmem:[#allocation2 + $0x68] sm:$0xfe] %vm5402_vm13, %v5321_v48  ;;  %5481 = vrot.lane.b32.xlu0 %v11421_v9, %s6705_s17 }
 0x58a   : > { %5437 = vst.msk [vmem:[#allocation2 + $0x68] sm:$0xff] %vm5116_vm10, %v12790_v42 }
 0x58b   : > { %v5242_v62 = vpop.permute.xlu0 %5241 }
 0x58c   : > { %5485 = vrot.lane.b32.xlu2 %v11371_v45, %s6705_s17  ;;  %5309 = vst.msk [vmem:[#allocation2 + $0x2c0] sm:$0x7f] %vm5280_vm15, %v5242_v62 }
 0x58e   : > { %v5329_v18 = vpop.permute.xlu2 %5328  ;;  %5499 = vrot.lane.b32.xlu1 %v11576_v15, %s6705_s17  ;;  %v12793_v15 = vld [vmem:[#allocation29_spill] sm:$0xff] }
 0x58f   : > { %5411 = vst.msk [vmem:[#allocation2 + $0xc8] sm:$0xfe] %vm5402_vm13, %v5329_v18 }
 0x590   : > { %5441 = vst.msk [vmem:[#allocation2 + $0xc8] sm:$0xff] %vm5116_vm10, %v12791_v40  ;;  %v5327_v37 = vpop.permute.xlu1 %5326 }
 0x591   : > { %5410 = vst.msk [vmem:[#allocation2 + $0xb0] sm:$0xff] %vm5047_vm4, %v5327_v37  ;;  %5487 = vrot.lane.b32.xlu0 %v11511_v16, %s6705_s17  ;;  %v12795_v16 = vld [vmem:[#allocation101_spill] sm:$0xff] }
 0x592   : > { %5440 = vst.msk [vmem:[#allocation2 + $0xb0] sm:$0xff] %vm5116_vm10, %v12792_v28 }
 0x593   : > { %v5313_v45 = vpop.permute.xlu0 %5312 }
 0x594   : > { %5491 = vrot.lane.b32.xlu2 %v11518_v61, %s6705_s17  ;;  %5403 = vst.msk [vmem:[#allocation2 + $0x8] sm:$0xfe] %vm5402_vm13, %v5313_v45 }
 0x595   : > { %5433 = vst.msk [vmem:[#allocation2 + $0x8] sm:$0xff] %vm5116_vm10, %v12794_v56  ;;  %v5754_v56 = vld [vmem:[%s6785_s15] sm:$0x3] }
 0x596   : > { %v5335_v9 = vpop.permute.xlu2 %5334  ;;  %5505 = vrot.lane.b32.xlu1 %v11562_v29, %s6705_s17 }
 0x597   : > { %5414 = vst.msk [vmem:[#allocation2 + $0x110] sm:$0xff] %vm5047_vm4, %v5335_v9 }
 0x598   : > { %5444 = vst.msk [vmem:[#allocation2 + $0x110] sm:$0xff] %vm5116_vm10, %v12793_v15  ;;  %v5333_v55 = vpop.permute.xlu1 %5332 }
 0x599   : > { %5413 = vst.msk [vmem:[#allocation2 + $0xf8] sm:$0xfe] %vm5402_vm13, %v5333_v55  ;;  %5493 = vrot.lane.b32.xlu0 %v11496_v25, %s6705_s17  ;;  %v12798_v25 = vld [vmem:[#allocation48_spill] sm:$0xff] }
 0x59a   : > { %5443 = vst.msk [vmem:[#allocation2 + $0xf8] sm:$0xff] %vm5116_vm10, %v12795_v16 }
 0x59b   : > { %v5319_v61 = vpop.permute.xlu0 %5318 }
 0x59c   : > { %5497 = vrot.lane.b32.xlu2 %v11432_v43, %s6705_s17  ;;  %5406 = vst.msk [vmem:[#allocation2 + $0x50] sm:$0xff] %vm5047_vm4, %v5319_v61 }
 0x59d   : > { %5436 = vst.msk [vmem:[#allocation2 + $0x50] sm:$0xff] %vm5116_vm10, %v12797_v49 }
 0x59e   : > { %v5341_v29 = vpop.permute.xlu2 %5340  ;;  %5511 = vrot.lane.b32.xlu1 %v11644_v44, %s6705_s17 }
 0x59f   : > { %5417 = vst.msk [vmem:[#allocation2 + $0x158] sm:$0xfe] %vm5402_vm13, %v5341_v29 }
 0x5a0   : > { %5447 = vst.msk [vmem:[#allocation2 + $0x158] sm:$0xff] %vm5116_vm10, %v12796_v5  ;;  %v5339_v22 = vpop.permute.xlu1 %5338 }
 0x5a1   : > { %5416 = vst.msk [vmem:[#allocation2 + $0x140] sm:$0xff] %vm5047_vm4, %v5339_v22  ;;  %5757 = vrot.lane.b32.xlu0 %v11748_v11, %s6705_s17  ;;  %v12801_v11 = vld [vmem:[#allocation103_spill] sm:$0xff] }
 0x5a2   : > { %5446 = vst.msk [vmem:[#allocation2 + $0x140] sm:$0xff] %vm5116_vm10, %v12798_v25 }
 0x5a3   : > { %v5325_v43 = vpop.permute.xlu0 %5324 }
 0x5a4   : > { %5501 = vrot.lane.b32.xlu2 %v11483_v59, %s6705_s17  ;;  %5409 = vst.msk [vmem:[#allocation2 + $0x98] sm:$0xfe] %vm5402_vm13, %v5325_v43 }
 0x5a5   : > { %5439 = vst.msk [vmem:[#allocation2 + $0x98] sm:$0xff] %vm5116_vm10, %v12800_v31 }
 0x5a6   : > { %v5347_v44 = vpop.permute.xlu2 %5346  ;;  %5517 = vrot.lane.b32.xlu1 %v11629_v57, %s6705_s17 }
 0x5a7   : > { %5420 = vst.msk [vmem:[#allocation2 + $0x1a0] sm:$0xff] %vm5047_vm4, %v5347_v44 }
 0x5a8   : > { %5450 = vst.msk [vmem:[#allocation2 + $0x1a0] sm:$0xff] %vm5116_vm10, %v12799_v60  ;;  %v5345_v12 = vpop.permute.xlu1 %5344 }
 0x5a9   : > { %5419 = vst.msk [vmem:[#allocation2 + $0x188] sm:$0xfe] %vm5402_vm13, %v5345_v12  ;;  %5503 = vrot.lane.b32.xlu0 %v11580_v8, %s6705_s17 }
 0x5aa   : > { %5449 = vst.msk [vmem:[#allocation2 + $0x188] sm:$0xff] %vm5116_vm10, %v12801_v11 }
 0x5ab   : > { %v5331_v59 = vpop.permute.xlu0 %5330 }
 0x5ac   : > { %5507 = vrot.lane.b32.xlu2 %v11532_v38, %s6705_s17  ;;  %5412 = vst.msk [vmem:[#allocation2 + $0xe0] sm:$0xff] %vm5047_vm4, %v5331_v59 }
 0x5ad   : > { %5442 = vst.msk [vmem:[#allocation2 + $0xe0] sm:$0xff] %vm5116_vm10, %v12803_v36 }
 0x5ae   : > { %v5353_v57 = vpop.permute.xlu2 %5352 }
 0x5af   : > { %5423 = vst.msk [vmem:[#allocation2 + $0x1e8] sm:$0xfe] %vm5402_vm13, %v5353_v57 }
 0x5b0   : > { %5453 = vst.msk [vmem:[#allocation2 + $0x1e8] sm:$0xff] %vm5116_vm10, %v12802_v21  ;;  %v5351_v14 = vpop.permute.xlu1 %5350 }
 0x5b1   : > { %5422 = vst.msk [vmem:[#allocation2 + $0x1d0] sm:$0xff] %vm5047_vm4, %v5351_v14  ;;  %5509 = vrot.lane.b32.xlu0 %v11504_v58, %s6705_s17 }
 0x5b2   : > { %5452 = vst.msk [vmem:[#allocation2 + $0x1d0] sm:$0xff] %vm5116_vm10, %v12804_v47 }
 0x5b3   : > { %v5337_v8 = vpop.permute.xlu0 %5336 }
 0x5b4   : > { %5513 = vrot.lane.b32.xlu2 %v11550_v13, %s6705_s17  ;;  %5415 = vst.msk [vmem:[#allocation2 + $0x128] sm:$0xfe] %vm5402_vm13, %v5337_v8 }
 0x5b5   : > { %5445 = vst.msk [vmem:[#allocation2 + $0x128] sm:$0xff] %vm5116_vm10, %v12805_v19 }
 0x5b6   : > { %v5359_v38 = vpop.permute.xlu2 %5358 }
 0x5b7   : > { %5426 = vst.msk [vmem:[#allocation2 + $0x230] sm:$0xff] %vm5047_vm4, %v5359_v38 }
 0x5b8   : > { %5456 = vst.msk [vmem:[#allocation2 + $0x230] sm:$0xff] %vm5116_vm10, %v11290_v41  ;;  %v5357_v54 = vpop.permute.xlu1 %5356  ;;  %v12806_v41 = vld [vmem:[#allocation49_spill] sm:$0xff] }
 0x5b9   : > { %5425 = vst.msk [vmem:[#allocation2 + $0x218] sm:$0xfe] %vm5402_vm13, %v5357_v54  ;;  %5515 = vrot.lane.b32.xlu0 %v11648_v1, %s6705_s17 }
 0x5ba   : > { %5455 = vst.msk [vmem:[#allocation2 + $0x218] sm:$0xff] %vm5116_vm10, %v11170_v33  ;;  %v12808_v33 = vld [vmem:[#allocation70_spill] sm:$0xff] }
 0x5bb   : > { %v5343_v58 = vpop.permute.xlu0 %5342 }
 0x5bc   : > { %5519 = vrot.lane.b32.xlu2 %v11799_v24, %s6705_s17  ;;  %5418 = vst.msk [vmem:[#allocation2 + $0x170] sm:$0xff] %vm5047_vm4, %v5343_v58 }
 0x5bd   : > { %5448 = vst.msk [vmem:[#allocation2 + $0x170] sm:$0xff] %vm5116_vm10, %v12807_v39 }
 0x5be   : > { %v5365_v13 = vpop.permute.xlu2 %5364 }
 0x5bf   : > { %5429 = vst.msk [vmem:[#allocation2 + $0x278] sm:$0xfe] %vm5402_vm13, %v5365_v13 }
 0x5c0   : > { %5459 = vst.msk [vmem:[#allocation2 + $0x278] sm:$0xff] %vm5116_vm10, %v12806_v41  ;;  %v5363_v34 = vpop.permute.xlu1 %5362 }
 0x5c1   : > { %5428 = vst.msk [vmem:[#allocation2 + $0x260] sm:$0xff] %vm5047_vm4, %v5363_v34  ;;  %5521 = vrot.lane.b32.xlu0 %v11787_v53, %s6705_s17 }
 0x5c2   : > { %5458 = vst.msk [vmem:[#allocation2 + $0x260] sm:$0xff] %vm5116_vm10, %v12808_v33 }
 0x5c3   : > { %v5349_v1 = vpop.permute.xlu0 %5348 }
 0x5c4   : > { %5421 = vst.msk [vmem:[#allocation2 + $0x1b8] sm:$0xfe] %vm5402_vm13, %v5349_v1 }
 0x5c5   : > { %5451 = vst.msk [vmem:[#allocation2 + $0x1b8] sm:$0xff] %vm5116_vm10, %v12809_v46 }
 0x5c6   : > { %v5371_v24 = vpop.permute.xlu2 %5370 }
 0x5c7   : > { %5432 = vst.msk [vmem:[#allocation2 + $0x2c0] sm:$0xff] %vm5047_vm4, %v5371_v24 }
 0x5c8   : > { %5462 = vst.msk [vmem:[#allocation2 + $0x2c0] sm:$0xff] %vm5116_vm10, %v11160_v35  ;;  %v5369_v6 = vpop.permute.xlu1 %5368 }
 0x5c9   : > { %5431 = vst.msk [vmem:[#allocation2 + $0x2a8] sm:$0xfe] %vm5402_vm13, %v5369_v6 }
 0x5ca   : > { %5461 = vst.msk [vmem:[#allocation2 + $0x2a8] sm:$0xff] %vm5116_vm10, %v11123_v26  ;;  %v12811_v26 = vld [vmem:[#allocation12_spill] sm:$0xff] }
 0x5cb   : > { %v5355_v51 = vpop.permute.xlu0 %5354 }
 0x5cc   : > { %5424 = vst.msk [vmem:[#allocation2 + $0x200] sm:$0xff] %vm5047_vm4, %v5355_v51 }
 0x5cd   : > { %5454 = vst.msk [vmem:[#allocation2 + $0x200] sm:$0xff] %vm5116_vm10, %v12810_v20 }
 0x5ce   : > { %v5468_v53 = vpop.permute.xlu2 %5467 }
 0x5cf   : > { %5556 = vst.msk [vmem:[#allocation2 + $0x40] sm:$0xff] %vm850_vm2, %v5468_v53 }
 0x5d0   : > { %v5466_v35 = vpop.permute.xlu1 %5465 }
 0x5d1   : > { %5555 = vst.msk [vmem:[#allocation2 + $0x28] sm:$0x7f] %vm5554_vm11, %v5466_v35 }
 0x5d3   : > { %v5361_v32 = vpop.permute.xlu0 %5360 }
 0x5d4   : > { %5427 = vst.msk [vmem:[#allocation2 + $0x248] sm:$0xfe] %vm5402_vm13, %v5361_v32 }
 0x5d5   : > { %5457 = vst.msk [vmem:[#allocation2 + $0x248] sm:$0xff] %vm5116_vm10, %v12811_v26 }
 0x5d6   : > { %v5474_v2 = vpop.permute.xlu2 %5473 }
 0x5d7   : > { %5559 = vst.msk [vmem:[#allocation2 + $0x88] sm:$0x7f] %vm5554_vm11, %v5474_v2 }
 0x5d8   : > { %v5472_v0 = vpop.permute.xlu1 %5471 }
 0x5d9   : > { %5558 = vst.msk [vmem:[#allocation2 + $0x70] sm:$0xff] %vm850_vm2, %v5472_v0 }
 0x5db   : > { %v5367_v7 = vpop.permute.xlu0 %5366 }
 0x5dc   : > { %5430 = vst.msk [vmem:[#allocation2 + $0x290] sm:$0xff] %vm5047_vm4, %v5367_v7 }
 0x5dd   : > { %5460 = vst.msk [vmem:[#allocation2 + $0x290] sm:$0xff] %vm5116_vm10, %v12812_v50  ;;  %vm5761_vm10 = vcmask 254976  }
 0x5de   : > { %v5480_v10 = vpop.permute.xlu2 %5479 }
 0x5df   : > { %5562 = vst.msk [vmem:[#allocation2 + $0xd0] sm:$0xff] %vm850_vm2, %v5480_v10 }
 0x5e0   : > { %v5478_v52 = vpop.permute.xlu1 %5477 }
 0x5e1   : > { %5561 = vst.msk [vmem:[#allocation2 + $0xb8] sm:$0x7f] %vm5554_vm11, %v5478_v52 }
 0x5e3   : > { %v5464_v27 = vpop.permute.xlu0 %5463 }
 0x5e4   : > { %5553 = vst.msk [vmem:[#allocation2 + $0x10] sm:$0xff] %vm850_vm2, %v5464_v27 }
 0x5e6   : > { %v5486_v63 = vpop.permute.xlu2 %5485 }
 0x5e7   : > { %5565 = vst.msk [vmem:[#allocation2 + $0x118] sm:$0x7f] %vm5554_vm11, %v5486_v63 }
 0x5e8   : > { %v5484_v17 = vpop.permute.xlu1 %5483 }
 0x5e9   : > { %5564 = vst.msk [vmem:[#allocation2 + $0x100] sm:$0xff] %vm850_vm2, %v5484_v17 }
 0x5eb   : > { %v5470_v4 = vpop.permute.xlu0 %5469 }
 0x5ec   : > { %5557 = vst.msk [vmem:[#allocation2 + $0x58] sm:$0x7f] %vm5554_vm11, %v5470_v4 }
 0x5ee   : > { %v5492_v23 = vpop.permute.xlu2 %5491 }
 0x5ef   : > { %5568 = vst.msk [vmem:[#allocation2 + $0x160] sm:$0xff] %vm850_vm2, %v5492_v23 }
 0x5f0   : > { %v5490_v30 = vpop.permute.xlu1 %5489 }
 0x5f1   : > { %5567 = vst.msk [vmem:[#allocation2 + $0x148] sm:$0x7f] %vm5554_vm11, %v5490_v30 }
 0x5f3   : > { %v5476_v3 = vpop.permute.xlu0 %5475 }
 0x5f4   : > { %5560 = vst.msk [vmem:[#allocation2 + $0xa0] sm:$0xff] %vm850_vm2, %v5476_v3 }
 0x5f6   : > { %v5498_v48 = vpop.permute.xlu2 %5497 }
 0x5f7   : > { %5571 = vst.msk [vmem:[#allocation2 + $0x1a8] sm:$0x7f] %vm5554_vm11, %v5498_v48 }
 0x5f8   : > { %v5496_v42 = vpop.permute.xlu1 %5495 }
 0x5f9   : > { %5570 = vst.msk [vmem:[#allocation2 + $0x190] sm:$0xff] %vm850_vm2, %v5496_v42 }
 0x5fb   : > { %v5482_v62 = vpop.permute.xlu0 %5481 }
 0x5fc   : > { %5563 = vst.msk [vmem:[#allocation2 + $0xe8] sm:$0x7f] %vm5554_vm11, %v5482_v62 }
 0x5fe   : > { %v5502_v18 = vpop.permute.xlu2 %5501 }
 0x5ff   : > { %5573 = vst.msk [vmem:[#allocation2 + $0x1d8] sm:$0x7f] %vm5554_vm11, %v5502_v18 }
 0x600   : > { %v5500_v40 = vpop.permute.xlu1 %5499 }
 0x601   : > { %5572 = vst.msk [vmem:[#allocation2 + $0x1c0] sm:$0xff] %vm850_vm2, %v5500_v40 }
 0x603   : > { %v5488_v37 = vpop.permute.xlu0 %5487 }
 0x604   : > { %5566 = vst.msk [vmem:[#allocation2 + $0x130] sm:$0xff] %vm850_vm2, %v5488_v37 }
 0x606   : > { %v5508_v28 = vpop.permute.xlu2 %5507 }
 0x607   : > { %5576 = vst.msk [vmem:[#allocation2 + $0x220] sm:$0xff] %vm850_vm2, %v5508_v28 }
 0x608   : > { %v5506_v45 = vpop.permute.xlu1 %5505 }
 0x609   : > { %5575 = vst.msk [vmem:[#allocation2 + $0x208] sm:$0x7f] %vm5554_vm11, %v5506_v45 }
 0x60b   : > { %v5494_v9 = vpop.permute.xlu0 %5493 }
 0x60c   : > { %5569 = vst.msk [vmem:[#allocation2 + $0x178] sm:$0x7f] %vm5554_vm11, %v5494_v9 }
 0x60e   : > { %v5514_v15 = vpop.permute.xlu2 %5513 }
 0x60f   : > { %5579 = vst.msk [vmem:[#allocation2 + $0x268] sm:$0x7f] %vm5554_vm11, %v5514_v15 }
 0x610   : > { %v5512_v55 = vpop.permute.xlu1 %5511 }
 0x611   : > { %5578 = vst.msk [vmem:[#allocation2 + $0x250] sm:$0xff] %vm850_vm2, %v5512_v55 }
 0x613   : > { %v5758_v16 = vpop.permute.xlu0 %5757 }
 0x614   : > { %v5760_v29 = vadd.f32 %v5758_v16, %v5754_v56 }
 0x616   : > { %v5520_v61 = vpop.permute.xlu2 %5519  ;;  %5762 = vst.msk [vmem:[%s6785_s15] sm:$0x3] %vm5761_vm10, %v5760_v29 }
 0x617   : > { %5582 = vst.msk [vmem:[#allocation2 + $0x2b0] sm:$0xff] %vm850_vm2, %v5520_v61 }
 0x618   : > { %v5518_v5 = vpop.permute.xlu1 %5517 }
 0x619   : > { %5581 = vst.msk [vmem:[#allocation2 + $0x298] sm:$0x7f] %vm5554_vm11, %v5518_v5 }
 0x61b   : > { %v5504_v22 = vpop.permute.xlu0 %5503 }
 0x61c   : > { %5574 = vst.msk [vmem:[#allocation2 + $0x1f0] sm:$0xff] %vm850_vm2, %v5504_v22 }
 0x623   : > { %v5510_v49 = vpop.permute.xlu0 %5509 }
 0x624   : > { %5577 = vst.msk [vmem:[#allocation2 + $0x238] sm:$0x7f] %vm5554_vm11, %v5510_v49 }
 0x62b   : > { %v5516_v25 = vpop.permute.xlu0 %5515 }
 0x62c   : > { %5580 = vst.msk [vmem:[#allocation2 + $0x280] sm:$0xff] %vm850_vm2, %v5516_v25 }
 0x633   : > { %v5522_v43 = vpop.permute.xlu0 %5521 }
 0x634   : > { %5583 = vst.msk [vmem:[#allocation2 + $0x2c8] sm:$0x7f] %vm5554_vm11, %v5522_v43 }
 0x635 PF: > { %s18_s28 = sadd.s32 1, %s6702_s28   ;;  %s12813_s24 = smov %s6694_s26 }
 0x636   : > { %p15_p8 = scmp.ge.s32.totalorder %s18_s28, 18   ;;  %s12814_s25 = smov %s6698_s27 }
 0x637   : > { %s12815_s26 = smov %s12818_s29  ;;  %s12816_s27 = smov %s12822_s30 }
 0x638   :  { %17 = sbr.rel (!%p15_p8) target bundleno = 3 (0x3), region = 91 }

// kernel: convcell_forward.5
= control target key start
LH: loop header
LB: loop body
LE: loop exit
PB: predicated region body
PF: predicated region fallthrough
CT: control target
= control target key end

     0   :  { %s1594_s0 = inlined_call_operand.vmem [shape: f32[1024,128], index: 0, kind: input, shape index: {}]   ;;  %s1595_s1 = inlined_call_operand.vmem [shape: f32[1,128], index: 1, kind: input, shape index: {}]   ;;  %s1596_s2 = inlined_call_operand.vmem [shape: f32[1,128], index: 2, kind: input, shape index: {}]   ;;  %s1597_s3 = inlined_call_operand.vmem [shape: f32[1024,128], index: 3, kind: output, shape index: {}]  }
   0x1   :  { %v14_v0 = vld [vmem:[%s1594_s0] sm:$0xff]  ;;  %v15_v3 = vld [vmem:[%s1594_s0 + $0x8] sm:$0xff]  ;;  %v16_v6 = vld [vmem:[%s1594_s0 + $0x10] sm:$0xff] }
   0x2   :  { %v566_v1 = vld [vmem:[%s1595_s1] ss:$0 sm:$0xff]  ;;  %v17_v7 = vld [vmem:[%s1594_s0 + $0x18] sm:$0xff]  ;;  %v19_v12 = vld [vmem:[%s1594_s0 + $0x28] sm:$0xff] }
   0x3   :  { %v571_v2 = vld [vmem:[%s1596_s2] ss:$0 sm:$0xff]  ;;  %v146_v4 = vsub.f32 %v14_v0, %v566_v1  ;;  %v147_v5 = vsub.f32 %v15_v3, %v566_v1  ;;  %v148_v9 = vsub.f32 %v16_v6, %v566_v1  ;;  %v149_v10 = vsub.f32 %v17_v7, %v566_v1  ;;  %v20_v13 = vld [vmem:[%s1594_s0 + $0x30] sm:$0xff]  ;;  %v21_v14 = vld [vmem:[%s1594_s0 + $0x38] sm:$0xff] }
   0x4   :  { %v18_v8 = vld [vmem:[%s1594_s0 + $0x20] sm:$0xff]  ;;  %v151_v17 = vsub.f32 %v19_v12, %v566_v1  ;;  %v152_v18 = vsub.f32 %v20_v13, %v566_v1  ;;  %v23_v20 = vld [vmem:[%s1594_s0 + $0x48] sm:$0xff]  ;;  %v153_v23 = vsub.f32 %v21_v14, %v566_v1  ;;  %v24_v24 = vld [vmem:[%s1594_s0 + $0x50] sm:$0xff] }
   0x5   :  { %v150_v11 = vsub.f32 %v18_v8, %v566_v1  ;;  %v278_v15 = vmul.f32 %v571_v2, %v146_v4  ;;  %v279_v16 = vmul.f32 %v571_v2, %v147_v5  ;;  %v22_v19 = vld [vmem:[%s1594_s0 + $0x40] sm:$0xff]  ;;  %v280_v21 = vmul.f32 %v571_v2, %v148_v9  ;;  %v25_v27 = vld [vmem:[%s1594_s0 + $0x58] sm:$0xff]  ;;  %v27_v33 = vld [vmem:[%s1594_s0 + $0x68] sm:$0xff] }
   0x6   :  { %v281_v22 = vmul.f32 %v571_v2, %v149_v10  ;;  %v154_v26 = vsub.f32 %v22_v19, %v566_v1  ;;  %v283_v28 = vmul.f32 %v571_v2, %v151_v17  ;;  %v155_v29 = vsub.f32 %v23_v20, %v566_v1  ;;  %v26_v30 = vld [vmem:[%s1594_s0 + $0x60] sm:$0xff]  ;;  %v28_v36 = vld [vmem:[%s1594_s0 + $0x70] sm:$0xff]  ;;  %v29_v39 = vld [vmem:[%s1594_s0 + $0x78] sm:$0xff] }
   0x7   :  { %406 = vst [vmem:[%s1597_s3] sm:$0xff] %v278_v15  ;;  %v282_v25 = vmul.f32 %v571_v2, %v150_v11  ;;  %v284_v31 = vmul.f32 %v571_v2, %v152_v18  ;;  %v156_v32 = vsub.f32 %v24_v24, %v566_v1  ;;  %v285_v34 = vmul.f32 %v571_v2, %v153_v23  ;;  %v30_v42 = vld [vmem:[%s1594_s0 + $0x80] sm:$0xff]  ;;  %v31_v45 = vld [vmem:[%s1594_s0 + $0x88] sm:$0xff]  ;;  %v32_v48 = vld [vmem:[%s1594_s0 + $0x90] sm:$0xff] }
   0x8   :  { %407 = vst [vmem:[%s1597_s3 + $0x8] sm:$0xff] %v279_v16  ;;  %v157_v35 = vsub.f32 %v25_v27, %v566_v1  ;;  %v286_v37 = vmul.f32 %v571_v2, %v154_v26  ;;  %v158_v38 = vsub.f32 %v26_v30, %v566_v1  ;;  %v287_v40 = vmul.f32 %v571_v2, %v155_v29  ;;  %v33_v51 = vld [vmem:[%s1594_s0 + $0x98] sm:$0xff]  ;;  %v34_v54 = vld [vmem:[%s1594_s0 + $0xa0] sm:$0xff]  ;;  %v35_v57 = vld [vmem:[%s1594_s0 + $0xa8] sm:$0xff] }
   0x9   :  { %408 = vst [vmem:[%s1597_s3 + $0x10] sm:$0xff] %v280_v21  ;;  %v159_v41 = vsub.f32 %v27_v33, %v566_v1  ;;  %v288_v43 = vmul.f32 %v571_v2, %v156_v32  ;;  %v160_v44 = vsub.f32 %v28_v36, %v566_v1  ;;  %v161_v47 = vsub.f32 %v29_v39, %v566_v1  ;;  %v36_v60 = vld [vmem:[%s1594_s0 + $0xb0] sm:$0xff]  ;;  %v37_v63 = vld [vmem:[%s1594_s0 + $0xb8] sm:$0xff]  ;;  %v38_v4 = vld [vmem:[%s1594_s0 + $0xc0] sm:$0xff] }
   0xa   :  { %409 = vst [vmem:[%s1597_s3 + $0x18] sm:$0xff] %v281_v22  ;;  %v289_v46 = vmul.f32 %v571_v2, %v157_v35  ;;  %v290_v49 = vmul.f32 %v571_v2, %v158_v38  ;;  %v162_v50 = vsub.f32 %v30_v42, %v566_v1  ;;  %v163_v53 = vsub.f32 %v31_v45, %v566_v1  ;;  %v39_v7 = vld [vmem:[%s1594_s0 + $0xc8] sm:$0xff]  ;;  %v40_v10 = vld [vmem:[%s1594_s0 + $0xd0] sm:$0xff]  ;;  %v41_v13 = vld [vmem:[%s1594_s0 + $0xd8] sm:$0xff] }
   0xb   :  { %410 = vst [vmem:[%s1597_s3 + $0x20] sm:$0xff] %v282_v25  ;;  %v291_v52 = vmul.f32 %v571_v2, %v159_v41  ;;  %v292_v55 = vmul.f32 %v571_v2, %v160_v44  ;;  %v164_v56 = vsub.f32 %v32_v48, %v566_v1  ;;  %v293_v58 = vmul.f32 %v571_v2, %v161_v47  ;;  %v42_v16 = vld [vmem:[%s1594_s0 + $0xe0] sm:$0xff]  ;;  %v43_v19 = vld [vmem:[%s1594_s0 + $0xe8] sm:$0xff]  ;;  %v44_v22 = vld [vmem:[%s1594_s0 + $0xf0] sm:$0xff] }
   0xc   :  { %411 = vst [vmem:[%s1597_s3 + $0x28] sm:$0xff] %v283_v28  ;;  %v165_v59 = vsub.f32 %v33_v51, %v566_v1  ;;  %v294_v61 = vmul.f32 %v571_v2, %v162_v50  ;;  %v166_v62 = vsub.f32 %v34_v54, %v566_v1  ;;  %v295_v0 = vmul.f32 %v571_v2, %v163_v53  ;;  %v45_v25 = vld [vmem:[%s1594_s0 + $0xf8] sm:$0xff]  ;;  %v46_v28 = vld [vmem:[%s1594_s0 + $0x100] sm:$0xff] }
   0xd   :  { %412 = vst [vmem:[%s1597_s3 + $0x30] sm:$0xff] %v284_v31  ;;  %v167_v3 = vsub.f32 %v35_v57, %v566_v1  ;;  %v296_v5 = vmul.f32 %v571_v2, %v164_v56  ;;  %v168_v6 = vsub.f32 %v36_v60, %v566_v1  ;;  %v169_v9 = vsub.f32 %v37_v63, %v566_v1  ;;  %v47_v31 = vld [vmem:[%s1594_s0 + $0x108] sm:$0xff] }
   0xe   :  { %413 = vst [vmem:[%s1597_s3 + $0x38] sm:$0xff] %v285_v34  ;;  %v297_v8 = vmul.f32 %v571_v2, %v165_v59  ;;  %v298_v11 = vmul.f32 %v571_v2, %v166_v62  ;;  %v170_v12 = vsub.f32 %v38_v4, %v566_v1  ;;  %v171_v15 = vsub.f32 %v39_v7, %v566_v1  ;;  %v48_v34 = vld [vmem:[%s1594_s0 + $0x110] sm:$0xff] }
   0xf   :  { %414 = vst [vmem:[%s1597_s3 + $0x40] sm:$0xff] %v286_v37  ;;  %v299_v14 = vmul.f32 %v571_v2, %v167_v3  ;;  %v300_v17 = vmul.f32 %v571_v2, %v168_v6  ;;  %v172_v18 = vsub.f32 %v40_v10, %v566_v1  ;;  %v301_v20 = vmul.f32 %v571_v2, %v169_v9  ;;  %v49_v37 = vld [vmem:[%s1594_s0 + $0x118] sm:$0xff] }
  0x10   :  { %415 = vst [vmem:[%s1597_s3 + $0x48] sm:$0xff] %v287_v40  ;;  %v173_v21 = vsub.f32 %v41_v13, %v566_v1  ;;  %v302_v23 = vmul.f32 %v571_v2, %v170_v12  ;;  %v174_v24 = vsub.f32 %v42_v16, %v566_v1  ;;  %v303_v26 = vmul.f32 %v571_v2, %v171_v15  ;;  %v50_v40 = vld [vmem:[%s1594_s0 + $0x120] sm:$0xff] }
  0x11   :  { %416 = vst [vmem:[%s1597_s3 + $0x50] sm:$0xff] %v288_v43  ;;  %v175_v27 = vsub.f32 %v43_v19, %v566_v1  ;;  %v304_v29 = vmul.f32 %v571_v2, %v172_v18  ;;  %v176_v30 = vsub.f32 %v44_v22, %v566_v1  ;;  %v177_v33 = vsub.f32 %v45_v25, %v566_v1  ;;  %v51_v43 = vld [vmem:[%s1594_s0 + $0x128] sm:$0xff] }
  0x12   :  { %417 = vst [vmem:[%s1597_s3 + $0x58] sm:$0xff] %v289_v46  ;;  %v305_v32 = vmul.f32 %v571_v2, %v173_v21  ;;  %v306_v35 = vmul.f32 %v571_v2, %v174_v24  ;;  %v178_v36 = vsub.f32 %v46_v28, %v566_v1  ;;  %v179_v39 = vsub.f32 %v47_v31, %v566_v1  ;;  %v52_v46 = vld [vmem:[%s1594_s0 + $0x130] sm:$0xff] }
  0x13   :  { %418 = vst [vmem:[%s1597_s3 + $0x60] sm:$0xff] %v290_v49  ;;  %v307_v38 = vmul.f32 %v571_v2, %v175_v27  ;;  %v308_v41 = vmul.f32 %v571_v2, %v176_v30  ;;  %v180_v42 = vsub.f32 %v48_v34, %v566_v1  ;;  %v309_v44 = vmul.f32 %v571_v2, %v177_v33  ;;  %v53_v49 = vld [vmem:[%s1594_s0 + $0x138] sm:$0xff] }
  0x14   :  { %419 = vst [vmem:[%s1597_s3 + $0x68] sm:$0xff] %v291_v52  ;;  %v181_v45 = vsub.f32 %v49_v37, %v566_v1  ;;  %v310_v47 = vmul.f32 %v571_v2, %v178_v36  ;;  %v182_v48 = vsub.f32 %v50_v40, %v566_v1  ;;  %v311_v50 = vmul.f32 %v571_v2, %v179_v39  ;;  %v54_v52 = vld [vmem:[%s1594_s0 + $0x140] sm:$0xff] }
  0x15   :  { %420 = vst [vmem:[%s1597_s3 + $0x70] sm:$0xff] %v292_v55  ;;  %v183_v51 = vsub.f32 %v51_v43, %v566_v1  ;;  %v312_v53 = vmul.f32 %v571_v2, %v180_v42  ;;  %v184_v54 = vsub.f32 %v52_v46, %v566_v1  ;;  %v55_v55 = vld [vmem:[%s1594_s0 + $0x148] sm:$0xff]  ;;  %v185_v57 = vsub.f32 %v53_v49, %v566_v1 }
  0x16   :  { %421 = vst [vmem:[%s1597_s3 + $0x78] sm:$0xff] %v293_v58  ;;  %v313_v56 = vmul.f32 %v571_v2, %v181_v45  ;;  %v56_v58 = vld [vmem:[%s1594_s0 + $0x150] sm:$0xff]  ;;  %v314_v59 = vmul.f32 %v571_v2, %v182_v48  ;;  %v186_v60 = vsub.f32 %v54_v52, %v566_v1  ;;  %v187_v63 = vsub.f32 %v55_v55, %v566_v1 }
  0x17   :  { %422 = vst [vmem:[%s1597_s3 + $0x80] sm:$0xff] %v294_v61  ;;  %v57_v61 = vld [vmem:[%s1594_s0 + $0x158] sm:$0xff]  ;;  %v315_v62 = vmul.f32 %v571_v2, %v183_v51  ;;  %v316_v3 = vmul.f32 %v571_v2, %v184_v54  ;;  %v188_v4 = vsub.f32 %v56_v58, %v566_v1  ;;  %v317_v6 = vmul.f32 %v571_v2, %v185_v57 }
  0x18   :  { %423 = vst [vmem:[%s1597_s3 + $0x88] sm:$0xff] %v295_v0  ;;  %v58_v0 = vld [vmem:[%s1594_s0 + $0x160] sm:$0xff]  ;;  %v189_v7 = vsub.f32 %v57_v61, %v566_v1  ;;  %v318_v9 = vmul.f32 %v571_v2, %v186_v60  ;;  %v319_v12 = vmul.f32 %v571_v2, %v187_v63 }
  0x19   :  { %424 = vst [vmem:[%s1597_s3 + $0x90] sm:$0xff] %v296_v5  ;;  %v59_v5 = vld [vmem:[%s1594_s0 + $0x168] sm:$0xff]  ;;  %v190_v10 = vsub.f32 %v58_v0, %v566_v1  ;;  %v320_v15 = vmul.f32 %v571_v2, %v188_v4 }
  0x1a   :  { %425 = vst [vmem:[%s1597_s3 + $0x98] sm:$0xff] %v297_v8  ;;  %v60_v8 = vld [vmem:[%s1594_s0 + $0x170] sm:$0xff]  ;;  %v191_v13 = vsub.f32 %v59_v5, %v566_v1  ;;  %v321_v18 = vmul.f32 %v571_v2, %v189_v7 }
  0x1b   :  { %426 = vst [vmem:[%s1597_s3 + $0xa0] sm:$0xff] %v298_v11  ;;  %v61_v11 = vld [vmem:[%s1594_s0 + $0x178] sm:$0xff]  ;;  %v192_v16 = vsub.f32 %v60_v8, %v566_v1  ;;  %v322_v21 = vmul.f32 %v571_v2, %v190_v10 }
  0x1c   :  { %427 = vst [vmem:[%s1597_s3 + $0xa8] sm:$0xff] %v299_v14  ;;  %v62_v14 = vld [vmem:[%s1594_s0 + $0x180] sm:$0xff]  ;;  %v193_v19 = vsub.f32 %v61_v11, %v566_v1  ;;  %v323_v24 = vmul.f32 %v571_v2, %v191_v13 }
  0x1d   :  { %428 = vst [vmem:[%s1597_s3 + $0xb0] sm:$0xff] %v300_v17  ;;  %v63_v17 = vld [vmem:[%s1594_s0 + $0x188] sm:$0xff]  ;;  %v194_v22 = vsub.f32 %v62_v14, %v566_v1  ;;  %v324_v27 = vmul.f32 %v571_v2, %v192_v16 }
  0x1e   :  { %429 = vst [vmem:[%s1597_s3 + $0xb8] sm:$0xff] %v301_v20  ;;  %v64_v20 = vld [vmem:[%s1594_s0 + $0x190] sm:$0xff]  ;;  %v195_v25 = vsub.f32 %v63_v17, %v566_v1  ;;  %v325_v30 = vmul.f32 %v571_v2, %v193_v19 }
  0x1f   :  { %430 = vst [vmem:[%s1597_s3 + $0xc0] sm:$0xff] %v302_v23  ;;  %v65_v23 = vld [vmem:[%s1594_s0 + $0x198] sm:$0xff]  ;;  %v196_v28 = vsub.f32 %v64_v20, %v566_v1  ;;  %v326_v33 = vmul.f32 %v571_v2, %v194_v22 }
  0x20   :  { %431 = vst [vmem:[%s1597_s3 + $0xc8] sm:$0xff] %v303_v26  ;;  %v66_v26 = vld [vmem:[%s1594_s0 + $0x1a0] sm:$0xff]  ;;  %v197_v31 = vsub.f32 %v65_v23, %v566_v1  ;;  %v327_v36 = vmul.f32 %v571_v2, %v195_v25 }
  0x21   :  { %432 = vst [vmem:[%s1597_s3 + $0xd0] sm:$0xff] %v304_v29  ;;  %v67_v29 = vld [vmem:[%s1594_s0 + $0x1a8] sm:$0xff]  ;;  %v198_v34 = vsub.f32 %v66_v26, %v566_v1  ;;  %v328_v39 = vmul.f32 %v571_v2, %v196_v28 }
  0x22   :  { %433 = vst [vmem:[%s1597_s3 + $0xd8] sm:$0xff] %v305_v32  ;;  %v68_v32 = vld [vmem:[%s1594_s0 + $0x1b0] sm:$0xff]  ;;  %v199_v37 = vsub.f32 %v67_v29, %v566_v1  ;;  %v329_v42 = vmul.f32 %v571_v2, %v197_v31 }
  0x23   :  { %434 = vst [vmem:[%s1597_s3 + $0xe0] sm:$0xff] %v306_v35  ;;  %v69_v35 = vld [vmem:[%s1594_s0 + $0x1b8] sm:$0xff]  ;;  %v200_v40 = vsub.f32 %v68_v32, %v566_v1  ;;  %v330_v45 = vmul.f32 %v571_v2, %v198_v34 }
  0x24   :  { %435 = vst [vmem:[%s1597_s3 + $0xe8] sm:$0xff] %v307_v38  ;;  %v70_v38 = vld [vmem:[%s1594_s0 + $0x1c0] sm:$0xff]  ;;  %v201_v43 = vsub.f32 %v69_v35, %v566_v1  ;;  %v331_v48 = vmul.f32 %v571_v2, %v199_v37 }
  0x25   :  { %436 = vst [vmem:[%s1597_s3 + $0xf0] sm:$0xff] %v308_v41  ;;  %v71_v41 = vld [vmem:[%s1594_s0 + $0x1c8] sm:$0xff]  ;;  %v202_v46 = vsub.f32 %v70_v38, %v566_v1  ;;  %v332_v51 = vmul.f32 %v571_v2, %v200_v40 }
  0x26   :  { %437 = vst [vmem:[%s1597_s3 + $0xf8] sm:$0xff] %v309_v44  ;;  %v72_v44 = vld [vmem:[%s1594_s0 + $0x1d0] sm:$0xff]  ;;  %v203_v49 = vsub.f32 %v71_v41, %v566_v1  ;;  %v333_v54 = vmul.f32 %v571_v2, %v201_v43 }
  0x27   :  { %438 = vst [vmem:[%s1597_s3 + $0x100] sm:$0xff] %v310_v47  ;;  %v73_v47 = vld [vmem:[%s1594_s0 + $0x1d8] sm:$0xff]  ;;  %v204_v52 = vsub.f32 %v72_v44, %v566_v1  ;;  %v334_v57 = vmul.f32 %v571_v2, %v202_v46 }
  0x28   :  { %439 = vst [vmem:[%s1597_s3 + $0x108] sm:$0xff] %v311_v50  ;;  %v74_v50 = vld [vmem:[%s1594_s0 + $0x1e0] sm:$0xff]  ;;  %v205_v55 = vsub.f32 %v73_v47, %v566_v1  ;;  %v335_v60 = vmul.f32 %v571_v2, %v203_v49 }
  0x29   :  { %440 = vst [vmem:[%s1597_s3 + $0x110] sm:$0xff] %v312_v53  ;;  %v75_v53 = vld [vmem:[%s1594_s0 + $0x1e8] sm:$0xff]  ;;  %v206_v58 = vsub.f32 %v74_v50, %v566_v1  ;;  %v336_v63 = vmul.f32 %v571_v2, %v204_v52 }
  0x2a   :  { %441 = vst [vmem:[%s1597_s3 + $0x118] sm:$0xff] %v313_v56  ;;  %v76_v56 = vld [vmem:[%s1594_s0 + $0x1f0] sm:$0xff]  ;;  %v207_v61 = vsub.f32 %v75_v53, %v566_v1  ;;  %v337_v4 = vmul.f32 %v571_v2, %v205_v55 }
  0x2b   :  { %442 = vst [vmem:[%s1597_s3 + $0x120] sm:$0xff] %v314_v59  ;;  %v77_v59 = vld [vmem:[%s1594_s0 + $0x1f8] sm:$0xff]  ;;  %v208_v0 = vsub.f32 %v76_v56, %v566_v1  ;;  %v338_v7 = vmul.f32 %v571_v2, %v206_v58 }
  0x2c   :  { %443 = vst [vmem:[%s1597_s3 + $0x128] sm:$0xff] %v315_v62  ;;  %v78_v62 = vld [vmem:[%s1594_s0 + $0x200] sm:$0xff]  ;;  %v209_v5 = vsub.f32 %v77_v59, %v566_v1  ;;  %v339_v10 = vmul.f32 %v571_v2, %v207_v61 }
  0x2d   :  { %444 = vst [vmem:[%s1597_s3 + $0x130] sm:$0xff] %v316_v3  ;;  %v79_v3 = vld [vmem:[%s1594_s0 + $0x208] sm:$0xff]  ;;  %v210_v8 = vsub.f32 %v78_v62, %v566_v1  ;;  %v340_v13 = vmul.f32 %v571_v2, %v208_v0 }
  0x2e   :  { %445 = vst [vmem:[%s1597_s3 + $0x138] sm:$0xff] %v317_v6  ;;  %v80_v6 = vld [vmem:[%s1594_s0 + $0x210] sm:$0xff]  ;;  %v211_v11 = vsub.f32 %v79_v3, %v566_v1  ;;  %v341_v16 = vmul.f32 %v571_v2, %v209_v5 }
  0x2f   :  { %446 = vst [vmem:[%s1597_s3 + $0x140] sm:$0xff] %v318_v9  ;;  %v81_v9 = vld [vmem:[%s1594_s0 + $0x218] sm:$0xff]  ;;  %v212_v14 = vsub.f32 %v80_v6, %v566_v1  ;;  %v342_v19 = vmul.f32 %v571_v2, %v210_v8 }
  0x30   :  { %447 = vst [vmem:[%s1597_s3 + $0x148] sm:$0xff] %v319_v12  ;;  %v82_v12 = vld [vmem:[%s1594_s0 + $0x220] sm:$0xff]  ;;  %v213_v17 = vsub.f32 %v81_v9, %v566_v1  ;;  %v343_v22 = vmul.f32 %v571_v2, %v211_v11 }
  0x31   :  { %448 = vst [vmem:[%s1597_s3 + $0x150] sm:$0xff] %v320_v15  ;;  %v83_v15 = vld [vmem:[%s1594_s0 + $0x228] sm:$0xff]  ;;  %v214_v20 = vsub.f32 %v82_v12, %v566_v1  ;;  %v344_v25 = vmul.f32 %v571_v2, %v212_v14 }
  0x32   :  { %449 = vst [vmem:[%s1597_s3 + $0x158] sm:$0xff] %v321_v18  ;;  %v84_v18 = vld [vmem:[%s1594_s0 + $0x230] sm:$0xff]  ;;  %v215_v23 = vsub.f32 %v83_v15, %v566_v1  ;;  %v345_v28 = vmul.f32 %v571_v2, %v213_v17 }
  0x33   :  { %450 = vst [vmem:[%s1597_s3 + $0x160] sm:$0xff] %v322_v21  ;;  %v85_v21 = vld [vmem:[%s1594_s0 + $0x238] sm:$0xff]  ;;  %v216_v26 = vsub.f32 %v84_v18, %v566_v1  ;;  %v346_v31 = vmul.f32 %v571_v2, %v214_v20 }
  0x34   :  { %451 = vst [vmem:[%s1597_s3 + $0x168] sm:$0xff] %v323_v24  ;;  %v86_v24 = vld [vmem:[%s1594_s0 + $0x240] sm:$0xff]  ;;  %v217_v29 = vsub.f32 %v85_v21, %v566_v1  ;;  %v347_v34 = vmul.f32 %v571_v2, %v215_v23 }
  0x35   :  { %452 = vst [vmem:[%s1597_s3 + $0x170] sm:$0xff] %v324_v27  ;;  %v87_v27 = vld [vmem:[%s1594_s0 + $0x248] sm:$0xff]  ;;  %v218_v32 = vsub.f32 %v86_v24, %v566_v1  ;;  %v348_v37 = vmul.f32 %v571_v2, %v216_v26 }
  0x36   :  { %453 = vst [vmem:[%s1597_s3 + $0x178] sm:$0xff] %v325_v30  ;;  %v88_v30 = vld [vmem:[%s1594_s0 + $0x250] sm:$0xff]  ;;  %v219_v35 = vsub.f32 %v87_v27, %v566_v1  ;;  %v349_v40 = vmul.f32 %v571_v2, %v217_v29 }
  0x37   :  { %454 = vst [vmem:[%s1597_s3 + $0x180] sm:$0xff] %v326_v33  ;;  %v89_v33 = vld [vmem:[%s1594_s0 + $0x258] sm:$0xff]  ;;  %v220_v38 = vsub.f32 %v88_v30, %v566_v1  ;;  %v350_v43 = vmul.f32 %v571_v2, %v218_v32 }
  0x38   :  { %455 = vst [vmem:[%s1597_s3 + $0x188] sm:$0xff] %v327_v36  ;;  %v90_v36 = vld [vmem:[%s1594_s0 + $0x260] sm:$0xff]  ;;  %v221_v41 = vsub.f32 %v89_v33, %v566_v1  ;;  %v351_v46 = vmul.f32 %v571_v2, %v219_v35 }
  0x39   :  { %456 = vst [vmem:[%s1597_s3 + $0x190] sm:$0xff] %v328_v39  ;;  %v91_v39 = vld [vmem:[%s1594_s0 + $0x268] sm:$0xff]  ;;  %v222_v44 = vsub.f32 %v90_v36, %v566_v1  ;;  %v352_v49 = vmul.f32 %v571_v2, %v220_v38 }
  0x3a   :  { %457 = vst [vmem:[%s1597_s3 + $0x198] sm:$0xff] %v329_v42  ;;  %v92_v42 = vld [vmem:[%s1594_s0 + $0x270] sm:$0xff]  ;;  %v223_v47 = vsub.f32 %v91_v39, %v566_v1  ;;  %v353_v52 = vmul.f32 %v571_v2, %v221_v41 }
  0x3b   :  { %458 = vst [vmem:[%s1597_s3 + $0x1a0] sm:$0xff] %v330_v45  ;;  %v93_v45 = vld [vmem:[%s1594_s0 + $0x278] sm:$0xff]  ;;  %v224_v50 = vsub.f32 %v92_v42, %v566_v1  ;;  %v354_v55 = vmul.f32 %v571_v2, %v222_v44 }
  0x3c   :  { %459 = vst [vmem:[%s1597_s3 + $0x1a8] sm:$0xff] %v331_v48  ;;  %v94_v48 = vld [vmem:[%s1594_s0 + $0x280] sm:$0xff]  ;;  %v225_v53 = vsub.f32 %v93_v45, %v566_v1  ;;  %v355_v58 = vmul.f32 %v571_v2, %v223_v47 }
  0x3d   :  { %460 = vst [vmem:[%s1597_s3 + $0x1b0] sm:$0xff] %v332_v51  ;;  %v95_v51 = vld [vmem:[%s1594_s0 + $0x288] sm:$0xff]  ;;  %v226_v56 = vsub.f32 %v94_v48, %v566_v1  ;;  %v356_v61 = vmul.f32 %v571_v2, %v224_v50 }
  0x3e   :  { %461 = vst [vmem:[%s1597_s3 + $0x1b8] sm:$0xff] %v333_v54  ;;  %v96_v54 = vld [vmem:[%s1594_s0 + $0x290] sm:$0xff]  ;;  %v227_v59 = vsub.f32 %v95_v51, %v566_v1  ;;  %v357_v0 = vmul.f32 %v571_v2, %v225_v53 }
  0x3f   :  { %462 = vst [vmem:[%s1597_s3 + $0x1c0] sm:$0xff] %v334_v57  ;;  %v97_v57 = vld [vmem:[%s1594_s0 + $0x298] sm:$0xff]  ;;  %v228_v62 = vsub.f32 %v96_v54, %v566_v1  ;;  %v358_v5 = vmul.f32 %v571_v2, %v226_v56 }
  0x40   :  { %463 = vst [vmem:[%s1597_s3 + $0x1c8] sm:$0xff] %v335_v60  ;;  %v98_v60 = vld [vmem:[%s1594_s0 + $0x2a0] sm:$0xff]  ;;  %v229_v3 = vsub.f32 %v97_v57, %v566_v1  ;;  %v359_v8 = vmul.f32 %v571_v2, %v227_v59 }
  0x41   :  { %464 = vst [vmem:[%s1597_s3 + $0x1d0] sm:$0xff] %v336_v63  ;;  %v99_v63 = vld [vmem:[%s1594_s0 + $0x2a8] sm:$0xff]  ;;  %v230_v6 = vsub.f32 %v98_v60, %v566_v1  ;;  %v360_v11 = vmul.f32 %v571_v2, %v228_v62 }
  0x42   :  { %465 = vst [vmem:[%s1597_s3 + $0x1d8] sm:$0xff] %v337_v4  ;;  %v100_v4 = vld [vmem:[%s1594_s0 + $0x2b0] sm:$0xff]  ;;  %v231_v9 = vsub.f32 %v99_v63, %v566_v1  ;;  %v361_v14 = vmul.f32 %v571_v2, %v229_v3 }
  0x43   :  { %466 = vst [vmem:[%s1597_s3 + $0x1e0] sm:$0xff] %v338_v7  ;;  %v101_v7 = vld [vmem:[%s1594_s0 + $0x2b8] sm:$0xff]  ;;  %v232_v12 = vsub.f32 %v100_v4, %v566_v1  ;;  %v362_v17 = vmul.f32 %v571_v2, %v230_v6 }
  0x44   :  { %467 = vst [vmem:[%s1597_s3 + $0x1e8] sm:$0xff] %v339_v10  ;;  %v102_v10 = vld [vmem:[%s1594_s0 + $0x2c0] sm:$0xff]  ;;  %v233_v15 = vsub.f32 %v101_v7, %v566_v1  ;;  %v363_v20 = vmul.f32 %v571_v2, %v231_v9 }
  0x45   :  { %468 = vst [vmem:[%s1597_s3 + $0x1f0] sm:$0xff] %v340_v13  ;;  %v103_v13 = vld [vmem:[%s1594_s0 + $0x2c8] sm:$0xff]  ;;  %v234_v18 = vsub.f32 %v102_v10, %v566_v1  ;;  %v364_v23 = vmul.f32 %v571_v2, %v232_v12 }
  0x46   :  { %469 = vst [vmem:[%s1597_s3 + $0x1f8] sm:$0xff] %v341_v16  ;;  %v104_v16 = vld [vmem:[%s1594_s0 + $0x2d0] sm:$0xff]  ;;  %v235_v21 = vsub.f32 %v103_v13, %v566_v1  ;;  %v365_v26 = vmul.f32 %v571_v2, %v233_v15 }
  0x47   :  { %470 = vst [vmem:[%s1597_s3 + $0x200] sm:$0xff] %v342_v19  ;;  %v105_v19 = vld [vmem:[%s1594_s0 + $0x2d8] sm:$0xff]  ;;  %v236_v24 = vsub.f32 %v104_v16, %v566_v1  ;;  %v366_v29 = vmul.f32 %v571_v2, %v234_v18 }
  0x48   :  { %471 = vst [vmem:[%s1597_s3 + $0x208] sm:$0xff] %v343_v22  ;;  %v106_v22 = vld [vmem:[%s1594_s0 + $0x2e0] sm:$0xff]  ;;  %v237_v27 = vsub.f32 %v105_v19, %v566_v1  ;;  %v367_v32 = vmul.f32 %v571_v2, %v235_v21 }
  0x49   :  { %472 = vst [vmem:[%s1597_s3 + $0x210] sm:$0xff] %v344_v25  ;;  %v107_v25 = vld [vmem:[%s1594_s0 + $0x2e8] sm:$0xff]  ;;  %v238_v30 = vsub.f32 %v106_v22, %v566_v1  ;;  %v368_v35 = vmul.f32 %v571_v2, %v236_v24 }
  0x4a   :  { %473 = vst [vmem:[%s1597_s3 + $0x218] sm:$0xff] %v345_v28  ;;  %v108_v28 = vld [vmem:[%s1594_s0 + $0x2f0] sm:$0xff]  ;;  %v239_v33 = vsub.f32 %v107_v25, %v566_v1  ;;  %v369_v38 = vmul.f32 %v571_v2, %v237_v27 }
  0x4b   :  { %474 = vst [vmem:[%s1597_s3 + $0x220] sm:$0xff] %v346_v31  ;;  %v109_v31 = vld [vmem:[%s1594_s0 + $0x2f8] sm:$0xff]  ;;  %v240_v36 = vsub.f32 %v108_v28, %v566_v1  ;;  %v370_v41 = vmul.f32 %v571_v2, %v238_v30 }
  0x4c   :  { %475 = vst [vmem:[%s1597_s3 + $0x228] sm:$0xff] %v347_v34  ;;  %v110_v34 = vld [vmem:[%s1594_s0 + $0x300] sm:$0xff]  ;;  %v241_v39 = vsub.f32 %v109_v31, %v566_v1  ;;  %v371_v44 = vmul.f32 %v571_v2, %v239_v33 }
  0x4d   :  { %476 = vst [vmem:[%s1597_s3 + $0x230] sm:$0xff] %v348_v37  ;;  %v111_v37 = vld [vmem:[%s1594_s0 + $0x308] sm:$0xff]  ;;  %v242_v42 = vsub.f32 %v110_v34, %v566_v1  ;;  %v372_v47 = vmul.f32 %v571_v2, %v240_v36 }
  0x4e   :  { %477 = vst [vmem:[%s1597_s3 + $0x238] sm:$0xff] %v349_v40  ;;  %v112_v40 = vld [vmem:[%s1594_s0 + $0x310] sm:$0xff]  ;;  %v243_v45 = vsub.f32 %v111_v37, %v566_v1  ;;  %v373_v50 = vmul.f32 %v571_v2, %v241_v39 }
  0x4f   :  { %478 = vst [vmem:[%s1597_s3 + $0x240] sm:$0xff] %v350_v43  ;;  %v113_v43 = vld [vmem:[%s1594_s0 + $0x318] sm:$0xff]  ;;  %v244_v48 = vsub.f32 %v112_v40, %v566_v1  ;;  %v374_v53 = vmul.f32 %v571_v2, %v242_v42 }
  0x50   :  { %479 = vst [vmem:[%s1597_s3 + $0x248] sm:$0xff] %v351_v46  ;;  %v114_v46 = vld [vmem:[%s1594_s0 + $0x320] sm:$0xff]  ;;  %v245_v51 = vsub.f32 %v113_v43, %v566_v1  ;;  %v375_v56 = vmul.f32 %v571_v2, %v243_v45 }
  0x51   :  { %480 = vst [vmem:[%s1597_s3 + $0x250] sm:$0xff] %v352_v49  ;;  %v115_v49 = vld [vmem:[%s1594_s0 + $0x328] sm:$0xff]  ;;  %v246_v54 = vsub.f32 %v114_v46, %v566_v1  ;;  %v376_v59 = vmul.f32 %v571_v2, %v244_v48 }
  0x52   :  { %481 = vst [vmem:[%s1597_s3 + $0x258] sm:$0xff] %v353_v52  ;;  %v116_v52 = vld [vmem:[%s1594_s0 + $0x330] sm:$0xff]  ;;  %v247_v57 = vsub.f32 %v115_v49, %v566_v1  ;;  %v377_v62 = vmul.f32 %v571_v2, %v245_v51 }
  0x53   :  { %482 = vst [vmem:[%s1597_s3 + $0x260] sm:$0xff] %v354_v55  ;;  %v117_v55 = vld [vmem:[%s1594_s0 + $0x338] sm:$0xff]  ;;  %v248_v60 = vsub.f32 %v116_v52, %v566_v1  ;;  %v378_v3 = vmul.f32 %v571_v2, %v246_v54 }
  0x54   :  { %483 = vst [vmem:[%s1597_s3 + $0x268] sm:$0xff] %v355_v58  ;;  %v118_v58 = vld [vmem:[%s1594_s0 + $0x340] sm:$0xff]  ;;  %v249_v63 = vsub.f32 %v117_v55, %v566_v1  ;;  %v379_v6 = vmul.f32 %v571_v2, %v247_v57 }
  0x55   :  { %484 = vst [vmem:[%s1597_s3 + $0x270] sm:$0xff] %v356_v61  ;;  %v119_v61 = vld [vmem:[%s1594_s0 + $0x348] sm:$0xff]  ;;  %v250_v4 = vsub.f32 %v118_v58, %v566_v1  ;;  %v380_v9 = vmul.f32 %v571_v2, %v248_v60 }
  0x56   :  { %485 = vst [vmem:[%s1597_s3 + $0x278] sm:$0xff] %v357_v0  ;;  %v120_v0 = vld [vmem:[%s1594_s0 + $0x350] sm:$0xff]  ;;  %v251_v7 = vsub.f32 %v119_v61, %v566_v1  ;;  %v381_v12 = vmul.f32 %v571_v2, %v249_v63 }
  0x57   :  { %486 = vst [vmem:[%s1597_s3 + $0x280] sm:$0xff] %v358_v5  ;;  %v121_v5 = vld [vmem:[%s1594_s0 + $0x358] sm:$0xff]  ;;  %v252_v10 = vsub.f32 %v120_v0, %v566_v1  ;;  %v382_v15 = vmul.f32 %v571_v2, %v250_v4 }
  0x58   :  { %487 = vst [vmem:[%s1597_s3 + $0x288] sm:$0xff] %v359_v8  ;;  %v122_v8 = vld [vmem:[%s1594_s0 + $0x360] sm:$0xff]  ;;  %v253_v13 = vsub.f32 %v121_v5, %v566_v1  ;;  %v383_v18 = vmul.f32 %v571_v2, %v251_v7 }
  0x59   :  { %488 = vst [vmem:[%s1597_s3 + $0x290] sm:$0xff] %v360_v11  ;;  %v123_v11 = vld [vmem:[%s1594_s0 + $0x368] sm:$0xff]  ;;  %v254_v16 = vsub.f32 %v122_v8, %v566_v1  ;;  %v384_v21 = vmul.f32 %v571_v2, %v252_v10 }
  0x5a   :  { %489 = vst [vmem:[%s1597_s3 + $0x298] sm:$0xff] %v361_v14  ;;  %v124_v14 = vld [vmem:[%s1594_s0 + $0x370] sm:$0xff]  ;;  %v255_v19 = vsub.f32 %v123_v11, %v566_v1  ;;  %v385_v24 = vmul.f32 %v571_v2, %v253_v13 }
  0x5b   :  { %490 = vst [vmem:[%s1597_s3 + $0x2a0] sm:$0xff] %v362_v17  ;;  %v125_v17 = vld [vmem:[%s1594_s0 + $0x378] sm:$0xff]  ;;  %v256_v22 = vsub.f32 %v124_v14, %v566_v1  ;;  %v386_v27 = vmul.f32 %v571_v2, %v254_v16 }
  0x5c   :  { %491 = vst [vmem:[%s1597_s3 + $0x2a8] sm:$0xff] %v363_v20  ;;  %v126_v20 = vld [vmem:[%s1594_s0 + $0x380] sm:$0xff]  ;;  %v257_v25 = vsub.f32 %v125_v17, %v566_v1  ;;  %v387_v30 = vmul.f32 %v571_v2, %v255_v19 }
  0x5d   :  { %492 = vst [vmem:[%s1597_s3 + $0x2b0] sm:$0xff] %v364_v23  ;;  %v127_v23 = vld [vmem:[%s1594_s0 + $0x388] sm:$0xff]  ;;  %v258_v28 = vsub.f32 %v126_v20, %v566_v1  ;;  %v388_v33 = vmul.f32 %v571_v2, %v256_v22 }
  0x5e   :  { %493 = vst [vmem:[%s1597_s3 + $0x2b8] sm:$0xff] %v365_v26  ;;  %v128_v26 = vld [vmem:[%s1594_s0 + $0x390] sm:$0xff]  ;;  %v259_v31 = vsub.f32 %v127_v23, %v566_v1  ;;  %v389_v36 = vmul.f32 %v571_v2, %v257_v25 }
  0x5f   :  { %494 = vst [vmem:[%s1597_s3 + $0x2c0] sm:$0xff] %v366_v29  ;;  %v129_v29 = vld [vmem:[%s1594_s0 + $0x398] sm:$0xff]  ;;  %v260_v34 = vsub.f32 %v128_v26, %v566_v1  ;;  %v390_v39 = vmul.f32 %v571_v2, %v258_v28 }
  0x60   :  { %495 = vst [vmem:[%s1597_s3 + $0x2c8] sm:$0xff] %v367_v32  ;;  %v130_v32 = vld [vmem:[%s1594_s0 + $0x3a0] sm:$0xff]  ;;  %v261_v37 = vsub.f32 %v129_v29, %v566_v1  ;;  %v391_v42 = vmul.f32 %v571_v2, %v259_v31 }
  0x61   :  { %496 = vst [vmem:[%s1597_s3 + $0x2d0] sm:$0xff] %v368_v35  ;;  %v131_v35 = vld [vmem:[%s1594_s0 + $0x3a8] sm:$0xff]  ;;  %v262_v40 = vsub.f32 %v130_v32, %v566_v1  ;;  %v392_v45 = vmul.f32 %v571_v2, %v260_v34 }
  0x62   :  { %497 = vst [vmem:[%s1597_s3 + $0x2d8] sm:$0xff] %v369_v38  ;;  %v132_v38 = vld [vmem:[%s1594_s0 + $0x3b0] sm:$0xff]  ;;  %v263_v43 = vsub.f32 %v131_v35, %v566_v1  ;;  %v393_v48 = vmul.f32 %v571_v2, %v261_v37 }
  0x63   :  { %498 = vst [vmem:[%s1597_s3 + $0x2e0] sm:$0xff] %v370_v41  ;;  %v133_v41 = vld [vmem:[%s1594_s0 + $0x3b8] sm:$0xff]  ;;  %v264_v46 = vsub.f32 %v132_v38, %v566_v1  ;;  %v394_v51 = vmul.f32 %v571_v2, %v262_v40 }
  0x64   :  { %499 = vst [vmem:[%s1597_s3 + $0x2e8] sm:$0xff] %v371_v44  ;;  %v134_v44 = vld [vmem:[%s1594_s0 + $0x3c0] sm:$0xff]  ;;  %v265_v49 = vsub.f32 %v133_v41, %v566_v1  ;;  %v395_v54 = vmul.f32 %v571_v2, %v263_v43 }
  0x65   :  { %500 = vst [vmem:[%s1597_s3 + $0x2f0] sm:$0xff] %v372_v47  ;;  %v135_v47 = vld [vmem:[%s1594_s0 + $0x3c8] sm:$0xff]  ;;  %v266_v52 = vsub.f32 %v134_v44, %v566_v1  ;;  %v396_v57 = vmul.f32 %v571_v2, %v264_v46 }
  0x66   :  { %501 = vst [vmem:[%s1597_s3 + $0x2f8] sm:$0xff] %v373_v50  ;;  %v136_v50 = vld [vmem:[%s1594_s0 + $0x3d0] sm:$0xff]  ;;  %v267_v55 = vsub.f32 %v135_v47, %v566_v1  ;;  %v397_v60 = vmul.f32 %v571_v2, %v265_v49 }
  0x67   :  { %502 = vst [vmem:[%s1597_s3 + $0x300] sm:$0xff] %v374_v53  ;;  %v137_v53 = vld [vmem:[%s1594_s0 + $0x3d8] sm:$0xff]  ;;  %v268_v58 = vsub.f32 %v136_v50, %v566_v1  ;;  %v398_v63 = vmul.f32 %v571_v2, %v266_v52 }
  0x68   :  { %503 = vst [vmem:[%s1597_s3 + $0x308] sm:$0xff] %v375_v56  ;;  %v138_v56 = vld [vmem:[%s1594_s0 + $0x3e0] sm:$0xff]  ;;  %v269_v61 = vsub.f32 %v137_v53, %v566_v1  ;;  %v399_v4 = vmul.f32 %v571_v2, %v267_v55 }
  0x69   :  { %504 = vst [vmem:[%s1597_s3 + $0x310] sm:$0xff] %v376_v59  ;;  %v139_v59 = vld [vmem:[%s1594_s0 + $0x3e8] sm:$0xff]  ;;  %v270_v0 = vsub.f32 %v138_v56, %v566_v1 }
  0x6a   :  { %505 = vst [vmem:[%s1597_s3 + $0x318] sm:$0xff] %v377_v62  ;;  %v140_v62 = vld [vmem:[%s1594_s0 + $0x3f0] sm:$0xff]  ;;  %v271_v5 = vsub.f32 %v139_v59, %v566_v1  ;;  %v401_v8 = vmul.f32 %v571_v2, %v269_v61 }
  0x6b   :  { %506 = vst [vmem:[%s1597_s3 + $0x320] sm:$0xff] %v378_v3  ;;  %v141_v3 = vld [vmem:[%s1594_s0 + $0x3f8] sm:$0xff]  ;;  %v272_v7 = vsub.f32 %v140_v62, %v566_v1  ;;  %v402_v10 = vmul.f32 %v571_v2, %v270_v0 }
  0x6c   :  { %507 = vst [vmem:[%s1597_s3 + $0x328] sm:$0xff] %v379_v6  ;;  %v400_v6 = vmul.f32 %v571_v2, %v268_v58  ;;  %v403_v11 = vmul.f32 %v571_v2, %v271_v5 }
  0x6d   :  { %508 = vst [vmem:[%s1597_s3 + $0x330] sm:$0xff] %v380_v9  ;;  %v273_v9 = vsub.f32 %v141_v3, %v566_v1 }
  0x6e   :  { %509 = vst [vmem:[%s1597_s3 + $0x338] sm:$0xff] %v381_v12  ;;  %v404_v12 = vmul.f32 %v571_v2, %v272_v7 }
  0x6f   :  { %510 = vst [vmem:[%s1597_s3 + $0x340] sm:$0xff] %v382_v15  ;;  %v405_v1 = vmul.f32 %v571_v2, %v273_v9 }
  0x70   :  { %511 = vst [vmem:[%s1597_s3 + $0x348] sm:$0xff] %v383_v18 }
  0x71   :  { %512 = vst [vmem:[%s1597_s3 + $0x350] sm:$0xff] %v384_v21 }
  0x72   :  { %513 = vst [vmem:[%s1597_s3 + $0x358] sm:$0xff] %v385_v24 }
  0x73   :  { %514 = vst [vmem:[%s1597_s3 + $0x360] sm:$0xff] %v386_v27 }
  0x74   :  { %515 = vst [vmem:[%s1597_s3 + $0x368] sm:$0xff] %v387_v30 }
  0x75   :  { %516 = vst [vmem:[%s1597_s3 + $0x370] sm:$0xff] %v388_v33 }
  0x76   :  { %517 = vst [vmem:[%s1597_s3 + $0x378] sm:$0xff] %v389_v36 }
  0x77   :  { %518 = vst [vmem:[%s1597_s3 + $0x380] sm:$0xff] %v390_v39 }
  0x78   :  { %519 = vst [vmem:[%s1597_s3 + $0x388] sm:$0xff] %v391_v42 }
  0x79   :  { %520 = vst [vmem:[%s1597_s3 + $0x390] sm:$0xff] %v392_v45 }
  0x7a   :  { %521 = vst [vmem:[%s1597_s3 + $0x398] sm:$0xff] %v393_v48 }
  0x7b   :  { %522 = vst [vmem:[%s1597_s3 + $0x3a0] sm:$0xff] %v394_v51 }
  0x7c   :  { %523 = vst [vmem:[%s1597_s3 + $0x3a8] sm:$0xff] %v395_v54 }
  0x7d   :  { %524 = vst [vmem:[%s1597_s3 + $0x3b0] sm:$0xff] %v396_v57 }
  0x7e   :  { %525 = vst [vmem:[%s1597_s3 + $0x3b8] sm:$0xff] %v397_v60 }
  0x7f   :  { %526 = vst [vmem:[%s1597_s3 + $0x3c0] sm:$0xff] %v398_v63 }
  0x80   :  { %527 = vst [vmem:[%s1597_s3 + $0x3c8] sm:$0xff] %v399_v4 }
  0x81   :  { %528 = vst [vmem:[%s1597_s3 + $0x3d0] sm:$0xff] %v400_v6 }
  0x82   :  { %529 = vst [vmem:[%s1597_s3 + $0x3d8] sm:$0xff] %v401_v8 }
  0x83   :  { %530 = vst [vmem:[%s1597_s3 + $0x3e0] sm:$0xff] %v402_v10 }
  0x84   :  { %531 = vst [vmem:[%s1597_s3 + $0x3e8] sm:$0xff] %v403_v11 }
  0x85   :  { %532 = vst [vmem:[%s1597_s3 + $0x3f0] sm:$0xff] %v404_v12 }
  0x86   :  { %533 = vst [vmem:[%s1597_s3 + $0x3f8] sm:$0xff] %v405_v1 }

</bundles_post_ra>
